<compile_context>
chip_gen: v5e
topology: v5e:2x2
jax: 0.10.0
libtpu: 0.0.40
codegen_flags: <defaults>
</compile_context>

<pallas_src>
import functools  # noqa: F401  (kept for API parity; kernel derives its own sizes)

import jax
import jax.numpy as jnp
from jax import lax
from jax.experimental import pallas as pl
from jax.experimental.pallas import tpu as pltpu

F32 = jnp.float32
BF16 = jnp.bfloat16


def _unet_kernel(x_e_ref, x_o_ref, pos_ref,
                 e1w1, e1b1, e1w2, e1b2,
                 e2w1, e2b1, e2w2, e2b2,
                 upw, upb, d1w, d1b, dhw, dhb,
                 lg_e_ref, lg_o_ref, loss_ref):
    Mh = x_e_ref.shape[0]                 # Bb * H rows per stream in this block
    Bb = loss_ref.shape[0]
    H = Mh // Bb                          # half sequence length
    nc = loss_ref.shape[-1]

    seg = lax.broadcasted_iota(jnp.int32, (Mh, 1), 0) % H
    first = seg == 0                      # original position 0   (left  zero-pad)
    last = seg == H - 1                   # original position L-1 (right zero-pad)

    def shift_dn(t):                      # t[j-1]; wrapped rows masked by caller
        return pltpu.roll(t, 1, 0)

    def shift_up(t):                      # t[j+1]
        return pltpu.roll(t, Mh - 1, 0)

    def conv_full(a_e, a_o, wf_ref, b_ref):
        """Conv1d(k=3, padding=1) on the full-resolution signal whose even/odd
        streams are a_e / a_o (bf16, (Mh, Cin)).  wf = (Cin, 3*Cout) with the
        three taps [l-1 | l | l+1] stacked along the output axis.  f32 out."""
        w = wf_ref[...]
        c = w.shape[-1] // 3
        q_e = jnp.dot(a_e, w, preferred_element_type=F32)      # (Mh, 3*Cout)
        q_o = jnp.dot(a_o, w, preferred_element_type=F32)
        v_e = (jnp.where(first, 0.0, shift_dn(q_o[:, :c]))     # W[-1] . u[2j-1]
               + q_e[:, c:2 * c]                               # W[0]  . u[2j]
               + q_o[:, 2 * c:]                                # W[+1] . u[2j+1]
               + b_ref[...])
        v_o = (q_e[:, :c]                                      # W[-1] . u[2j]
               + q_o[:, c:2 * c]                               # W[0]  . u[2j+1]
               + jnp.where(last, 0.0, shift_up(q_e[:, 2 * c:]))  # W[+1] . u[2j+2]
               + b_ref[...])
        return v_e, v_o

    def conv_half(a, wf_ref, b_ref):
        """Same conv on the half-resolution (pooled) signal (one stream)."""
        w = wf_ref[...]
        c = w.shape[-1] // 3
        q = jnp.dot(a, w, preferred_element_type=F32)
        return (jnp.where(first, 0.0, shift_dn(q[:, :c]))
                + q[:, c:2 * c]
                + jnp.where(last, 0.0, shift_up(q[:, 2 * c:]))
                + b_ref[...])

    # ---------------- Encoder Block(300, 64) --------------------------------
    x_e = x_e_ref[...]                                          # (Mh, 300) bf16
    x_o = x_o_ref[...]
    h_e, h_o = conv_full(x_e, x_o, e1w1, e1b1)
    h_e = jnp.maximum(h_e, 0.0).astype(BF16)
    h_o = jnp.maximum(h_o, 0.0).astype(BF16)
    f1_e, f1_o = conv_full(h_e, h_o, e1w2, e1b2)                # skip feature, f32

    # ---------------- MaxPool1d(2): elementwise max of the two streams ------
    pooled = jnp.maximum(f1_e, f1_o).astype(BF16)               # (Mh, 64)
    f1_e = f1_e.astype(BF16)
    f1_o = f1_o.astype(BF16)

    # ---------------- Encoder Block(64, 128) (bottleneck; its pool is unused)
    h2 = jnp.maximum(conv_half(pooled, e2w1, e2b1), 0.0).astype(BF16)
    f2 = conv_half(h2, e2w2, e2b2).astype(BF16)                 # (Mh, 128)

    # ---------------- ConvTranspose1d(128 -> 64, k=2, s=2) ------------------
    # upw = [U0 | U1]: lanes 0:64 feed even positions, 64:128 feed odd ones.
    up = jnp.dot(f2, upw[...], preferred_element_type=F32) + upb[...]
    up_e = up[:, 0:64].astype(BF16)
    up_o = up[:, 64:128].astype(BF16)

    # ---------------- Decoder Block(128, 64): cat([up, skip]) on lanes ------
    c_e = jnp.concatenate([up_e, f1_e], axis=-1)                # (Mh, 128) bf16
    c_o = jnp.concatenate([up_o, f1_o], axis=-1)
    d_e, d_o = conv_full(c_e, c_o, d1w, d1b)
    d_e = jnp.maximum(d_e, 0.0).astype(BF16)
    d_o = jnp.maximum(d_o, 0.0).astype(BF16)

    # ---------------- Decoder conv2 with the 1x1 head folded in -------------
    lg_e, lg_o = conv_full(d_e, d_o, dhw, dhb)                  # (Mh, nc) f32
    lg_e_ref[...] = lg_e
    lg_o_ref[...] = lg_o

    # ---------------- CrossEntropy over the L positions per (example, slot) -
    lg_e3 = lg_e.reshape(Bb, H, nc)
    lg_o3 = lg_o.reshape(Bb, H, nc)
    pos3 = pos_ref[...]                                         # (Bb, 1, nc) int32
    j3 = lax.broadcasted_iota(jnp.int32, (Bb, H, nc), 1)
    picked3 = (jnp.sum(jnp.where(2 * j3 == pos3, lg_e3, 0.0), axis=1, keepdims=True)
               + jnp.sum(jnp.where(2 * j3 + 1 == pos3, lg_o3, 0.0), axis=1, keepdims=True))
    m3 = jnp.maximum(jnp.max(lg_e3, axis=1, keepdims=True),     # per-example max
                     jnp.max(lg_o3, axis=1, keepdims=True))
    se3 = (jnp.sum(jnp.exp(lg_e3 - m3), axis=1, keepdims=True)
           + jnp.sum(jnp.exp(lg_o3 - m3), axis=1, keepdims=True))
    loss_ref[...] = m3 + jnp.log(se3) - picked3                 # (Bb, 1, nc)


def _pick_block_batch(batch, half_len, target_rows=128):
    """Largest Bb dividing batch with Bb*H ~ target_rows and Bb*H % 8 == 0."""
    cand = max(1, min(batch, max(1, target_rows // max(half_len, 1))))
    for bb in range(cand, 0, -1):
        if batch % bb == 0 and (bb * half_len) % 8 == 0:
            return bb
    return batch


def wordembed_unet_forward(x_ncl, all_positions, params, *, block_batch=None):
    """Returns (total_loss, logits) matching WordEmbedUNetMultiQA.forward."""
    B, Cin, L = x_ncl.shape
    nc = params["dhb"].shape[-1]
    assert L % 2 == 0, "MaxPool1d(2) / ConvTranspose1d(2,2) round-trip needs even L"
    H = L // 2

    Bb = _pick_block_batch(B, H) if block_batch is None else block_batch
    assert B % Bb == 0 and (Bb * H) % 8 == 0
    Mh = Bb * H

    # Split every sequence into even/odd position streams (free host reshapes).
    x_l = jnp.transpose(x_ncl, (0, 2, 1)).reshape(B, H, 2, Cin)
    x_e = x_l[:, :, 0, :].reshape(B * H, Cin).astype(BF16)
    x_o = x_l[:, :, 1, :].reshape(B * H, Cin).astype(BF16)
    pos = all_positions.astype(jnp.int32).reshape(B, 1, nc)

    weight_order = ["e1w1", "e1b1", "e1w2", "e1b2",
                    "e2w1", "e2b1", "e2w2", "e2b2",
                    "upw", "upb", "d1w", "d1b", "dhw", "dhb"]
    weights = [params[k] for k in weight_order]

    def wspec(arr):
        nd = arr.ndim
        return pl.BlockSpec(arr.shape, lambda i, _nd=nd: (0,) * _nd)

    in_specs = ([pl.BlockSpec((Mh, Cin), lambda i: (i, 0)),
                 pl.BlockSpec((Mh, Cin), lambda i: (i, 0)),
                 pl.BlockSpec((Bb, 1, nc), lambda i: (i, 0, 0))]
                + [wspec(w) for w in weights])
    out_specs = [pl.BlockSpec((Mh, nc), lambda i: (i, 0)),
                 pl.BlockSpec((Mh, nc), lambda i: (i, 0)),
                 pl.BlockSpec((Bb, 1, nc), lambda i: (i, 0, 0))]
    out_shape = [jax.ShapeDtypeStruct((B * H, nc), F32),
                 jax.ShapeDtypeStruct((B * H, nc), F32),
                 jax.ShapeDtypeStruct((B, 1, nc), F32)]

    lg_e, lg_o, loss_bc = pl.pallas_call(
        _unet_kernel,
        out_shape=out_shape,
        grid_spec=pltpu.PrefetchScalarGridSpec(
            num_scalar_prefetch=0,
            grid=(B // Bb,),
            in_specs=in_specs,
            out_specs=out_specs),
        compiler_params=pltpu.CompilerParams(
            dimension_semantics=("parallel",)),
    )(x_e, x_o, pos, *weights)

    # Re-interleave the even/odd streams (free host reshape).
    logits = jnp.stack([lg_e.reshape(B, H, nc), lg_o.reshape(B, H, nc)],
                       axis=2).reshape(B, L, nc)
    # CrossEntropyLoss(reduction='mean') over all B * num_class (example, slot) pairs.
    total_loss = jnp.mean(loss_bc)
    return total_loss, logits


def init_params(key, enc_chs=(300, 64, 128), dec_chs=(128, 64), num_class=6):
    """Deterministic synthetic parameters, pre-converted to the kernel layout."""
    keys = iter(jax.random.split(key, 20))
    scale = 0.05

    def conv_w(out_ch, in_ch, k):
        # PyTorch Conv1d weight layout is (out, in, k).
        w = scale * jax.random.normal(next(keys), (out_ch, in_ch, k), F32)
        b = scale * jax.random.normal(next(keys), (out_ch,), F32)
        return w, b

    def taps(w):                       # (out, in, 3) -> (3, in, out), order l-1, l, l+1
        return jnp.transpose(w, (2, 1, 0))

    def fuse_out_taps(t):              # (3, in, out) -> (in, 3*out)
        return jnp.concatenate([t[0], t[1], t[2]], axis=1)

    def fuse_out(w):
        return fuse_out_taps(taps(w))

    p = {}
    w, b = conv_w(enc_chs[1], enc_chs[0], 3)      # encoder block1 conv1
    p["e1w1"] = fuse_out(w).astype(BF16)          # (300, 192)
    p["e1b1"] = b.reshape(1, -1)
    w, b = conv_w(enc_chs[1], enc_chs[1], 3)      # encoder block1 conv2
    p["e1w2"] = fuse_out(w).astype(BF16)          # (64, 192)
    p["e1b2"] = b.reshape(1, -1)
    w, b = conv_w(enc_chs[2], enc_chs[1], 3)      # encoder block2 conv1
    p["e2w1"] = fuse_out(w).astype(BF16)          # (64, 384)
    p["e2b1"] = b.reshape(1, -1)
    w, b = conv_w(enc_chs[2], enc_chs[2], 3)      # encoder block2 conv2
    p["e2w2"] = fuse_out(w).astype(BF16)          # (128, 384)
    p["e2b2"] = b.reshape(1, -1)

    # ConvTranspose1d(128, 64, 2, 2): PyTorch weight layout is (in, out, k).
    upw = scale * jax.random.normal(next(keys), (dec_chs[0], dec_chs[1], 2), F32)
    upb = scale * jax.random.normal(next(keys), (dec_chs[1],), F32)
    p["upw"] = jnp.concatenate([upw[:, :, 0], upw[:, :, 1]], axis=1).astype(BF16)  # (128, 128)
    p["upb"] = jnp.concatenate([upb, upb]).reshape(1, -1)                          # (1, 128)

    # Decoder Block(128, 64) conv1: in-channels ordered [upconv(64) | skip f1(64)].
    w, b = conv_w(dec_chs[1], dec_chs[0], 3)
    p["d1w"] = fuse_out(w).astype(BF16)           # (128, 192)
    p["d1b"] = b.reshape(1, -1)

    # Decoder conv2 (64->64) with the 1x1 head (64->num_class) folded in (exact:
    # the reference Block applies no nonlinearity after conv2).
    d2w, d2b = conv_w(dec_chs[1], dec_chs[1], 3)
    hw = scale * jax.random.normal(next(keys), (num_class, dec_chs[1], 1), F32)
    hb = scale * jax.random.normal(next(keys), (num_class,), F32)
    hmat = jnp.transpose(hw, (2, 1, 0))[0]        # (64, nc)
    dh3 = jnp.einsum("kio,oc->kic", taps(d2w), hmat)   # (3, 64, nc)
    p["dhw"] = fuse_out_taps(dh3).astype(BF16)    # (64, 3*nc)
    p["dhb"] = (d2b @ hmat + hb).reshape(1, -1)
    return p


if __name__ == "__main__":
    B, L = 32, 16
    enc_chs, dec_chs, num_class = (300, 64, 128), (128, 64), 6

    key = jax.random.PRNGKey(0)
    k_par, k_x, k_pos = jax.random.split(key, 3)
    params = init_params(k_par, enc_chs, dec_chs, num_class)

    # PyTorch-style NCL input for Conv1d; integer answer positions per class slot.
    x = jax.random.normal(k_x, (B, enc_chs[0], L), F32)
    all_positions = jax.random.randint(k_pos, (B, num_class), 0, L, jnp.int32)

    fwd = jax.jit(wordembed_unet_forward)
    total_loss, logits = fwd(x, all_positions, params)
    jax.block_until_ready((total_loss, logits))

    assert total_loss.shape == ()
    assert logits.shape == (B, L, num_class)
    assert bool(jnp.isfinite(total_loss))
    assert bool(jnp.all(jnp.isfinite(logits)))
    print("KERNEL_OK")
</pallas_src>

<mosaic_0001>
module attributes {stable_mosaic.version = 11 : i64} {
  func.func @_unet_kernel(%arg0: i32, %arg1: memref<128x300xbf16, #tpu.memory_space<vmem>>, %arg2: memref<128x300xbf16, #tpu.memory_space<vmem>>, %arg3: memref<16x1x6xi32, #tpu.memory_space<vmem>>, %arg4: memref<300x192xbf16, #tpu.memory_space<vmem>>, %arg5: memref<1x64xf32, #tpu.memory_space<vmem>>, %arg6: memref<64x192xbf16, #tpu.memory_space<vmem>>, %arg7: memref<1x64xf32, #tpu.memory_space<vmem>>, %arg8: memref<64x384xbf16, #tpu.memory_space<vmem>>, %arg9: memref<1x128xf32, #tpu.memory_space<vmem>>, %arg10: memref<128x384xbf16, #tpu.memory_space<vmem>>, %arg11: memref<1x128xf32, #tpu.memory_space<vmem>>, %arg12: memref<128x128xbf16, #tpu.memory_space<vmem>>, %arg13: memref<1x128xf32, #tpu.memory_space<vmem>>, %arg14: memref<128x192xbf16, #tpu.memory_space<vmem>>, %arg15: memref<1x64xf32, #tpu.memory_space<vmem>>, %arg16: memref<64x18xbf16, #tpu.memory_space<vmem>>, %arg17: memref<1x6xf32, #tpu.memory_space<vmem>>, %arg18: memref<128x6xf32, #tpu.memory_space<vmem>>, %arg19: memref<128x6xf32, #tpu.memory_space<vmem>>, %arg20: memref<16x1x6xf32, #tpu.memory_space<vmem>>) attributes {dimension_semantics = [#tpu.dimension_semantics<parallel>], iteration_bounds = array<i64: 2>, scalar_prefetch = 0 : i64, scratch_operands = 0 : i64, tpu.core_type = #tpu.core_type<tc>, window_params = [{transform_indices = @transform_0, window_bounds = array<i64: 128, 300>}, {transform_indices = @transform_1, window_bounds = array<i64: 128, 300>}, {transform_indices = @transform_2, window_bounds = array<i64: 16, 1, 6>}, {pipeline_mode = #tpu.pipeline_mode<synchronous>, transform_indices = @transform_3, window_bounds = array<i64: 300, 192>}, {pipeline_mode = #tpu.pipeline_mode<synchronous>, transform_indices = @transform_4, window_bounds = array<i64: 1, 64>}, {pipeline_mode = #tpu.pipeline_mode<synchronous>, transform_indices = @transform_5, window_bounds = array<i64: 64, 192>}, {pipeline_mode = #tpu.pipeline_mode<synchronous>, transform_indices = @transform_6, window_bounds = array<i64: 1, 64>}, {pipeline_mode = #tpu.pipeline_mode<synchronous>, transform_indices = @transform_7, window_bounds = array<i64: 64, 384>}, {pipeline_mode = #tpu.pipeline_mode<synchronous>, transform_indices = @transform_8, window_bounds = array<i64: 1, 128>}, {pipeline_mode = #tpu.pipeline_mode<synchronous>, transform_indices = @transform_9, window_bounds = array<i64: 128, 384>}, {pipeline_mode = #tpu.pipeline_mode<synchronous>, transform_indices = @transform_10, window_bounds = array<i64: 1, 128>}, {pipeline_mode = #tpu.pipeline_mode<synchronous>, transform_indices = @transform_11, window_bounds = array<i64: 128, 128>}, {pipeline_mode = #tpu.pipeline_mode<synchronous>, transform_indices = @transform_12, window_bounds = array<i64: 1, 128>}, {pipeline_mode = #tpu.pipeline_mode<synchronous>, transform_indices = @transform_13, window_bounds = array<i64: 128, 192>}, {pipeline_mode = #tpu.pipeline_mode<synchronous>, transform_indices = @transform_14, window_bounds = array<i64: 1, 64>}, {pipeline_mode = #tpu.pipeline_mode<synchronous>, transform_indices = @transform_15, window_bounds = array<i64: 64, 18>}, {pipeline_mode = #tpu.pipeline_mode<synchronous>, transform_indices = @transform_16, window_bounds = array<i64: 1, 6>}, {transform_indices = @transform_17, window_bounds = array<i64: 128, 6>}, {transform_indices = @transform_18, window_bounds = array<i64: 128, 6>}, {transform_indices = @transform_19, window_bounds = array<i64: 16, 1, 6>}]} {
    %0 = tpu.iota {dimensions = array<i32: 0>} : vector<128x1xi32>
    %c8_i32 = arith.constant 8 : i32
    %c0_i32 = arith.constant 0 : i32
    %1 = arith.cmpi eq, %c8_i32, %c0_i32 : i32
    %c1_i32 = arith.constant 1 : i32
    %2 = arith.select %1, %c1_i32, %c8_i32 : i32
    %3 = vector.broadcast %2 : i32 to vector<128x1xi32>
    %4 = arith.remsi %0, %3 : vector<128x1xi32>
    %c0_i32_0 = arith.constant 0 : i32
    %5 = vector.broadcast %c0_i32_0 : i32 to vector<128x1xi32>
    %6 = arith.cmpi ne, %4, %5 : vector<128x1xi32>
    %c0_i32_1 = arith.constant 0 : i32
    %7 = vector.broadcast %c0_i32_1 : i32 to vector<128x1xi32>
    %8 = arith.cmpi slt, %4, %7 : vector<128x1xi32>
    %c0_i32_2 = arith.constant 0 : i32
    %9 = arith.cmpi slt, %2, %c0_i32_2 : i32
    %10 = vector.broadcast %9 : i1 to vector<128x1xi1>
    %11 = vector.broadcast %10 : vector<128x1xi1> to vector<128x1xi1>
    %12 = arith.xori %8, %11 : vector<128x1xi1>
    %13 = arith.andi %12, %6 : vector<128x1xi1>
    %14 = vector.broadcast %2 : i32 to vector<128x1xi32>
    %15 = arith.addi %4, %14 : vector<128x1xi32>
    %16 = arith.select %13, %15, %4 : vector<128x1xi1>, vector<128x1xi32>
    %c0_i32_3 = arith.constant 0 : i32
    %17 = vector.broadcast %c0_i32_3 : i32 to vector<128x1xi32>
    %18 = arith.cmpi eq, %16, %17 : vector<128x1xi32>
    %c7_i32 = arith.constant 7 : i32
    %19 = vector.broadcast %c7_i32 : i32 to vector<128x1xi32>
    %20 = arith.cmpi eq, %16, %19 : vector<128x1xi32>
    %c0 = arith.constant 0 : index
    %c0_4 = arith.constant 0 : index
    %21 = vector.load %arg1[%c0, %c0_4] : memref<128x300xbf16, #tpu.memory_space<vmem>>, vector<128x300xbf16>
    %c0_5 = arith.constant 0 : index
    %c0_6 = arith.constant 0 : index
    %22 = vector.load %arg2[%c0_5, %c0_6] : memref<128x300xbf16, #tpu.memory_space<vmem>>, vector<128x300xbf16>
    %c0_7 = arith.constant 0 : index
    %c0_8 = arith.constant 0 : index
    %23 = vector.load %arg4[%c0_7, %c0_8] : memref<300x192xbf16, #tpu.memory_space<vmem>>, vector<300x192xbf16>
    %cst = arith.constant dense<0.000000e+00> : vector<128x192xf32>
    %24 = tpu.matmul %21, %23, %cst {dimension_numbers = #tpu.dot_dimension_numbers<[1], [0], [0], [1], [0, 0, 1, 1], [], []>} : vector<128x300xbf16>, vector<300x192xbf16>, vector<128x192xf32> -> vector<128x192xf32>
    %cst_9 = arith.constant dense<0.000000e+00> : vector<128x192xf32>
    %25 = tpu.matmul %22, %23, %cst_9 {dimension_numbers = #tpu.dot_dimension_numbers<[1], [0], [0], [1], [0, 0, 1, 1], [], []>} : vector<128x300xbf16>, vector<300x192xbf16>, vector<128x192xf32> -> vector<128x192xf32>
    %26 = vector.extract_strided_slice %25 {offsets = [0, 0], sizes = [128, 64], strides = [1, 1]} : vector<128x192xf32> to vector<128x64xf32>
    %c1_i32_10 = arith.constant 1 : i32
    %27 = tpu.dynamic_rotate %26 by %c1_i32_10 dim 0 : vector<128x64xf32>, i32 -> vector<128x64xf32>
    %cst_11 = arith.constant 0.000000e+00 : f32
    %28 = vector.shape_cast %18 : vector<128x1xi1> to vector<128x1xi1>
    %29 = vector.broadcast %28 : vector<128x1xi1> to vector<128x64xi1>
    %30 = vector.broadcast %cst_11 : f32 to vector<128x64xf32>
    %31 = arith.select %29, %30, %27 : vector<128x64xi1>, vector<128x64xf32>
    %32 = vector.extract_strided_slice %24 {offsets = [0, 64], sizes = [128, 64], strides = [1, 1]} : vector<128x192xf32> to vector<128x64xf32>
    %33 = arith.addf %31, %32 : vector<128x64xf32>
    %34 = vector.extract_strided_slice %25 {offsets = [0, 128], sizes = [128, 64], strides = [1, 1]} : vector<128x192xf32> to vector<128x64xf32>
    %35 = arith.addf %33, %34 : vector<128x64xf32>
    %c0_12 = arith.constant 0 : index
    %c0_13 = arith.constant 0 : index
    %36 = vector.load %arg5[%c0_12, %c0_13] : memref<1x64xf32, #tpu.memory_space<vmem>>, vector<1x64xf32>
    %37 = vector.broadcast %36 : vector<1x64xf32> to vector<128x64xf32>
    %38 = arith.addf %35, %37 : vector<128x64xf32>
    %39 = vector.extract_strided_slice %24 {offsets = [0, 0], sizes = [128, 64], strides = [1, 1]} : vector<128x192xf32> to vector<128x64xf32>
    %40 = vector.extract_strided_slice %25 {offsets = [0, 64], sizes = [128, 64], strides = [1, 1]} : vector<128x192xf32> to vector<128x64xf32>
    %41 = arith.addf %39, %40 : vector<128x64xf32>
    %42 = vector.extract_strided_slice %24 {offsets = [0, 128], sizes = [128, 64], strides = [1, 1]} : vector<128x192xf32> to vector<128x64xf32>
    %c127_i32 = arith.constant 127 : i32
    %43 = tpu.dynamic_rotate %42 by %c127_i32 dim 0 : vector<128x64xf32>, i32 -> vector<128x64xf32>
    %cst_14 = arith.constant 0.000000e+00 : f32
    %44 = vector.shape_cast %20 : vector<128x1xi1> to vector<128x1xi1>
    %45 = vector.broadcast %44 : vector<128x1xi1> to vector<128x64xi1>
    %46 = vector.broadcast %cst_14 : f32 to vector<128x64xf32>
    %47 = arith.select %45, %46, %43 : vector<128x64xi1>, vector<128x64xf32>
    %48 = arith.addf %41, %47 : vector<128x64xf32>
    %c0_15 = arith.constant 0 : index
    %c0_16 = arith.constant 0 : index
    %49 = vector.load %arg5[%c0_15, %c0_16] : memref<1x64xf32, #tpu.memory_space<vmem>>, vector<1x64xf32>
    %50 = vector.broadcast %49 : vector<1x64xf32> to vector<128x64xf32>
    %51 = arith.addf %48, %50 : vector<128x64xf32>
    %cst_17 = arith.constant 0.000000e+00 : f32
    %52 = vector.broadcast %cst_17 : f32 to vector<128x64xf32>
    %53 = arith.maximumf %38, %52 : vector<128x64xf32>
    %54 = arith.truncf %53 : vector<128x64xf32> to vector<128x64xbf16>
    %cst_18 = arith.constant 0.000000e+00 : f32
    %55 = vector.broadcast %cst_18 : f32 to vector<128x64xf32>
    %56 = arith.maximumf %51, %55 : vector<128x64xf32>
    %57 = arith.truncf %56 : vector<128x64xf32> to vector<128x64xbf16>
    %c0_19 = arith.constant 0 : index
    %c0_20 = arith.constant 0 : index
    %58 = vector.load %arg6[%c0_19, %c0_20] : memref<64x192xbf16, #tpu.memory_space<vmem>>, vector<64x192xbf16>
    %cst_21 = arith.constant dense<0.000000e+00> : vector<128x192xf32>
    %59 = tpu.matmul %54, %58, %cst_21 {dimension_numbers = #tpu.dot_dimension_numbers<[1], [0], [0], [1], [0, 0, 1, 1], [], []>} : vector<128x64xbf16>, vector<64x192xbf16>, vector<128x192xf32> -> vector<128x192xf32>
    %cst_22 = arith.constant dense<0.000000e+00> : vector<128x192xf32>
    %60 = tpu.matmul %57, %58, %cst_22 {dimension_numbers = #tpu.dot_dimension_numbers<[1], [0], [0], [1], [0, 0, 1, 1], [], []>} : vector<128x64xbf16>, vector<64x192xbf16>, vector<128x192xf32> -> vector<128x192xf32>
    %61 = vector.extract_strided_slice %60 {offsets = [0, 0], sizes = [128, 64], strides = [1, 1]} : vector<128x192xf32> to vector<128x64xf32>
    %c1_i32_23 = arith.constant 1 : i32
    %62 = tpu.dynamic_rotate %61 by %c1_i32_23 dim 0 : vector<128x64xf32>, i32 -> vector<128x64xf32>
    %cst_24 = arith.constant 0.000000e+00 : f32
    %63 = vector.shape_cast %18 : vector<128x1xi1> to vector<128x1xi1>
    %64 = vector.broadcast %63 : vector<128x1xi1> to vector<128x64xi1>
    %65 = vector.broadcast %cst_24 : f32 to vector<128x64xf32>
    %66 = arith.select %64, %65, %62 : vector<128x64xi1>, vector<128x64xf32>
    %67 = vector.extract_strided_slice %59 {offsets = [0, 64], sizes = [128, 64], strides = [1, 1]} : vector<128x192xf32> to vector<128x64xf32>
    %68 = arith.addf %66, %67 : vector<128x64xf32>
    %69 = vector.extract_strided_slice %60 {offsets = [0, 128], sizes = [128, 64], strides = [1, 1]} : vector<128x192xf32> to vector<128x64xf32>
    %70 = arith.addf %68, %69 : vector<128x64xf32>
    %c0_25 = arith.constant 0 : index
    %c0_26 = arith.constant 0 : index
    %71 = vector.load %arg7[%c0_25, %c0_26] : memref<1x64xf32, #tpu.memory_space<vmem>>, vector<1x64xf32>
    %72 = vector.broadcast %71 : vector<1x64xf32> to vector<128x64xf32>
    %73 = arith.addf %70, %72 : vector<128x64xf32>
    %74 = vector.extract_strided_slice %59 {offsets = [0, 0], sizes = [128, 64], strides = [1, 1]} : vector<128x192xf32> to vector<128x64xf32>
    %75 = vector.extract_strided_slice %60 {offsets = [0, 64], sizes = [128, 64], strides = [1, 1]} : vector<128x192xf32> to vector<128x64xf32>
    %76 = arith.addf %74, %75 : vector<128x64xf32>
    %77 = vector.extract_strided_slice %59 {offsets = [0, 128], sizes = [128, 64], strides = [1, 1]} : vector<128x192xf32> to vector<128x64xf32>
    %c127_i32_27 = arith.constant 127 : i32
    %78 = tpu.dynamic_rotate %77 by %c127_i32_27 dim 0 : vector<128x64xf32>, i32 -> vector<128x64xf32>
    %cst_28 = arith.constant 0.000000e+00 : f32
    %79 = vector.shape_cast %20 : vector<128x1xi1> to vector<128x1xi1>
    %80 = vector.broadcast %79 : vector<128x1xi1> to vector<128x64xi1>
    %81 = vector.broadcast %cst_28 : f32 to vector<128x64xf32>
    %82 = arith.select %80, %81, %78 : vector<128x64xi1>, vector<128x64xf32>
    %83 = arith.addf %76, %82 : vector<128x64xf32>
    %c0_29 = arith.constant 0 : index
    %c0_30 = arith.constant 0 : index
    %84 = vector.load %arg7[%c0_29, %c0_30] : memref<1x64xf32, #tpu.memory_space<vmem>>, vector<1x64xf32>
    %85 = vector.broadcast %84 : vector<1x64xf32> to vector<128x64xf32>
    %86 = arith.addf %83, %85 : vector<128x64xf32>
    %87 = arith.maximumf %73, %86 : vector<128x64xf32>
    %88 = arith.truncf %87 : vector<128x64xf32> to vector<128x64xbf16>
    %89 = arith.truncf %73 : vector<128x64xf32> to vector<128x64xbf16>
    %90 = arith.truncf %86 : vector<128x64xf32> to vector<128x64xbf16>
    %c0_31 = arith.constant 0 : index
    %c0_32 = arith.constant 0 : index
    %91 = vector.load %arg8[%c0_31, %c0_32] : memref<64x384xbf16, #tpu.memory_space<vmem>>, vector<64x384xbf16>
    %cst_33 = arith.constant dense<0.000000e+00> : vector<128x384xf32>
    %92 = tpu.matmul %88, %91, %cst_33 {dimension_numbers = #tpu.dot_dimension_numbers<[1], [0], [0], [1], [0, 0, 1, 1], [], []>} : vector<128x64xbf16>, vector<64x384xbf16>, vector<128x384xf32> -> vector<128x384xf32>
    %93 = vector.extract_strided_slice %92 {offsets = [0, 0], sizes = [128, 128], strides = [1, 1]} : vector<128x384xf32> to vector<128x128xf32>
    %c1_i32_34 = arith.constant 1 : i32
    %94 = tpu.dynamic_rotate %93 by %c1_i32_34 dim 0 : vector<128x128xf32>, i32 -> vector<128x128xf32>
    %cst_35 = arith.constant 0.000000e+00 : f32
    %95 = vector.shape_cast %18 : vector<128x1xi1> to vector<128x1xi1>
    %96 = vector.broadcast %95 : vector<128x1xi1> to vector<128x128xi1>
    %97 = vector.broadcast %cst_35 : f32 to vector<128x128xf32>
    %98 = arith.select %96, %97, %94 : vector<128x128xi1>, vector<128x128xf32>
    %99 = vector.extract_strided_slice %92 {offsets = [0, 128], sizes = [128, 128], strides = [1, 1]} : vector<128x384xf32> to vector<128x128xf32>
    %100 = arith.addf %98, %99 : vector<128x128xf32>
    %101 = vector.extract_strided_slice %92 {offsets = [0, 256], sizes = [128, 128], strides = [1, 1]} : vector<128x384xf32> to vector<128x128xf32>
    %c127_i32_36 = arith.constant 127 : i32
    %102 = tpu.dynamic_rotate %101 by %c127_i32_36 dim 0 : vector<128x128xf32>, i32 -> vector<128x128xf32>
    %cst_37 = arith.constant 0.000000e+00 : f32
    %103 = vector.shape_cast %20 : vector<128x1xi1> to vector<128x1xi1>
    %104 = vector.broadcast %103 : vector<128x1xi1> to vector<128x128xi1>
    %105 = vector.broadcast %cst_37 : f32 to vector<128x128xf32>
    %106 = arith.select %104, %105, %102 : vector<128x128xi1>, vector<128x128xf32>
    %107 = arith.addf %100, %106 : vector<128x128xf32>
    %c0_38 = arith.constant 0 : index
    %c0_39 = arith.constant 0 : index
    %108 = vector.load %arg9[%c0_38, %c0_39] : memref<1x128xf32, #tpu.memory_space<vmem>>, vector<1x128xf32>
    %109 = vector.broadcast %108 : vector<1x128xf32> to vector<128x128xf32>
    %110 = arith.addf %107, %109 : vector<128x128xf32>
    %cst_40 = arith.constant 0.000000e+00 : f32
    %111 = vector.broadcast %cst_40 : f32 to vector<128x128xf32>
    %112 = arith.maximumf %110, %111 : vector<128x128xf32>
    %113 = arith.truncf %112 : vector<128x128xf32> to vector<128x128xbf16>
    %c0_41 = arith.constant 0 : index
    %c0_42 = arith.constant 0 : index
    %114 = vector.load %arg10[%c0_41, %c0_42] : memref<128x384xbf16, #tpu.memory_space<vmem>>, vector<128x384xbf16>
    %cst_43 = arith.constant dense<0.000000e+00> : vector<128x384xf32>
    %115 = tpu.matmul %113, %114, %cst_43 {dimension_numbers = #tpu.dot_dimension_numbers<[1], [0], [0], [1], [0, 0, 1, 1], [], []>} : vector<128x128xbf16>, vector<128x384xbf16>, vector<128x384xf32> -> vector<128x384xf32>
    %116 = vector.extract_strided_slice %115 {offsets = [0, 0], sizes = [128, 128], strides = [1, 1]} : vector<128x384xf32> to vector<128x128xf32>
    %c1_i32_44 = arith.constant 1 : i32
    %117 = tpu.dynamic_rotate %116 by %c1_i32_44 dim 0 : vector<128x128xf32>, i32 -> vector<128x128xf32>
    %cst_45 = arith.constant 0.000000e+00 : f32
    %118 = vector.shape_cast %18 : vector<128x1xi1> to vector<128x1xi1>
    %119 = vector.broadcast %118 : vector<128x1xi1> to vector<128x128xi1>
    %120 = vector.broadcast %cst_45 : f32 to vector<128x128xf32>
    %121 = arith.select %119, %120, %117 : vector<128x128xi1>, vector<128x128xf32>
    %122 = vector.extract_strided_slice %115 {offsets = [0, 128], sizes = [128, 128], strides = [1, 1]} : vector<128x384xf32> to vector<128x128xf32>
    %123 = arith.addf %121, %122 : vector<128x128xf32>
    %124 = vector.extract_strided_slice %115 {offsets = [0, 256], sizes = [128, 128], strides = [1, 1]} : vector<128x384xf32> to vector<128x128xf32>
    %c127_i32_46 = arith.constant 127 : i32
    %125 = tpu.dynamic_rotate %124 by %c127_i32_46 dim 0 : vector<128x128xf32>, i32 -> vector<128x128xf32>
    %cst_47 = arith.constant 0.000000e+00 : f32
    %126 = vector.shape_cast %20 : vector<128x1xi1> to vector<128x1xi1>
    %127 = vector.broadcast %126 : vector<128x1xi1> to vector<128x128xi1>
    %128 = vector.broadcast %cst_47 : f32 to vector<128x128xf32>
    %129 = arith.select %127, %128, %125 : vector<128x128xi1>, vector<128x128xf32>
    %130 = arith.addf %123, %129 : vector<128x128xf32>
    %c0_48 = arith.constant 0 : index
    %c0_49 = arith.constant 0 : index
    %131 = vector.load %arg11[%c0_48, %c0_49] : memref<1x128xf32, #tpu.memory_space<vmem>>, vector<1x128xf32>
    %132 = vector.broadcast %131 : vector<1x128xf32> to vector<128x128xf32>
    %133 = arith.addf %130, %132 : vector<128x128xf32>
    %134 = arith.truncf %133 : vector<128x128xf32> to vector<128x128xbf16>
    %c0_50 = arith.constant 0 : index
    %c0_51 = arith.constant 0 : index
    %135 = vector.load %arg12[%c0_50, %c0_51] : memref<128x128xbf16, #tpu.memory_space<vmem>>, vector<128x128xbf16>
    %cst_52 = arith.constant dense<0.000000e+00> : vector<128x128xf32>
    %136 = tpu.matmul %134, %135, %cst_52 {dimension_numbers = #tpu.dot_dimension_numbers<[1], [0], [0], [1], [0, 0, 1, 1], [], []>} : vector<128x128xbf16>, vector<128x128xbf16>, vector<128x128xf32> -> vector<128x128xf32>
    %c0_53 = arith.constant 0 : index
    %c0_54 = arith.constant 0 : index
    %137 = vector.load %arg13[%c0_53, %c0_54] : memref<1x128xf32, #tpu.memory_space<vmem>>, vector<1x128xf32>
    %138 = vector.broadcast %137 : vector<1x128xf32> to vector<128x128xf32>
    %139 = arith.addf %136, %138 : vector<128x128xf32>
    %140 = vector.extract_strided_slice %139 {offsets = [0, 0], sizes = [128, 64], strides = [1, 1]} : vector<128x128xf32> to vector<128x64xf32>
    %141 = arith.truncf %140 : vector<128x64xf32> to vector<128x64xbf16>
    %142 = vector.extract_strided_slice %139 {offsets = [0, 64], sizes = [128, 64], strides = [1, 1]} : vector<128x128xf32> to vector<128x64xf32>
    %143 = arith.truncf %142 : vector<128x64xf32> to vector<128x64xbf16>
    %144 = tpu.concatenate %141, %89 in 1 : vector<128x64xbf16>, vector<128x64xbf16> -> vector<128x128xbf16>
    %145 = tpu.concatenate %143, %90 in 1 : vector<128x64xbf16>, vector<128x64xbf16> -> vector<128x128xbf16>
    %c0_55 = arith.constant 0 : index
    %c0_56 = arith.constant 0 : index
    %146 = vector.load %arg14[%c0_55, %c0_56] : memref<128x192xbf16, #tpu.memory_space<vmem>>, vector<128x192xbf16>
    %cst_57 = arith.constant dense<0.000000e+00> : vector<128x192xf32>
    %147 = tpu.matmul %144, %146, %cst_57 {dimension_numbers = #tpu.dot_dimension_numbers<[1], [0], [0], [1], [0, 0, 1, 1], [], []>} : vector<128x128xbf16>, vector<128x192xbf16>, vector<128x192xf32> -> vector<128x192xf32>
    %cst_58 = arith.constant dense<0.000000e+00> : vector<128x192xf32>
    %148 = tpu.matmul %145, %146, %cst_58 {dimension_numbers = #tpu.dot_dimension_numbers<[1], [0], [0], [1], [0, 0, 1, 1], [], []>} : vector<128x128xbf16>, vector<128x192xbf16>, vector<128x192xf32> -> vector<128x192xf32>
    %149 = vector.extract_strided_slice %148 {offsets = [0, 0], sizes = [128, 64], strides = [1, 1]} : vector<128x192xf32> to vector<128x64xf32>
    %c1_i32_59 = arith.constant 1 : i32
    %150 = tpu.dynamic_rotate %149 by %c1_i32_59 dim 0 : vector<128x64xf32>, i32 -> vector<128x64xf32>
    %cst_60 = arith.constant 0.000000e+00 : f32
    %151 = vector.shape_cast %18 : vector<128x1xi1> to vector<128x1xi1>
    %152 = vector.broadcast %151 : vector<128x1xi1> to vector<128x64xi1>
    %153 = vector.broadcast %cst_60 : f32 to vector<128x64xf32>
    %154 = arith.select %152, %153, %150 : vector<128x64xi1>, vector<128x64xf32>
    %155 = vector.extract_strided_slice %147 {offsets = [0, 64], sizes = [128, 64], strides = [1, 1]} : vector<128x192xf32> to vector<128x64xf32>
    %156 = arith.addf %154, %155 : vector<128x64xf32>
    %157 = vector.extract_strided_slice %148 {offsets = [0, 128], sizes = [128, 64], strides = [1, 1]} : vector<128x192xf32> to vector<128x64xf32>
    %158 = arith.addf %156, %157 : vector<128x64xf32>
    %c0_61 = arith.constant 0 : index
    %c0_62 = arith.constant 0 : index
    %159 = vector.load %arg15[%c0_61, %c0_62] : memref<1x64xf32, #tpu.memory_space<vmem>>, vector<1x64xf32>
    %160 = vector.broadcast %159 : vector<1x64xf32> to vector<128x64xf32>
    %161 = arith.addf %158, %160 : vector<128x64xf32>
    %162 = vector.extract_strided_slice %147 {offsets = [0, 0], sizes = [128, 64], strides = [1, 1]} : vector<128x192xf32> to vector<128x64xf32>
    %163 = vector.extract_strided_slice %148 {offsets = [0, 64], sizes = [128, 64], strides = [1, 1]} : vector<128x192xf32> to vector<128x64xf32>
    %164 = arith.addf %162, %163 : vector<128x64xf32>
    %165 = vector.extract_strided_slice %147 {offsets = [0, 128], sizes = [128, 64], strides = [1, 1]} : vector<128x192xf32> to vector<128x64xf32>
    %c127_i32_63 = arith.constant 127 : i32
    %166 = tpu.dynamic_rotate %165 by %c127_i32_63 dim 0 : vector<128x64xf32>, i32 -> vector<128x64xf32>
    %cst_64 = arith.constant 0.000000e+00 : f32
    %167 = vector.shape_cast %20 : vector<128x1xi1> to vector<128x1xi1>
    %168 = vector.broadcast %167 : vector<128x1xi1> to vector<128x64xi1>
    %169 = vector.broadcast %cst_64 : f32 to vector<128x64xf32>
    %170 = arith.select %168, %169, %166 : vector<128x64xi1>, vector<128x64xf32>
    %171 = arith.addf %164, %170 : vector<128x64xf32>
    %c0_65 = arith.constant 0 : index
    %c0_66 = arith.constant 0 : index
    %172 = vector.load %arg15[%c0_65, %c0_66] : memref<1x64xf32, #tpu.memory_space<vmem>>, vector<1x64xf32>
    %173 = vector.broadcast %172 : vector<1x64xf32> to vector<128x64xf32>
    %174 = arith.addf %171, %173 : vector<128x64xf32>
    %cst_67 = arith.constant 0.000000e+00 : f32
    %175 = vector.broadcast %cst_67 : f32 to vector<128x64xf32>
    %176 = arith.maximumf %161, %175 : vector<128x64xf32>
    %177 = arith.truncf %176 : vector<128x64xf32> to vector<128x64xbf16>
    %cst_68 = arith.constant 0.000000e+00 : f32
    %178 = vector.broadcast %cst_68 : f32 to vector<128x64xf32>
    %179 = arith.maximumf %174, %178 : vector<128x64xf32>
    %180 = arith.truncf %179 : vector<128x64xf32> to vector<128x64xbf16>
    %c0_69 = arith.constant 0 : index
    %c0_70 = arith.constant 0 : index
    %181 = vector.load %arg16[%c0_69, %c0_70] : memref<64x18xbf16, #tpu.memory_space<vmem>>, vector<64x18xbf16>
    %cst_71 = arith.constant dense<0.000000e+00> : vector<128x18xf32>
    %182 = tpu.matmul %177, %181, %cst_71 {dimension_numbers = #tpu.dot_dimension_numbers<[1], [0], [0], [1], [0, 0, 1, 1], [], []>} : vector<128x64xbf16>, vector<64x18xbf16>, vector<128x18xf32> -> vector<128x18xf32>
    %cst_72 = arith.constant dense<0.000000e+00> : vector<128x18xf32>
    %183 = tpu.matmul %180, %181, %cst_72 {dimension_numbers = #tpu.dot_dimension_numbers<[1], [0], [0], [1], [0, 0, 1, 1], [], []>} : vector<128x64xbf16>, vector<64x18xbf16>, vector<128x18xf32> -> vector<128x18xf32>
    %184 = vector.extract_strided_slice %183 {offsets = [0, 0], sizes = [128, 6], strides = [1, 1]} : vector<128x18xf32> to vector<128x6xf32>
    %c1_i32_73 = arith.constant 1 : i32
    %185 = tpu.dynamic_rotate %184 by %c1_i32_73 dim 0 : vector<128x6xf32>, i32 -> vector<128x6xf32>
    %cst_74 = arith.constant 0.000000e+00 : f32
    %186 = vector.shape_cast %18 : vector<128x1xi1> to vector<128x1xi1>
    %187 = vector.broadcast %186 : vector<128x1xi1> to vector<128x6xi1>
    %188 = vector.broadcast %cst_74 : f32 to vector<128x6xf32>
    %189 = arith.select %187, %188, %185 : vector<128x6xi1>, vector<128x6xf32>
    %190 = vector.extract_strided_slice %182 {offsets = [0, 6], sizes = [128, 6], strides = [1, 1]} : vector<128x18xf32> to vector<128x6xf32>
    %191 = arith.addf %189, %190 : vector<128x6xf32>
    %192 = vector.extract_strided_slice %183 {offsets = [0, 12], sizes = [128, 6], strides = [1, 1]} : vector<128x18xf32> to vector<128x6xf32>
    %193 = arith.addf %191, %192 : vector<128x6xf32>
    %c0_75 = arith.constant 0 : index
    %c0_76 = arith.constant 0 : index
    %194 = vector.load %arg17[%c0_75, %c0_76] : memref<1x6xf32, #tpu.memory_space<vmem>>, vector<1x6xf32>
    %195 = vector.broadcast %194 : vector<1x6xf32> to vector<128x6xf32>
    %196 = arith.addf %193, %195 : vector<128x6xf32>
    %197 = vector.extract_strided_slice %182 {offsets = [0, 0], sizes = [128, 6], strides = [1, 1]} : vector<128x18xf32> to vector<128x6xf32>
    %198 = vector.extract_strided_slice %183 {offsets = [0, 6], sizes = [128, 6], strides = [1, 1]} : vector<128x18xf32> to vector<128x6xf32>
    %199 = arith.addf %197, %198 : vector<128x6xf32>
    %200 = vector.extract_strided_slice %182 {offsets = [0, 12], sizes = [128, 6], strides = [1, 1]} : vector<128x18xf32> to vector<128x6xf32>
    %c127_i32_77 = arith.constant 127 : i32
    %201 = tpu.dynamic_rotate %200 by %c127_i32_77 dim 0 : vector<128x6xf32>, i32 -> vector<128x6xf32>
    %cst_78 = arith.constant 0.000000e+00 : f32
    %202 = vector.shape_cast %20 : vector<128x1xi1> to vector<128x1xi1>
    %203 = vector.broadcast %202 : vector<128x1xi1> to vector<128x6xi1>
    %204 = vector.broadcast %cst_78 : f32 to vector<128x6xf32>
    %205 = arith.select %203, %204, %201 : vector<128x6xi1>, vector<128x6xf32>
    %206 = arith.addf %199, %205 : vector<128x6xf32>
    %c0_79 = arith.constant 0 : index
    %c0_80 = arith.constant 0 : index
    %207 = vector.load %arg17[%c0_79, %c0_80] : memref<1x6xf32, #tpu.memory_space<vmem>>, vector<1x6xf32>
    %208 = vector.broadcast %207 : vector<1x6xf32> to vector<128x6xf32>
    %209 = arith.addf %206, %208 : vector<128x6xf32>
    %c0_81 = arith.constant 0 : index
    %c0_82 = arith.constant 0 : index
    %210 = vector.load %arg18[%c0_81, %c0_82] : memref<128x6xf32, #tpu.memory_space<vmem>>, vector<128x6xf32>
    tpu.vector_store %arg18[%c0_81, %c0_82], %196 {strides = array<i32>} : memref<128x6xf32, #tpu.memory_space<vmem>>, vector<128x6xf32>,
    %c0_83 = arith.constant 0 : index
    %c0_84 = arith.constant 0 : index
    %211 = vector.load %arg19[%c0_83, %c0_84] : memref<128x6xf32, #tpu.memory_space<vmem>>, vector<128x6xf32>
    tpu.vector_store %arg19[%c0_83, %c0_84], %209 {strides = array<i32>} : memref<128x6xf32, #tpu.memory_space<vmem>>, vector<128x6xf32>,
    %212 = vector.shape_cast %196 : vector<128x6xf32> to vector<16x8x6xf32>
    %213 = vector.shape_cast %209 : vector<128x6xf32> to vector<16x8x6xf32>
    %c0_85 = arith.constant 0 : index
    %c0_86 = arith.constant 0 : index
    %c0_87 = arith.constant 0 : index
    %214 = vector.load %arg3[%c0_85, %c0_86, %c0_87] : memref<16x1x6xi32, #tpu.memory_space<vmem>>, vector<16x1x6xi32>
    %215 = tpu.iota {dimensions = array<i32: 1>} : vector<16x8x6xi32>
    %c2_i32 = arith.constant 2 : i32
    %216 = vector.broadcast %c2_i32 : i32 to vector<16x8x6xi32>
    %217 = arith.muli %216, %215 : vector<16x8x6xi32>
    %218 = vector.broadcast %214 : vector<16x1x6xi32> to vector<16x8x6xi32>
    %219 = arith.cmpi eq, %217, %218 : vector<16x8x6xi32>
    %cst_88 = arith.constant 0.000000e+00 : f32
    %220 = vector.broadcast %cst_88 : f32 to vector<16x8x6xf32>
    %221 = arith.select %219, %212, %220 : vector<16x8x6xi1>, vector<16x8x6xf32>
    %cst_89 = arith.constant dense<0.000000e+00> : vector<16x6xf32>
    %222 = vector.multi_reduction <add>, %221, %cst_89 [1] : vector<16x8x6xf32> to vector<16x6xf32>
    %223 = vector.shape_cast %222 : vector<16x6xf32> to vector<16x1x6xf32>
    %c2_i32_90 = arith.constant 2 : i32
    %224 = vector.broadcast %c2_i32_90 : i32 to vector<16x8x6xi32>
    %225 = arith.muli %224, %215 : vector<16x8x6xi32>
    %c1_i32_91 = arith.constant 1 : i32
    %226 = vector.broadcast %c1_i32_91 : i32 to vector<16x8x6xi32>
    %227 = arith.addi %225, %226 : vector<16x8x6xi32>
    %228 = vector.broadcast %214 : vector<16x1x6xi32> to vector<16x8x6xi32>
    %229 = arith.cmpi eq, %227, %228 : vector<16x8x6xi32>
    %cst_92 = arith.constant 0.000000e+00 : f32
    %230 = vector.broadcast %cst_92 : f32 to vector<16x8x6xf32>
    %231 = arith.select %229, %213, %230 : vector<16x8x6xi1>, vector<16x8x6xf32>
    %cst_93 = arith.constant dense<0.000000e+00> : vector<16x6xf32>
    %232 = vector.multi_reduction <add>, %231, %cst_93 [1] : vector<16x8x6xf32> to vector<16x6xf32>
    %233 = vector.shape_cast %232 : vector<16x6xf32> to vector<16x1x6xf32>
    %234 = arith.addf %223, %233 : vector<16x1x6xf32>
    %cst_94 = arith.constant dense<0xFF800000> : vector<16x6xf32>
    %235 = vector.multi_reduction <maximumf>, %212, %cst_94 [1] : vector<16x8x6xf32> to vector<16x6xf32>
    %236 = vector.shape_cast %235 : vector<16x6xf32> to vector<16x1x6xf32>
    %cst_95 = arith.constant dense<0xFF800000> : vector<16x6xf32>
    %237 = vector.multi_reduction <maximumf>, %213, %cst_95 [1] : vector<16x8x6xf32> to vector<16x6xf32>
    %238 = vector.shape_cast %237 : vector<16x6xf32> to vector<16x1x6xf32>
    %239 = arith.maximumf %236, %238 : vector<16x1x6xf32>
    %240 = vector.broadcast %239 : vector<16x1x6xf32> to vector<16x8x6xf32>
    %241 = arith.subf %212, %240 : vector<16x8x6xf32>
    %242 = math.exp %241 : vector<16x8x6xf32>
    %cst_96 = arith.constant dense<0.000000e+00> : vector<16x6xf32>
    %243 = vector.multi_reduction <add>, %242, %cst_96 [1] : vector<16x8x6xf32> to vector<16x6xf32>
    %244 = vector.shape_cast %243 : vector<16x6xf32> to vector<16x1x6xf32>
    %245 = vector.broadcast %239 : vector<16x1x6xf32> to vector<16x8x6xf32>
    %246 = arith.subf %213, %245 : vector<16x8x6xf32>
    %247 = math.exp %246 : vector<16x8x6xf32>
    %cst_97 = arith.constant dense<0.000000e+00> : vector<16x6xf32>
    %248 = vector.multi_reduction <add>, %247, %cst_97 [1] : vector<16x8x6xf32> to vector<16x6xf32>
    %249 = vector.shape_cast %248 : vector<16x6xf32> to vector<16x1x6xf32>
    %250 = arith.addf %244, %249 : vector<16x1x6xf32>
    %251 = math.log %250 : vector<16x1x6xf32>
    %252 = arith.addf %239, %251 : vector<16x1x6xf32>
    %253 = arith.subf %252, %234 : vector<16x1x6xf32>
    %c0_98 = arith.constant 0 : index
    %c0_99 = arith.constant 0 : index
    %c0_100 = arith.constant 0 : index
    %254 = vector.load %arg20[%c0_98, %c0_99, %c0_100] : memref<16x1x6xf32, #tpu.memory_space<vmem>>, vector<16x1x6xf32>
    tpu.vector_store %arg20[%c0_98, %c0_99, %c0_100], %253 {strides = array<i32>} : memref<16x1x6xf32, #tpu.memory_space<vmem>>, vector<16x1x6xf32>,
    return
  }
  func.func @transform_0(%arg0: i32) -> (i32, i32) {
    %c0_i32 = arith.constant 0 : i32
    %c0_i32_0 = arith.constant 0 : i32
    return %arg0, %c0_i32 : i32, i32
  }
  func.func @transform_1(%arg0: i32) -> (i32, i32) {
    %c0_i32 = arith.constant 0 : i32
    %c0_i32_0 = arith.constant 0 : i32
    return %arg0, %c0_i32 : i32, i32
  }
  func.func @transform_2(%arg0: i32) -> (i32, i32, i32) {
    %c0_i32 = arith.constant 0 : i32
    %c0_i32_0 = arith.constant 0 : i32
    %c0_i32_1 = arith.constant 0 : i32
    return %arg0, %c0_i32, %c0_i32_0 : i32, i32, i32
  }
  func.func @transform_3(%arg0: i32) -> (i32, i32) {
    %c0_i32 = arith.constant 0 : i32
    %c0_i32_0 = arith.constant 0 : i32
    %c0_i32_1 = arith.constant 0 : i32
    return %c0_i32, %c0_i32_0 : i32, i32
  }
  func.func @transform_4(%arg0: i32) -> (i32, i32) {
    %c0_i32 = arith.constant 0 : i32
    %c0_i32_0 = arith.constant 0 : i32
    %c0_i32_1 = arith.constant 0 : i32
    return %c0_i32, %c0_i32_0 : i32, i32
  }
  func.func @transform_5(%arg0: i32) -> (i32, i32) {
    %c0_i32 = arith.constant 0 : i32
    %c0_i32_0 = arith.constant 0 : i32
    %c0_i32_1 = arith.constant 0 : i32
    return %c0_i32, %c0_i32_0 : i32, i32
  }
  func.func @transform_6(%arg0: i32) -> (i32, i32) {
    %c0_i32 = arith.constant 0 : i32
    %c0_i32_0 = arith.constant 0 : i32
    %c0_i32_1 = arith.constant 0 : i32
    return %c0_i32, %c0_i32_0 : i32, i32
  }
  func.func @transform_7(%arg0: i32) -> (i32, i32) {
    %c0_i32 = arith.constant 0 : i32
    %c0_i32_0 = arith.constant 0 : i32
    %c0_i32_1 = arith.constant 0 : i32
    return %c0_i32, %c0_i32_0 : i32, i32
  }
  func.func @transform_8(%arg0: i32) -> (i32, i32) {
    %c0_i32 = arith.constant 0 : i32
    %c0_i32_0 = arith.constant 0 : i32
    %c0_i32_1 = arith.constant 0 : i32
    return %c0_i32, %c0_i32_0 : i32, i32
  }
  func.func @transform_9(%arg0: i32) -> (i32, i32) {
    %c0_i32 = arith.constant 0 : i32
    %c0_i32_0 = arith.constant 0 : i32
    %c0_i32_1 = arith.constant 0 : i32
    return %c0_i32, %c0_i32_0 : i32, i32
  }
  func.func @transform_10(%arg0: i32) -> (i32, i32) {
    %c0_i32 = arith.constant 0 : i32
    %c0_i32_0 = arith.constant 0 : i32
    %c0_i32_1 = arith.constant 0 : i32
    return %c0_i32, %c0_i32_0 : i32, i32
  }
  func.func @transform_11(%arg0: i32) -> (i32, i32) {
    %c0_i32 = arith.constant 0 : i32
    %c0_i32_0 = arith.constant 0 : i32
    %c0_i32_1 = arith.constant 0 : i32
    return %c0_i32, %c0_i32_0 : i32, i32
  }
  func.func @transform_12(%arg0: i32) -> (i32, i32) {
    %c0_i32 = arith.constant 0 : i32
    %c0_i32_0 = arith.constant 0 : i32
    %c0_i32_1 = arith.constant 0 : i32
    return %c0_i32, %c0_i32_0 : i32, i32
  }
  func.func @transform_13(%arg0: i32) -> (i32, i32) {
    %c0_i32 = arith.constant 0 : i32
    %c0_i32_0 = arith.constant 0 : i32
    %c0_i32_1 = arith.constant 0 : i32
    return %c0_i32, %c0_i32_0 : i32, i32
  }
  func.func @transform_14(%arg0: i32) -> (i32, i32) {
    %c0_i32 = arith.constant 0 : i32
    %c0_i32_0 = arith.constant 0 : i32
    %c0_i32_1 = arith.constant 0 : i32
    return %c0_i32, %c0_i32_0 : i32, i32
  }
  func.func @transform_15(%arg0: i32) -> (i32, i32) {
    %c0_i32 = arith.constant 0 : i32
    %c0_i32_0 = arith.constant 0 : i32
    %c0_i32_1 = arith.constant 0 : i32
    return %c0_i32, %c0_i32_0 : i32, i32
  }
  func.func @transform_16(%arg0: i32) -> (i32, i32) {
    %c0_i32 = arith.constant 0 : i32
    %c0_i32_0 = arith.constant 0 : i32
    %c0_i32_1 = arith.constant 0 : i32
    return %c0_i32, %c0_i32_0 : i32, i32
  }
  func.func @transform_17(%arg0: i32) -> (i32, i32) {
    %c0_i32 = arith.constant 0 : i32
    %c0_i32_0 = arith.constant 0 : i32
    return %arg0, %c0_i32 : i32, i32
  }
  func.func @transform_18(%arg0: i32) -> (i32, i32) {
    %c0_i32 = arith.constant 0 : i32
    %c0_i32_0 = arith.constant 0 : i32
    return %arg0, %c0_i32 : i32, i32
  }
  func.func @transform_19(%arg0: i32) -> (i32, i32, i32) {
    %c0_i32 = arith.constant 0 : i32
    %c0_i32_0 = arith.constant 0 : i32
    %c0_i32_1 = arith.constant 0 : i32
    return %arg0, %c0_i32, %c0_i32_0 : i32, i32, i32
  }
}

</mosaic_0001>

<bundles_post_ra>
// kernel: wordembed_unet_forward.1
= control target key start
LH: loop header
LB: loop body
LE: loop exit
PB: predicated region body
PF: predicated region fallthrough
CT: control target
= control target key end

     0   :  { %s12943_s0 = inlined_call_operand.vmem [shape: bf16[256,300], index: 0, kind: input, shape index: {}]   ;;  %s12944_s1 = inlined_call_operand.vmem [shape: bf16[256,300], index: 1, kind: input, shape index: {}]   ;;  %s12945_s2 = inlined_call_operand.vmem [shape: s32[32,1,6], index: 2, kind: input, shape index: {}]   ;;  %s12946_s3 = inlined_call_operand.vmem [shape: bf16[300,192], index: 3, kind: input, shape index: {}]   ;;  %s12947_s4 = inlined_call_operand.vmem [shape: f32[1,64], index: 4, kind: input, shape index: {}]   ;;  %s12948_s5 = inlined_call_operand.vmem [shape: bf16[64,192], index: 5, kind: input, shape index: {}]   ;;  %s12949_s6 = inlined_call_operand.vmem [shape: f32[1,64], index: 6, kind: input, shape index: {}]   ;;  %s12950_s7 = inlined_call_operand.vmem [shape: bf16[64,384], index: 7, kind: input, shape index: {}]   ;;  %s12951_s8 = inlined_call_operand.vmem [shape: f32[1,128], index: 8, kind: input, shape index: {}]   ;;  %s12952_s9 = inlined_call_operand.vmem [shape: bf16[128,384], index: 9, kind: input, shape index: {}]   ;;  %s12953_s10 = inlined_call_operand.vmem [shape: f32[1,128], index: 10, kind: input, shape index: {}]   ;;  %s12954_s11 = inlined_call_operand.vmem [shape: bf16[128,128], index: 11, kind: input, shape index: {}]   ;;  %s12955_s12 = inlined_call_operand.vmem [shape: f32[1,128], index: 12, kind: input, shape index: {}]   ;;  %s12956_s13 = inlined_call_operand.vmem [shape: bf16[128,192], index: 13, kind: input, shape index: {}]   ;;  %s12957_s14 = inlined_call_operand.vmem [shape: f32[1,64], index: 14, kind: input, shape index: {}]   ;;  %s12958_s15 = inlined_call_operand.vmem [shape: bf16[64,18], index: 15, kind: input, shape index: {}]   ;;  %s12959_s16 = inlined_call_operand.vmem [shape: f32[1,6], index: 16, kind: input, shape index: {}]   ;;  %s12960_s17 = inlined_call_operand.vmem [shape: f32[256,6], index: 17, kind: output, shape index: {0}]   ;;  %s12961_s18 = inlined_call_operand.vmem [shape: f32[256,6], index: 18, kind: output, shape index: {1}]   ;;  %s12962_s19 = inlined_call_operand.vmem [shape: f32[32,1,6], index: 19, kind: output, shape index: {2}]  }
   0x1   :  { %13195 = sst [smem:[#allocation70_spill]] %s12943_s0  ;;  %s8059_s0 = smov 0  }
   0x2   :  { %13196 = sst [smem:[#allocation71_spill]] %s12944_s1 }
   0x3   :  { %13197 = sst [smem:[#allocation72_spill]] %s12945_s2 }
   0x4   :  { %13198 = sst [smem:[#allocation73_spill]] %s12946_s3 }
   0x5 LB: > { %s6885_s30 = sadd.s32 4294967295, %s7954_s0   ;;  %p6889_p0 = scmp.ge.s32.totalorder %s7954_s0, 1  ;;  %s7954_s0 = sphi %s8059_s0, %s30_s0  }
   0x6   : > { %p566_p1 = scmp.lt.s32.totalorder %s7954_s0, 3 }
   0x8   : > { %p567_p2 = pnand %p6889_p0, %p566_p1 }
   0xa   : > { %570 = sbr.rel (%p567_p2) target bundleno = 2497 (0x9c1), region = 88 }
   0xf   : > { %s13199_s1 = sld [smem:[#allocation73_spill]]  ;;  %vm1355_vm0 = vcmask 1045504   ;;  %s6890_s28 = sshll.u32 %s6885_s30, 4  ;;  %vm1330_vm1 = vcmask 359424   ;;  %vm13011_vm9 = vcmask 523264  }
  0x10   : > { %p643_p3 = scmp.lt.s32.totalorder %s6890_s28, 31  ;;  %s13200_s20 = sld [smem:[#allocation70_spill]] }
  0x11   : > { %s13210_s2 = sld [smem:[#allocation71_spill]]  ;;  %s7958_s29 = smov 116  }
  0x12   : > { %s13982_s28 = smov (!%p643_p3, %s6890_s28), 31  ;;  %s13853_s3 = sld [smem:[#allocation72_spill]] }
  0x13   : > { %s7815_s26 = smul.u32 12, %s13982_s28 }
  0x15   : > { %v7054_v0 = vld [vmem:[%s13199_s1 + $0x70] sm:$0xf]  ;;  %v7701_v1 = vld [vmem:[%s13199_s1 + $0x74] sm:$0xf0]  ;;  %v7142_v2 = vld [vmem:[%s13199_s1 + $0x120] sm:$0xf] }
  0x16   : > { %v8076_v3 = vor.u32 %v7701_v1, %v7054_v0  ;;  %v7723_v4 = vld [vmem:[%s13199_s1 + $0x124] sm:$0x30]  ;;  %v7046_v5 = vld [vmem:[%s13199_s1 + $0x60] sm:$0xf]  ;;  %v7134_v8 = vld [vmem:[%s13199_s1 + $0x110] sm:$0xf]  ;;  %s8144_s21 = scalar_lea.vmem %s13200_s20, %s7815_s26 }
  0x17   : > { %v7143_v6 = vor.u32 %v7723_v4, %v7142_v2  ;;  %v7699_v7 = vld [vmem:[%s13199_s1 + $0x64] sm:$0xf0]  ;;  %v7721_v9 = vld [vmem:[%s13199_s1 + $0x114] sm:$0xf0]  ;;  %v7038_v12 = vld [vmem:[%s13199_s1 + $0x50] sm:$0xf]  ;;  %s8566_s23 = scalar_lea.vmem %s13210_s2, %s7815_s26 }
  0x18   : > { %1362 = vmatpush.bf16.msra.mxu0 %v8076_v3  ;;  %7796 = vmatpush.bf16.msra.mxu1 %v8076_v3  ;;  %v8095_v10 = vor.u32 %v7699_v7, %v7046_v5  ;;  %v7697_v13 = vld [vmem:[%s13199_s1 + $0x54] sm:$0xf0]  ;;  %v8108_v14 = vor.u32 %v7721_v9, %v7134_v8  ;;  %v7126_v15 = vld [vmem:[%s13199_s1 + $0x100] sm:$0xf]  ;;  %v7719_v16 = vld [vmem:[%s13199_s1 + $0x104] sm:$0xf0]  ;;  %s11666_s27 = scalar_lea.vmem %s13853_s3, %s13982_s28 }
  0x19   : > { %7797 = vmatpush.bf16.msra.mxu3 %v8076_v3  ;;  %v8099_v11 = vsel %vm1355_vm0, %v7143_v6, 0  ;;  %v8120_v17 = vor.u32 %v7697_v13, %v7038_v12  ;;  %v7716_v18 = vld [vmem:[%s13199_s1 + $0xf4] sm:$0xf]  ;;  %v7120_v19 = vld [vmem:[%s13199_s1 + $0xf8] sm:$0xf0]  ;;  %v8137_v22 = vor.u32 %v7719_v16, %v7126_v15  ;;  %s7956_s26 = smov 64  }
  0x1a   : > { %7812 = vmatpush.bf16.msra.mxu2 %v8099_v11  ;;  %v7030_v20 = vld [vmem:[%s13199_s1 + $0x40] sm:$0xf]  ;;  %v7695_v21 = vld [vmem:[%s13199_s1 + $0x44] sm:$0xf0]  ;;  %v8146_v23 = vor.u32 %v7716_v18, %v7120_v19  ;;  %v7714_v24 = vld [vmem:[%s13199_s1 + $0xe4] sm:$0xf] }
  0x1b   : > { %v8153_v25 = vor.u32 %v7695_v21, %v7030_v20  ;;  %v6970_v26 = vld [vmem:[%s8144_s21 + $0x80] sm:$0xf]  ;;  %v7655_v27 = vld [vmem:[%s8144_s21 + $0x88] sm:$0xf0]  ;;  %v7022_v30 = vld [vmem:[%s13199_s1 + $0x30] sm:$0xf] }
  0x1c   : > { %1363 = vmatpush.bf16.msra.mxu0 %v8095_v10  ;;  %7798 = vmatpush.bf16.msra.mxu1 %v8095_v10  ;;  %v7112_v28 = vld [vmem:[%s13199_s1 + $0xe8] sm:$0xf0]  ;;  %v8161_v29 = vor.u32 %v7655_v27, %v6970_v26  ;;  %v7693_v31 = vld [vmem:[%s13199_s1 + $0x34] sm:$0xf0]  ;;  %v7712_v34 = vld [vmem:[%s13199_s1 + $0xd4] sm:$0xf] }
  0x1d   : > { %7799 = vmatpush.bf16.msra.mxu3 %v8095_v10  ;;  %v8171_v32 = vor.u32 %v7714_v24, %v7112_v28  ;;  %v8175_v33 = vor.u32 %v7693_v31, %v7022_v30  ;;  %v7104_v35 = vld [vmem:[%s13199_s1 + $0xd8] sm:$0xf0]  ;;  %v7014_v36 = vld [vmem:[%s13199_s1 + $0x20] sm:$0xf]  ;;  %v7691_v37 = vld [vmem:[%s13199_s1 + $0x24] sm:$0xf0] }
  0x1e   : > { %7813 = vmatpush.bf16.msra.mxu2 %v8108_v14  ;;  %v8193_v38 = vor.u32 %v7712_v34, %v7104_v35  ;;  %v8197_v39 = vor.u32 %v7691_v37, %v7014_v36  ;;  %v7710_v40 = vld [vmem:[%s13199_s1 + $0xc4] sm:$0xf]  ;;  %v7096_v41 = vld [vmem:[%s13199_s1 + $0xc8] sm:$0xf0]  ;;  %v7006_v42 = vld [vmem:[%s13199_s1 + $0x10] sm:$0xf] }
  0x1f   : > { %v7689_v43 = vld [vmem:[%s13199_s1 + $0x14] sm:$0xf0]  ;;  %v8213_v44 = vor.u32 %v7710_v40, %v7096_v41  ;;  %v6998_v46 = vld [vmem:[%s13199_s1] sm:$0xf]  ;;  %v7708_v47 = vld [vmem:[%s13199_s1 + $0xb4] sm:$0xf] }
  0x20   : > { %1364 = vmatpush.bf16.msra.mxu0 %v8120_v17  ;;  %7800 = vmatpush.bf16.msra.mxu1 %v8120_v17  ;;  %v8217_v45 = vor.u32 %v7689_v43, %v7006_v42  ;;  %v7088_v48 = vld [vmem:[%s13199_s1 + $0xb8] sm:$0xf0]  ;;  %v7687_v49 = vld [vmem:[%s13199_s1 + $0x4] sm:$0xf0]  ;;  %v6982_v50 = vld [vmem:[%s8144_s21 + $0x98] sm:$0xf] }
  0x21   : > { %7801 = vmatpush.bf16.msra.mxu3 %v8120_v17  ;;  %v7658_v51 = vld [vmem:[%s8144_s21 + $0xa0] sm:$0xf0]  ;;  %v7700_v52 = vld [vmem:[%s13199_s1 + $0x74] sm:$0xf]  ;;  %v7056_v53 = vld [vmem:[%s13199_s1 + $0x78] sm:$0xf0]  ;;  %v8249_v58 = vor.u32 %v7708_v47, %v7088_v48  ;;  %v8253_v59 = vor.u32 %v7687_v49, %v6998_v46 }
  0x22   : > { %7814 = vmatpush.bf16.msra.mxu2 %v8137_v22  ;;  %v6902_v54 = vld [vmem:[%s8144_s21] sm:$0xf]  ;;  %v7639_v55 = vld [vmem:[%s8144_s21 + $0x8] sm:$0xf0]  ;;  %v7118_v56 = vld [vmem:[%s13199_s1 + $0xf0] sm:$0xf]  ;;  %v8259_v63 = vor.u32 %v7658_v51, %v6982_v50  ;;  %v8268_v4 = vor.u32 %v7700_v52, %v7056_v53 }
  0x23   : > { %v7717_v57 = vld [vmem:[%s13199_s1 + $0xf4] sm:$0xf0]  ;;  %v7654_v61 = vld [vmem:[%s8144_s21 + $0x80] sm:$0xf0]  ;;  %v6986_v62 = vld [vmem:[%s8144_s21 + $0xa8] sm:$0xf]  ;;  %v8275_v7 = vor.u32 %v7639_v55, %v6902_v54 }
  0x24   : > { %1365 = vmatpush.bf16.msra.mxu0 %v8153_v25  ;;  %7802 = vmatpush.bf16.msra.mxu1 %v8153_v25  ;;  %v6962_v60 = vld [vmem:[%s8144_s21 + $0x78] sm:$0xf]  ;;  %v7660_v0 = vld [vmem:[%s8144_s21 + $0xb0] sm:$0xf0]  ;;  %v7706_v1 = vld [vmem:[%s13199_s1 + $0xa4] sm:$0xf]  ;;  %v8270_v5 = vor.u32 %v7717_v57, %v7118_v56 }
  0x25   : > { %7803 = vmatpush.bf16.msra.mxu3 %v8153_v25  ;;  %7153 = vmatmul.msk.bf16.vlgmr.msra.gmra.mxu2 %vm1330_vm1, %v8161_v29  ;;  %v7080_v2 = vld [vmem:[%s13199_s1 + $0xa8] sm:$0xf0]  ;;  %v7698_v6 = vld [vmem:[%s13199_s1 + $0x64] sm:$0xf]  ;;  %v8277_v8 = vor.u32 %v7654_v61, %v6962_v60  ;;  %v7110_v12 = vld [vmem:[%s13199_s1 + $0xe0] sm:$0xf]  ;;  %v8291_v15 = vor.u32 %v7660_v0, %v6986_v62 }
  0x26   : > { %1558 = vmatpush.bf16.msrb.mxu2 %v8146_v23  ;;  %v7048_v9 = vld [vmem:[%s13199_s1 + $0x68] sm:$0xf0]  ;;  %v7715_v13 = vld [vmem:[%s13199_s1 + $0xe4] sm:$0xf0]  ;;  %v8293_v16 = vor.u32 %v7706_v1, %v7080_v2  ;;  %v7696_v18 = vld [vmem:[%s13199_s1 + $0x54] sm:$0xf] }
  0x27   : > { %v7704_v19 = vld [vmem:[%s13199_s1 + $0x94] sm:$0xf]  ;;  %v7072_v20 = vld [vmem:[%s13199_s1 + $0x98] sm:$0xf0]  ;;  %v8309_v21 = vor.u32 %v7698_v6, %v7048_v9  ;;  %v8311_v24 = vor.u32 %v7715_v13, %v7110_v12  ;;  %v7102_v27 = vld [vmem:[%s13199_s1 + $0xd0] sm:$0xf] }
  0x28   : > { %1366 = vmatpush.bf16.msra.mxu0 %v8175_v33  ;;  %7804 = vmatpush.bf16.msra.mxu1 %v8175_v33  ;;  %v7040_v26 = vld [vmem:[%s13199_s1 + $0x58] sm:$0xf0]  ;;  %v7713_v28 = vld [vmem:[%s13199_s1 + $0xd4] sm:$0xf0]  ;;  %v8326_v30 = vor.u32 %v7704_v19, %v7072_v20  ;;  %v7702_v31 = vld [vmem:[%s13199_s1 + $0x84] sm:$0xf] }
  0x29   : > { %7805 = vmatpush.bf16.msra.mxu3 %v8175_v33  ;;  %v7064_v34 = vld [vmem:[%s13199_s1 + $0x88] sm:$0xf0]  ;;  %v8337_v35 = vor.u32 %v7696_v18, %v7040_v26  ;;  %v8339_v36 = vor.u32 %v7713_v28, %v7102_v27  ;;  %v7694_v37 = vld [vmem:[%s13199_s1 + $0x44] sm:$0xf]  ;;  %v7094_v41 = vld [vmem:[%s13199_s1 + $0xc0] sm:$0xf] }
  0x2a   : > { %1559 = vmatpush.bf16.msrb.mxu2 %v8171_v32  ;;  %v7032_v40 = vld [vmem:[%s13199_s1 + $0x48] sm:$0xf0]  ;;  %v7711_v42 = vld [vmem:[%s13199_s1 + $0xc4] sm:$0xf0]  ;;  %v8354_v43 = vor.u32 %v7702_v31, %v7064_v34  ;;  %v6994_v46 = vld [vmem:[%s8144_s21 + $0xb0] sm:$0xf] }
  0x2b   : > { %v8360_v47 = vor.u32 %v7694_v37, %v7032_v40  ;;  %v8362_v48 = vor.u32 %v7711_v42, %v7094_v41  ;;  %v7661_v49 = vld [vmem:[%s8144_s21 + $0xb8] sm:$0xf0]  ;;  %v7692_v50 = vld [vmem:[%s13199_s1 + $0x34] sm:$0xf]  ;;  %v6914_v52 = vld [vmem:[%s8144_s21 + $0x18] sm:$0xf] }
  0x2c   : > { %1367 = vmatpush.bf16.msra.mxu0 %v8197_v39  ;;  %7806 = vmatpush.bf16.msra.mxu1 %v8197_v39  ;;  %v7024_v51 = vld [vmem:[%s13199_s1 + $0x38] sm:$0xf0]  ;;  %v7086_v53 = vld [vmem:[%s13199_s1 + $0xb0] sm:$0xf]  ;;  %v7709_v54 = vld [vmem:[%s13199_s1 + $0xb4] sm:$0xf0]  ;;  %v8382_v60 = vor.u32 %v7661_v49, %v6994_v46 }
  0x2d   : > { %7807 = vmatpush.bf16.msra.mxu3 %v8197_v39  ;;  %v7642_v55 = vld [vmem:[%s8144_s21 + $0x20] sm:$0xf0]  ;;  %v6974_v56 = vld [vmem:[%s8144_s21 + $0x90] sm:$0xf]  ;;  %v7657_v57 = vld [vmem:[%s8144_s21 + $0x98] sm:$0xf0]  ;;  %v8388_v61 = vor.u32 %v7692_v50, %v7024_v51  ;;  %v7087_v62 = vor.u32 %v7709_v54, %v7086_v53 }
  0x2e   : > { %1560 = vmatpush.bf16.msrb.mxu2 %v8193_v38  ;;  %v7690_v0 = vld [vmem:[%s13199_s1 + $0x24] sm:$0xf]  ;;  %v6915_v1 = vor.u32 %v7642_v55, %v6914_v52  ;;  %v8393_v2 = vor.u32 %v7657_v57, %v6974_v56  ;;  %v7078_v6 = vld [vmem:[%s13199_s1 + $0xa0] sm:$0xf]  ;;  %v7707_v9 = vld [vmem:[%s13199_s1 + $0xa4] sm:$0xf0] }
  0x2f   : > { %v7079_v13 = vor.u32 %v7707_v9, %v7078_v6  ;;  %v7688_v18 = vld [vmem:[%s13199_s1 + $0x14] sm:$0xf]  ;;  %v7008_v19 = vld [vmem:[%s13199_s1 + $0x18] sm:$0xf0]  ;;  %v7070_v20 = vld [vmem:[%s13199_s1 + $0x90] sm:$0xf] }
  0x30   : > { %1368 = vmatpush.bf16.msra.mxu0 %v8217_v45  ;;  %7808 = vmatpush.bf16.msra.mxu1 %v8217_v45  ;;  %v7705_v26 = vld [vmem:[%s13199_s1 + $0x94] sm:$0xf0]  ;;  %v8424_v27 = vor.u32 %v7688_v18, %v7008_v19  ;;  %v7686_v31 = vld [vmem:[%s13199_s1 + $0x4] sm:$0xf]  ;;  %v7000_v34 = vld [vmem:[%s13199_s1 + $0x8] sm:$0xf0] }
  0x31   : > { %7809 = vmatpush.bf16.msra.mxu3 %v8217_v45  ;;  %v7071_v28 = vor.u32 %v7705_v26, %v7070_v20  ;;  %v7703_v37 = vld [vmem:[%s13199_s1 + $0x84] sm:$0xf0]  ;;  %v8440_v40 = vor.u32 %v7686_v31, %v7000_v34  ;;  %v7638_v42 = vld [vmem:[%s8144_s21 + $0x4] sm:$0xf]  ;;  %v6904_v46 = vld [vmem:[%s8144_s21 + $0xc] sm:$0xf0] }
  0x32   : > { %1561 = vmatpush.bf16.msrb.mxu2 %v8213_v44  ;;  %v6926_v49 = vld [vmem:[%s8144_s21 + $0x30] sm:$0xf]  ;;  %v7645_v50 = vld [vmem:[%s8144_s21 + $0x38] sm:$0xf0]  ;;  %v6907_v51 = vor.u32 %v7638_v42, %v6904_v46  ;;  %v6916_v53 = vld [vmem:[%s8144_s21 + $0x24] sm:$0xf0] }
  0x33   : > { %v7641_v52 = vld [vmem:[%s8144_s21 + $0x1c] sm:$0xf]  ;;  %v6938_v54 = vld [vmem:[%s8144_s21 + $0x48] sm:$0xf]  ;;  %v7656_v19 = vld [vmem:[%s8144_s21 + $0x94] sm:$0xf] }
  0x34   : > { %1369 = vmatpush.bf16.msra.mxu0 %v8253_v59  ;;  %7810 = vmatpush.bf16.msra.mxu1 %v8253_v59  ;;  %v6976_v20 = vld [vmem:[%s8144_s21 + $0x9c] sm:$0xf0]  ;;  %v7720_v26 = vld [vmem:[%s13199_s1 + $0x114] sm:$0xf]  ;;  %v7128_v42 = vld [vmem:[%s13199_s1 + $0x108] sm:$0xf0] }
  0x35   : > { %7811 = vmatpush.bf16.msra.mxu3 %v8253_v59  ;;  %7154 = vmatmul.msk.bf16.gmra.mxu2 %vm1330_vm1, %v8259_v63  ;;  %s6896_s20 = sshll.u32 %s13982_s28, 3 }
  0x36   : > { %1562 = vmatpush.bf16.msrb.mxu2 %v8249_v58  ;;  %s11875_s30 = scalar_lea.vmem %s12961_s18, %s6896_s20  ;;  %s11901_s3 = scalar_lea.vmem %s12960_s17, %s6896_s20 }
  0x37   : > { %1370 = vmatmul.bf16.vlgmr.msra.gmra.mxu0 %v8275_v7  ;;  %1395 = vmatmul.bf16.vlgmr.msra.gmra.mxu1 %v8277_v8  ;;  %s12244_s20 = scalar_lea.vmem %s12962_s19, %s13982_s28 }
  0x38   : > { %1411 = vmatpush.bf16.msrb.mxu1 %v8270_v5  ;;  %1405 = vmatmul.bf16.vlgmr.msra.gmra.mxu3 %v8291_v15 }
  0x39   : > { %1509 = vmatpush.bf16.msrb.mxu3 %v8268_v4  ;;  %1465 = vmatpush.bf16.msrb.mxu0 %v8099_v11 }
  0x3a   : > { %1563 = vmatpush.bf16.msrb.mxu2 %v8293_v16 }
  0x3c   : > { %1412 = vmatpush.bf16.msrb.mxu1 %v8311_v24 }
  0x3d   : > { %1510 = vmatpush.bf16.msrb.mxu3 %v8309_v21  ;;  %1466 = vmatpush.bf16.msrb.mxu0 %v8108_v14 }
  0x3e   : > { %1564 = vmatpush.bf16.msrb.mxu2 %v8326_v30 }
  0x40   : > { %1413 = vmatpush.bf16.msrb.mxu1 %v8339_v36 }
  0x41   : > { %1511 = vmatpush.bf16.msrb.mxu3 %v8337_v35  ;;  %1467 = vmatpush.bf16.msrb.mxu0 %v8137_v22 }
  0x42   : > { %1565 = vmatpush.bf16.msrb.mxu2 %v8354_v43 }
  0x44   : > { %1414 = vmatpush.bf16.msrb.mxu1 %v8362_v48 }
  0x45   : > { %1512 = vmatpush.bf16.msrb.mxu3 %v8360_v47  ;;  %7155 = vmatmul.msk.bf16.gmra.mxu2 %vm1330_vm1, %v8382_v60 }
  0x46   : > { %1903 = vmatpush.bf16.msra.mxu2 %v8099_v11  ;;  %v7016_v11 = vld [vmem:[%s13199_s1 + $0x28] sm:$0xf0] }
  0x47   : > { %v8407_v12 = vor.u32 %v7690_v0, %v7016_v11  ;;  %1375 = vmatmul.bf16.gmra.mxu0 %v6915_v1  ;;  %1400 = vmatmul.bf16.gmra.mxu1 %v8393_v2  ;;  %v6934_v0 = vld [vmem:[%s8144_s21 + $0x38] sm:$0xf] }
  0x48   : > { %1415 = vmatpush.bf16.msrb.mxu1 %v7087_v62 }
  0x49   : > { %1513 = vmatpush.bf16.msrb.mxu3 %v8388_v61 }
  0x4a   : > { %1904 = vmatpush.bf16.msra.mxu2 %v8108_v14  ;;  %v7062_v14 = vld [vmem:[%s13199_s1 + $0x80] sm:$0xf] }
  0x4b   : > { %v7063_v41 = vor.u32 %v7703_v37, %v7062_v14  ;;  %v7649_v14 = vld [vmem:[%s8144_s21 + $0x58] sm:$0xf0]  ;;  %v6979_v37 = vor.u32 %v7656_v19, %v6976_v20  ;;  %v7178_v19 = vld [vmem:[%s8566_s23 + $0x18] sm:$0xf]  ;;  %v7666_v20 = vld [vmem:[%s8566_s23 + $0x20] sm:$0xf0] }
  0x4c   : > { %1416 = vmatpush.bf16.msrb.mxu1 %v7079_v13 }
  0x4d   : > { %1514 = vmatpush.bf16.msrb.mxu3 %v8407_v12 }
  0x4e   : > { %1905 = vmatpush.bf16.msra.mxu2 %v8137_v22  ;;  %v6927_v22 = vor.u32 %v7645_v50, %v6926_v49 }
  0x50   : > { %1417 = vmatpush.bf16.msrb.mxu1 %v7071_v28 }
  0x51   : > { %1515 = vmatpush.bf16.msrb.mxu3 %v8424_v27 }
  0x54   : > { %1418 = vmatpush.bf16.msrb.mxu1 %v7063_v41 }
  0x55   : > { %1516 = vmatpush.bf16.msrb.mxu3 %v8440_v40  ;;  %1566 = vmatmul.bf16.vlgmr.msrb.gmra.mxu2 %v6907_v51 }
  0x57   : > { %1380 = vmatmul.bf16.gmra.mxu0 %v6927_v22  ;;  %1419 = vmatmul.bf16.vlgmr.msrb.gmra.mxu1 %v6907_v51 }
  0x58   : > { %1800 = vmatpush.bf16.msra.mxu1 %v8076_v3  ;;  %1517 = vmatmul.bf16.vlgmr.msrb.gmra.mxu3 %v8275_v7  ;;  %v6919_v3 = vor.u32 %v7641_v52, %v6916_v53 }
  0x59   : > { %1849 = vmatpush.bf16.msra.mxu3 %v8270_v5  ;;  %v7648_v5 = vld [vmem:[%s8144_s21 + $0x50] sm:$0xf0] }
  0x5a   : > { %v6939_v7 = vor.u32 %v7648_v5, %v6938_v54  ;;  %v7659_v54 = vld [vmem:[%s8144_s21 + $0xac] sm:$0xf]  ;;  %v6988_v5 = vld [vmem:[%s8144_s21 + $0xb4] sm:$0xf0] }
  0x5c   : > { %1801 = vmatpush.bf16.msra.mxu1 %v8095_v10  ;;  %v7644_v10 = vld [vmem:[%s8144_s21 + $0x34] sm:$0xf] }
  0x5d   : > { %1850 = vmatpush.bf16.msra.mxu3 %v8311_v24  ;;  %v7651_v24 = vld [vmem:[%s8144_s21 + $0x68] sm:$0xf0] }
  0x60   : > { %1802 = vmatpush.bf16.msra.mxu1 %v8120_v17  ;;  %v6928_v17 = vld [vmem:[%s8144_s21 + $0x3c] sm:$0xf0] }
  0x61   : > { %1851 = vmatpush.bf16.msra.mxu3 %v8339_v36 }
  0x64   : > { %1803 = vmatpush.bf16.msra.mxu1 %v8153_v25  ;;  %v6950_v25 = vld [vmem:[%s8144_s21 + $0x60] sm:$0xf] }
  0x65   : > { %1852 = vmatpush.bf16.msra.mxu3 %v8362_v48  ;;  %1571 = vmatmul.bf16.gmra.mxu2 %v6919_v3  ;;  %v6951_v36 = vor.u32 %v7651_v24, %v6950_v25  ;;  %v7640_v48 = vld [vmem:[%s8144_s21 + $0x10] sm:$0xf0] }
  0x67   : > { %1385 = vmatmul.bf16.gmra.mxu0 %v6939_v7  ;;  %1424 = vmatmul.bf16.gmra.mxu1 %v6919_v3 }
  0x68   : > { %1804 = vmatpush.bf16.msra.mxu1 %v8175_v33  ;;  %1522 = vmatmul.bf16.gmra.mxu3 %v6915_v1  ;;  %v6931_v33 = vor.u32 %v7644_v10, %v6928_v17  ;;  %v7144_v1 = vld [vmem:[%s13199_s1 + $0x128] sm:$0x30]  ;;  %v6991_v10 = vor.u32 %v7659_v54, %v6988_v5  ;;  %v7668_v5 = vld [vmem:[%s8566_s23 + $0x34] sm:$0xf] }
  0x69   : > { %1853 = vmatpush.bf16.msra.mxu3 %v7087_v62  ;;  %v6964_v62 = vld [vmem:[%s8144_s21 + $0x84] sm:$0xf0] }
  0x6c   : > { %1805 = vmatpush.bf16.msra.mxu1 %v8197_v39  ;;  %v7647_v39 = vld [vmem:[%s8144_s21 + $0x4c] sm:$0xf] }
  0x6d   : > { %1854 = vmatpush.bf16.msra.mxu3 %v7079_v13 }
  0x70   : > { %1806 = vmatpush.bf16.msra.mxu1 %v8217_v45  ;;  %v6940_v45 = vld [vmem:[%s8144_s21 + $0x54] sm:$0xf0] }
  0x71   : > { %1855 = vmatpush.bf16.msra.mxu3 %v7071_v28  ;;  %v7136_v28 = vld [vmem:[%s13199_s1 + $0x118] sm:$0xf0] }
  0x72   : > { %v7139_v31 = vor.u32 %v7720_v26, %v7136_v28 }
  0x74   : > { %1807 = vmatpush.bf16.msra.mxu1 %v8253_v59  ;;  %v6910_v59 = vld [vmem:[%s8144_s21 + $0x8] sm:$0xf] }
  0x75   : > { %1856 = vmatpush.bf16.msra.mxu3 %v7063_v41  ;;  %1576 = vmatmul.bf16.gmra.mxu2 %v6931_v33  ;;  %v8477_v55 = vor.u32 %v7640_v48, %v6910_v59  ;;  %v7718_v41 = vld [vmem:[%s13199_s1 + $0x104] sm:$0xf]  ;;  %v7166_v59 = vld [vmem:[%s8566_s23] sm:$0xf]  ;;  %v7663_v48 = vld [vmem:[%s8566_s23 + $0x8] sm:$0xf0] }
  0x76   : > { %v7131_v49 = vor.u32 %v7718_v41, %v7128_v42 }
  0x77   : > { %1390 = vmatmul.bf16.gmra.mxu0 %v6951_v36  ;;  %1429 = vmatmul.bf16.gmra.mxu1 %v6931_v33  ;;  %v7168_v33 = vld [vmem:[%s8566_s23 + $0xc] sm:$0xf0] }
  0x78   : > { %1996 = vmatpush.bf16.msrb.mxu1 %v8146_v23  ;;  %1527 = vmatmul.bf16.gmra.mxu3 %v6927_v22  ;;  %v6943_v23 = vor.u32 %v7647_v39, %v6940_v45 }
  0x7c   : > { %1997 = vmatpush.bf16.msrb.mxu1 %v8171_v32  ;;  %v7650_v32 = vld [vmem:[%s8144_s21 + $0x64] sm:$0xf] }
  0x80   : > { %1998 = vmatpush.bf16.msrb.mxu1 %v8193_v38  ;;  %v6952_v38 = vld [vmem:[%s8144_s21 + $0x6c] sm:$0xf0] }
  0x81   : > { %v6955_v56 = vor.u32 %v7650_v32, %v6952_v38  ;;  %v8586_v38 = vor.u32 %v7663_v48, %v7166_v59 }
  0x84   : > { %1999 = vmatpush.bf16.msrb.mxu1 %v8213_v44  ;;  %v6922_v44 = vld [vmem:[%s8144_s21 + $0x20] sm:$0xf] }
  0x85   : > { %1581 = vmatmul.bf16.gmra.mxu2 %v6943_v23 }
  0x87   : > { %1434 = vmatmul.bf16.gmra.mxu1 %v6943_v23  ;;  %7148 = vmatmul.msk.bf16.vlgmr.msrb.gmra.mxu0 %vm1330_vm1, %v8477_v55 }
  0x88   : > { %2000 = vmatpush.bf16.msrb.mxu1 %v8249_v58  ;;  %1532 = vmatmul.bf16.gmra.mxu3 %v6939_v7  ;;  %v7643_v58 = vld [vmem:[%s8144_s21 + $0x28] sm:$0xf0]  ;;  %v7652_v7 = vld [vmem:[%s8144_s21 + $0x70] sm:$0xf0] }
  0x89   : > { %v8488_v57 = vor.u32 %v7643_v58, %v6922_v44 }
  0x8c   : > { %2001 = vmatpush.bf16.msrb.mxu1 %v8293_v16  ;;  %v7653_v16 = vld [vmem:[%s8144_s21 + $0x7c] sm:$0xf] }
  0x8d   : > { %v6967_v11 = vor.u32 %v7653_v16, %v6964_v62 }
  0x90   : > { %2002 = vmatpush.bf16.msrb.mxu1 %v8326_v30  ;;  %v7646_v30 = vld [vmem:[%s8144_s21 + $0x40] sm:$0xf0] }
  0x91   : > { %v8502_v9 = vor.u32 %v7646_v30, %v6934_v0  ;;  %v7665_v30 = vld [vmem:[%s8566_s23 + $0x1c] sm:$0xf] }
  0x94   : > { %2003 = vmatpush.bf16.msrb.mxu1 %v8354_v43  ;;  %v7722_v43 = vld [vmem:[%s13199_s1 + $0x124] sm:$0xf] }
  0x95   : > { %1586 = vmatmul.bf16.gmra.mxu2 %v6955_v56  ;;  %v7147_v6 = vor.u32 %v7722_v43, %v7144_v1  ;;  %v7180_v43 = vld [vmem:[%s8566_s23 + $0x24] sm:$0xf0]  ;;  %v7186_v1 = vld [vmem:[%s8566_s23 + $0x20] sm:$0xf] }
  0x97   : > { %1439 = vmatmul.bf16.gmra.mxu1 %v6955_v56  ;;  %7149 = vmatmul.msk.bf16.gmra.mxu0 %vm1330_vm1, %v8488_v57  ;;  %v1360_v13 = vsel %vm1355_vm0, %v7147_v6, 0 }
  0x98   : > { %1537 = vmatmul.bf16.gmra.mxu3 %v6951_v36  ;;  %1612 = vmatpush.bf16.msra.mxu0 %v1360_v13  ;;  %v7664_v36 = vld [vmem:[%s8566_s23 + $0x10] sm:$0xf0] }
  0x99   : > { %2050 = vmatpush.bf16.msrb.mxu3 %v1360_v13 }
  0x9c   : > { %1613 = vmatpush.bf16.msra.mxu0 %v7139_v31 }
  0x9d   : > { %2051 = vmatpush.bf16.msrb.mxu3 %v7139_v31  ;;  %v8613_v31 = vor.u32 %v7666_v20, %v7178_v19  ;;  %v7673_v19 = vld [vmem:[%s8566_s23 + $0x58] sm:$0xf0] }
  0xa0   : > { %1614 = vmatpush.bf16.msra.mxu0 %v7131_v49 }
  0xa1   : > { %2052 = vmatpush.bf16.msrb.mxu3 %v7131_v49 }
  0xa4   : > { %1947 = vmatpush.bf16.msrb.mxu0 %v8268_v4 }
  0xa5   : > { %1591 = vmatmul.bf16.gmra.mxu2 %v6967_v11 }
  0xa7   : > { %1444 = vmatmul.bf16.gmra.mxu1 %v6967_v11  ;;  %7150 = vmatmul.msk.bf16.gmra.mxu0 %vm1330_vm1, %v8502_v9  ;;  %v7667_v11 = vld [vmem:[%s8566_s23 + $0x28] sm:$0xf0] }
  0xa8   : > { %1542 = vmatmul.bf16.gmra.mxu3 %v8277_v8  ;;  %v8508_v18 = vpop.f32.mrf.mxu2  ;;  %v6946_v8 = vld [vmem:[%s8144_s21 + $0x50] sm:$0xf]  ;;  %1948 = vmatpush.bf16.msrb.mxu0 %v8309_v21  ;;  %v8611_v28 = vor.u32 %v7667_v11, %v7186_v1  ;;  %v7671_v11 = vld [vmem:[%s8566_s23 + $0x4c] sm:$0xf] }
  0xa9   : > { %13201 = vst [vmem:[#allocation2_spill] sm:$0xff] %v8508_v18  ;;  %v8528_v46 = vor.u32 %v7649_v14, %v6946_v8  ;;  %v7684_v18 = vld [vmem:[%s8566_s23 + $0xb0] sm:$0xf0] }
  0xac   : > { %1949 = vmatpush.bf16.msrb.mxu0 %v8337_v35 }
  0xb0   : > { %v8518_v34 = vpop.f32.mrf.mxu2  ;;  %1950 = vmatpush.bf16.msrb.mxu0 %v8360_v47  ;;  %v7662_v47 = vld [vmem:[%s8566_s23 + $0x4] sm:$0xf] }
  0xb1   : > { %13202 = vst [vmem:[#allocation3_spill] sm:$0xff] %v8518_v34  ;;  %v8582_v23 = vor.u32 %v7662_v47, %v7168_v33  ;;  %v7190_v33 = vld [vmem:[%s8566_s23 + $0x30] sm:$0xf] }
  0xb4   : > { %v1371_v50 = vpop.f32.mrf.mxu0  ;;  %v8530_v51 = vpop.f32.mrf.mxu1  ;;  %1951 = vmatpush.bf16.msrb.mxu0 %v8388_v61  ;;  %v7174_v61 = vld [vmem:[%s8566_s23 + $0x8] sm:$0xf] }
  0xb5   : > { %13203 = vst [vmem:[#allocation4_spill] sm:$0xff] %v8530_v51  ;;  %1596 = vmatmul.bf16.gmra.mxu2 %v6979_v37  ;;  %v8584_v32 = vor.u32 %v7664_v36, %v7174_v61  ;;  %v7669_v61 = vld [vmem:[%s8566_s23 + $0x38] sm:$0xf0] }
  0xb6   : > { %v8639_v48 = vor.u32 %v7669_v61, %v7190_v33 }
  0xb7   : > { %1449 = vmatmul.bf16.gmra.mxu1 %v6979_v37  ;;  %7151 = vmatmul.msk.bf16.gmra.mxu0 %vm1330_vm1, %v8528_v46 }
  0xb8   : > { %1547 = vmatmul.bf16.gmra.mxu3 %v8393_v2  ;;  %v8535_v22 = vpop.f32.mrf.mxu2  ;;  %v6958_v2 = vld [vmem:[%s8144_s21 + $0x68] sm:$0xf]  ;;  %1952 = vmatpush.bf16.msrb.mxu0 %v8407_v12 }
  0xb9   : > { %13204 = vst [vmem:[#allocation5_spill] sm:$0xff] %v8535_v22  ;;  %v8548_v17 = vor.u32 %v7652_v7, %v6958_v2  ;;  %v7192_v2 = vld [vmem:[%s8566_s23 + $0x3c] sm:$0xf0]  ;;  %v7198_v7 = vld [vmem:[%s8566_s23 + $0x38] sm:$0xf] }
  0xbb   : > { %v8554_v4 = vpop.f32.mrf.mxu3 }
  0xbc   : > { %v1373_v52 = vpop.f32.mrf.mxu0  ;;  %v8538_v53 = vpop.f32.mrf.mxu1  ;;  %13208 = vst [vmem:[#allocation9_spill] sm:$0xff] %v8554_v4  ;;  %1953 = vmatpush.bf16.msrb.mxu0 %v8424_v27 }
  0xbd   : > { %13205 = vst [vmem:[#allocation6_spill] sm:$0xff] %v8538_v53 }
  0xc0   : > { %v8543_v3 = vpop.f32.mrf.mxu2  ;;  %1954 = vmatpush.bf16.msrb.mxu0 %v8440_v40 }
  0xc1   : > { %13206 = vst [vmem:[#allocation7_spill] sm:$0xff] %v8543_v3  ;;  %v7681_v3 = vld [vmem:[%s8566_s23 + $0x98] sm:$0xf0] }
  0xc3   : > { %v8575_v39 = vpop.f32.mrf.mxu3 }
  0xc4   : > { %v1376_v25 = vpop.f32.mrf.mxu0  ;;  %v8550_v24 = vpop.f32.mrf.mxu1  ;;  %13212 = vst [vmem:[#allocation12_spill] sm:$0xff] %v8575_v39 }
  0xc5   : > { %13207 = vst [vmem:[#allocation8_spill] sm:$0xff] %v8550_v24  ;;  %1601 = vmatmul.bf16.gmra.mxu2 %v6991_v10 }
  0xc7   : > { %1454 = vmatmul.bf16.gmra.mxu1 %v6991_v10  ;;  %7152 = vmatmul.msk.bf16.gmra.mxu0 %vm1330_vm1, %v8548_v17  ;;  %v7670_v10 = vld [vmem:[%s8566_s23 + $0x40] sm:$0xf0] }
  0xc8   : > { %1552 = vmatmul.bf16.gmra.mxu3 %v8291_v15  ;;  %v8558_v21 = vpop.f32.mrf.mxu2  ;;  %v8637_v59 = vor.u32 %v7670_v10, %v7198_v7 }
  0xc9   : > { %13209 = vst [vmem:[#allocation10_spill] sm:$0xff] %v8558_v21  ;;  %v7682_v21 = vld [vmem:[%s8566_s23 + $0xa0] sm:$0xf0] }
  0xcc   : > { %v1378_v15 = vpop.f32.mrf.mxu0  ;;  %v8568_v35 = vpop.f32.mrf.mxu1 }
  0xcd   : > { %13211 = vst [vmem:[#allocation11_spill] sm:$0xff] %v8568_v35  ;;  %v7258_v35 = vld [vmem:[%s8566_s23 + $0xb0] sm:$0xf] }
  0xd0   : > { %v8577_v45 = vpop.f32.mrf.mxu2 }
  0xd1   : > { %13213 = vst [vmem:[#allocation13_spill] sm:$0xff] %v8577_v45 }
  0xd4   : > { %v1381_v12 = vpop.f32.mrf.mxu0  ;;  %v1420_v44 = vpop.f32.mrf.mxu1 }
  0xd5   : > { %v8589_v58 = vadd.f32 %v1420_v44, %v1371_v50  ;;  %7260 = vmatmul.msk.bf16.vlgmr.msra.gmra.mxu2 %vm1330_vm1, %v8584_v32 }
  0xd7   : > { %7156 = vmatmul.msk.bf16.vlgmr.msra.gmra.mxu0 %vm1330_vm1, %v8477_v55  ;;  %1808 = vmatmul.bf16.vlgmr.msra.gmra.mxu1 %v8586_v38  ;;  %v8609_v55 = vor.u32 %v7665_v30, %v7180_v43 }
  0xd8   : > { %1857 = vmatmul.bf16.vlgmr.msra.gmra.mxu3 %v8582_v23  ;;  %v1567_v56 = vpop.f32.mrf.mxu2 }
  0xdb   : > { %v1518_v27 = vpop.f32.mrf.mxu3 }
  0xdc   : > { %v8597_v16 = vadd.f32 %v1567_v56, %v1518_v27  ;;  %v1383_v62 = vpop.f32.mrf.mxu0  ;;  %v1422_v40 = vpop.f32.mrf.mxu1 }
  0xdd   : > { %v8599_v0 = vadd.f32 %v1422_v40, %v1373_v52 }
  0xe0   : > { %v1569_v13 = vpop.f32.mrf.mxu2 }
  0xe3   : > { %v1520_v6 = vpop.f32.mrf.mxu3 }
  0xe4   : > { %v8607_v26 = vadd.f32 %v1569_v13, %v1520_v6  ;;  %v1386_v8 = vpop.f32.mrf.mxu0  ;;  %v1425_v14 = vpop.f32.mrf.mxu1  ;;  %v7204_v6 = vld [vmem:[%s8566_s23 + $0x54] sm:$0xf0]  ;;  %v7210_v13 = vld [vmem:[%s8566_s23 + $0x50] sm:$0xf] }
  0xe5   : > { %v8615_v37 = vadd.f32 %v1425_v14, %v1376_v25  ;;  %7261 = vmatmul.msk.bf16.gmra.mxu2 %vm1330_vm1, %v8611_v28 }
  0xe7   : > { %7157 = vmatmul.msk.bf16.gmra.mxu0 %vm1330_vm1, %v8488_v57  ;;  %1813 = vmatmul.bf16.gmra.mxu1 %v8613_v31  ;;  %v8635_v57 = vor.u32 %v7668_v5, %v7192_v2  ;;  %v8663_v5 = vor.u32 %v7673_v19, %v7210_v13  ;;  %v7214_v19 = vld [vmem:[%s8566_s23 + $0x60] sm:$0xf] }
  0xe8   : > { %1862 = vmatmul.bf16.gmra.mxu3 %v8609_v55  ;;  %v1572_v42 = vpop.f32.mrf.mxu2 }
  0xeb   : > { %v1523_v41 = vpop.f32.mrf.mxu3 }
  0xec   : > { %v8623_v49 = vadd.f32 %v1572_v42, %v1523_v41  ;;  %v1388_v50 = vpop.f32.mrf.mxu0  ;;  %v1427_v52 = vpop.f32.mrf.mxu1  ;;  %v7202_v41 = vld [vmem:[%s8566_s23 + $0x48] sm:$0xf]  ;;  %v7672_v42 = vld [vmem:[%s8566_s23 + $0x50] sm:$0xf0] }
  0xed   : > { %v8625_v54 = vadd.f32 %v1427_v52, %v1378_v15  ;;  %v8665_v2 = vor.u32 %v7672_v42, %v7202_v41 }
  0xf0   : > { %v1574_v47 = vpop.f32.mrf.mxu2 }
  0xf3   : > { %v1525_v25 = vpop.f32.mrf.mxu3 }
  0xf4   : > { %v8633_v36 = vadd.f32 %v1574_v47, %v1525_v25  ;;  %v1391_v15 = vpop.f32.mrf.mxu0  ;;  %v1430_v44 = vpop.f32.mrf.mxu1 }
  0xf5   : > { %v8641_v27 = vadd.f32 %v1430_v44, %v1381_v12  ;;  %7262 = vmatmul.msk.bf16.gmra.mxu2 %vm1330_vm1, %v8637_v59 }
  0xf7   : > { %7158 = vmatmul.msk.bf16.gmra.mxu0 %vm1330_vm1, %v8502_v9  ;;  %1818 = vmatmul.bf16.gmra.mxu1 %v8639_v48  ;;  %v8661_v9 = vor.u32 %v7671_v11, %v7204_v6  ;;  %v7222_v11 = vld [vmem:[%s8566_s23 + $0x68] sm:$0xf]  ;;  %v7676_v6 = vld [vmem:[%s8566_s23 + $0x70] sm:$0xf0] }
  0xf8   : > { %1867 = vmatmul.bf16.gmra.mxu3 %v8635_v57  ;;  %v1577_v40 = vpop.f32.mrf.mxu2  ;;  %v8695_v42 = vor.u32 %v7676_v6, %v7222_v11  ;;  %v7677_v11 = vld [vmem:[%s8566_s23 + $0x7c] sm:$0xf]  ;;  %v7228_v6 = vld [vmem:[%s8566_s23 + $0x84] sm:$0xf0] }
  0xfb   : > { %v1528_v56 = vpop.f32.mrf.mxu3 }
  0xfc   : > { %v8649_v30 = vadd.f32 %v1577_v40, %v1528_v56  ;;  %v1393_v43 = vpop.f32.mrf.mxu0  ;;  %v1432_v1 = vpop.f32.mrf.mxu1  ;;  %v7674_v40 = vld [vmem:[%s8566_s23 + $0x64] sm:$0xf] }
  0xfd   : > { %v8651_v12 = vadd.f32 %v1432_v1, %v1383_v62  ;;  %v7216_v1 = vld [vmem:[%s8566_s23 + $0x6c] sm:$0xf0] }
  0xfe   : > { %v8693_v41 = vor.u32 %v7674_v40, %v7216_v1 }
 0x100   : > { %v1579_v14 = vpop.f32.mrf.mxu2 }
 0x103   : > { %v1530_v20 = vpop.f32.mrf.mxu3 }
 0x104   : > { %v8659_v52 = vadd.f32 %v1579_v14, %v1530_v20  ;;  %v1435_v7 = vpop.f32.mrf.mxu1  ;;  %v1469_v62 = vpop.f32.mrf.mxu0  ;;  %v7675_v20 = vld [vmem:[%s8566_s23 + $0x68] sm:$0xf0] }
 0x105   : > { %v8667_v10 = vadd.f32 %v1435_v7, %v1386_v8  ;;  %v8670_v25 = vadd.f32 %v1469_v62, %v8589_v58  ;;  %7263 = vmatmul.msk.bf16.gmra.mxu2 %vm1330_vm1, %v8663_v5  ;;  %v8697_v7 = vor.u32 %v7675_v20, %v7214_v19  ;;  %v7226_v20 = vld [vmem:[%s8566_s23 + $0x78] sm:$0xf] }
 0x107   : > { %7159 = vmatmul.msk.bf16.gmra.mxu0 %vm1330_vm1, %v8528_v46  ;;  %1823 = vmatmul.bf16.gmra.mxu1 %v8665_v2 }
 0x108   : > { %1872 = vmatmul.bf16.gmra.mxu3 %v8661_v9  ;;  %v1582_v33 = vpop.f32.mrf.mxu2 }
 0x10b   : > { %v1533_v47 = vpop.f32.mrf.mxu3 }
 0x10c   : > { %v8678_v8 = vadd.f32 %v1582_v33, %v1533_v47  ;;  %v1437_v61 = vpop.f32.mrf.mxu1  ;;  %v1471_v44 = vpop.f32.mrf.mxu0 }
 0x10d   : > { %v8680_v58 = vadd.f32 %v1437_v61, %v1388_v50  ;;  %v8683_v56 = vadd.f32 %v1471_v44, %v8599_v0 }
 0x110   : > { %v1584_v46 = vpop.f32.mrf.mxu2 }
 0x113   : > { %v1535_v13 = vpop.f32.mrf.mxu3 }
 0x114   : > { %v8691_v14 = vadd.f32 %v1584_v46, %v1535_v13  ;;  %v1440_v50 = vpop.f32.mrf.mxu1  ;;  %v1474_v0 = vpop.f32.mrf.mxu0  ;;  %v7234_v13 = vld [vmem:[%s8566_s23 + $0x80] sm:$0xf]  ;;  %v7679_v46 = vld [vmem:[%s8566_s23 + $0x88] sm:$0xf0] }
 0x115   : > { %v8699_v62 = vadd.f32 %v1440_v50, %v1391_v15  ;;  %v8702_v47 = vadd.f32 %v1474_v0, %v8615_v37  ;;  %7264 = vmatmul.msk.bf16.gmra.mxu2 %vm1330_vm1, %v8695_v42  ;;  %v7678_v50 = vld [vmem:[%s8566_s23 + $0x80] sm:$0xf0]  ;;  %v8727_v0 = vor.u32 %v7677_v11, %v7228_v6 }
 0x117   : > { %7160 = vmatmul.msk.bf16.gmra.mxu0 %vm1330_vm1, %v8548_v17  ;;  %1828 = vmatmul.bf16.gmra.mxu1 %v8697_v7 }
 0x118   : > { %1877 = vmatmul.bf16.gmra.mxu3 %v8693_v41  ;;  %v1587_v61 = vpop.f32.mrf.mxu2 }
 0x11b   : > { %v1538_v33 = vpop.f32.mrf.mxu3 }
 0x11c   : > { %v8710_v15 = vadd.f32 %v1587_v61, %v1538_v33  ;;  %v1442_v44 = vpop.f32.mrf.mxu1  ;;  %v1476_v40 = vpop.f32.mrf.mxu0  ;;  %v8729_v33 = vor.u32 %v7679_v46, %v7234_v13 }
 0x11d   : > { %v8712_v37 = vadd.f32 %v1442_v44, %v1393_v43  ;;  %v8715_v1 = vadd.f32 %v1476_v40, %v8625_v54  ;;  %v8731_v43 = vor.u32 %v7678_v50, %v7226_v20  ;;  %v7680_v20 = vld [vmem:[%s8566_s23 + $0x94] sm:$0xf]  ;;  %v7240_v50 = vld [vmem:[%s8566_s23 + $0x9c] sm:$0xf0] }
 0x11e   : > { %v8761_v34 = vor.u32 %v7680_v20, %v7240_v50 }
 0x120   : > { %v8723_v17 = vpop.f32.mrf.mxu2 }
 0x123   : > { %v8721_v19 = vpop.f32.mrf.mxu3 }
 0x124   : > { %v8733_v54 = vpop.f32.mrf.mxu1  ;;  %v1479_v61 = vpop.f32.mrf.mxu0 }
 0x125   : > { %13214 = vst [vmem:[#allocation14_spill] sm:$0xff] %v8733_v54  ;;  %v8736_v44 = vadd.f32 %v1479_v61, %v8641_v27  ;;  %7265 = vmatmul.msk.bf16.gmra.mxu2 %vm1330_vm1, %v8729_v33  ;;  %v7246_v61 = vld [vmem:[%s8566_s23 + $0x98] sm:$0xf] }
 0x127   : > { %7161 = vmatmul.msk.bf16.gmra.mxu0 %vm1330_vm1, %v8161_v29  ;;  %1833 = vmatmul.bf16.gmra.mxu1 %v8731_v43  ;;  %v7238_v29 = vld [vmem:[%s8566_s23 + $0x90] sm:$0xf] }
 0x128   : > { %1882 = vmatmul.bf16.gmra.mxu3 %v8727_v0  ;;  %v1592_v11 = vpop.f32.mrf.mxu2 }
 0x12b   : > { %v1543_v40 = vpop.f32.mrf.mxu3 }
 0x12c   : > { %v8744_v6 = vadd.f32 %v1592_v11, %v1543_v40  ;;  %v8746_v13 = vpop.f32.mrf.mxu1  ;;  %v1481_v27 = vpop.f32.mrf.mxu0  ;;  %v8763_v40 = vor.u32 %v7682_v21, %v7246_v61  ;;  %v8765_v11 = vor.u32 %v7681_v3, %v7238_v29  ;;  %v7683_v29 = vld [vmem:[%s8566_s23 + $0xac] sm:$0xf] }
 0x12d   : > { %13215 = vst [vmem:[#allocation15_spill] sm:$0xff] %v8746_v13  ;;  %v8749_v46 = vadd.f32 %v1481_v27, %v8651_v12  ;;  %v7685_v13 = vld [vmem:[%s8566_s23 + $0xb8] sm:$0xf0] }
 0x130   : > { %v8757_v45 = vpop.f32.mrf.mxu2 }
 0x133   : > { %v8755_v4 = vpop.f32.mrf.mxu3 }
 0x134   : > { %v8767_v12 = vpop.f32.mrf.mxu1  ;;  %v1484_v27 = vpop.f32.mrf.mxu0 }
 0x135   : > { %13216 = vst [vmem:[#allocation16_spill] sm:$0xff] %v8767_v12  ;;  %v8770_v39 = vadd.f32 %v1484_v27, %v8667_v10  ;;  %7266 = vmatmul.msk.bf16.gmra.mxu2 %vm1330_vm1, %v8763_v40  ;;  %v7252_v27 = vld [vmem:[%s8566_s23 + $0xb4] sm:$0xf0] }
 0x136   : > { %v8795_v12 = vor.u32 %v7683_v29, %v7252_v27 }
 0x137   : > { %7162 = vmatmul.msk.bf16.gmra.mxu0 %vm1330_vm1, %v8259_v63  ;;  %1838 = vmatmul.bf16.gmra.mxu1 %v8765_v11  ;;  %v7250_v63 = vld [vmem:[%s8566_s23 + $0xa8] sm:$0xf] }
 0x138   : > { %1887 = vmatmul.bf16.gmra.mxu3 %v8761_v34  ;;  %v1597_v21 = vpop.f32.mrf.mxu2 }
 0x13b   : > { %v1548_v3 = vpop.f32.mrf.mxu3 }
 0x13c   : > { %v8778_v20 = vadd.f32 %v1597_v21, %v1548_v3  ;;  %v8780_v50 = vpop.f32.mrf.mxu1  ;;  %v1486_v10 = vpop.f32.mrf.mxu0  ;;  %v8797_v3 = vor.u32 %v7685_v13, %v7258_v35  ;;  %v8799_v21 = vor.u32 %v7684_v18, %v7250_v63 }
 0x13d   : > { %13217 = vst [vmem:[#allocation17_spill] sm:$0xff] %v8780_v50  ;;  %v8783_v61 = vadd.f32 %v1486_v10, %v8680_v58 }
 0x140   : > { %v8791_v22 = vpop.f32.mrf.mxu2 }
 0x143   : > { %v8789_v53 = vpop.f32.mrf.mxu3 }
 0x144   : > { %v8801_v50 = vpop.f32.mrf.mxu1  ;;  %v1489_v58 = vpop.f32.mrf.mxu0 }
 0x145   : > { %13218 = vst [vmem:[#allocation18_spill] sm:$0xff] %v8801_v50  ;;  %v8804_v10 = vadd.f32 %v1489_v58, %v8699_v62  ;;  %7267 = vmatmul.msk.bf16.gmra.mxu2 %vm1330_vm1, %v8797_v3 }
 0x147   : > { %13219 = vst [vmem:[#allocation19_spill] sm:$0xff] %v8804_v10  ;;  %7163 = vmatmul.msk.bf16.gmra.mxu0 %vm1330_vm1, %v8382_v60  ;;  %1843 = vmatmul.bf16.gmra.mxu1 %v8799_v21 }
 0x148   : > { %1892 = vmatmul.bf16.gmra.mxu3 %v8795_v12  ;;  %v1602_v13 = vpop.f32.mrf.mxu2 }
 0x14b   : > { %v1553_v35 = vpop.f32.mrf.mxu3 }
 0x14c   : > { %v8812_v18 = vadd.f32 %v1602_v13, %v1553_v35  ;;  %v8814_v29 = vpop.f32.mrf.mxu1  ;;  %v1491_v27 = vpop.f32.mrf.mxu0 }
 0x14d   : > { %13220 = vst [vmem:[#allocation20_spill] sm:$0xff] %v8814_v29  ;;  %v8817_v62 = vadd.f32 %v1491_v27, %v8712_v37 }
 0x14f   : > { %13221 = vst [vmem:[#allocation21_spill] sm:$0xff] %v8817_v62 }
 0x150   : > { %v8821_v58 = vpop.f32.mrf.mxu2 }
 0x153   : > { %v8819_v63 = vpop.f32.mrf.mxu3 }
 0x154   : > { %v1616_v50 = vpop.f32.mrf.mxu0  ;;  %v1809_v10 = vpop.f32.mrf.mxu1 }
 0x155   : > { %v8824_v60 = vadd.f32 %v1616_v50, %v8597_v16  ;;  %v679_v16 = vlaneseq }
 0x157   : > { %13222 = vst [vmem:[#allocation22_spill] sm:$0xff] %v8824_v60  ;;  %1955 = vmatmul.bf16.vlgmr.msrb.gmra.mxu0 %v8586_v38  ;;  %2004 = vmatmul.bf16.vlgmr.msrb.gmra.mxu1 %v8582_v23  ;;  %v8837_v51 = vshrl.u32 %v679_v16, 7 }
 0x158   : > { %7268 = vmatmul.msk.bf16.vlgmr.msrb.gmra.mxu3 %vm1330_vm1, %v8584_v32  ;;  %v1907_v13 = vpop.f32.mrf.mxu2 }
 0x159   : > { %vm13005_vm2 = vcmp.lt.s32.totalorder %v8837_v51, 1  ;;  %vm13007_vm3 = vcmp.lt.s32.totalorder %v8837_v51, 7 }
 0x15b   : > { %v1858_v35 = vpop.f32.mrf.mxu3 }
 0x15c   : > { %v1859_v37 = vadd.f32 %v1858_v35, %v1809_v10  ;;  %v1618_v29 = vpop.f32.mrf.mxu0  ;;  %v1811_v24 = vpop.f32.mrf.mxu1 }
 0x15d   : > { %v8833_v54 = vadd.f32 %v1618_v29, %v8607_v26 }
 0x15e   : > { %v8830_v27 = vadd.f32 %v1907_v13, %v1859_v37 }
 0x15f   : > { %v12968_v29 = vrot.slane %v8833_v54, 1 }
 0x160   : > { %13223 = vst [vmem:[#allocation23_spill] sm:$0xff] %v8830_v27  ;;  %2307 = vrot.lane.b32.xlu0 %v8830_v27, %s7956_s26  ;;  %v1909_v50 = vpop.f32.mrf.mxu2  ;;  %v12966_v35 = vrot.slane %v8830_v27, 7 }
 0x163   : > { %v1860_v32 = vpop.f32.mrf.mxu3 }
 0x164   : > { %v1861_v38 = vadd.f32 %v1860_v32, %v1811_v24  ;;  %v1621_v62 = vpop.f32.mrf.mxu0  ;;  %v1814_v10 = vpop.f32.mrf.mxu1 }
 0x165   : > { %v1622_v26 = vadd.f32 %v1621_v62, %v8623_v49 }
 0x166   : > { %v1910_v23 = vadd.f32 %v1909_v50, %v1861_v38 }
 0x167   : > { %v2373_v24 = vrot.slane %v1622_v26, 1  ;;  %1960 = vmatmul.bf16.gmra.mxu0 %v8613_v31  ;;  %2009 = vmatmul.bf16.gmra.mxu1 %v8609_v55 }
 0x168   : > { %v2095_v13 = vrot.slane %v1910_v23, 7  ;;  %7269 = vmatmul.msk.bf16.gmra.mxu3 %vm1330_vm1, %v8611_v28  ;;  %2309 = vrot.lane.b32.xlu0 %v1910_v23, %s7956_s26  ;;  %v1912_v62 = vpop.f32.mrf.mxu2 }
 0x169   : > { %v8859_v28 = vsel %vm13007_vm3, %v12968_v29, %v2373_v24 }
 0x16a   : > { %v8852_v37 = vsel %vm13005_vm2, %v12966_v35, %v2095_v13 }
 0x16b   : > { %13224 = vst [vmem:[#allocation24_spill] sm:$0xff] %v8852_v37  ;;  %v1863_v49 = vpop.f32.mrf.mxu3 }
 0x16c   : > { %v1864_v16 = vadd.f32 %v1863_v49, %v1814_v10  ;;  %v1623_v32 = vpop.f32.mrf.mxu0  ;;  %v1816_v55 = vpop.f32.mrf.mxu1 }
 0x16d   : > { %v1624_v38 = vadd.f32 %v1623_v32, %v8633_v36 }
 0x16e   : > { %v1913_v31 = vadd.f32 %v1912_v62, %v1864_v16 }
 0x16f   : > { %v2374_v23 = vrot.slane %v1624_v38, 1 }
 0x170   : > { %v2096_v50 = vrot.slane %v1913_v31, 7  ;;  %2311 = vrot.lane.b32.xlu1 %v1913_v31, %s7956_s26  ;;  %v1914_v27 = vpop.f32.mrf.mxu2 }
 0x171   : > { %v8869_v29 = vsel %vm13007_vm3, %v2373_v24, %v2374_v23 }
 0x172   : > { %v8865_v26 = vsel %vm13005_vm2, %v2095_v13, %v2096_v50 }
 0x173   : > { %v1865_v35 = vpop.f32.mrf.mxu3 }
 0x174   : > { %v1866_v37 = vadd.f32 %v1865_v35, %v1816_v55  ;;  %v1626_v49 = vpop.f32.mrf.mxu0  ;;  %v1819_v62 = vpop.f32.mrf.mxu1 }
 0x175   : > { %v1627_v36 = vadd.f32 %v1626_v49, %v8649_v30 }
 0x176   : > { %v1915_v10 = vadd.f32 %v1914_v27, %v1866_v37 }
 0x177   : > { %v2375_v13 = vrot.slane %v1627_v36, 1  ;;  %1965 = vmatmul.bf16.gmra.mxu0 %v8639_v48  ;;  %2014 = vmatmul.bf16.gmra.mxu1 %v8635_v57 }
 0x178   : > { %v2097_v16 = vrot.slane %v1915_v10, 7  ;;  %7270 = vmatmul.msk.bf16.gmra.mxu3 %vm1330_vm1, %v8637_v59  ;;  %2313 = vrot.lane.b32.xlu1 %v1915_v10, %s7956_s26  ;;  %v1917_v24 = vpop.f32.mrf.mxu2 }
 0x179   : > { %v8883_v37 = vsel %vm13007_vm3, %v2374_v23, %v2375_v13 }
 0x17a   : > { %v8879_v35 = vsel %vm13005_vm2, %v2096_v50, %v2097_v16 }
 0x17b   : > { %v1868_v27 = vpop.f32.mrf.mxu3 }
 0x17c   : > { %v1869_v30 = vadd.f32 %v1868_v27, %v1819_v62  ;;  %v1628_v59 = vpop.f32.mrf.mxu0  ;;  %v1821_v32 = vpop.f32.mrf.mxu1 }
 0x17d   : > { %v1629_v38 = vadd.f32 %v1628_v59, %v8659_v52 }
 0x17e   : > { %v1918_v31 = vadd.f32 %v1917_v24, %v1869_v30 }
 0x17f   : > { %v2376_v57 = vrot.slane %v1629_v38, 1 }
 0x180   : > { %v2098_v55 = vrot.slane %v1918_v31, 7  ;;  %2315 = vrot.lane.b32.xlu2 %v1918_v31, %s7956_s26  ;;  %v1919_v10 = vpop.f32.mrf.mxu2 }
 0x181   : > { %v8893_v23 = vsel %vm13007_vm3, %v2375_v13, %v2376_v57  ;;  %v7731_v13 = vld [vmem:[%s12948_s5 + $0x34] sm:$0xf0] }
 0x182   : > { %v8889_v48 = vsel %vm13005_vm2, %v2097_v16, %v2098_v55  ;;  %v7302_v16 = vld [vmem:[%s12948_s5 + $0x30] sm:$0xf] }
 0x183   : > { %v1870_v50 = vpop.f32.mrf.mxu3  ;;  %v7303_v30 = vor.u32 %v7731_v13, %v7302_v16 }
 0x184   : > { %v1871_v49 = vadd.f32 %v1870_v50, %v1821_v32  ;;  %v1631_v36 = vpop.f32.mrf.mxu0  ;;  %v1824_v27 = vpop.f32.mrf.mxu1 }
 0x185   : > { %v1632_v52 = vadd.f32 %v1631_v36, %v8678_v8  ;;  %2609 = vmatpush.bf16.msrb.mxu2 %v7303_v30  ;;  %2731 = vmatpush.bf16.msra.mxu1 %v7303_v30 }
 0x186   : > { %v1920_v62 = vadd.f32 %v1919_v10, %v1871_v49 }
 0x187   : > { %v2377_v31 = vrot.slane %v1632_v52, 1  ;;  %1970 = vmatmul.bf16.gmra.mxu0 %v8665_v2  ;;  %2019 = vmatmul.bf16.gmra.mxu1 %v8661_v9 }
 0x188   : > { %v2099_v24 = vrot.slane %v1920_v62, 7  ;;  %7271 = vmatmul.msk.bf16.gmra.mxu3 %vm1330_vm1, %v8663_v5  ;;  %2317 = vrot.lane.b32.xlu2 %v1920_v62, %s7956_s26  ;;  %v1922_v59 = vpop.f32.mrf.mxu2 }
 0x189   : > { %v8913_v32 = vsel %vm13007_vm3, %v2376_v57, %v2377_v31 }
 0x18a   : > { %v8909_v8 = vsel %vm13005_vm2, %v2098_v55, %v2099_v24 }
 0x18b   : > { %v1873_v5 = vpop.f32.mrf.mxu3 }
 0x18c   : > { %v1874_v38 = vadd.f32 %v1873_v5, %v1824_v27  ;;  %v1633_v10 = vpop.f32.mrf.mxu0  ;;  %v1826_v49 = vpop.f32.mrf.mxu1 }
 0x18d   : > { %v1634_v2 = vadd.f32 %v1633_v10, %v8691_v14 }
 0x18e   : > { %v1923_v50 = vadd.f32 %v1922_v59, %v1874_v38 }
 0x18f   : > { %v2378_v9 = vrot.slane %v1634_v2, 1 }
 0x190   : > { %v2100_v62 = vrot.slane %v1923_v50, 7  ;;  %2319 = vrot.lane.b32.xlu0 %v1923_v50, %s7956_s26  ;;  %v1924_v52 = vpop.f32.mrf.mxu2 }
 0x191   : > { %v8923_v57 = vsel %vm13007_vm3, %v2377_v31, %v2378_v9 }
 0x192   : > { %v8919_v55 = vsel %vm13005_vm2, %v2099_v24, %v2100_v62 }
 0x193   : > { %13225 = vst [vmem:[#allocation25_spill] sm:$0xff] %v8919_v55  ;;  %v1875_v36 = vpop.f32.mrf.mxu3 }
 0x194   : > { %v1876_v16 = vadd.f32 %v1875_v36, %v1826_v49  ;;  %v1636_v13 = vpop.f32.mrf.mxu0  ;;  %v1829_v30 = vpop.f32.mrf.mxu1 }
 0x195   : > { %v1637_v14 = vadd.f32 %v1636_v13, %v8710_v15 }
 0x196   : > { %v1925_v27 = vadd.f32 %v1924_v52, %v1876_v16 }
 0x197   : > { %v2379_v24 = vrot.slane %v1637_v14, 1  ;;  %1975 = vmatmul.bf16.gmra.mxu0 %v8697_v7  ;;  %2024 = vmatmul.bf16.gmra.mxu1 %v8693_v41 }
 0x198   : > { %v2101_v5 = vrot.slane %v1925_v27, 7  ;;  %7272 = vmatmul.msk.bf16.gmra.mxu3 %vm1330_vm1, %v8695_v42  ;;  %2321 = vrot.lane.b32.xlu1 %v1925_v27, %s7956_s26  ;;  %v1927_v38 = vpop.f32.mrf.mxu2  ;;  %v1590_v42 = vadd.f32 %v8723_v17, %v8721_v19 }
 0x199   : > { %v8937_v50 = vsel %vm13007_vm3, %v2378_v9, %v2379_v24 }
 0x19a   : > { %v8933_v31 = vsel %vm13005_vm2, %v2100_v62, %v2101_v5 }
 0x19b   : > { %v1878_v59 = vpop.f32.mrf.mxu3 }
 0x19c   : > { %v1879_v15 = vadd.f32 %v1878_v59, %v1829_v30  ;;  %v1638_v49 = vpop.f32.mrf.mxu0  ;;  %v1831_v2 = vpop.f32.mrf.mxu1 }
 0x19d   : > { %v1639_v36 = vadd.f32 %v1638_v49, %v1590_v42  ;;  %v1595_v49 = vadd.f32 %v8757_v45, %v8755_v4  ;;  %v7730_v4 = vld [vmem:[%s12948_s5 + $0x34] sm:$0xf]  ;;  %v7304_v45 = vld [vmem:[%s12948_s5 + $0x38] sm:$0xf0] }
 0x19e   : > { %v1928_v10 = vadd.f32 %v1927_v38, %v1879_v15 }
 0x19f   : > { %v2380_v41 = vrot.slane %v1639_v36, 1 }
 0x1a0   : > { %v2102_v7 = vrot.slane %v1928_v10, 7  ;;  %2323 = vrot.lane.b32.xlu2 %v1928_v10, %s7956_s26  ;;  %2191 = vrot.lane.b32.xlu1 %v8670_v25, %s7956_s26  ;;  %v1929_v52 = vpop.f32.mrf.mxu2 }
 0x1a1   : > { %v8950_v19 = vsel %vm13007_vm3, %v2379_v24, %v2380_v41  ;;  %v7729_v24 = vld [vmem:[%s12948_s5 + $0x24] sm:$0xf0] }
 0x1a2   : > { %v8946_v62 = vsel %vm13005_vm2, %v2101_v5, %v2102_v7  ;;  %v7294_v5 = vld [vmem:[%s12948_s5 + $0x20] sm:$0xf] }
 0x1a3   : > { %13226 = vst [vmem:[#allocation26_spill] sm:$0xff] %v8946_v62  ;;  %v1880_v9 = vpop.f32.mrf.mxu3  ;;  %v7295_v59 = vor.u32 %v7729_v24, %v7294_v5  ;;  %v9210_v62 = vadd.s32 24, %v8837_v51 }
 0x1a4   : > { %v1881_v16 = vadd.f32 %v1880_v9, %v1831_v2  ;;  %v1641_v27 = vpop.f32.mrf.mxu0  ;;  %v1834_v13 = vpop.f32.mrf.mxu1 }
 0x1a5   : > { %v1642_v14 = vadd.f32 %v1641_v27, %v8744_v6  ;;  %2610 = vmatpush.bf16.msrb.mxu2 %v7295_v59  ;;  %2732 = vmatpush.bf16.msra.mxu1 %v7295_v59 }
 0x1a6   : > { %v1930_v17 = vadd.f32 %v1929_v52, %v1881_v16 }
 0x1a7   : > { %v2381_v38 = vrot.slane %v1642_v14, 1  ;;  %1980 = vmatmul.bf16.gmra.mxu0 %v8731_v43  ;;  %2029 = vmatmul.bf16.gmra.mxu1 %v8727_v0 }
 0x1a8   : > { %v2103_v30 = vrot.slane %v1930_v17, 7  ;;  %7273 = vmatmul.msk.bf16.gmra.mxu3 %vm1330_vm1, %v8729_v33  ;;  %2325 = vrot.lane.b32.xlu0 %v1930_v17, %s7956_s26  ;;  %v1932_v15 = vpop.f32.mrf.mxu2 }
 0x1a9   : > { %2193 = vrot.lane.b32.xlu2 %v8683_v56, %s7956_s26  ;;  %v8972_v42 = vsel %vm13007_vm3, %v2380_v41, %v2381_v38 }
 0x1aa   : > { %v8968_v33 = vsel %vm13005_vm2, %v2102_v7, %v2103_v30 }
 0x1ab   : > { %13227 = vst [vmem:[#allocation27_spill] sm:$0xff] %v8968_v33  ;;  %v1883_v6 = vpop.f32.mrf.mxu3  ;;  %v13283_v33 = vmov 0 }
 0x1ac   : > { %v1884_v10 = vadd.f32 %v1883_v6, %v1834_v13  ;;  %v1643_v43 = vpop.f32.mrf.mxu0  ;;  %v1836_v36 = vpop.f32.mrf.mxu1  ;;  %v7307_v13 = vor.u32 %v7730_v4, %v7304_v45  ;;  %v7296_v6 = vld [vmem:[%s12948_s5 + $0x28] sm:$0xf0] }
 0x1ad   : > { %v1644_v9 = vadd.f32 %v1643_v43, %v1595_v49 }
 0x1ae   : > { %v1933_v2 = vadd.f32 %v1932_v15, %v1884_v10  ;;  %2780 = vmatpush.bf16.msra.mxu3 %v7307_v13  ;;  %2658 = vmatpush.bf16.msra.mxu0 %v7307_v13 }
 0x1af   : > { %v2382_v7 = vrot.slane %v1644_v9, 1  ;;  %v7288_v9 = vld [vmem:[%s12948_s5 + $0x18] sm:$0xf0] }
 0x1b0   : > { %v2104_v0 = vrot.slane %v1933_v2, 7  ;;  %2327 = vrot.lane.b32.xlu0 %v1933_v2, %s7956_s26  ;;  %v1934_v16 = vpop.f32.mrf.mxu2 }
 0x1b1   : > { %2195 = vrot.lane.b32.xlu2 %v8702_v47, %s7956_s26  ;;  %v8991_v27 = vsel %vm13007_vm3, %v2381_v38, %v2382_v7  ;;  %v7728_v38 = vld [vmem:[%s12948_s5 + $0x24] sm:$0xf] }
 0x1b2   : > { %v8981_v52 = vsel %vm13005_vm2, %v2103_v30, %v2104_v0  ;;  %v7299_v15 = vor.u32 %v7728_v38, %v7296_v6 }
 0x1b3   : > { %13228 = vst [vmem:[#allocation28_spill] sm:$0xff] %v8981_v52  ;;  %v1885_v41 = vpop.f32.mrf.mxu3 }
 0x1b4   : > { %v1886_v17 = vadd.f32 %v1885_v41, %v1836_v36  ;;  %v1646_v5 = vpop.f32.mrf.mxu0  ;;  %v1839_v30 = vpop.f32.mrf.mxu1  ;;  %2781 = vmatpush.bf16.msra.mxu3 %v7299_v15  ;;  %2659 = vmatpush.bf16.msra.mxu0 %v7299_v15  ;;  %v7286_v36 = vld [vmem:[%s12948_s5 + $0x10] sm:$0xf] }
 0x1b5   : > { %v1647_v59 = vadd.f32 %v1646_v5, %v8778_v20  ;;  %v7724_v5 = vld [vmem:[%s12948_s5 + $0x4] sm:$0xf] }
 0x1b6   : > { %v1935_v14 = vadd.f32 %v1934_v16, %v1886_v17 }
 0x1b7   : > { %v2383_v10 = vrot.slane %v1647_v59, 1  ;;  %1985 = vmatmul.bf16.gmra.mxu0 %v8765_v11  ;;  %2034 = vmatmul.bf16.gmra.mxu1 %v8761_v34  ;;  %v7727_v34 = vld [vmem:[%s12948_s5 + $0x14] sm:$0xf0]  ;;  %v7726_v11 = vld [vmem:[%s12948_s5 + $0x14] sm:$0xf] }
 0x1b8   : > { %v2105_v24 = vrot.slane %v1935_v14, 7  ;;  %7274 = vmatmul.msk.bf16.gmra.mxu3 %vm1330_vm1, %v8763_v40  ;;  %2197 = vrot.lane.b32.xlu0 %v8715_v1, %s7956_s26  ;;  %v1937_v49 = vpop.f32.mrf.mxu2  ;;  %v7291_v16 = vor.u32 %v7726_v11, %v7288_v9 }
 0x1b9   : > { %2329 = vrot.lane.b32.xlu1 %v1935_v14, %s7956_s26  ;;  %v9013_v2 = vsel %vm13007_vm3, %v2382_v7, %v2383_v10  ;;  %v1600_v7 = vadd.f32 %v8791_v22, %v8789_v53  ;;  %v7278_v14 = vld [vmem:[%s12948_s5] sm:$0xf]  ;;  %v7725_v22 = vld [vmem:[%s12948_s5 + $0x4] sm:$0xf0] }
 0x1ba   : > { %v9009_v40 = vsel %vm13005_vm2, %v2104_v0, %v2105_v24  ;;  %v7287_v0 = vor.u32 %v7727_v34, %v7286_v36  ;;  %2782 = vmatpush.bf16.msra.mxu3 %v7291_v16  ;;  %v7279_v53 = vor.u32 %v7725_v22, %v7278_v14  ;;  %2660 = vmatpush.bf16.msra.mxu0 %v7291_v16  ;;  %v13233_v22 = vmov 0 }
 0x1bb   : > { %13229 = vst [vmem:[#allocation29_spill] sm:$0xff] %v9009_v40  ;;  %v1888_v20 = vpop.f32.mrf.mxu3 }
 0x1bc   : > { %v1889_v43 = vadd.f32 %v1888_v20, %v1839_v30  ;;  %v1648_v17 = vpop.f32.mrf.mxu0  ;;  %v1841_v4 = vpop.f32.mrf.mxu1  ;;  %2733 = vmatpush.bf16.msra.mxu1 %v7287_v0  ;;  %2611 = vmatpush.bf16.msrb.mxu2 %v7287_v0  ;;  %v7280_v30 = vld [vmem:[%s12948_s5 + $0x8] sm:$0xf0] }
 0x1bd   : > { %v1649_v13 = vadd.f32 %v1648_v17, %v1600_v7  ;;  %v7283_v38 = vor.u32 %v7724_v5, %v7280_v30  ;;  %v1605_v17 = vadd.f32 %v8821_v58, %v8819_v63  ;;  %v13236_v63 = vrot.slane %v8833_v54, 1 }
 0x1be   : > { %v1938_v41 = vadd.f32 %v1937_v49, %v1889_v43  ;;  %v9099_v54 = vadd.s32 32, %v8837_v51 }
 0x1bf   : > { %v2384_v59 = vrot.slane %v1649_v13, 1  ;;  %2783 = vmatpush.bf16.msra.mxu3 %v7283_v38  ;;  %2661 = vmatpush.bf16.msra.mxu0 %v7283_v38 }
 0x1c0   : > { %v2106_v45 = vrot.slane %v1938_v41, 7  ;;  %2199 = vrot.lane.b32.xlu0 %v8736_v44, %s7956_s26  ;;  %v1939_v20 = vpop.f32.mrf.mxu2  ;;  %2734 = vmatpush.bf16.msra.mxu1 %v7279_v53 }
 0x1c1   : > { %2331 = vrot.lane.b32.xlu1 %v1938_v41, %s7956_s26  ;;  %2612 = vmatpush.bf16.msrb.mxu2 %v7279_v53  ;;  %v9050_v43 = vsel %vm13007_vm3, %v2383_v10, %v2384_v59 }
 0x1c2   : > { %v9046_v6 = vsel %vm13005_vm2, %v2105_v24, %v2106_v45 }
 0x1c3   : > { %13230 = vst [vmem:[#allocation30_spill] sm:$0xff] %v9046_v6  ;;  %v1890_v15 = vpop.f32.mrf.mxu3 }
 0x1c4   : > { %v1891_v49 = vadd.f32 %v1890_v15, %v1841_v4  ;;  %v1651_v34 = vpop.f32.mrf.mxu0  ;;  %v1844_v11 = vpop.f32.mrf.mxu1 }
 0x1c5   : > { %v1652_v9 = vadd.f32 %v1651_v34, %v8812_v18 }
 0x1c6   : > { %v1940_v36 = vadd.f32 %v1939_v20, %v1891_v49  ;;  %v9096_v20 = vadd.s32 8, %v8837_v51 }
 0x1c7   : > { %v2385_v24 = vrot.slane %v1652_v9, 1  ;;  %1990 = vmatmul.bf16.gmra.mxu0 %v8799_v21  ;;  %2039 = vmatmul.bf16.gmra.mxu1 %v8795_v12  ;;  %v12970_v21 = vrot.slane %v8824_v60, 1 }
 0x1c8   : > { %v2107_v0 = vrot.slane %v1940_v36, 7  ;;  %2333 = vrot.lane.b32.xlu2 %v1940_v36, %s7956_s26  ;;  %7275 = vmatmul.msk.bf16.gmra.mxu3 %vm1330_vm1, %v8797_v3  ;;  %v1942_v41 = vpop.f32.mrf.mxu2  ;;  %v12972_v3 = vand.u32 7, %v8837_v51 }
 0x1c9   : > { %2201 = vrot.lane.b32.xlu1 %v8749_v46, %s7956_s26  ;;  %v9066_v18 = vsel %vm13007_vm3, %v2384_v59, %v2385_v24  ;;  %v2402_v58 = vsel %vm13007_vm3, %v12970_v21, %v13236_v63  ;;  %v13246_v63 = vld [vmem:[#allocation14_spill] sm:$0xff] }
 0x1ca   : > { %v9062_v10 = vsel %vm13005_vm2, %v2106_v45, %v2107_v0  ;;  %vm9079_vm4 = vcmp.eq.s32.totalorder %v12972_v3, 7  ;;  %v9156_v3 = vadd.s32 16, %v8837_v51 }
 0x1cb   : > { %13231 = vst [vmem:[#allocation31_spill] sm:$0xff] %v9062_v10  ;;  %v1893_v7 = vpop.f32.mrf.mxu3  ;;  %v13234_v22 = vsel %vm9079_vm4, 4294967295, %v13233_v22  ;;  %v2436_v49 = vsel %vm9079_vm4, 0.0, %v2402_v58  ;;  %v13282_v10 = vand.u32 7, %v9096_v20 }
 0x1cc   : > { %v1894_v16 = vadd.f32 %v1893_v7, %v1844_v11  ;;  %v1653_v12 = vpop.f32.mrf.mxu0  ;;  %v1846_v13 = vpop.f32.mrf.mxu1  ;;  %13235 = vst [vmem:[#allocation33_spill] sm:$0xff] %v13234_v22  ;;  %v12974_v7 = vand.u32 7, %v9096_v20  ;;  %v13290_v20 = vld [vmem:[#allocation24_spill] sm:$0xff] }
 0x1cd   : > { %v9072_v45 = vadd.f32 %v1653_v12, %v1605_v17  ;;  %v13238_v17 = vld [vmem:[#allocation21_spill] sm:$0xff]  ;;  %v13242_v12 = vmov 0  ;;  %vm9327_vm13 = vcmp.eq.s32.totalorder %v13282_v10, 0 }
 0x1ce   : > { %v1943_v4 = vadd.f32 %v1942_v41, %v1894_v16  ;;  %v12971_v41 = vand.u32 7, %v9099_v54  ;;  %vm9131_vm5 = vcmp.eq.s32.totalorder %v12974_v7, 7  ;;  %v13284_v33 = vsel %vm9327_vm13, 4294967295, %v13283_v33 }
 0x1cf   : > { %13232 = vst [vmem:[#allocation32_spill] sm:$0xff] %v9072_v45  ;;  %v12969_v53 = vrot.slane %v9072_v45, 1  ;;  %v2160_v10 = vsel %vm9327_vm13, 0.0, %v13290_v20  ;;  %v13295_v20 = vld [vmem:[#allocation23_spill] sm:$0xff] }
 0x1d0   : > { %v2108_v14 = vrot.slane %v1943_v4, 7  ;;  %2335 = vrot.lane.b32.xlu2 %v1943_v4, %s7956_s26  ;;  %v1944_v15 = vpop.f32.mrf.mxu2  ;;  %v13239_v4 = vmov 0  ;;  %vm9137_vm6 = vcmp.eq.s32.totalorder %v12971_v41, 7 }
 0x1d1   : > { %2203 = vrot.lane.b32.xlu1 %v8770_v39, %s7956_s26  ;;  %v9107_v34 = vsel %vm13007_vm3, %v2385_v24, %v12969_v53  ;;  %v9125_v24 = vld [vmem:[%s12947_s4] ss:$0 sm:$0xff]  ;;  %v13240_v4 = vsel %vm9131_vm5, 4294967295, %v13239_v4  ;;  %v13243_v12 = vsel %vm9137_vm6, 4294967295, %v13242_v12 }
 0x1d2   : > { %v2308_v5 = vpop.permute.xlu0 %2307  ;;  %v9092_v30 = vsel %vm13005_vm2, %v2107_v0, %v2108_v14  ;;  %13241 = vst [vmem:[#allocation21_spill] sm:$0xff] %v13240_v4 }
 0x1d3   : > { %13237 = vst [vmem:[#allocation34_spill] sm:$0xff] %v9092_v30  ;;  %v2355_v59 = vadd.f32 %v2308_v5, %v8670_v25  ;;  %v1895_v38 = vpop.f32.mrf.mxu3  ;;  %v13247_v5 = vld [vmem:[#allocation8_spill] sm:$0xff] }
 0x1d4   : > { %v1896_v36 = vadd.f32 %v1895_v38, %v1846_v13  ;;  %v9111_v0 = vpop.f32.mrf.mxu0  ;;  %v9113_v9 = vpop.f32.mrf.mxu1  ;;  %13244 = vst [vmem:[#allocation35_spill] sm:$0xff] %v13243_v12  ;;  %v13245_v13 = vld [vmem:[#allocation4_spill] sm:$0xff] }
 0x1d5   : > { %v2452_v11 = vadd.f32 %v2436_v49, %v2355_v59  ;;  %v1446_v58 = vadd.f32 %v13246_v63, %v13245_v13  ;;  %v13248_v59 = vld [vmem:[#allocation16_spill] sm:$0xff]  ;;  %v9159_v13 = vadd.s32 40, %v8837_v51  ;;  %v2437_v63 = vsel %vm9131_vm5, 0.0, %v8859_v28 }
 0x1d6   : > { %v9109_v25 = vadd.f32 %v1944_v15, %v1896_v36  ;;  %v1451_v38 = vadd.f32 %v13248_v59, %v13247_v5  ;;  %v13250_v59 = vld [vmem:[#allocation2_spill] sm:$0xff]  ;;  %v12981_v28 = vand.u32 7, %v9156_v3  ;;  %v13264_v12 = vld [vmem:[#allocation20_spill] sm:$0xff] }
 0x1d8   : > { %v12973_v16 = vrot.slane %v9109_v25, 7  ;;  %2337 = vrot.lane.b32.xlu0 %v9109_v25, %s7956_s26  ;;  %2205 = vrot.lane.b32.xlu2 %v8783_v61, %s7956_s26  ;;  %vm9189_vm7 = vcmp.eq.s32.totalorder %v12981_v28, 7 }
 0x1d9   : > { %2209 = vrot.lane.b32.xlu1 %v13238_v17, %s7956_s26 }
 0x1da   : > { %v2310_v15 = vpop.permute.xlu0 %2309  ;;  %v2316_v49 = vpop.permute.xlu2 %2315  ;;  %v9149_v36 = vsel %vm13005_vm2, %v2108_v14, %v12973_v16  ;;  %v2440_v14 = vsel %vm9137_vm6, 0.0, %v8893_v23  ;;  %v12982_v23 = vand.u32 7, %v9159_v13 }
 0x1db   : > { %13249 = vst [vmem:[#allocation4_spill] sm:$0xff] %v9149_v36  ;;  %v2356_v53 = vadd.f32 %v2310_v15, %v8683_v56  ;;  %v2359_v21 = vadd.f32 %v2316_v49, %v8736_v44  ;;  %v9153_v41 = vpop.f32.mrf.mxu3  ;;  %v2468_v56 = vadd.f32 %v9125_v24, %v2452_v11  ;;  %v9169_v15 = vadd.f32 %v13250_v59, %v1446_v58  ;;  %v13251_v49 = vld [vmem:[#allocation5_spill] sm:$0xff]  ;;  %v13252_v11 = vld [vmem:[#allocation19_spill] sm:$0xff] }
 0x1dc   : > { %v9172_v16 = vadd.f32 %v13251_v49, %v1451_v38  ;;  %v9175_v22 = vpop.f32.mrf.mxu0  ;;  %v9177_v4 = vpop.f32.mrf.mxu1  ;;  %v13253_v58 = vmov 0  ;;  %vm9195_vm8 = vcmp.eq.s32.totalorder %v12982_v23, 7  ;;  %v13256_v38 = vmov 0  ;;  %v13263_v49 = vld [vmem:[#allocation12_spill] sm:$0xff] }
 0x1dd   : > { %v2453_v5 = vadd.f32 %v2437_v63, %v2356_v53  ;;  %v2456_v44 = vadd.f32 %v2440_v14, %v2359_v21  ;;  %v2508_v21 = vmax.f32 %v2468_v56, 0.0  ;;  %v13254_v58 = vsel %vm9189_vm7, 4294967295, %v13253_v58  ;;  %v13259_v63 = vld [vmem:[#allocation6_spill] sm:$0xff]  ;;  %v13260_v14 = vld [vmem:[#allocation15_spill] sm:$0xff] }
 0x1de   : > { %13255 = vst [vmem:[#allocation14_spill] sm:$0xff] %v13254_v58  ;;  %v13257_v38 = vsel %vm9195_vm8, 4294967295, %v13256_v38  ;;  %v13261_v56 = vld [vmem:[#allocation11_spill] sm:$0xff]  ;;  %v1458_v30 = vadd.f32 %v13264_v12, %v13263_v49  ;;  %v2441_v12 = vsel %vm9195_vm8, 0.0, %v8913_v32 }
 0x1df   : > { %v2469_v7 = vadd.f32 %v9125_v24, %v2453_v5  ;;  %13258 = vst [vmem:[#allocation8_spill] sm:$0xff] %v13257_v38  ;;  %v1448_v5 = vadd.f32 %v13260_v14, %v13259_v63  ;;  %v2438_v63 = vsel %vm9189_vm7, 0.0, %v8869_v29  ;;  %v2472_v14 = vadd.f32 %v9125_v24, %v2456_v44 }
 0x1e0   : > { %2207 = vrot.lane.b32.xlu0 %v13252_v11, %s7956_s26  ;;  %2211 = vrot.lane.b32.xlu2 %v9169_v15, %s7956_s26  ;;  %13285 = vst [vmem:[#allocation15_spill] sm:$0xff] %v13284_v33 }
 0x1e1   : > { %v2509_v53 = vmax.f32 %v2469_v7, 0.0  ;;  %2215 = vrot.lane.b32.xlu1 %v9172_v16, %s7956_s26  ;;  %v13262_v7 = vld [vmem:[#allocation17_spill] sm:$0xff] }
 0x1e2   : > { %v1453_v59 = vadd.f32 %v13262_v7, %v13261_v56  ;;  %v2312_v36 = vpop.permute.xlu1 %2311  ;;  %v2318_v28 = vpop.permute.xlu2 %2317  ;;  %v13267_v56 = vld [vmem:[#allocation13_spill] sm:$0xff] }
 0x1e3   : > { %v2524_v40 = vpack.c.bf16 %v2509_v53, %v2508_v21  ;;  %v2357_v6 = vadd.f32 %v2312_v36, %v8702_v47  ;;  %v2360_v23 = vadd.f32 %v2318_v28, %v8749_v46  ;;  %v9207_v52 = vpop.f32.mrf.mxu3  ;;  %v13265_v47 = vld [vmem:[#allocation3_spill] sm:$0xff]  ;;  %v9228_v29 = vadd.f32 %v13267_v56, %v1458_v30 }
 0x1e4   : > { %v9222_v46 = vadd.f32 %v13265_v47, %v1448_v5  ;;  %v13266_v36 = vld [vmem:[#allocation7_spill] sm:$0xff]  ;;  %v9231_v32 = vpop.f32.mrf.mxu0  ;;  %v9233_v44 = vpop.f32.mrf.mxu1  ;;  %v13269_v30 = vmov 0  ;;  %v13272_v5 = vld [vmem:[#allocation9_spill] sm:$0xff] }
 0x1e5   : > { %v2454_v21 = vadd.f32 %v2438_v63, %v2357_v6  ;;  %v2457_v53 = vadd.f32 %v2441_v12, %v2360_v23  ;;  %7324 = vmatmul.msk.bf16.vlgmr.msra.gmra.mxu1 %vm13011_vm9, %v2524_v40  ;;  %7332 = vmatmul.msk.bf16.vlgmr.msra.gmra.mxu3 %vm13011_vm9, %v2524_v40  ;;  %v9225_v28 = vadd.f32 %v13266_v36, %v1453_v59  ;;  %v12983_v6 = vand.u32 7, %v9210_v62  ;;  %v13273_v59 = vld [vmem:[#allocation18_spill] sm:$0xff] }
 0x1e6   : > { %13268 = vst [vmem:[#allocation16_spill] sm:$0xff] %v9228_v29  ;;  %v2512_v40 = vmax.f32 %v2472_v14, 0.0  ;;  %v1456_v49 = vadd.f32 %v13273_v59, %v13272_v5 }
 0x1e7   : > { %v2473_v7 = vadd.f32 %v9125_v24, %v2457_v53  ;;  %vm9244_vm10 = vcmp.eq.s32.totalorder %v12983_v6, 7  ;;  %v2470_v36 = vadd.f32 %v9125_v24, %v2454_v21  ;;  %v9270_v21 = vadd.s32 64, %v8837_v51 }
 0x1e8   : > { %2213 = vrot.lane.b32.xlu0 %v9222_v46, %s7956_s26  ;;  %2217 = vrot.lane.b32.xlu2 %v9225_v28, %s7956_s26  ;;  %v13270_v30 = vsel %vm9244_vm10, 4294967295, %v13269_v30  ;;  %v2439_v14 = vsel %vm9244_vm10, 0.0, %v8883_v37 }
 0x1e9   : > { %v2513_v23 = vmax.f32 %v2473_v7, 0.0  ;;  %2221 = vrot.lane.b32.xlu1 %v9228_v29, %s7956_s26  ;;  %13271 = vst [vmem:[#allocation2_spill] sm:$0xff] %v13270_v30  ;;  %v13274_v7 = vld [vmem:[#allocation10_spill] sm:$0xff] }
 0x1ea   : > { %v2314_v63 = vpop.permute.xlu1 %2313  ;;  %v9258_v6 = vadd.f32 %v13274_v7, %v1456_v49  ;;  %13275 = vst [vmem:[#allocation5_spill] sm:$0xff] %v9270_v21 }
 0x1eb   : > { %v2358_v12 = vadd.f32 %v2314_v63, %v8715_v1  ;;  %v9251_v53 = vpop.f32.mrf.mxu3  ;;  %v2526_v47 = vpack.c.bf16 %v2513_v23, %v2512_v40  ;;  %v2510_v1 = vmax.f32 %v2470_v36, 0.0  ;;  %v12988_v63 = vand.u32 7, %v9270_v21 }
 0x1ec   : > { %v9261_v58 = vpop.f32.mrf.mxu0  ;;  %v9263_v5 = vpop.f32.mrf.mxu1 }
 0x1ed   : > { %v2455_v56 = vadd.f32 %v2439_v14, %v2358_v12  ;;  %vm9281_vm11 = vcmp.eq.s32.totalorder %v12988_v63, 7 }
 0x1ee   : > { %v2444_v7 = vsel %vm9281_vm11, 0.0, %v8950_v19  ;;  %v9311_v19 = vadd.s32 56, %v8837_v51 }
 0x1ef   : > { %v2471_v38 = vadd.f32 %v9125_v24, %v2455_v56  ;;  %v9289_v56 = vadd.s32 48, %v8837_v51 }
 0x1f0   : > { %2219 = vrot.lane.b32.xlu0 %v9258_v6, %s7956_s26 }
 0x1f1   : > { %v2511_v40 = vmax.f32 %v2471_v38, 0.0  ;;  %v13276_v38 = vmov 0  ;;  %v12992_v63 = vand.u32 7, %v9289_v56 }
 0x1f2   : > { %v13277_v38 = vsel %vm9281_vm11, 4294967295, %v13276_v38 }
 0x1f3   : > { %v9267_v23 = vpop.f32.mrf.mxu3  ;;  %v2525_v37 = vpack.c.bf16 %v2511_v40, %v2510_v1  ;;  %13278 = vst [vmem:[#allocation19_spill] sm:$0xff] %v13277_v38  ;;  %vm9303_vm12 = vcmp.eq.s32.totalorder %v12992_v63, 7 }
 0x1f4   : > { %v9274_v59 = vpop.f32.mrf.mxu0  ;;  %v9276_v49 = vpop.f32.mrf.mxu1 }
 0x1f5   : > { %7325 = vmatmul.msk.bf16.gmra.mxu1 %vm13011_vm9, %v2525_v37  ;;  %7333 = vmatmul.msk.bf16.gmra.mxu3 %vm13011_vm9, %v2525_v37 }
 0x1fa   : > { %v2324_v12 = vpop.permute.xlu2 %2323 }
 0x1fb   : > { %v2363_v14 = vadd.f32 %v2324_v12, %v13252_v11  ;;  %v9286_v36 = vpop.f32.mrf.mxu3  ;;  %v13279_v11 = vmov 0 }
 0x1fc   : > { %v9296_v40 = vpop.f32.mrf.mxu0  ;;  %v9298_v37 = vpop.f32.mrf.mxu1  ;;  %v13280_v11 = vsel %vm9303_vm12, 4294967295, %v13279_v11 }
 0x1fd   : > { %v9294_v1 = vadd.f32 %v2444_v7, %v2363_v14  ;;  %13281 = vst [vmem:[#allocation6_spill] sm:$0xff] %v13280_v11  ;;  %v2442_v14 = vsel %vm9303_vm12, 0.0, %v8923_v57  ;;  %v13286_v57 = vmov 0 }
 0x202   : > { %v2320_v12 = vpop.permute.xlu0 %2319 }
 0x203   : > { %v2361_v30 = vadd.f32 %v2320_v12, %v8770_v39  ;;  %v9308_v21 = vpop.f32.mrf.mxu3  ;;  %v12997_v39 = vand.u32 7, %v9311_v19  ;;  %v2008_v12 = vadd.f32 %v9177_v4, %v9175_v22  ;;  %v2006_v22 = vadd.f32 %v9113_v9, %v9111_v0 }
 0x204   : > { %v9318_v63 = vpop.f32.mrf.mxu0  ;;  %v9320_v38 = vpop.f32.mrf.mxu1  ;;  %v13291_v0 = vand.u32 7, %v8837_v51  ;;  %v13292_v9 = vmov 0 }
 0x205   : > { %v2458_v7 = vadd.f32 %v2442_v14, %v2361_v30  ;;  %7326 = vmatmul.msk.bf16.gmra.mxu1 %vm13011_vm9, %v2526_v47  ;;  %7334 = vmatmul.msk.bf16.gmra.mxu3 %vm13011_vm9, %v2526_v47  ;;  %vm9333_vm14 = vcmp.eq.s32.totalorder %v12997_v39, 7  ;;  %v2194_v30 = vpop.permute.xlu2 %2193  ;;  %v2057_v39 = vadd.f32 %v9207_v52, %v2008_v12  ;;  %v13297_v52 = vrot.slane %v9109_v25, 7 }
 0x206   : > { %v13287_v57 = vsel %vm9333_vm14, 4294967295, %v13286_v57  ;;  %v2443_v4 = vsel %vm9333_vm14, 0.0, %v8937_v50  ;;  %v2240_v45 = vadd.f32 %v2194_v30, %v2160_v10  ;;  %vm9357_vm15 = vcmp.eq.s32.totalorder %v13291_v0, 0 }
 0x207   : > { %13288 = vst [vmem:[#allocation11_spill] sm:$0xff] %v13287_v57  ;;  %v2474_v29 = vadd.f32 %v9125_v24, %v2458_v7  ;;  %v13293_v9 = vsel %vm9357_vm15, 4294967295, %v13292_v9  ;;  %v13296_v50 = vrot.slane %v13295_v20, 7  ;;  %v2055_v12 = vadd.f32 %v9153_v41, %v2006_v22 }
 0x208   : > { %13294 = vst [vmem:[#allocation12_spill] sm:$0xff] %v13293_v9  ;;  %v2256_v30 = vadd.f32 %v2240_v45, %v2057_v39  ;;  %v9373_v20 = vadd.s32 72, %v8837_v51 }
 0x209   : > { %v2126_v7 = vsel %vm13005_vm2, %v13297_v52, %v13296_v50  ;;  %v13298_v50 = vmov 0 }
 0x20a   : > { %v2322_v47 = vpop.permute.xlu1 %2321  ;;  %v2159_v10 = vsel %vm9357_vm15, 0.0, %v2126_v7  ;;  %v2276_v25 = vadd.f32 %v9125_v24, %v2256_v30  ;;  %v13006_v39 = vand.u32 7, %v9373_v20 }
 0x20b   : > { %v2362_v14 = vadd.f32 %v2322_v47, %v8783_v61  ;;  %v9338_v11 = vpop.f32.mrf.mxu3 }
 0x20c   : > { %13289 = vst [vmem:[#allocation17_spill] sm:$0xff] %v9338_v11  ;;  %v9351_v47 = vpop.f32.mrf.mxu0  ;;  %v9353_v55 = vpop.f32.mrf.mxu1  ;;  %v2485_v22 = vmax.f32 %v2276_v25, 0.0  ;;  %vm9386_vm0 = vcmp.eq.s32.totalorder %v13006_v39, 7  ;;  %v9430_v39 = vadd.s32 112, %v8837_v51 }
 0x20d   : > { %v2459_v60 = vadd.f32 %v2443_v4, %v2362_v14  ;;  %v13299_v50 = vsel %vm9386_vm0, 4294967295, %v13298_v50  ;;  %v2196_v52 = vpop.permute.xlu2 %2195  ;;  %v2445_v30 = vsel %vm9386_vm0, 0.0, %v8972_v42 }
 0x20e   : > { %13300 = vst [vmem:[#allocation20_spill] sm:$0xff] %v13299_v50 }
 0x20f   : > { %v2475_v61 = vadd.f32 %v9125_v24, %v2459_v60  ;;  %v2514_v60 = vmax.f32 %v2474_v29, 0.0 }
 0x211   : > { %v2515_v14 = vmax.f32 %v2475_v61, 0.0 }
 0x212   : > { %v2192_v4 = vpop.permute.xlu1 %2191 }
 0x213   : > { %v2239_v0 = vadd.f32 %v2192_v4, %v2159_v10  ;;  %v9370_v57 = vpop.f32.mrf.mxu3  ;;  %v2527_v33 = vpack.c.bf16 %v2515_v14, %v2514_v60  ;;  %v9394_v60 = vadd.s32 104, %v8837_v51  ;;  %v2476_v14 = vadd.f32 %v9125_v24, %v9294_v1 }
 0x214   : > { %v9379_v41 = vpop.f32.mrf.mxu0  ;;  %v9381_v29 = vpop.f32.mrf.mxu1  ;;  %v9416_v1 = vadd.s32 80, %v8837_v51 }
 0x215   : > { %v2255_v11 = vadd.f32 %v2239_v0, %v2055_v12  ;;  %7327 = vmatmul.msk.bf16.gmra.mxu1 %vm13011_vm9, %v2527_v33  ;;  %7335 = vmatmul.msk.bf16.gmra.mxu3 %vm13011_vm9, %v2527_v33  ;;  %v13008_v25 = vand.u32 7, %v9394_v60 }
 0x217   : > { %v2275_v45 = vadd.f32 %v9125_v24, %v2255_v11  ;;  %vm9422_vm2 = vcmp.eq.s32.totalorder %v13008_v25, 7 }
 0x219   : > { %v2484_v61 = vmax.f32 %v2275_v45, 0.0  ;;  %v13301_v45 = vand.u32 7, %v9156_v3 }
 0x21a   : > { %v2326_v7 = vpop.permute.xlu0 %2325 }
 0x21b   : > { %v2500_v12 = vpack.c.bf16 %v2485_v22, %v2484_v61  ;;  %v2364_v33 = vadd.f32 %v2326_v7, %v13238_v17  ;;  %v9391_v11 = vpop.f32.mrf.mxu3  ;;  %vm9411_vm1 = vcmp.eq.s32.totalorder %v13301_v45, 0  ;;  %v2011_v22 = vadd.f32 %v9233_v44, %v9231_v32 }
 0x21c   : > { %v9404_v17 = vpop.f32.mrf.mxu0  ;;  %v9406_v0 = vpop.f32.mrf.mxu1  ;;  %v2516_v61 = vmax.f32 %v2476_v14, 0.0  ;;  %v2161_v32 = vsel %vm9411_vm1, 0.0, %v8865_v26  ;;  %v13015_v44 = vand.u32 7, %v9416_v1  ;;  %v2449_v14 = vsel %vm9422_vm2, 0.0, %v9066_v18 }
 0x21d   : > { %v2461_v10 = vadd.f32 %v2445_v30, %v2364_v33  ;;  %7308 = vmatmul.msk.bf16.vlgmr.msrb.gmra.mxu2 %vm13011_vm9, %v2500_v12  ;;  %7316 = vmatmul.msk.bf16.vlgmr.msra.gmra.mxu0 %vm13011_vm9, %v2500_v12  ;;  %v13304_v12 = vmov 0  ;;  %v13307_v26 = vmov 0  ;;  %v2013_v18 = vadd.f32 %v9263_v5, %v9261_v58 }
 0x21e   : > { %v13305_v12 = vsel %vm9422_vm2, 4294967295, %v13304_v12  ;;  %vm9447_vm3 = vcmp.eq.s32.totalorder %v13015_v44, 7  ;;  %v13313_v58 = vmov 0 }
 0x21f   : > { %v2477_v4 = vadd.f32 %v9125_v24, %v2461_v10  ;;  %13306 = vst [vmem:[#allocation3_spill] sm:$0xff] %v13305_v12  ;;  %v13308_v26 = vsel %vm9447_vm3, 4294967295, %v13307_v26 }
 0x220   : > { %13309 = vst [vmem:[#allocation7_spill] sm:$0xff] %v13308_v26 }
 0x221   : > { %v2517_v7 = vmax.f32 %v2477_v4, 0.0  ;;  %v9440_v4 = vadd.s32 88, %v8837_v51 }
 0x222   : > { %v2328_v33 = vpop.permute.xlu0 %2327  ;;  %v2334_v3 = vpop.permute.xlu2 %2333 }
 0x223   : > { %v2368_v30 = vadd.f32 %v2334_v3, %v9225_v28  ;;  %v9427_v10 = vpop.f32.mrf.mxu3  ;;  %v2528_v45 = vpack.c.bf16 %v2517_v7, %v2516_v61  ;;  %v2060_v28 = vadd.f32 %v9251_v53, %v2011_v22  ;;  %v2241_v3 = vadd.f32 %v2196_v52, %v2161_v32 }
 0x224   : > { %v2365_v7 = vadd.f32 %v2328_v33, %v9169_v15  ;;  %v9454_v25 = vpop.f32.mrf.mxu0  ;;  %v9456_v53 = vpop.f32.mrf.mxu1  ;;  %v13310_v52 = vand.u32 7, %v9210_v62  ;;  %v2446_v15 = vsel %vm9447_vm3, 0.0, %v8991_v27  ;;  %v2062_v27 = vadd.f32 %v9267_v23, %v2013_v18 }
 0x225   : > { %v2465_v61 = vadd.f32 %v2449_v14, %v2368_v30  ;;  %7328 = vmatmul.msk.bf16.gmra.mxu1 %vm13011_vm9, %v2528_v45  ;;  %7336 = vmatmul.msk.bf16.gmra.mxu3 %vm13011_vm9, %v2528_v45  ;;  %v13014_v30 = vand.u32 7, %v9430_v39  ;;  %v13016_v45 = vand.u32 7, %v9440_v4  ;;  %v2257_v32 = vadd.f32 %v2241_v3, %v2060_v28 }
 0x226   : > { %vm9460_vm2 = vcmp.eq.s32.totalorder %v13310_v52, 0  ;;  %v2462_v62 = vadd.f32 %v2446_v15, %v2365_v7  ;;  %v13316_v28 = vmov 0  ;;  %v9493_v15 = vadd.s32 96, %v8837_v51 }
 0x227   : > { %vm9471_vm9 = vcmp.eq.s32.totalorder %v13014_v30, 7  ;;  %v2162_v5 = vsel %vm9460_vm2, 0.0, %v8879_v35  ;;  %vm9480_vm0 = vcmp.eq.s32.totalorder %v13016_v45, 7  ;;  %v2277_v45 = vadd.f32 %v9125_v24, %v2257_v32 }
 0x228   : > { %v13314_v58 = vsel %vm9471_vm9, 4294967295, %v13313_v58  ;;  %v13317_v28 = vsel %vm9480_vm0, 4294967295, %v13316_v28  ;;  %v2450_v35 = vsel %vm9471_vm9, 0.0, %v9107_v34  ;;  %v2478_v23 = vadd.f32 %v9125_v24, %v2462_v62 }
 0x229   : > { %13315 = vst [vmem:[#allocation13_spill] sm:$0xff] %v13314_v58  ;;  %v784_v32 = vand.u32 7, %v9493_v15  ;;  %v13319_v62 = vand.u32 7, %v9099_v54  ;;  %vm13325_vm3 = vcmask 523264  }
 0x22a   : > { %v2198_v33 = vpop.permute.xlu0 %2197  ;;  %v2336_v14 = vpop.permute.xlu2 %2335  ;;  %13318 = vst [vmem:[#allocation9_spill] sm:$0xff] %v13317_v28  ;;  %vm13326_vm11 = vmmov %vm13325_vm3 }
 0x22b   : > { %v2242_v3 = vadd.f32 %v2198_v33, %v2162_v5  ;;  %v2369_v52 = vadd.f32 %v2336_v14, %v9258_v6  ;;  %v2330_v30 = vpop.permute.xlu1 %2329  ;;  %v9486_v44 = vpop.f32.mrf.mxu3  ;;  %v2447_v6 = vsel %vm9480_vm0, 0.0, %v9013_v2  ;;  %v2016_v33 = vadd.f32 %v9276_v49, %v9274_v59  ;;  %vm13327_vm12 = vmmov %vm13325_vm3 }
 0x22c   : > { %v2366_v7 = vadd.f32 %v2330_v30, %v9222_v46  ;;  %v9504_v46 = vpop.f32.mrf.mxu0  ;;  %v9506_v30 = vpop.f32.mrf.mxu1  ;;  %v2486_v14 = vmax.f32 %v2277_v45, 0.0  ;;  %vm9513_vm9 = vcmp.eq.s32.totalorder %v13319_v62, 0  ;;  %vm9519_vm0 = vcmp.eq.s32.totalorder %v784_v32, 7  ;;  %vm13328_vm14 = vmmov %vm13325_vm3 }
 0x22d   : > { %v2258_v12 = vadd.f32 %v2242_v3, %v2062_v27  ;;  %v9496_v26 = vadd.f32 %v2450_v35, %v2369_v52  ;;  %v2518_v3 = vmax.f32 %v2478_v23, 0.0  ;;  %v13320_v52 = vmov 0 }
 0x22e   : > { %v2463_v18 = vadd.f32 %v2447_v6, %v2366_v7  ;;  %v13321_v52 = vsel %vm9513_vm9, 4294967295, %v13320_v52  ;;  %v2065_v54 = vadd.f32 %v9286_v36, %v2016_v33  ;;  %v2163_v23 = vsel %vm9513_vm9, 0.0, %v8889_v48 }
 0x22f   : > { %v2278_v5 = vadd.f32 %v9125_v24, %v2258_v12  ;;  %v13322_v12 = vmov 0  ;;  %v2018_v48 = vadd.f32 %v9298_v37, %v9296_v40 }
 0x230   : > { %v2479_v34 = vadd.f32 %v9125_v24, %v2463_v18  ;;  %v13323_v12 = vsel %vm9519_vm0, 4294967295, %v13322_v12  ;;  %v2448_v18 = vsel %vm9519_vm0, 0.0, %v9050_v43  ;;  %v13329_v43 = vand.u32 7, %v9159_v13 }
 0x231   : > { %v2487_v27 = vmax.f32 %v2278_v5, 0.0  ;;  %13324 = vst [vmem:[#allocation18_spill] sm:$0xff] %v13323_v12  ;;  %v2481_v5 = vadd.f32 %v9125_v24, %v2465_v61  ;;  %v13333_v61 = vand.u32 7, %v9311_v19 }
 0x232   : > { %v2519_v2 = vmax.f32 %v2479_v34, 0.0  ;;  %v2200_v35 = vpop.permute.xlu0 %2199  ;;  %v2206_v36 = vpop.permute.xlu2 %2205  ;;  %vm9543_vm0 = vcmp.eq.s32.totalorder %v13329_v43, 0 }
 0x233   : > { %v2332_v7 = vpop.permute.xlu1 %2331  ;;  %v2501_v6 = vpack.c.bf16 %v2487_v27, %v2486_v14  ;;  %v9524_v49 = vpop.f32.mrf.mxu3  ;;  %v13330_v14 = vmov 0  ;;  %v13334_v27 = vmov 0  ;;  %v2164_v13 = vsel %vm9543_vm0, 0.0, %v8909_v8 }
 0x234   : > { %v2367_v59 = vadd.f32 %v2332_v7, %v9172_v16  ;;  %v2529_v45 = vpack.c.bf16 %v2519_v2, %v2518_v3  ;;  %v2243_v16 = vadd.f32 %v2200_v35, %v2163_v23  ;;  %v13331_v14 = vsel %vm9543_vm0, 4294967295, %v13330_v14  ;;  %v1986_v37 = vpop.f32.mrf.mxu0  ;;  %v2035_v35 = vpop.f32.mrf.mxu1 }
 0x235   : > { %7309 = vmatmul.msk.bf16.gmra.mxu2 %vm13325_vm3, %v2501_v6  ;;  %7317 = vmatmul.msk.bf16.gmra.mxu0 %vm13326_vm11, %v2501_v6  ;;  %13332 = vst [vmem:[#allocation10_spill] sm:$0xff] %v13331_v14  ;;  %vm9549_vm3 = vcmp.eq.s32.totalorder %v13333_v61, 0  ;;  %v2023_v3 = vadd.f32 %v9353_v55, %v9351_v47  ;;  %v2521_v2 = vmax.f32 %v2481_v5, 0.0  ;;  %v2067_v6 = vadd.f32 %v9308_v21, %v2018_v48 }
 0x236   : > { %v2464_v34 = vadd.f32 %v2448_v18, %v2367_v59  ;;  %7329 = vmatmul.msk.bf16.gmra.mxu1 %vm13327_vm12, %v2529_v45  ;;  %7337 = vmatmul.msk.bf16.gmra.mxu3 %vm13328_vm14, %v2529_v45  ;;  %v13335_v27 = vsel %vm9549_vm3, 4294967295, %v13334_v27  ;;  %v2259_v62 = vadd.f32 %v2243_v16, %v2065_v54  ;;  %v2021_v45 = vadd.f32 %v9320_v38, %v9318_v63  ;;  %vm13342_vm14 = vmmov %vm13327_vm12 }
 0x237   : > { %13336 = vst [vmem:[#allocation24_spill] sm:$0xff] %v13335_v27  ;;  %v2166_v55 = vsel %vm9549_vm3, 0.0, %v8933_v31  ;;  %v2072_v47 = vadd.f32 %v9370_v57, %v2023_v3  ;;  %v13337_v21 = vand.u32 7, %v9289_v56  ;;  %v13338_v16 = vmov 0  ;;  %v13340_v31 = vld [vmem:[#allocation17_spill] sm:$0xff]  ;;  %vm13343_vm3 = vmmov %vm13327_vm12 }
 0x238   : > { %v2480_v33 = vadd.f32 %v9125_v24, %v2464_v34  ;;  %v2279_v54 = vadd.f32 %v9125_v24, %v2259_v62  ;;  %v2246_v23 = vadd.f32 %v2206_v36, %v2166_v55  ;;  %v9576_v38 = vadd.s32 120, %v8837_v51  ;;  %vm13344_vm8 = vmmov %vm13343_vm3 }
 0x239   : > { %vm9569_vm11 = vcmp.eq.s32.totalorder %v13337_v21, 0  ;;  %v2070_v57 = vadd.f32 %v13340_v31, %v2021_v45  ;;  %v13345_v45 = vand.u32 7, %v9373_v20  ;;  %v13346_v55 = vmov 0  ;;  %v13356_v20 = vld [vmem:[#allocation22_spill] sm:$0xff] }
 0x23a   : > { %v2520_v40 = vmax.f32 %v2480_v33, 0.0  ;;  %v13339_v16 = vsel %vm9569_vm11, 4294967295, %v13338_v16  ;;  %v9573_v63 = vpop.permute.xlu2 %2211  ;;  %v2488_v34 = vmax.f32 %v2279_v54, 0.0  ;;  %v2262_v48 = vadd.f32 %v2246_v23, %v2072_v47  ;;  %v13341_v33 = vld [vmem:[#allocation25_spill] sm:$0xff] }
 0x23b   : > { %v2202_v7 = vpop.permute.xlu1 %2201  ;;  %v2084_v5 = vpop.f32.mrf.mxu3  ;;  %v2165_v43 = vsel %vm9569_vm11, 0.0, %v13341_v33  ;;  %vm9591_vm11 = vcmp.eq.s32.totalorder %v13345_v45, 0  ;;  %v2028_v47 = vadd.f32 %v9406_v0, %v9404_v17  ;;  %v13349_v54 = vand.u32 7, %v9394_v60  ;;  %v13362_v33 = vld [vmem:[#allocation27_spill] sm:$0xff] }
 0x23c   : > { %v2244_v19 = vadd.f32 %v2202_v7, %v2164_v13  ;;  %v2530_v59 = vpack.c.bf16 %v2521_v2, %v2520_v40  ;;  %v1988_v56 = vpop.f32.mrf.mxu0  ;;  %v2037_v3 = vpop.f32.mrf.mxu1  ;;  %v805_v40 = vand.u32 7, %v9576_v38  ;;  %v2282_v13 = vadd.f32 %v9125_v24, %v2262_v48  ;;  %v13361_v48 = vld [vmem:[#allocation16_spill] sm:$0xff] }
 0x23d   : > { %v13347_v55 = vsel %vm9591_vm11, 4294967295, %v13346_v55  ;;  %v13350_v23 = vmov 0  ;;  %v2038_v0 = vadd.f32 %v2037_v3, %v1988_v56  ;;  %v2077_v45 = vadd.f32 %v9427_v10, %v2028_v47 }
 0x23e   : > { %v2260_v18 = vadd.f32 %v2244_v19, %v2067_v6  ;;  %13348 = vst [vmem:[#allocation23_spill] sm:$0xff] %v13347_v55  ;;  %v2491_v17 = vmax.f32 %v2282_v13, 0.0  ;;  %v13369_v10 = vand.u32 7, %v9416_v1 }
 0x240   : > { %v2280_v8 = vadd.f32 %v9125_v24, %v2260_v18  ;;  %v13357_v18 = vrot.slane %v13356_v20, 1 }
 0x242   : > { %v2489_v36 = vmax.f32 %v2280_v8, 0.0  ;;  %v13358_v8 = vld [vmem:[#allocation32_spill] sm:$0xff] }
 0x243   : > { %v2204_v61 = vpop.permute.xlu1 %2203  ;;  %v2086_v19 = vpop.f32.mrf.mxu3  ;;  %v13359_v21 = vrot.slane %v13358_v8, 1  ;;  %v2036_v8 = vadd.f32 %v2035_v35, %v1986_v37  ;;  %v13373_v35 = vmov 0 }
 0x244   : > { %v2245_v2 = vadd.f32 %v2204_v61, %v2165_v43  ;;  %v2502_v62 = vpack.c.bf16 %v2489_v36, %v2488_v34  ;;  %v2218_v34 = vpop.permute.xlu2 %2217  ;;  %v2168_v43 = vsel %vm9591_vm11, 0.0, %v13362_v33  ;;  %v9626_v3 = vpop.f32.mrf.mxu0  ;;  %v13377_v33 = vld [vmem:[#allocation28_spill] sm:$0xff] }
 0x245   : > { %v2040_v13 = vpop.f32.mrf.mxu1 }
 0x246   : > { %v2261_v7 = vadd.f32 %v2245_v2, %v2070_v57  ;;  %7310 = vmatmul.msk.bf16.gmra.mxu2 %vm13327_vm12, %v2502_v62  ;;  %7318 = vmatmul.msk.bf16.gmra.mxu0 %vm13342_vm14, %v2502_v62  ;;  %vm9599_vm12 = vcmp.eq.s32.totalorder %v13349_v54, 0  ;;  %v2026_v2 = vadd.f32 %v9381_v29, %v9379_v41  ;;  %v13363_v62 = vld [vmem:[#allocation31_spill] sm:$0xff]  ;;  %v2482_v54 = vadd.f32 %v9125_v24, %v9496_v26 }
 0x247   : > { %7330 = vmatmul.msk.bf16.gmra.mxu1 %vm13343_vm3, %v2530_v59  ;;  %7338 = vmatmul.msk.bf16.gmra.mxu3 %vm13344_vm8, %v2530_v59  ;;  %v13351_v23 = vsel %vm9599_vm12, 4294967295, %v13350_v23  ;;  %vm9605_vm8 = vcmp.eq.s32.totalorder %v805_v40, 7  ;;  %v13353_v59 = vmov 0  ;;  %vm13360_vm3 = vcmp.lt.s32.totalorder %v8837_v51, 7 }
 0x248   : > { %v2281_v6 = vadd.f32 %v9125_v24, %v2261_v7  ;;  %13352 = vst [vmem:[#allocation17_spill] sm:$0xff] %v13351_v23  ;;  %v13354_v59 = vsel %vm9605_vm8, 4294967295, %v13353_v59  ;;  %v2403_v31 = vsel %vm13360_vm3, %v13359_v21, %v13357_v18  ;;  %v2172_v7 = vsel %vm9599_vm12, 0.0, %v13363_v62 }
 0x249   : > { %13355 = vst [vmem:[#allocation25_spill] sm:$0xff] %v13354_v59  ;;  %v2451_v56 = vsel %vm9605_vm8, 0.0, %v2403_v31  ;;  %v2252_v41 = vadd.f32 %v2218_v34, %v2172_v7  ;;  %v2087_v29 = vadd.f32 %v2086_v19, %v2038_v0  ;;  %v13366_v31 = vmov 0 }
 0x24a   : > { %v2490_v60 = vmax.f32 %v2281_v6, 0.0  ;;  %v2338_v57 = vpop.permute.xlu0 %2337  ;;  %vm9642_vm3 = vcmp.eq.s32.totalorder %v13369_v10, 0  ;;  %v13370_v26 = vmov 0  ;;  %vm9648_vm8 = vcmp.eq.s32.totalorder %v784_v32, 0 }
 0x24b   : > { %v2370_v36 = vadd.f32 %v2338_v57, %v13361_v48  ;;  %v2210_v61 = vpop.permute.xlu1 %2209  ;;  %v13364_v57 = vld [vmem:[#allocation5_spill] sm:$0xff]  ;;  %v13371_v26 = vsel %vm9642_vm3, 4294967295, %v13370_v26  ;;  %v2089_v37 = vpop.f32.mrf.mxu3  ;;  %v13374_v35 = vsel %vm9648_vm8, 4294967295, %v13373_v35  ;;  %v2075_v19 = vadd.f32 %v9391_v11, %v2026_v2 }
 0x24c   : > { %v2503_v6 = vpack.c.bf16 %v2491_v17, %v2490_v60  ;;  %v2248_v18 = vadd.f32 %v2210_v61, %v2168_v43  ;;  %v13365_v48 = vand.u32 7, %v13364_v57  ;;  %v2031_v17 = vadd.f32 %v9456_v53, %v9454_v25  ;;  %13372 = vst [vmem:[#allocation32_spill] sm:$0xff] %v13371_v26  ;;  %v13376_v53 = vld [vmem:[#allocation26_spill] sm:$0xff] }
 0x24d   : > { %v2467_v20 = vadd.f32 %v2451_v56, %v2370_v36  ;;  %13375 = vst [vmem:[#allocation16_spill] sm:$0xff] %v13374_v35  ;;  %v2522_v47 = vmax.f32 %v2482_v54, 0.0  ;;  %v2085_v34 = vadd.f32 %v2084_v5, %v2036_v8  ;;  %v2268_v25 = vadd.f32 %v2252_v41, %v2087_v29  ;;  %v13378_v43 = vld [vmem:[#allocation30_spill] sm:$0xff]  ;;  %v1993_v8 = vpop.f32.mrf.mxu0  ;;  %v2042_v41 = vpop.f32.mrf.mxu1 }
 0x24e   : > { %vm9634_vm14 = vcmp.eq.s32.totalorder %v13365_v48, 0  ;;  %v2264_v60 = vadd.f32 %v2248_v18, %v2077_v45  ;;  %v2169_v15 = vsel %vm9642_vm3, 0.0, %v13377_v33  ;;  %v2171_v61 = vsel %vm9648_vm8, 0.0, %v13378_v43 }
 0x24f   : > { %v2483_v21 = vadd.f32 %v9125_v24, %v2467_v20  ;;  %v13367_v31 = vsel %vm9634_vm14, 4294967295, %v13366_v31  ;;  %v2167_v1 = vsel %vm9634_vm14, 0.0, %v13376_v53  ;;  %v2080_v62 = vadd.f32 %v9486_v44, %v2031_v17  ;;  %v13391_v53 = vld [vmem:[#allocation4_spill] sm:$0xff] }
 0x250   : > { %13368 = vst [vmem:[#allocation22_spill] sm:$0xff] %v13367_v31  ;;  %v2249_v5 = vadd.f32 %v9573_v63, %v2169_v15  ;;  %v2033_v56 = vadd.f32 %v9506_v30, %v9504_v46  ;;  %v2284_v45 = vadd.f32 %v9125_v24, %v2264_v60  ;;  %v2288_v20 = vadd.f32 %v9125_v24, %v2268_v25 }
 0x251   : > { %v2523_v0 = vmax.f32 %v2483_v21, 0.0  ;;  %vm13379_vm12 = vcmask 523264   ;;  %v13383_v46 = vand.u32 7, %v9440_v4  ;;  %v13384_v30 = vmov 0 }
 0x252   : > { %v2208_v36 = vpop.permute.xlu0 %2207  ;;  %vm13380_vm3 = vmmov %vm13379_vm12  ;;  %v2265_v63 = vadd.f32 %v2249_v5, %v2080_v62  ;;  %v2082_v21 = vadd.f32 %v9524_v49, %v2033_v56  ;;  %v2493_v57 = vmax.f32 %v2284_v45, 0.0  ;;  %v2043_v17 = vadd.f32 %v2042_v41, %v1993_v8  ;;  %v13396_v56 = vld [vmem:[#allocation34_spill] sm:$0xff] }
 0x253   : > { %v2247_v32 = vadd.f32 %v2208_v36, %v2167_v1  ;;  %v2216_v11 = vpop.permute.xlu1 %2215  ;;  %v2531_v2 = vpack.c.bf16 %v2523_v0, %v2522_v47  ;;  %vm13381_vm8 = vmmov %vm13380_vm3  ;;  %vm9675_vm14 = vcmp.eq.s32.totalorder %v13383_v46, 0  ;;  %v2497_v10 = vmax.f32 %v2288_v20, 0.0  ;;  %v13390_v47 = vld [vmem:[#allocation29_spill] sm:$0xff] }
 0x254   : > { %v2251_v7 = vadd.f32 %v2216_v11, %v2171_v61  ;;  %vm13382_vm11 = vmmov %vm13380_vm3  ;;  %v13385_v30 = vsel %vm9675_vm14, 4294967295, %v13384_v30  ;;  %v2170_v0 = vsel %vm9675_vm14, 0.0, %v13390_v47  ;;  %v2041_v36 = vadd.f32 %v2040_v13, %v9626_v3 }
 0x255   : > { %v2263_v54 = vadd.f32 %v2247_v32, %v2075_v19  ;;  %13386 = vst [vmem:[#allocation27_spill] sm:$0xff] %v13385_v30  ;;  %v2091_v19 = vpop.f32.mrf.mxu3  ;;  %v13392_v61 = vand.u32 7, %v9430_v39  ;;  %v13393_v11 = vmov 0  ;;  %v7446_v30 = vld [vmem:[%s12952_s9 + $0x38] sm:$0xf] }
 0x256   : > { %v2267_v18 = vadd.f32 %v2251_v7, %v2085_v34  ;;  %7311 = vmatmul.msk.bf16.gmra.mxu2 %vm13379_vm12, %v2503_v6  ;;  %7319 = vmatmul.msk.bf16.gmra.mxu0 %vm13380_vm3, %v2503_v6  ;;  %vm9682_vm12 = vcmp.eq.s32.totalorder %v805_v40, 0  ;;  %v13387_v6 = vmov 0  ;;  %v2285_v40 = vadd.f32 %v9125_v24, %v2265_v63 }
 0x257   : > { %v2283_v44 = vadd.f32 %v9125_v24, %v2263_v54  ;;  %7331 = vmatmul.msk.bf16.gmra.mxu1 %vm13381_vm8, %v2531_v2  ;;  %7339 = vmatmul.msk.bf16.gmra.mxu3 %vm13382_vm11, %v2531_v2  ;;  %v13388_v6 = vsel %vm9682_vm12, 4294967295, %v13387_v6  ;;  %v2174_v49 = vsel %vm9682_vm12, 0.0, %v13391_v53  ;;  %v2092_v33 = vadd.f32 %v2091_v19, %v2043_v17  ;;  %vm13397_vm8 = vmmov %vm13380_vm3 }
 0x258   : > { %v2287_v29 = vadd.f32 %v9125_v24, %v2267_v18  ;;  %13389 = vst [vmem:[#allocation31_spill] sm:$0xff] %v13388_v6  ;;  %vm9698_vm11 = vcmp.eq.s32.totalorder %v13392_v61, 0  ;;  %v2494_v2 = vmax.f32 %v2285_v40, 0.0  ;;  %v2090_v62 = vadd.f32 %v2089_v37, %v2041_v36  ;;  %vm13398_vm12 = vmmov %vm13380_vm3 }
 0x259   : > { %v2492_v48 = vmax.f32 %v2283_v44, 0.0  ;;  %v13394_v11 = vsel %vm9698_vm11, 4294967295, %v13393_v11  ;;  %v2173_v45 = vsel %vm9698_vm11, 0.0, %v13396_v56  ;;  %vm13399_vm11 = vmmov %vm13380_vm3 }
 0x25a   : > { %v2496_v4 = vmax.f32 %v2287_v29, 0.0  ;;  %v2214_v60 = vpop.permute.xlu0 %2213  ;;  %13395 = vst [vmem:[#allocation5_spill] sm:$0xff] %v13394_v11 }
 0x25b   : > { %v2250_v34 = vadd.f32 %v2214_v60, %v2170_v0  ;;  %v2222_v25 = vpop.permute.xlu1 %2221  ;;  %v2504_v38 = vpack.c.bf16 %v2493_v57, %v2492_v48  ;;  %v7742_v57 = vld [vmem:[%s12950_s7 + $0x50] sm:$0xf0]  ;;  %v7366_v60 = vld [vmem:[%s12950_s7 + $0x30] sm:$0xf] }
 0x25c   : > { %v2506_v1 = vpack.c.bf16 %v2497_v10, %v2496_v4  ;;  %v2254_v32 = vadd.f32 %v2222_v25, %v2174_v49 }
 0x25d   : > { %v2266_v15 = vadd.f32 %v2250_v34, %v2082_v21  ;;  %v7739_v34 = vld [vmem:[%s12950_s7 + $0x38] sm:$0xf0] }
 0x25e   : > { %v2270_v7 = vadd.f32 %v2254_v32, %v2092_v33  ;;  %v7367_v25 = vor.u32 %v7739_v34, %v7366_v60  ;;  %v7354_v33 = vld [vmem:[%s12950_s7 + $0x18] sm:$0xf]  ;;  %v7386_v34 = vld [vmem:[%s12950_s7 + $0x50] sm:$0xf] }
 0x25f   : > { %v2286_v43 = vadd.f32 %v9125_v24, %v2266_v15  ;;  %v7736_v15 = vld [vmem:[%s12950_s7 + $0x20] sm:$0xf0] }
 0x260   : > { %v2290_v20 = vadd.f32 %v9125_v24, %v2270_v7  ;;  %v7355_v32 = vor.u32 %v7736_v15, %v7354_v33 }
 0x261   : > { %v2495_v5 = vmax.f32 %v2286_v43, 0.0 }
 0x262   : > { %v2220_v3 = vpop.permute.xlu0 %2219  ;;  %v9705_v13 = vpop.f32.mrf.mxu1  ;;  %v2499_v8 = vmax.f32 %v2290_v20, 0.0 }
 0x263   : > { %v2253_v54 = vadd.f32 %v2220_v3, %v2173_v45  ;;  %3005 = vrot.lane.b32.xlu1 %v9705_v13, %s7956_s26  ;;  %v2505_v39 = vpack.c.bf16 %v2495_v5, %v2494_v2  ;;  %v13059_v33 = vrot.slane %v9705_v13, 7 }
 0x265   : > { %v2269_v18 = vadd.f32 %v2253_v54, %v2090_v62  ;;  %v7342_v54 = vld [vmem:[%s12950_s7] sm:$0xf] }
 0x266   : > { %7312 = vmatmul.msk.bf16.gmra.mxu2 %vm13397_vm8, %v2504_v38  ;;  %7320 = vmatmul.msk.bf16.gmra.mxu0 %vm13380_vm3, %v2504_v38  ;;  %vm13400_vm8 = vmmov %vm13380_vm3 }
 0x267   : > { %v2289_v37 = vadd.f32 %v9125_v24, %v2269_v18  ;;  %v7378_v24 = vld [vmem:[%s12950_s7 + $0x48] sm:$0xf] }
 0x268   : > { %v7379_v48 = vor.u32 %v7742_v57, %v7378_v24  ;;  %v7741_v24 = vld [vmem:[%s12950_s7 + $0x4c] sm:$0xf]  ;;  %v7380_v57 = vld [vmem:[%s12950_s7 + $0x54] sm:$0xf0] }
 0x269   : > { %v2498_v41 = vmax.f32 %v2289_v37, 0.0  ;;  %v7383_v60 = vor.u32 %v7741_v24, %v7380_v57  ;;  %v2785_v57 = vpop.f32.mrf.mxu3 }
 0x26a   : > { %v9713_v44 = vpop.f32.mrf.mxu1  ;;  %3313 = vmatpush.bf16.msra.mxu2 %v7379_v48 }
 0x26b   : > { %v2507_v46 = vpack.c.bf16 %v2499_v8, %v2498_v41  ;;  %3362 = vmatpush.bf16.msrb.mxu0 %v7383_v60 }
 0x26e   : > { %3314 = vmatpush.bf16.msra.mxu2 %v7367_v25  ;;  %v7743_v25 = vld [vmem:[%s12950_s7 + $0x58] sm:$0xf0] }
 0x272   : > { %v9715_v63 = vpop.f32.mrf.mxu1  ;;  %3315 = vmatpush.bf16.msra.mxu2 %v7355_v32  ;;  %v7387_v32 = vor.u32 %v7743_v25, %v7386_v34 }
 0x274   : > { %3411 = vmatpush.bf16.msrb.mxu1 %v7387_v32 }
 0x276   : > { %7313 = vmatmul.msk.bf16.gmra.mxu2 %vm13398_vm12, %v2505_v39  ;;  %7321 = vmatmul.msk.bf16.gmra.mxu0 %vm13399_vm11, %v2505_v39  ;;  %vm13401_vm12 = vmmov %vm13380_vm3  ;;  %v7733_v39 = vld [vmem:[%s12950_s7 + $0x8] sm:$0xf0] }
 0x277   : > { %vm13402_vm11 = vmmov %vm13380_vm3  ;;  %v7343_v37 = vor.u32 %v7733_v39, %v7342_v54 }
 0x279   : > { %3316 = vmatpush.bf16.msra.mxu2 %v7343_v37 }
 0x27a   : > { %v9719_v29 = vpop.f32.mrf.mxu1 }
 0x282   : > { %v9721_v21 = vpop.f32.mrf.mxu1 }
 0x286   : > { %7314 = vmatmul.msk.bf16.gmra.mxu2 %vm13400_vm8, %v2506_v1  ;;  %7322 = vmatmul.msk.bf16.gmra.mxu0 %vm13380_vm3, %v2506_v1  ;;  %vm13406_vm8 = vcmp.lt.s32.totalorder %v8837_v51, 7  ;;  %vm13407_vm3 = vcmp.lt.s32.totalorder %v8837_v51, 1 }
 0x28a   : > { %v9731_v17 = vpop.f32.mrf.mxu1 }
 0x292   : > { %v9735_v10 = vpop.f32.mrf.mxu1 }
 0x296   : > { %7315 = vmatmul.msk.bf16.gmra.mxu2 %vm13401_vm12, %v2507_v46  ;;  %7323 = vmatmul.msk.bf16.gmra.mxu0 %vm13402_vm11, %v2507_v46  ;;  %vm13412_vm12 = vmmov %vm13406_vm8 }
 0x297   : > { %vm13415_vm11 = vmmov %vm13407_vm3 }
 0x29a   : > { %v9739_v19 = vpop.f32.mrf.mxu1  ;;  %v9805_v7 = vpop.f32.mrf.mxu0 }
 0x29b   : > { %13404 = vst [vmem:[#allocation28_spill] sm:$0xff] %v9805_v7  ;;  %v13057_v15 = vrot.slane %v9805_v7, 1  ;;  %v7362_v7 = vld [vmem:[%s12950_s7 + $0x20] sm:$0xf] }
 0x2a0   : > { %v9737_v4 = vpop.f32.mrf.mxu2 }
 0x2a1   : > { %2889 = vrot.lane.b32.xlu2 %v9737_v4, %s7956_s26 }
 0x2a2   : > { %v9749_v0 = vpop.f32.mrf.mxu1  ;;  %v9819_v3 = vpop.f32.mrf.mxu0 }
 0x2a3   : > { %v13060_v8 = vrot.slane %v9819_v3, 1 }
 0x2a5   : > { %v3099_v54 = vsel %vm13406_vm8, %v13057_v15, %v13060_v8  ;;  %v9891_v8 = vld [vmem:[%s12949_s6] ss:$0 sm:$0xff]  ;;  %vm13420_vm8 = vcmask 523264  }
 0x2a6   : > { %v3101_v34 = vsel %vm9079_vm4, 0.0, %v3099_v54  ;;  %vm13423_vm4 = vcmp.lt.s32.totalorder %v8837_v51, 7 }
 0x2a8   : > { %v9743_v47 = vpop.f32.mrf.mxu2 }
 0x2a9   : > { %2891 = vrot.lane.b32.xlu0 %v9743_v47, %s7956_s26  ;;  %3007 = vrot.lane.b32.xlu2 %v9713_v44, %s7956_s26 }
 0x2aa   : > { %v9759_v38 = vpop.f32.mrf.mxu1 }
 0x2b1   : > { %3009 = vrot.lane.b32.xlu2 %v9715_v63, %s7956_s26 }
 0x2b2   : > { %v9836_v41 = vpop.f32.mrf.mxu0 }
 0x2b3   : > { %v9765_v53 = vpop.f32.mrf.mxu1 }
 0x2b8   : > { %v9761_v40 = vpop.f32.mrf.mxu2 }
 0x2b9   : > { %2893 = vrot.lane.b32.xlu0 %v9761_v40, %s7956_s26 }
 0x2ba   : > { %v9893_v9 = vpop.f32.mrf.mxu0 }
 0x2bb   : > { %v9773_v1 = vpop.f32.mrf.mxu1 }
 0x2c0   : > { %v9767_v49 = vpop.f32.mrf.mxu2 }
 0x2c1   : > { %2895 = vrot.lane.b32.xlu1 %v9767_v49, %s7956_s26  ;;  %3011 = vrot.lane.b32.xlu0 %v9719_v29, %s7956_s26 }
 0x2c4   : > { %v9793_v61 = vpop.f32.mrf.mxu1 }
 0x2c9   : > { %v9775_v36 = vpop.f32.mrf.mxu2  ;;  %3013 = vrot.lane.b32.xlu0 %v9721_v21, %s7956_s26 }
 0x2ca   : > { %2897 = vrot.lane.b32.xlu1 %v9775_v36, %s7956_s26 }
 0x2cc   : > { %v9801_v62 = vpop.f32.mrf.mxu1 }
 0x2cd   : > { %13403 = vst [vmem:[#allocation26_spill] sm:$0xff] %v9801_v62 }
 0x2d1   : > { %v9787_v43 = vpop.f32.mrf.mxu2 }
 0x2d2   : > { %2899 = vrot.lane.b32.xlu2 %v9787_v43, %s7956_s26  ;;  %3015 = vrot.lane.b32.xlu1 %v9731_v17, %s7956_s26 }
 0x2d4   : > { %v9811_v56 = vpop.f32.mrf.mxu1 }
 0x2d5   : > { %13405 = vst [vmem:[#allocation30_spill] sm:$0xff] %v9811_v56  ;;  %v3006_v48 = vpop.permute.xlu1 %3005 }
 0x2d6   : > { %v3053_v39 = vadd.f32 %v3006_v48, %v9737_v4  ;;  %v7738_v4 = vld [vmem:[%s12950_s7 + $0x34] sm:$0xf]  ;;  %v7368_v48 = vld [vmem:[%s12950_s7 + $0x3c] sm:$0xf0] }
 0x2d7   : > { %v7371_v15 = vor.u32 %v7738_v4, %v7368_v48  ;;  %v7735_v4 = vld [vmem:[%s12950_s7 + $0x1c] sm:$0xf]  ;;  %v7356_v48 = vld [vmem:[%s12950_s7 + $0x24] sm:$0xf0] }
 0x2d8   : > { %v3117_v60 = vadd.f32 %v3101_v34, %v3053_v39  ;;  %v7359_v39 = vor.u32 %v7735_v4, %v7356_v48  ;;  %v3071_v48 = vrot.slane %v9836_v41, 1 }
 0x2d9   : > { %v9795_v2 = vpop.f32.mrf.mxu2  ;;  %3363 = vmatpush.bf16.msrb.mxu0 %v7371_v15 }
 0x2da   : > { %2901 = vrot.lane.b32.xlu2 %v9795_v2, %s7956_s26  ;;  %3017 = vrot.lane.b32.xlu1 %v9735_v10, %s7956_s26 }
 0x2dc   : > { %v9827_v20 = vpop.f32.mrf.mxu1 }
 0x2dd   : > { %v13058_v46 = vrot.slane %v9827_v20, 7  ;;  %3364 = vmatpush.bf16.msrb.mxu0 %v7359_v39  ;;  %v9928_v39 = vpop.f32.mrf.mxu0 }
 0x2df   : > { %v2856_v37 = vsel %vm13407_vm3, %v13058_v46, %v13059_v33  ;;  %v7374_v46 = vld [vmem:[%s12950_s7 + $0x38] sm:$0xf]  ;;  %v7740_v33 = vld [vmem:[%s12950_s7 + $0x40] sm:$0xf0]  ;;  %vm13421_vm3 = vmmov %vm13420_vm8 }
 0x2e0   : > { %v2857_v32 = vsel %vm9357_vm15, 0.0, %v2856_v37  ;;  %v7375_v59 = vor.u32 %v7740_v33, %v7374_v46  ;;  %v7737_v46 = vld [vmem:[%s12950_s7 + $0x28] sm:$0xf0]  ;;  %v3133_v33 = vadd.f32 %v9891_v8, %v3117_v60  ;;  %v7344_v60 = vld [vmem:[%s12950_s7 + $0xc] sm:$0xf0] }
 0x2e1   : > { %v9803_v5 = vpop.f32.mrf.mxu2  ;;  %v7363_v15 = vor.u32 %v7737_v46, %v7362_v7 }
 0x2e2   : > { %2903 = vrot.lane.b32.xlu0 %v9803_v5, %s7956_s26  ;;  %3019 = vrot.lane.b32.xlu2 %v9739_v19, %s7956_s26  ;;  %v3189_v41 = vpack.c.bf16 %v3133_v33, %v3133_v33 }
 0x2e3   : > { %3412 = vmatpush.bf16.msrb.mxu1 %v7375_v59 }
 0x2e5   : > { %v9949_v58 = vpop.f32.mrf.mxu0 }
 0x2e7   : > { %3413 = vmatpush.bf16.msrb.mxu1 %v7363_v15  ;;  %v13411_v15 = vrot.slane %v9819_v3, 1  ;;  %v2826_v3 = vrot.slane %v9713_v44, 7 }
 0x2e9   : > { %v9813_v45 = vpop.f32.mrf.mxu2 }
 0x2ea   : > { %2905 = vrot.lane.b32.xlu0 %v9813_v45, %s7956_s26  ;;  %3021 = vrot.lane.b32.xlu2 %v9749_v0, %s7956_s26 }
 0x2f1   : > { %v9829_v18 = vpop.f32.mrf.mxu2 }
 0x2f2   : > { %2907 = vrot.lane.b32.xlu1 %v9829_v18, %s7956_s26  ;;  %3023 = vrot.lane.b32.xlu0 %v9759_v38, %s7956_s26 }
 0x2f9   : > { %v9866_v24 = vpop.f32.mrf.mxu2 }
 0x2fa   : > { %2909 = vrot.lane.b32.xlu1 %v9866_v24, %s7956_s26  ;;  %3025 = vrot.lane.b32.xlu0 %v9765_v53, %s7956_s26 }
 0x2fb   : > { %v2890_v25 = vpop.permute.xlu2 %2889 }
 0x2fc   : > { %v2937_v54 = vadd.f32 %v2890_v25, %v2857_v32  ;;  %v7732_v25 = vld [vmem:[%s12950_s7 + $0x4] sm:$0xf]  ;;  %v7350_v32 = vld [vmem:[%s12950_s7 + $0x8] sm:$0xf] }
 0x2fd   : > { %v7347_v7 = vor.u32 %v7732_v25, %v7344_v60  ;;  %v3098_v25 = vsel %vm13412_vm12, %v13411_v15, %v3071_v48  ;;  %vm13422_vm12 = vmmov %vm13421_vm3 }
 0x2fe   : > { %v2953_v37 = vadd.f32 %v2937_v54, %v2785_v57  ;;  %v7734_v54 = vld [vmem:[%s12950_s7 + $0x10] sm:$0xf0] }
 0x2ff   : > { %v7351_v4 = vor.u32 %v7734_v54, %v7350_v32  ;;  %3365 = vmatpush.bf16.msrb.mxu0 %v7347_v7  ;;  %v3102_v32 = vsel %vm9131_vm5, 0.0, %v3098_v25 }
 0x300   : > { %v2973_v59 = vadd.f32 %v9891_v8, %v2953_v37  ;;  %v2787_v37 = vpop.f32.mrf.mxu3 }
 0x301   : > { %v9909_v57 = vpop.f32.mrf.mxu2  ;;  %3414 = vmatpush.bf16.msrb.mxu1 %v7351_v4 }
 0x302   : > { %13409 = vst [vmem:[#allocation29_spill] sm:$0xff] %v9909_v57  ;;  %v3149_v34 = vmax.f32 %v2973_v59, %v3133_v33  ;;  %2911 = vrot.lane.b32.xlu2 %v9909_v57, %s7956_s26  ;;  %3027 = vrot.lane.b32.xlu1 %v9773_v1, %s7956_s26  ;;  %v3173_v28 = vpack.c.bf16 %v2973_v59, %v2973_v59 }
 0x303   : > { %v3008_v46 = vpop.permute.xlu2 %3007 }
 0x304   : > { %v3054_v60 = vadd.f32 %v3008_v46, %v9743_v47  ;;  %v13414_v46 = vrot.slane %v9705_v13, 7  ;;  %v9967_v13 = vpop.f32.mrf.mxu0 }
 0x306   : > { %v3118_v54 = vadd.f32 %v3102_v32, %v3054_v60  ;;  %v2855_v25 = vsel %vm13415_vm11, %v13414_v46, %v2826_v3  ;;  %v4384_v46 = vunpack.c.l.b16 %v3189_v41  ;;  %v13428_v41 = vld [vmem:[#allocation2_spill] sm:$0xff] }
 0x308   : > { %v2790_v7 = vpop.f32.mrf.mxu3  ;;  %v3134_v15 = vadd.f32 %v9891_v8, %v3118_v54  ;;  %v2858_v54 = vsel %vm9327_vm13, 0.0, %v2855_v25  ;;  %v2828_v25 = vrot.slane %v9719_v29, 7 }
 0x309   : > { %v9930_v6 = vpop.f32.mrf.mxu2 }
 0x30a   : > { %13410 = vst [vmem:[#allocation4_spill] sm:$0xff] %v9930_v6  ;;  %2913 = vrot.lane.b32.xlu2 %v9930_v6, %s7956_s26  ;;  %3029 = vrot.lane.b32.xlu1 %v9793_v61, %s7956_s26  ;;  %v3190_v60 = vpack.c.bf16 %v3134_v15, %v3134_v15 }
 0x30b   : > { %v3010_v59 = vpop.permute.xlu2 %3009 }
 0x30c   : > { %v4385_v12 = vunpack.c.l.b16 %v3190_v60 }
 0x30e   : > { %v4400_v35 = vpack.c.b16 %v4385_v12, %v4384_v46  ;;  %v3073_v46 = vrot.slane %v9928_v39, 1 }
 0x310   : > { %v9953_v47 = vpop.f32.mrf.mxu3 }
 0x311   : > { %v9943_v4 = vpop.f32.mrf.mxu2 }
 0x312   : > { %2915 = vrot.lane.b32.xlu0 %v9943_v4, %s7956_s26  ;;  %3031 = vrot.lane.b32.xlu2 %v9801_v62, %s7956_s26 }
 0x319   : > { %v9959_v32 = vpop.f32.mrf.mxu2 }
 0x31a   : > { %13416 = vst [vmem:[#allocation34_spill] sm:$0xff] %v9959_v32  ;;  %2917 = vrot.lane.b32.xlu0 %v9959_v32, %s7956_s26  ;;  %3033 = vrot.lane.b32.xlu2 %v9811_v56, %s7956_s26  ;;  %v9972_v32 = vpop.f32.mrf.mxu3 }
 0x31b   : > { %v2892_v44 = vpop.permute.xlu0 %2891 }
 0x31c   : > { %v2938_v23 = vadd.f32 %v2892_v44, %v2858_v54  ;;  %v13087_v44 = vrot.slane %v9731_v17, 7 }
 0x31e   : > { %v2954_v6 = vadd.f32 %v2938_v23, %v2787_v37  ;;  %v2827_v23 = vrot.slane %v9715_v63, 7 }
 0x320   : > { %v2974_v62 = vadd.f32 %v9891_v8, %v2954_v6  ;;  %v9980_v6 = vunpack.c.l.b16 %v3173_v28  ;;  %v2854_v28 = vsel %vm13415_vm11, %v2826_v3, %v2827_v23 }
 0x321   : > { %v9970_v57 = vpop.f32.mrf.mxu2 }
 0x322   : > { %v3150_v56 = vmax.f32 %v2974_v62, %v3134_v15  ;;  %2919 = vrot.lane.b32.xlu1 %v9970_v57, %s7956_s26  ;;  %4408 = vrot.lane.b32.xlu2 %v4400_v35, %s7956_s26  ;;  %v3174_v33 = vpack.c.bf16 %v2974_v62, %v2974_v62  ;;  %13418 = vst [vmem:[#allocation36_spill] sm:$0xff] %v9980_v6  ;;  %v3072_v35 = vrot.slane %v9893_v9, 1  ;;  %v9989_v62 = vpop.f32.mrf.mxu0  ;;  %v2859_v15 = vsel %vm9411_vm1, 0.0, %v2854_v28  ;;  %v2797_v60 = vpop.f32.mrf.mxu3 }
 0x323   : > { %3035 = vrot.lane.b32.xlu0 %v9827_v20, %s7956_s26 }
 0x324   : > { %v3165_v37 = vpack.c.bf16 %v3150_v56, %v3149_v34  ;;  %v9982_v12 = vunpack.c.l.b16 %v3174_v33  ;;  %v3097_v63 = vsel %vm13423_vm4, %v3071_v48, %v3072_v35  ;;  %v3055_v56 = vadd.f32 %v3010_v59, %v9761_v40  ;;  %vm13425_vm4 = vmmov %vm13415_vm11 }
 0x325   : > { %v3103_v3 = vsel %vm9189_vm7, 0.0, %v3097_v63  ;;  %v2829_v48 = vrot.slane %v9721_v21, 7  ;;  %v2853_v59 = vsel %vm13425_vm4, %v2827_v23, %v2828_v25 }
 0x326   : > { %13419 = vst [vmem:[#allocation37_spill] sm:$0xff] %v9982_v12  ;;  %7388 = vmatmul.msk.bf16.vlgmr.msra.gmra.mxu2 %vm13420_vm8, %v3165_v37  ;;  %7396 = vmatmul.msk.bf16.vlgmr.msrb.gmra.mxu0 %vm13421_vm3, %v3165_v37  ;;  %vm13426_vm8 = vmmov %vm13425_vm4  ;;  %vm13427_vm3 = vcmp.lt.s32.totalorder %v8837_v51, 7  ;;  %v2860_v21 = vsel %vm9460_vm2, 0.0, %v2853_v59 }
 0x327   : > { %7404 = vmatmul.msk.bf16.vlgmr.msrb.gmra.mxu1 %vm13422_vm12, %v3165_v37  ;;  %v3119_v37 = vadd.f32 %v3103_v3, %v3055_v56  ;;  %v2851_v29 = vsel %vm13426_vm8, %v2829_v48, %v13087_v44  ;;  %v3096_v39 = vsel %vm13427_vm3, %v3072_v35, %v3073_v46  ;;  %vm13429_vm12 = vmmov %vm13425_vm4  ;;  %vm13435_vm4 = vcmask 523264  }
 0x328   : > { %v2862_v23 = vsel %vm9543_vm0, 0.0, %v2851_v29  ;;  %v3104_v44 = vsel %vm9244_vm10, 0.0, %v3096_v39  ;;  %v2852_v29 = vsel %vm13429_vm12, %v2828_v25, %v2829_v48  ;;  %vm13434_vm11 = vmmov %vm13427_vm3 }
 0x329   : > { %vm13436_vm8 = vmmov %vm13435_vm4 }
 0x32a   : > { %v10007_v28 = vpop.f32.mrf.mxu0  ;;  %v10024_v35 = vpop.f32.mrf.mxu3  ;;  %vm13437_vm3 = vmmov %vm13435_vm4 }
 0x32b   : > { %v2894_v34 = vpop.permute.xlu0 %2893  ;;  %vm13439_vm12 = vmmov %vm13434_vm11 }
 0x32c   : > { %v2939_v9 = vadd.f32 %v2894_v34, %v2859_v15  ;;  %v2900_v54 = vpop.permute.xlu2 %2899  ;;  %v3135_v34 = vadd.f32 %v9891_v8, %v3119_v37 }
 0x32d   : > { %v2942_v3 = vadd.f32 %v2900_v54, %v2862_v23  ;;  %v3074_v54 = vrot.slane %v9949_v58, 1 }
 0x32e   : > { %v2955_v40 = vadd.f32 %v2939_v9, %v2790_v7  ;;  %v3191_v59 = vpack.c.bf16 %v3135_v34, %v3135_v34 }
 0x32f   : > { %v3095_v48 = vsel %vm13434_vm11, %v3073_v46, %v3074_v54  ;;  %v13092_v46 = vrot.slane %v10007_v28, 1 }
 0x330   : > { %v2975_v56 = vadd.f32 %v9891_v8, %v2955_v40 }
 0x332   : > { %v3151_v39 = vmax.f32 %v2975_v56, %v3135_v34 }
 0x333   : > { %v2896_v63 = vpop.permute.xlu1 %2895  ;;  %v3012_v7 = vpop.permute.xlu0 %3011 }
 0x334   : > { %v2940_v15 = vadd.f32 %v2896_v63, %v2860_v21  ;;  %v3056_v9 = vadd.f32 %v3012_v7, %v9767_v49  ;;  %v10027_v12 = vpop.permute.xlu2 %2901  ;;  %v3175_v49 = vpack.c.bf16 %v2975_v56, %v2975_v56  ;;  %v2958_v63 = vadd.f32 %v2942_v3, %v2797_v60 }
 0x336   : > { %v2956_v37 = vadd.f32 %v2940_v15, %v9953_v47  ;;  %v3120_v6 = vadd.f32 %v3104_v44, %v3056_v9  ;;  %v10034_v47 = vpop.f32.mrf.mxu0  ;;  %v2861_v44 = vsel %vm9513_vm9, 0.0, %v2852_v29  ;;  %v10038_v9 = vunpack.c.l.b16 %v3191_v59  ;;  %v2802_v29 = vpop.f32.mrf.mxu3 }
 0x337   : > { %v10042_v25 = vunpack.c.l.b16 %v3175_v49  ;;  %v2978_v60 = vadd.f32 %v9891_v8, %v2958_v63  ;;  %v3075_v59 = vrot.slane %v9967_v13, 1  ;;  %v3105_v49 = vsel %vm9137_vm6, 0.0, %v3095_v48 }
 0x338   : > { %v2976_v40 = vadd.f32 %v9891_v8, %v2956_v37  ;;  %v3136_v14 = vadd.f32 %v9891_v8, %v3120_v6  ;;  %13430 = vst [vmem:[#allocation2_spill] sm:$0xff] %v10038_v9  ;;  %vm13456_vm6 = vcmp.lt.s32.totalorder %v8837_v51, 1 }
 0x339   : > { %13432 = vst [vmem:[#allocation39_spill] sm:$0xff] %v10042_v25 }
 0x33a   : > { %v3152_v21 = vmax.f32 %v2976_v40, %v3136_v14  ;;  %v3192_v7 = vpack.c.bf16 %v3136_v14, %v3136_v14  ;;  %v3176_v23 = vpack.c.bf16 %v2976_v40, %v2976_v40 }
 0x33b   : > { %v3014_v15 = vpop.permute.xlu0 %3013 }
 0x33c   : > { %v2898_v6 = vpop.permute.xlu1 %2897  ;;  %v3166_v37 = vpack.c.bf16 %v3152_v21, %v3151_v39  ;;  %v10040_v33 = vunpack.c.l.b16 %v3192_v7  ;;  %v10044_v58 = vunpack.c.l.b16 %v3176_v23  ;;  %v3057_v34 = vadd.f32 %v3014_v15, %v9775_v36  ;;  %v13438_v36 = vld [vmem:[#allocation35_spill] sm:$0xff]  ;;  %v3020_v21 = vpop.permute.xlu2 %3019 }
 0x33d   : > { %v2941_v14 = vadd.f32 %v2898_v6, %v2861_v44  ;;  %v3178_v7 = vpack.c.bf16 %v2978_v60, %v2978_v60  ;;  %v3076_v23 = vrot.slane %v9989_v62, 1  ;;  %v2831_v44 = vrot.slane %v9735_v10, 7 }
 0x33e   : > { %13431 = vst [vmem:[#allocation38_spill] sm:$0xff] %v10040_v33  ;;  %7389 = vmatmul.msk.bf16.gmra.mxu2 %vm13435_vm4, %v3166_v37  ;;  %7397 = vmatmul.msk.bf16.gmra.mxu0 %vm13436_vm8, %v3166_v37  ;;  %v3121_v39 = vadd.f32 %v3105_v49, %v3057_v34  ;;  %v3060_v6 = vadd.f32 %v3020_v21, %v9803_v5  ;;  %v13444_v49 = vrot.slane %v9731_v17, 7  ;;  %vm13445_vm8 = vcmp.lt.s32.totalorder %v8837_v51, 1  ;;  %v13446_v5 = vld [vmem:[#allocation11_spill] sm:$0xff]  ;;  %v7426_v33 = vld [vmem:[%s12952_s9 + $0x18] sm:$0xf] }
 0x33f   : > { %13433 = vst [vmem:[#allocation40_spill] sm:$0xff] %v10044_v58  ;;  %v2957_v40 = vadd.f32 %v2941_v14, %v9972_v32  ;;  %7405 = vmatmul.msk.bf16.gmra.mxu1 %vm13437_vm3, %v3166_v37  ;;  %v3094_v32 = vsel %vm13439_vm12, %v3074_v54, %v3075_v59  ;;  %v3092_v15 = vsel %vm13434_vm11, %v3076_v23, %v13092_v46  ;;  %v10072_v14 = vpop.f32.mrf.mxu0  ;;  %v10078_v10 = vunpack.c.l.b16 %v3178_v7  ;;  %v13442_v54 = vld [vmem:[#allocation8_spill] sm:$0xff] }
 0x340   : > { %v3137_v48 = vadd.f32 %v9891_v8, %v3121_v39  ;;  %vm13443_vm4 = vnez %v13442_v54  ;;  %v2850_v3 = vsel %vm13445_vm8, %v13444_v49, %v2831_v44  ;;  %vm13447_vm3 = vnez %v13446_v5 }
 0x341   : > { %v2977_v63 = vadd.f32 %v9891_v8, %v2957_v40  ;;  %13441 = vst [vmem:[#allocation41_spill] sm:$0xff] %v10078_v10  ;;  %v3106_v40 = vsel %vm13443_vm4, 0.0, %v3094_v32  ;;  %v3108_v21 = vsel %vm13447_vm3, 0.0, %v3092_v15  ;;  %vm13448_vm12 = vnez %v13339_v16 }
 0x342   : > { %v3193_v7 = vpack.c.bf16 %v3137_v48, %v3137_v48  ;;  %v2863_v32 = vsel %vm13448_vm12, 0.0, %v2850_v3  ;;  %v3093_v49 = vsel %vm13434_vm11, %v3075_v59, %v3076_v23  ;;  %v2832_v15 = vrot.slane %v9739_v19, 7  ;;  %v13451_v3 = vld [vmem:[#allocation6_spill] sm:$0xff] }
 0x343   : > { %v3177_v13 = vpack.c.bf16 %v2977_v63, %v2977_v63  ;;  %v3153_v17 = vmax.f32 %v2977_v63, %v3137_v48  ;;  %vm13452_vm8 = vnez %v13451_v3  ;;  %vm13453_vm11 = vcmask 523264  }
 0x344   : > { %v3016_v37 = vpop.permute.xlu1 %3015  ;;  %v10101_v39 = vunpack.c.l.b16 %v3193_v7  ;;  %vm13454_vm3 = vmmov %vm13453_vm11  ;;  %v2833_v48 = vrot.slane %v9749_v0, 7  ;;  %vm13526_vm4 = vcmp.lt.s32.totalorder %v8837_v51, 1 }
 0x345   : > { %v3058_v62 = vadd.f32 %v3016_v37, %v9787_v43  ;;  %v10076_v34 = vunpack.c.l.b16 %v3177_v13  ;;  %v3124_v43 = vadd.f32 %v3108_v21, %v3060_v6  ;;  %v10091_v37 = vpop.f32.mrf.mxu3  ;;  %vm13455_vm12 = vmmov %vm13454_vm3 }
 0x346   : > { %13449 = vst [vmem:[#allocation8_spill] sm:$0xff] %v10101_v39  ;;  %v7765_v39 = vld [vmem:[%s12952_s9 + $0xac] sm:$0xf] }
 0x347   : > { %13440 = vst [vmem:[#allocation35_spill] sm:$0xff] %v10076_v34  ;;  %v3122_v56 = vadd.f32 %v3106_v40, %v3058_v62  ;;  %v2943_v62 = vadd.f32 %v10027_v12, %v2863_v32  ;;  %v3140_v6 = vadd.f32 %v9891_v8, %v3124_v43  ;;  %v10107_v63 = vpop.f32.mrf.mxu0 }
 0x349   : > { %v3138_v13 = vadd.f32 %v9891_v8, %v3122_v56 }
 0x34b   : > { %v3154_v46 = vmax.f32 %v2978_v60, %v3138_v13  ;;  %v3194_v25 = vpack.c.bf16 %v3138_v13, %v3138_v13  ;;  %v3107_v60 = vsel %vm13452_vm8, 0.0, %v3093_v49 }
 0x34c   : > { %v3018_v40 = vpop.permute.xlu1 %3017 }
 0x34d   : > { %v3059_v56 = vadd.f32 %v3018_v40, %v9795_v2  ;;  %v3167_v21 = vpack.c.bf16 %v3154_v46, %v3153_v17  ;;  %v10103_v34 = vunpack.c.l.b16 %v3194_v25  ;;  %v2959_v2 = vadd.f32 %v2943_v62, %v10024_v35  ;;  %v2807_v43 = vpop.f32.mrf.mxu3  ;;  %v3022_v17 = vpop.permute.xlu2 %3021 }
 0x34e   : > { %v2849_v25 = vsel %vm13456_vm6, %v2831_v44, %v2832_v15  ;;  %v3196_v46 = vpack.c.bf16 %v3140_v6, %v3140_v6 }
 0x34f   : > { %13450 = vst [vmem:[#allocation42_spill] sm:$0xff] %v10103_v34  ;;  %v3123_v59 = vadd.f32 %v3107_v60, %v3059_v56  ;;  %7390 = vmatmul.msk.bf16.gmra.mxu2 %vm13453_vm11, %v3167_v21  ;;  %7398 = vmatmul.msk.bf16.gmra.mxu0 %vm13454_vm3, %v3167_v21  ;;  %vm13457_vm3 = vnez %v13335_v27  ;;  %v2979_v32 = vadd.f32 %v9891_v8, %v2959_v2  ;;  %v10128_v56 = vpop.f32.mrf.mxu0  ;;  %vm13464_vm11 = vcmp.lt.s32.totalorder %v8837_v51, 7  ;;  %v7500_v34 = vld [vmem:[%s12952_s9 + $0xb4] sm:$0xf0] }
 0x350   : > { %7406 = vmatmul.msk.bf16.gmra.mxu1 %vm13455_vm12, %v3167_v21  ;;  %v2864_v7 = vsel %vm13457_vm3, 0.0, %v2849_v25  ;;  %v10124_v35 = vunpack.c.l.b16 %v3196_v46  ;;  %v2848_v21 = vsel %vm13456_vm6, %v2832_v15, %v2833_v48  ;;  %v2834_v46 = vrot.slane %v9759_v38, 7 }
 0x351   : > { %v3139_v12 = vadd.f32 %v9891_v8, %v3123_v59  ;;  %v3179_v60 = vpack.c.bf16 %v2979_v32, %v2979_v32  ;;  %v3078_v59 = vrot.slane %v10034_v47, 1  ;;  %vm13460_vm12 = vnez %v13367_v31 }
 0x352   : > { %13459 = vst [vmem:[#allocation44_spill] sm:$0xff] %v10124_v35  ;;  %v13463_v47 = vrot.slane %v10007_v28, 1  ;;  %v3061_v38 = vadd.f32 %v3022_v17, %v9813_v45  ;;  %vm13465_vm6 = vcmask 523264  }
 0x353   : > { %v3195_v23 = vpack.c.bf16 %v3139_v12, %v3139_v12  ;;  %v3155_v2 = vmax.f32 %v2979_v32, %v3139_v12  ;;  %v10138_v19 = vunpack.c.l.b16 %v3179_v60  ;;  %v2835_v12 = vrot.slane %v9765_v53, 7  ;;  %vm13467_vm8 = vmmov %vm13465_vm6 }
 0x354   : > { %v2904_v13 = vpop.permute.xlu0 %2903 }
 0x355   : > { %v2944_v49 = vadd.f32 %v2904_v13, %v2864_v7  ;;  %v10122_v40 = vunpack.c.l.b16 %v3195_v23  ;;  %v2865_v7 = vsel %vm13460_vm12, 0.0, %v2848_v21  ;;  %13461 = vst [vmem:[#allocation45_spill] sm:$0xff] %v10138_v19  ;;  %v2810_v10 = vpop.f32.mrf.mxu3  ;;  %vm13466_vm12 = vmmov %vm13465_vm6  ;;  %v13468_v21 = vld [vmem:[#allocation19_spill] sm:$0xff] }
 0x356   : > { %vm13469_vm3 = vnez %v13468_v21 }
 0x357   : > { %13458 = vst [vmem:[#allocation43_spill] sm:$0xff] %v10122_v40  ;;  %v2960_v62 = vadd.f32 %v2944_v49, %v2802_v29  ;;  %v2836_v29 = vrot.slane %v9773_v1, 7 }
 0x359   : > { %v2980_v0 = vadd.f32 %v9891_v8, %v2960_v62 }
 0x35b   : > { %v3156_v25 = vmax.f32 %v2980_v0, %v3140_v6  ;;  %v3180_v23 = vpack.c.bf16 %v2980_v0, %v2980_v0  ;;  %v3091_v6 = vsel %vm13464_vm11, %v13463_v47, %v3078_v59  ;;  %v3079_v0 = vrot.slane %v10072_v14, 1 }
 0x35c   : > { %v2906_v13 = vpop.permute.xlu0 %2905  ;;  %v2912_v44 = vpop.permute.xlu2 %2911  ;;  %v3109_v28 = vsel %vm13469_vm3, 0.0, %v3091_v6  ;;  %vm13470_vm11 = vcmp.lt.s32.totalorder %v8837_v51, 1 }
 0x35d   : > { %v2945_v49 = vadd.f32 %v2906_v13, %v2865_v7  ;;  %v3168_v62 = vpack.c.bf16 %v3156_v25, %v3155_v2  ;;  %v10140_v15 = vunpack.c.l.b16 %v3180_v23  ;;  %v2845_v53 = vsel %vm13470_vm11, %v2835_v12, %v2836_v29  ;;  %v10163_v2 = vpop.f32.mrf.mxu0 }
 0x35e   : > { %v3125_v17 = vadd.f32 %v3109_v28, %v3061_v38  ;;  %v2868_v14 = vsel %vm9675_vm14, 0.0, %v2845_v53  ;;  %v2812_v53 = vpop.f32.mrf.mxu3  ;;  %vm13476_vm14 = vcmp.lt.s32.totalorder %v8837_v51, 7 }
 0x35f   : > { %13462 = vst [vmem:[#allocation46_spill] sm:$0xff] %v10140_v15  ;;  %7391 = vmatmul.msk.bf16.gmra.mxu2 %vm13465_vm6, %v3168_v62  ;;  %7399 = vmatmul.msk.bf16.gmra.mxu0 %vm13466_vm12, %v3168_v62  ;;  %v2961_v60 = vadd.f32 %v2945_v49, %v10091_v37  ;;  %vm13471_vm6 = vmmov %vm13470_vm11  ;;  %vm13473_vm12 = vcmp.lt.s32.totalorder %v8837_v51, 7  ;;  %v2948_v7 = vadd.f32 %v2912_v44, %v2868_v14  ;;  %vm13474_vm11 = vnez %v13299_v50 }
 0x360   : > { %7407 = vmatmul.msk.bf16.gmra.mxu1 %vm13467_vm8, %v3168_v62  ;;  %v2847_v45 = vsel %vm13471_vm6, %v2833_v48, %v2834_v46  ;;  %vm13472_vm8 = vnez %v13347_v55  ;;  %v3090_v37 = vsel %vm13473_vm12, %v3078_v59, %v3079_v0  ;;  %v3141_v48 = vadd.f32 %v9891_v8, %v3125_v17 }
 0x361   : > { %v2866_v23 = vsel %vm13472_vm8, 0.0, %v2847_v45  ;;  %v2981_v13 = vadd.f32 %v9891_v8, %v2961_v60  ;;  %v3110_v28 = vsel %vm13474_vm11, 0.0, %v3090_v37  ;;  %v3080_v45 = vrot.slane %v10107_v63, 1 }
 0x362   : > { %v2846_v59 = vsel %vm13471_vm6, %v2834_v46, %v2835_v12  ;;  %v2964_v44 = vadd.f32 %v2948_v7, %v2812_v53  ;;  %vm13475_vm12 = vnez %v13371_v26  ;;  %vm13483_vm6 = vcmask 523264  }
 0x363   : > { %v3181_v14 = vpack.c.bf16 %v2981_v13, %v2981_v13  ;;  %v3089_v63 = vsel %vm13476_vm14, %v3079_v0, %v3080_v45  ;;  %v3081_v0 = vrot.slane %v10128_v56, 1  ;;  %vm13485_vm3 = vmmov %vm13483_vm6  ;;  %vm13508_vm11 = vcmp.lt.s32.totalorder %v8837_v51, 1 }
 0x364   : > { %v2908_v25 = vpop.permute.xlu1 %2907  ;;  %v3024_v62 = vpop.permute.xlu0 %3023  ;;  %v2984_v46 = vadd.f32 %v9891_v8, %v2964_v44 }
 0x365   : > { %v2946_v49 = vadd.f32 %v2908_v25, %v2866_v23  ;;  %v3062_v47 = vadd.f32 %v3024_v62, %v9829_v18  ;;  %v10174_v38 = vpop.permute.xlu2 %2913  ;;  %v3197_v18 = vpack.c.bf16 %v3141_v48, %v3141_v48  ;;  %v3157_v23 = vmax.f32 %v2981_v13, %v3141_v48 }
 0x367   : > { %v2962_v6 = vadd.f32 %v2946_v49, %v2807_v43  ;;  %v3126_v32 = vadd.f32 %v3110_v28, %v3062_v47  ;;  %v2867_v43 = vsel %vm13475_vm12, 0.0, %v2846_v59  ;;  %v10187_v47 = vpop.f32.mrf.mxu0  ;;  %v10195_v13 = vunpack.c.l.b16 %v3197_v18  ;;  %vm13484_vm12 = vmmov %vm13483_vm6 }
 0x368   : > { %v13100_v44 = vrot.slane %v10187_v47, 1 }
 0x369   : > { %v2982_v60 = vadd.f32 %v9891_v8, %v2962_v6  ;;  %v3142_v17 = vadd.f32 %v9891_v8, %v3126_v32  ;;  %v10190_v6 = vunpack.c.l.b16 %v3181_v14  ;;  %13479 = vst [vmem:[#allocation49_spill] sm:$0xff] %v10195_v13  ;;  %v7438_v13 = vld [vmem:[%s12952_s9 + $0x30] sm:$0xf] }
 0x36b   : > { %v3182_v25 = vpack.c.bf16 %v2982_v60, %v2982_v60  ;;  %v3158_v37 = vmax.f32 %v2982_v60, %v3142_v17  ;;  %v3198_v62 = vpack.c.bf16 %v3142_v17, %v3142_v17  ;;  %13477 = vst [vmem:[#allocation47_spill] sm:$0xff] %v10190_v6  ;;  %v13481_v17 = vld [vmem:[#allocation7_spill] sm:$0xff] }
 0x36c   : > { %v2910_v49 = vpop.permute.xlu1 %2909  ;;  %v3026_v7 = vpop.permute.xlu0 %3025  ;;  %vm13482_vm14 = vnez %v13481_v17  ;;  %v13494_v60 = vld [vmem:[#allocation3_spill] sm:$0xff]  ;;  %v7494_v17 = vld [vmem:[%s12952_s9 + $0x98] sm:$0xf] }
 0x36d   : > { %v2947_v12 = vadd.f32 %v2910_v49, %v2867_v43  ;;  %v10192_v32 = vunpack.c.l.b16 %v3182_v25  ;;  %v3063_v28 = vadd.f32 %v3026_v7, %v9866_v24  ;;  %v3169_v53 = vpack.c.bf16 %v3158_v37, %v3157_v23  ;;  %v3032_v56 = vpop.permute.xlu2 %3031  ;;  %v13496_v24 = vld [vmem:[#allocation16_spill] sm:$0xff] }
 0x36e   : > { %v10197_v48 = vunpack.c.l.b16 %v3198_v62  ;;  %v3111_v14 = vsel %vm13482_vm14, 0.0, %v3089_v63  ;;  %v3082_v25 = vrot.slane %v10163_v2, 1  ;;  %v2837_v23 = vrot.slane %v9793_v61, 7  ;;  %v13491_v61 = vld [vmem:[#allocation9_spill] sm:$0xff] }
 0x36f   : > { %13478 = vst [vmem:[#allocation48_spill] sm:$0xff] %v10192_v32  ;;  %v2963_v59 = vadd.f32 %v2947_v12, %v2810_v10  ;;  %7392 = vmatmul.msk.bf16.gmra.mxu2 %vm13483_vm6, %v3169_v53  ;;  %7400 = vmatmul.msk.bf16.gmra.mxu0 %vm13484_vm12, %v3169_v53  ;;  %v3127_v43 = vadd.f32 %v3111_v14, %v3063_v28  ;;  %vm13486_vm14 = vcmp.lt.s32.totalorder %v8837_v51, 7  ;;  %v13488_v28 = vld [vmem:[#allocation29_spill] sm:$0xff]  ;;  %vm13495_vm6 = vnez %v13494_v60  ;;  %v13499_v32 = vld [vmem:[#allocation26_spill] sm:$0xff] }
 0x370   : > { %13480 = vst [vmem:[#allocation50_spill] sm:$0xff] %v10197_v48  ;;  %7408 = vmatmul.msk.bf16.gmra.mxu1 %vm13485_vm3, %v3169_v53  ;;  %v3184_v10 = vpack.c.bf16 %v2984_v46, %v2984_v46  ;;  %v3088_v37 = vsel %vm13486_vm14, %v3080_v45, %v3081_v0  ;;  %vm13487_vm12 = vmmov %vm13486_vm14  ;;  %v3066_v62 = vadd.f32 %v3032_v56, %v9943_v4  ;;  %vm13493_vm14 = vcmp.lt.s32.totalorder %v8837_v51, 1  ;;  %v7751_v48 = vld [vmem:[%s12952_s9 + $0x38] sm:$0xf0] }
 0x371   : > { %v2983_v18 = vadd.f32 %v9891_v8, %v2963_v59  ;;  %v3086_v63 = vsel %vm13487_vm12, %v3082_v25, %v13100_v44  ;;  %v3143_v7 = vadd.f32 %v9891_v8, %v3127_v43  ;;  %vm13492_vm3 = vnez %v13491_v61 }
 0x372   : > { %v10224_v2 = vunpack.c.l.b16 %v3184_v10  ;;  %v3112_v45 = vsel %vm13492_vm3, 0.0, %v3088_v37  ;;  %v2844_v14 = vsel %vm13493_vm14, %v2836_v29, %v2837_v23  ;;  %v3114_v4 = vsel %vm13495_vm6, 0.0, %v3086_v63 }
 0x373   : > { %v3183_v49 = vpack.c.bf16 %v2983_v18, %v2983_v18  ;;  %vm13497_vm12 = vnez %v13496_v24  ;;  %v3159_v44 = vmax.f32 %v2983_v18, %v3143_v7  ;;  %vm13498_vm3 = vcmp.lt.s32.totalorder %v8837_v51, 7  ;;  %v13503_v18 = vld [vmem:[#allocation18_spill] sm:$0xff] }
 0x374   : > { %v3028_v12 = vpop.permute.xlu1 %3027  ;;  %13490 = vst [vmem:[#allocation51_spill] sm:$0xff] %v10224_v2  ;;  %v2869_v37 = vsel %vm13497_vm12, 0.0, %v2844_v14  ;;  %v3087_v29 = vsel %vm13498_vm3, %v3081_v0, %v3082_v25  ;;  %v2838_v63 = vrot.slane %v13499_v32, 7  ;;  %vm13504_vm14 = vnez %v13503_v18  ;;  %v7748_v18 = vld [vmem:[%s12952_s9 + $0x20] sm:$0xf0] }
 0x375   : > { %v3064_v53 = vadd.f32 %v3028_v12, %v13488_v28  ;;  %v10222_v59 = vunpack.c.l.b16 %v3183_v49  ;;  %v2815_v12 = vpop.f32.mrf.mxu3  ;;  %v3130_v49 = vadd.f32 %v3114_v4, %v3066_v62  ;;  %v3199_v28 = vpack.c.bf16 %v3143_v7, %v3143_v7  ;;  %v13500_v62 = vld [vmem:[#allocation4_spill] sm:$0xff] }
 0x376   : > { %vm13505_vm3 = vcmask 523264   ;;  %v7427_v24 = vor.u32 %v7748_v18, %v7426_v33 }
 0x377   : > { %13489 = vst [vmem:[#allocation29_spill] sm:$0xff] %v10222_v59  ;;  %v3128_v56 = vadd.f32 %v3112_v45, %v3064_v53  ;;  %v2949_v53 = vadd.f32 %v10174_v38, %v2869_v37  ;;  %v3146_v45 = vadd.f32 %v9891_v8, %v3130_v49  ;;  %v10245_v59 = vunpack.c.l.b16 %v3199_v28  ;;  %vm13506_vm6 = vmmov %vm13505_vm3  ;;  %v13510_v28 = vld [vmem:[#allocation17_spill] sm:$0xff] }
 0x378   : > { %vm13507_vm12 = vmmov %vm13505_vm3 }
 0x379   : > { %v3144_v10 = vadd.f32 %v9891_v8, %v3128_v56  ;;  %13501 = vst [vmem:[#allocation26_spill] sm:$0xff] %v10245_v59  ;;  %v2965_v38 = vadd.f32 %v2949_v53, %v2815_v12  ;;  %vm13524_vm8 = vmmov %vm13505_vm3 }
 0x37b   : > { %v3160_v1 = vmax.f32 %v2984_v46, %v3144_v10  ;;  %v3200_v6 = vpack.c.bf16 %v3144_v10, %v3144_v10  ;;  %v3113_v46 = vsel %vm13504_vm14, 0.0, %v3087_v29  ;;  %vm13511_vm14 = vnez %v13510_v28 }
 0x37c   : > { %v3030_v43 = vpop.permute.xlu1 %3029 }
 0x37d   : > { %v3065_v4 = vadd.f32 %v3030_v43, %v13500_v62  ;;  %v3170_v56 = vpack.c.bf16 %v3160_v1, %v3159_v44  ;;  %v10247_v2 = vunpack.c.l.b16 %v3200_v6  ;;  %v2843_v6 = vsel %vm13508_vm11, %v2837_v23, %v2838_v63  ;;  %v2817_v25 = vpop.f32.mrf.mxu3  ;;  %v13509_v43 = vld [vmem:[#allocation30_spill] sm:$0xff]  ;;  %v2700_v62 = vpop.f32.mrf.mxu0 }
 0x37e   : > { %v3202_v44 = vpack.c.bf16 %v3146_v45, %v3146_v45  ;;  %v2839_v49 = vrot.slane %v13509_v43, 7  ;;  %v2870_v37 = vsel %vm13511_vm14, 0.0, %v2843_v6  ;;  %v2985_v1 = vadd.f32 %v9891_v8, %v2965_v38  ;;  %v3034_v6 = vpop.permute.xlu2 %3033 }
 0x37f   : > { %13502 = vst [vmem:[#allocation4_spill] sm:$0xff] %v10247_v2  ;;  %v3129_v7 = vadd.f32 %v3113_v46, %v3065_v4  ;;  %7393 = vmatmul.msk.bf16.gmra.mxu2 %vm13505_vm3, %v3170_v56  ;;  %7401 = vmatmul.msk.bf16.gmra.mxu0 %vm13506_vm6, %v3170_v56  ;;  %v3084_v43 = vrot.slane %v2700_v62, 1  ;;  %v13520_v62 = vld [vmem:[#allocation34_spill] sm:$0xff] }
 0x380   : > { %7409 = vmatmul.msk.bf16.gmra.mxu1 %vm13507_vm12, %v3170_v56  ;;  %v10265_v53 = vunpack.c.l.b16 %v3202_v44  ;;  %v2842_v46 = vsel %vm13508_vm11, %v2838_v63, %v2839_v49  ;;  %v13514_v44 = vld [vmem:[#allocation5_spill] sm:$0xff]  ;;  %vm13519_vm12 = vcmp.lt.s32.totalorder %v8837_v51, 7  ;;  %vm13521_vm11 = vmmov %vm13505_vm3 }
 0x381   : > { %v3145_v32 = vadd.f32 %v9891_v8, %v3129_v7  ;;  %v3185_v7 = vpack.c.bf16 %v2985_v1, %v2985_v1  ;;  %vm13515_vm6 = vnez %v13514_v44 }
 0x382   : > { %13513 = vst [vmem:[#allocation52_spill] sm:$0xff] %v10265_v53  ;;  %v2871_v19 = vsel %vm13515_vm6, 0.0, %v2842_v46 }
 0x383   : > { %v3201_v14 = vpack.c.bf16 %v3145_v32, %v3145_v32  ;;  %v3161_v0 = vmax.f32 %v2985_v1, %v3145_v32  ;;  %v10274_v15 = vunpack.c.l.b16 %v3185_v7  ;;  %v3067_v32 = vadd.f32 %v3034_v6, %v13520_v62  ;;  %v13527_v6 = vld [vmem:[#allocation31_spill] sm:$0xff] }
 0x384   : > { %v2916_v10 = vpop.permute.xlu0 %2915 }
 0x385   : > { %v2950_v29 = vadd.f32 %v2916_v10, %v2870_v37  ;;  %v10263_v12 = vunpack.c.l.b16 %v3201_v14  ;;  %v2820_v14 = vpop.f32.mrf.mxu3  ;;  %13516 = vst [vmem:[#allocation53_spill] sm:$0xff] %v10274_v15 }
 0x387   : > { %13512 = vst [vmem:[#allocation30_spill] sm:$0xff] %v10263_v12  ;;  %v2966_v4 = vadd.f32 %v2950_v29, %v2817_v25 }
 0x389   : > { %v2986_v56 = vadd.f32 %v9891_v8, %v2966_v4  ;;  %v13518_v4 = vrot.slane %v10187_v47, 1  ;;  %v13525_v47 = vrot.slane %v9827_v20, 7 }
 0x38b   : > { %v3162_v38 = vmax.f32 %v2986_v56, %v3146_v45  ;;  %v3186_v10 = vpack.c.bf16 %v2986_v56, %v2986_v56  ;;  %v3085_v63 = vsel %vm13519_vm12, %v13518_v4, %v3084_v43  ;;  %v2841_v56 = vsel %vm13526_vm4, %v2839_v49, %v13525_v47  ;;  %v7498_v49 = vld [vmem:[%s12952_s9 + $0xa8] sm:$0xf]  ;;  %v13532_v47 = vld [vmem:[#allocation25_spill] sm:$0xff] }
 0x38c   : > { %v2918_v37 = vpop.permute.xlu0 %2917  ;;  %vm13528_vm12 = vnez %v13527_v6  ;;  %vm13533_vm4 = vnez %v13532_v47 }
 0x38d   : > { %v2951_v25 = vadd.f32 %v2918_v37, %v2871_v19  ;;  %v3171_v29 = vpack.c.bf16 %v3162_v38, %v3161_v0  ;;  %v10276_v23 = vunpack.c.l.b16 %v3186_v10  ;;  %v13522_v19 = vld [vmem:[#allocation13_spill] sm:$0xff]  ;;  %v2872_v38 = vsel %vm13528_vm12, 0.0, %v2841_v56  ;;  %v13529_v10 = vld [vmem:[#allocation28_spill] sm:$0xff] }
 0x38e   : > { %vm13523_vm14 = vnez %v13522_v19  ;;  %v13530_v37 = vrot.slane %v13529_v10, 1 }
 0x38f   : > { %13517 = vst [vmem:[#allocation54_spill] sm:$0xff] %v10276_v23  ;;  %7394 = vmatmul.msk.bf16.gmra.mxu2 %vm13505_vm3, %v3171_v29  ;;  %7402 = vmatmul.msk.bf16.gmra.mxu0 %vm13521_vm11, %v3171_v29  ;;  %v3115_v0 = vsel %vm13523_vm14, 0.0, %v3085_v63  ;;  %v2967_v1 = vadd.f32 %v2951_v25, %v2820_v14  ;;  %vm13531_vm3 = vcmp.lt.s32.totalorder %v8837_v51, 7  ;;  %vm13538_vm11 = vmmov %vm13524_vm8 }
 0x390   : > { %7410 = vmatmul.msk.bf16.gmra.mxu1 %vm13524_vm8, %v3171_v29  ;;  %v3131_v46 = vadd.f32 %v3115_v0, %v3067_v32  ;;  %v3100_v4 = vsel %vm13531_vm3, %v3084_v43, %v13530_v37  ;;  %v2822_v29 = vpop.f32.mrf.mxu3  ;;  %v7766_v32 = vld [vmem:[%s12952_s9 + $0xb0] sm:$0xf0]  ;;  %vm13539_vm3 = vmmov %vm13524_vm8 }
 0x391   : > { %v2987_v63 = vadd.f32 %v9891_v8, %v2967_v1  ;;  %v3116_v43 = vsel %vm13533_vm4, 0.0, %v3100_v4  ;;  %v7499_v1 = vor.u32 %v7766_v32, %v7498_v49 }
 0x392   : > { %v3147_v20 = vadd.f32 %v9891_v8, %v3131_v46 }
 0x393   : > { %3788 = vmatpush.bf16.msrb.mxu3 %v7499_v1  ;;  %v3187_v46 = vpack.c.bf16 %v2987_v63, %v2987_v63 }
 0x394   : > { %v2920_v7 = vpop.permute.xlu1 %2919  ;;  %v3163_v37 = vmax.f32 %v2987_v63, %v3147_v20 }
 0x395   : > { %v2952_v14 = vadd.f32 %v2920_v7, %v2872_v38  ;;  %v3036_v25 = vpop.permute.xlu0 %3035  ;;  %v3203_v38 = vpack.c.bf16 %v3147_v20, %v3147_v20  ;;  %v10313_v15 = vunpack.c.l.b16 %v3187_v46  ;;  %v7486_v20 = vld [vmem:[%s12952_s9 + $0x90] sm:$0xf]  ;;  %v7760_v46 = vld [vmem:[%s12952_s9 + $0x80] sm:$0xf0] }
 0x396   : > { %v3068_v62 = vadd.f32 %v3036_v25, %v9970_v57 }
 0x397   : > { %v2968_v0 = vadd.f32 %v2952_v14, %v2822_v29  ;;  %13534 = vst [vmem:[#allocation34_spill] sm:$0xff] %v10313_v15  ;;  %v10317_v29 = vunpack.c.l.b16 %v3203_v38 }
 0x398   : > { %v3132_v56 = vadd.f32 %v3116_v43, %v3068_v62 }
 0x399   : > { %v2988_v7 = vadd.f32 %v9891_v8, %v2968_v0  ;;  %13536 = vst [vmem:[#allocation55_spill] sm:$0xff] %v10317_v29  ;;  %v7450_v29 = vld [vmem:[%s12952_s9 + $0x48] sm:$0xf] }
 0x39a   : > { %v3148_v57 = vadd.f32 %v9891_v8, %v3132_v56 }
 0x39b   : > { %v3188_v10 = vpack.c.bf16 %v2988_v7, %v2988_v7 }
 0x39c   : > { %v3164_v25 = vmax.f32 %v2988_v7, %v3148_v57  ;;  %v3204_v45 = vpack.c.bf16 %v3148_v57, %v3148_v57  ;;  %v7474_v7 = vld [vmem:[%s12952_s9 + $0x78] sm:$0xf] }
 0x39d   : > { %v10315_v23 = vunpack.c.l.b16 %v3188_v10  ;;  %v7475_v38 = vor.u32 %v7760_v46, %v7474_v7 }
 0x39e   : > { %v3172_v14 = vpack.c.bf16 %v3164_v25, %v3163_v37  ;;  %v10319_v4 = vunpack.c.l.b16 %v3204_v45  ;;  %v7763_v45 = vld [vmem:[%s12952_s9 + $0x98] sm:$0xf0] }
 0x39f   : > { %13535 = vst [vmem:[#allocation28_spill] sm:$0xff] %v10315_v23  ;;  %v7487_v32 = vor.u32 %v7763_v45, %v7486_v20  ;;  %v7462_v45 = vld [vmem:[%s12952_s9 + $0x60] sm:$0xf] }
 0x3a0   : > { %13537 = vst [vmem:[#allocation56_spill] sm:$0xff] %v10319_v4  ;;  %7395 = vmatmul.msk.bf16.gmra.mxu2 %vm13524_vm8, %v3172_v14  ;;  %7403 = vmatmul.msk.bf16.gmra.mxu0 %vm13538_vm11, %v3172_v14  ;;  %vm13553_vm8 = vcmp.lt.s32.totalorder %v8837_v51, 1 }
 0x3a1   : > { %7411 = vmatmul.msk.bf16.gmra.mxu1 %vm13539_vm3, %v3172_v14  ;;  %3789 = vmatpush.bf16.msrb.mxu3 %v7487_v32  ;;  %v7757_v32 = vld [vmem:[%s12952_s9 + $0x68] sm:$0xf0]  ;;  %vm13554_vm11 = vmmov %vm13553_vm8  ;;  %vm13555_vm3 = vcmp.lt.s32.totalorder %v8837_v51, 7 }
 0x3a2   : > { %v7463_v7 = vor.u32 %v7757_v32, %v7462_v45  ;;  %v7754_v45 = vld [vmem:[%s12952_s9 + $0x50] sm:$0xf0] }
 0x3a3   : > { %v10328_v63 = vpop.f32.mrf.mxu0  ;;  %v7451_v4 = vor.u32 %v7754_v45, %v7450_v29  ;;  %v7439_v29 = vor.u32 %v7751_v48, %v7438_v13  ;;  %v7506_v13 = vld [vmem:[%s12952_s9 + $0xb0] sm:$0xf]  ;;  %v7503_v48 = vor.u32 %v7765_v39, %v7500_v34  ;;  %v7762_v34 = vld [vmem:[%s12952_s9 + $0x94] sm:$0xf]  ;;  %v7488_v39 = vld [vmem:[%s12952_s9 + $0x9c] sm:$0xf0] }
 0x3a4   : > { %v10336_v49 = vpop.f32.mrf.mxu1  ;;  %v7491_v33 = vor.u32 %v7762_v34, %v7488_v39  ;;  %v7761_v34 = vld [vmem:[%s12952_s9 + $0x88] sm:$0xf0] }
 0x3a5   : > { %3790 = vmatpush.bf16.msrb.mxu3 %v7475_v38  ;;  %3837 = vmatpush.bf16.msrb.mxu2 %v7503_v48  ;;  %v7476_v48 = vld [vmem:[%s12952_s9 + $0x84] sm:$0xf0]  ;;  %v3520_v50 = vrot.slane %v10336_v49, 1 }
 0x3a9   : > { %v10338_v0 = vpop.f32.mrf.mxu2  ;;  %3791 = vmatpush.bf16.msrb.mxu3 %v7463_v7  ;;  %3838 = vmatpush.bf16.msrb.mxu2 %v7491_v33  ;;  %v7756_v33 = vld [vmem:[%s12952_s9 + $0x64] sm:$0xf] }
 0x3ab   : > { %v10340_v43 = vpop.f32.mrf.mxu0 }
 0x3ac   : > { %v10342_v1 = vpop.f32.mrf.mxu1 }
 0x3ad   : > { %3792 = vmatpush.bf16.msrb.mxu3 %v7451_v4 }
 0x3b1   : > { %v10344_v56 = vpop.f32.mrf.mxu2  ;;  %3793 = vmatpush.bf16.msrb.mxu3 %v7439_v29  ;;  %v7767_v29 = vld [vmem:[%s12952_s9 + $0xb8] sm:$0xf0] }
 0x3b2   : > { %v7507_v60 = vor.u32 %v7767_v29, %v7506_v13  ;;  %v7759_v13 = vld [vmem:[%s12952_s9 + $0x7c] sm:$0xf] }
 0x3b3   : > { %v7479_v29 = vor.u32 %v7759_v13, %v7476_v48 }
 0x3b4   : > { %3886 = vmatpush.bf16.msra.mxu0 %v7507_v60  ;;  %v7764_v60 = vld [vmem:[%s12952_s9 + $0xa0] sm:$0xf0] }
 0x3b5   : > { %3794 = vmatpush.bf16.msrb.mxu3 %v7427_v24  ;;  %v7495_v18 = vor.u32 %v7764_v60, %v7494_v17  ;;  %v7482_v24 = vld [vmem:[%s12952_s9 + $0x80] sm:$0xf]  ;;  %3839 = vmatpush.bf16.msrb.mxu2 %v7479_v29  ;;  %v7464_v60 = vld [vmem:[%s12952_s9 + $0x6c] sm:$0xf0] }
 0x3b6   : > { %v7483_v39 = vor.u32 %v7761_v34, %v7482_v24  ;;  %v7467_v48 = vor.u32 %v7756_v33, %v7464_v60  ;;  %v7758_v24 = vld [vmem:[%s12952_s9 + $0x70] sm:$0xf0]  ;;  %v7458_v33 = vld [vmem:[%s12952_s9 + $0x50] sm:$0xf] }
 0x3b8   : > { %3887 = vmatpush.bf16.msra.mxu0 %v7495_v18  ;;  %v7470_v18 = vld [vmem:[%s12952_s9 + $0x68] sm:$0xf] }
 0x3b9   : > { %v7471_v34 = vor.u32 %v7758_v24, %v7470_v18  ;;  %3840 = vmatpush.bf16.msrb.mxu2 %v7467_v48  ;;  %v7414_v48 = vld [vmem:[%s12952_s9] sm:$0xf]  ;;  %v7745_v24 = vld [vmem:[%s12952_s9 + $0x8] sm:$0xf0] }
 0x3ba   : > { %v7415_v26 = vor.u32 %v7745_v24, %v7414_v48  ;;  %v7747_v48 = vld [vmem:[%s12952_s9 + $0x1c] sm:$0xf]  ;;  %v7428_v24 = vld [vmem:[%s12952_s9 + $0x24] sm:$0xf0] }
 0x3bb   : > { %v10352_v57 = vpop.f32.mrf.mxu0 }
 0x3bc   : > { %v10354_v10 = vpop.f32.mrf.mxu1  ;;  %3888 = vmatpush.bf16.msra.mxu0 %v7483_v39  ;;  %v7753_v39 = vld [vmem:[%s12952_s9 + $0x4c] sm:$0xf]  ;;  %3795 = vmatpush.bf16.msrb.mxu3 %v7415_v26  ;;  %v7434_v26 = vld [vmem:[%s12952_s9 + $0x20] sm:$0xf] }
 0x3c0   : > { %3889 = vmatpush.bf16.msra.mxu0 %v7471_v34 }
 0x3c1   : > { %v10356_v37 = vpop.f32.mrf.mxu2 }
 0x3c3   : > { %v10358_v25 = vpop.f32.mrf.mxu0 }
 0x3c4   : > { %v10360_v14 = vpop.f32.mrf.mxu1 }
 0x3c9   : > { %v10362_v20 = vpop.f32.mrf.mxu2 }
 0x3cc   : > { %v10370_v46 = vpop.f32.mrf.mxu0 }
 0x3cd   : > { %v10372_v38 = vpop.f32.mrf.mxu1 }
 0x3d2   : > { %v10374_v62 = vpop.f32.mrf.mxu2 }
 0x3d4   : > { %v10376_v8 = vpop.f32.mrf.mxu0 }
 0x3d5   : > { %v10378_v15 = vpop.f32.mrf.mxu1 }
 0x3da   : > { %v10380_v23 = vpop.f32.mrf.mxu2 }
 0x3dc   : > { %v10388_v32 = vpop.f32.mrf.mxu0 }
 0x3dd   : > { %v10390_v7 = vpop.f32.mrf.mxu1 }
 0x3e2   : > { %v10392_v12 = vpop.f32.mrf.mxu2 }
 0x3e4   : > { %v10394_v53 = vpop.f32.mrf.mxu0 }
 0x3e5   : > { %v10396_v59 = vpop.f32.mrf.mxu1 }
 0x3ea   : > { %v10398_v2 = vpop.f32.mrf.mxu2 }
 0x3ec   : > { %v10406_v45 = vpop.f32.mrf.mxu0 }
 0x3ed   : > { %13540 = vst [vmem:[#allocation57_spill] sm:$0xff] %v10406_v45  ;;  %v10408_v4 = vpop.f32.mrf.mxu1 }
 0x3f2   : > { %v10410_v58 = vpop.f32.mrf.mxu2 }
 0x3f4   : > { %v10412_v40 = vpop.f32.mrf.mxu0 }
 0x3f5   : > { %13541 = vst [vmem:[#allocation58_spill] sm:$0xff] %v10412_v40  ;;  %v10414_v35 = vpop.f32.mrf.mxu1 }
 0x3fa   : > { %v10428_v9 = vpop.f32.mrf.mxu2 }
 0x3fc   : > { %v10436_v28 = vpop.f32.mrf.mxu0 }
 0x3fd   : > { %13542 = vst [vmem:[#allocation59_spill] sm:$0xff] %v10436_v28  ;;  %v10447_v61 = vpop.f32.mrf.mxu1  ;;  %v7452_v28 = vld [vmem:[%s12952_s9 + $0x54] sm:$0xf0] }
 0x3fe   : > { %v7455_v60 = vor.u32 %v7753_v39, %v7452_v28  ;;  %v7750_v28 = vld [vmem:[%s12952_s9 + $0x34] sm:$0xf]  ;;  %v7440_v39 = vld [vmem:[%s12952_s9 + $0x3c] sm:$0xf0] }
 0x400   : > { %3841 = vmatpush.bf16.msrb.mxu2 %v7455_v60 }
 0x402   : > { %v10464_v17 = vpop.f32.mrf.mxu2 }
 0x403   : > { %13543 = vst [vmem:[#allocation60_spill] sm:$0xff] %v10464_v17  ;;  %v7443_v17 = vor.u32 %v7750_v28, %v7440_v39  ;;  %v7744_v39 = vld [vmem:[%s12952_s9 + $0x4] sm:$0xf] }
 0x404   : > { %v10480_v29 = vpop.f32.mrf.mxu0 }
 0x405   : > { %v10475_v13 = vpop.f32.mrf.mxu1  ;;  %13545 = vst [vmem:[#allocation62_spill] sm:$0xff] %v10480_v29  ;;  %v7755_v29 = vld [vmem:[%s12952_s9 + $0x58] sm:$0xf0]  ;;  %3842 = vmatpush.bf16.msrb.mxu2 %v7443_v17 }
 0x406   : > { %13544 = vst [vmem:[#allocation61_spill] sm:$0xff] %v10475_v13  ;;  %v7459_v34 = vor.u32 %v7755_v29, %v7458_v33  ;;  %v7752_v29 = vld [vmem:[%s12952_s9 + $0x40] sm:$0xf0] }
 0x407   : > { %v7447_v33 = vor.u32 %v7752_v29, %v7446_v30  ;;  %v7749_v30 = vld [vmem:[%s12952_s9 + $0x28] sm:$0xf0]  ;;  %v7416_v29 = vld [vmem:[%s12952_s9 + $0xc] sm:$0xf0] }
 0x408   : > { %3890 = vmatpush.bf16.msra.mxu0 %v7459_v34  ;;  %v7431_v34 = vor.u32 %v7747_v48, %v7428_v24  ;;  %v7435_v28 = vor.u32 %v7749_v30, %v7434_v26  ;;  %v7419_v24 = vor.u32 %v7744_v39, %v7416_v29  ;;  %v7746_v26 = vld [vmem:[%s12952_s9 + $0x10] sm:$0xf0] }
 0x40a   : > { %v10494_v18 = vpop.f32.mrf.mxu2  ;;  %3843 = vmatpush.bf16.msrb.mxu2 %v7431_v34 }
 0x40b   : > { %13546 = vst [vmem:[#allocation63_spill] sm:$0xff] %v10494_v18 }
 0x40c   : > { %v10516_v60 = vpop.f32.mrf.mxu0  ;;  %3891 = vmatpush.bf16.msra.mxu0 %v7447_v33  ;;  %v7422_v33 = vld [vmem:[%s12952_s9 + $0x8] sm:$0xf] }
 0x40d   : > { %v10511_v13 = vpop.f32.mrf.mxu1  ;;  %13548 = vst [vmem:[#allocation65_spill] sm:$0xff] %v10516_v60  ;;  %v7423_v34 = vor.u32 %v7746_v26, %v7422_v33  ;;  %v3521_v33 = vrot.slane %v10342_v1, 1 }
 0x40e   : > { %13547 = vst [vmem:[#allocation64_spill] sm:$0xff] %v10511_v13  ;;  %3844 = vmatpush.bf16.msrb.mxu2 %v7419_v24  ;;  %v3456_v13 = vrot.slane %v10338_v0, 7 }
 0x410   : > { %3892 = vmatpush.bf16.msra.mxu0 %v7435_v28 }
 0x412   : > { %v10530_v17 = vpop.f32.mrf.mxu2 }
 0x413   : > { %13549 = vst [vmem:[#allocation66_spill] sm:$0xff] %v10530_v17  ;;  %v3457_v17 = vrot.slane %v10344_v56, 7 }
 0x414   : > { %3893 = vmatpush.bf16.msra.mxu0 %v7423_v34  ;;  %v10546_v30 = vpop.f32.mrf.mxu0 }
 0x415   : > { %v10541_v48 = vpop.f32.mrf.mxu1  ;;  %13551 = vst [vmem:[#allocation68_spill] sm:$0xff] %v10546_v30  ;;  %v3486_v24 = vsel %vm13553_vm8, %v3456_v13, %v3457_v17  ;;  %vm13556_vm8 = vmmov %vm13555_vm3 }
 0x416   : > { %13550 = vst [vmem:[#allocation67_spill] sm:$0xff] %v10541_v48  ;;  %v3522_v48 = vrot.slane %v10354_v10, 1  ;;  %v3489_v1 = vsel %vm9327_vm13, 0.0, %v3486_v24 }
 0x417   : > { %v3505_v40 = vadd.f32 %v3489_v1, %v10340_v43 }
 0x418   : > { %v3549_v0 = vsel %vm13555_vm3, %v3521_v33, %v3522_v48 }
 0x41a   : > { %v10548_v28 = vpop.f32.mrf.mxu2 }
 0x41b   : > { %13552 = vst [vmem:[#allocation69_spill] sm:$0xff] %v10548_v28  ;;  %v13131_v29 = vrot.slane %v10548_v28, 7 }
 0x41d   : > { %v3402_v26 = vpop.f32.mrf.mxu0 }
 0x41e   : > { %v10550_v60 = vpop.f32.mrf.mxu1 }
 0x41f   : > { %v13136_v10 = vrot.slane %v10550_v60, 1 }
 0x423   : > { %v3353_v39 = vpop.f32.mrf.mxu2 }
 0x424   : > { %v3470_v18 = vrot.slane %v3353_v39, 7 }
 0x426   : > { %v3473_v34 = vsel %vm13554_vm11, %v13131_v29, %v3470_v18  ;;  %v3453_v56 = vpop.f32.mrf.mxu1  ;;  %v3553_v29 = vsel %vm9131_vm5, 0.0, %v3549_v0  ;;  %vm13558_vm11 = vmmov %vm13555_vm3 }
 0x427   : > { %v3502_v39 = vsel %vm13515_vm6, 0.0, %v3473_v34  ;;  %v3535_v30 = vrot.slane %v3453_v56, 1  ;;  %v3550_v24 = vsel %vm13558_vm11, %v3520_v50, %v3521_v33  ;;  %v3569_v11 = vadd.f32 %v3553_v29, %v3505_v40  ;;  %v3404_v40 = vpop.f32.mrf.mxu0 }
 0x428   : > { %v3518_v45 = vadd.f32 %v3502_v39, %v3402_v26  ;;  %v3459_v26 = vrot.slane %v10362_v20, 7  ;;  %v3458_v33 = vrot.slane %v10356_v37, 7 }
 0x429   : > { %v3536_v28 = vsel %vm13556_vm8, %v13136_v10, %v3535_v30  ;;  %v10585_v10 = vld [vmem:[%s12951_s8] ss:$0 sm:$0xff]  ;;  %v3551_v49 = vsel %vm13555_vm3, %v3535_v30, %v3520_v50  ;;  %vm13559_vm8 = vcmp.lt.s32.totalorder %v8837_v51, 1  ;;  %v13562_v50 = vld [vmem:[#allocation33_spill] sm:$0xff] }
 0x42a   : > { %v3566_v34 = vsel %vm13523_vm14, 0.0, %v3536_v28  ;;  %vm13560_vm14 = vmmov %vm13559_vm8  ;;  %vm13563_vm11 = vnez %v13562_v50  ;;  %v3567_v37 = vsel %vm13533_vm4, 0.0, %v3551_v49 }
 0x42b   : > { %v3355_v56 = vpop.f32.mrf.mxu2  ;;  %v3582_v43 = vadd.f32 %v3566_v34, %v3518_v45  ;;  %v3552_v45 = vsel %vm13563_vm11, 0.0, %v3550_v24  ;;  %vm13564_vm3 = vmmov %vm13559_vm8 }
 0x42c   : > { %v3471_v44 = vrot.slane %v3355_v56, 7 }
 0x42e   : > { %v3472_v28 = vsel %vm13559_vm8, %v3470_v18, %v3471_v44  ;;  %v3487_v0 = vsel %vm13560_vm14, %v3471_v44, %v3456_v13  ;;  %v3589_v18 = vadd.f32 %v10585_v10, %v3569_v11  ;;  %v3484_v44 = vsel %vm13564_vm3, %v3458_v33, %v3459_v26  ;;  %vm13565_vm14 = vmmov %vm13564_vm3 }
 0x42f   : > { %v3488_v39 = vsel %vm9357_vm15, 0.0, %v3487_v0  ;;  %v3503_v1 = vsel %vm13528_vm12, 0.0, %v3472_v28  ;;  %v3524_v13 = vrot.slane %v10372_v38, 1  ;;  %v3602_v28 = vadd.f32 %v10585_v10, %v3582_v43 }
 0x430   : > { %v3504_v20 = vadd.f32 %v3488_v39, %v10328_v63  ;;  %v3519_v56 = vadd.f32 %v3503_v1, %v3404_v40  ;;  %v3485_v63 = vsel %vm13565_vm14, %v3457_v17, %v3458_v33  ;;  %v3523_v0 = vrot.slane %v10360_v14, 1 }
 0x431   : > { %v3605_v40 = vmax.f32 %v3589_v18, 0.0  ;;  %v3491_v39 = vsel %vm9460_vm2, 0.0, %v3484_v44  ;;  %vm13566_vm8 = vcmp.lt.s32.totalorder %v8837_v51, 7  ;;  %v3618_v1 = vmax.f32 %v3602_v28, 0.0  ;;  %v13568_v44 = vld [vmem:[#allocation14_spill] sm:$0xff] }
 0x432   : > { %v3568_v30 = vadd.f32 %v3552_v45, %v3504_v20  ;;  %v3583_v34 = vadd.f32 %v3567_v37, %v3519_v56  ;;  %v3547_v38 = vsel %vm13566_vm8, %v3523_v0, %v3524_v13  ;;  %v3490_v43 = vsel %vm9411_vm1, 0.0, %v3485_v63  ;;  %vm13567_vm3 = vmmov %vm13566_vm8 }
 0x433   : > { %v3548_v14 = vsel %vm13567_vm3, %v3522_v48, %v3523_v0  ;;  %v3507_v17 = vadd.f32 %v3491_v39, %v10358_v25  ;;  %v3555_v45 = vsel %vm9244_vm10, 0.0, %v3547_v38  ;;  %v3506_v18 = vadd.f32 %v3490_v43, %v10352_v57  ;;  %vm13569_vm8 = vmmov %vm13565_vm14  ;;  %v13570_v39 = vld [vmem:[#allocation10_spill] sm:$0xff] }
 0x434   : > { %v3588_v24 = vadd.f32 %v10585_v10, %v3568_v30  ;;  %v3603_v11 = vadd.f32 %v10585_v10, %v3583_v34  ;;  %v3554_v37 = vsel %vm9189_vm7, 0.0, %v3548_v14  ;;  %v3461_v48 = vrot.slane %v10380_v23, 7 }
 0x435   : > { %v3571_v30 = vadd.f32 %v3555_v45, %v3507_v17  ;;  %v3570_v34 = vadd.f32 %v3554_v37, %v3506_v18  ;;  %v3460_v25 = vrot.slane %v10374_v62, 7  ;;  %v3526_v0 = vrot.slane %v10390_v7, 1 }
 0x436   : > { %v3604_v49 = vmax.f32 %v3588_v24, 0.0  ;;  %v3619_v20 = vmax.f32 %v3603_v11, 0.0  ;;  %v3525_v11 = vrot.slane %v10378_v15, 1  ;;  %v3528_v18 = vrot.slane %v10408_v4, 1 }
 0x437   : > { %v3591_v28 = vadd.f32 %v10585_v10, %v3571_v30  ;;  %v3482_v63 = vsel %vm13565_vm14, %v3460_v25, %v3461_v48  ;;  %v3590_v57 = vadd.f32 %v10585_v10, %v3570_v34  ;;  %v3483_v24 = vsel %vm13569_vm8, %v3459_v26, %v3460_v25  ;;  %vm13571_vm14 = vmmov %vm13567_vm3 }
 0x438   : > { %v3620_v33 = vpack.c.bf16 %v3605_v40, %v3604_v49  ;;  %v10623_v56 = vpack.c.bf16 %v3619_v20, %v3618_v1  ;;  %v3493_v23 = vsel %vm9543_vm0, 0.0, %v3482_v63  ;;  %v3545_v62 = vsel %vm13567_vm3, %v3525_v11, %v3526_v0 }
 0x439   : > { %v3607_v40 = vmax.f32 %v3591_v28, 0.0  ;;  %v3606_v38 = vmax.f32 %v3590_v57, 0.0  ;;  %v3492_v49 = vsel %vm9513_vm9, 0.0, %v3483_v24  ;;  %v3546_v7 = vsel %vm13571_vm14, %v3524_v13, %v3525_v11 }
 0x43a   : > { %3796 = vmatmul.bf16.vlgmr.msrb.gmra.mxu3 %v3620_v33  ;;  %3845 = vmatmul.bf16.vlgmr.msrb.gmra.mxu2 %v3620_v33  ;;  %v3509_v1 = vadd.f32 %v3493_v23, %v10376_v8  ;;  %vm13572_vm8 = vnez %v13442_v54  ;;  %v3508_v26 = vadd.f32 %v3492_v49, %v10370_v46  ;;  %vm13573_vm0 = vnez %v13438_v36 }
 0x43b   : > { %3894 = vmatmul.bf16.vlgmr.msra.gmra.mxu0 %v3620_v33  ;;  %v3621_v20 = vpack.c.bf16 %v3607_v40, %v3606_v38  ;;  %v3557_v15 = vsel %vm13572_vm8, 0.0, %v3545_v62  ;;  %v3556_v43 = vsel %vm13573_vm0, 0.0, %v3546_v7  ;;  %v3463_v33 = vrot.slane %v10398_v2, 7 }
 0x43c   : > { %v3573_v14 = vadd.f32 %v3557_v15, %v3509_v1  ;;  %v3572_v17 = vadd.f32 %v3556_v43, %v3508_v26  ;;  %v3462_v13 = vrot.slane %v10392_v12, 7  ;;  %vm13574_vm3 = vcmp.lt.s32.totalorder %v8837_v51, 1  ;;  %v13588_v26 = vld [vmem:[#allocation58_spill] sm:$0xff] }
 0x43d   : > { %vm13575_vm14 = vmmov %vm13574_vm3  ;;  %v3527_v30 = vrot.slane %v10396_v59, 1  ;;  %vm13576_vm0 = vnez %v13335_v27  ;;  %vm13577_vm8 = vcmp.lt.s32.totalorder %v8837_v51, 7  ;;  %vm13578_vm9 = vnez %v13339_v16 }
 0x43e   : > { %v3593_v8 = vadd.f32 %v10585_v10, %v3573_v14  ;;  %v3480_v45 = vsel %vm13574_vm3, %v3462_v13, %v3463_v33  ;;  %v3592_v46 = vadd.f32 %v10585_v10, %v3572_v17  ;;  %v3481_v37 = vsel %vm13575_vm14, %v3461_v48, %v3462_v13  ;;  %vm13579_vm3 = vmmov %vm13577_vm8  ;;  %v13589_v17 = vld [vmem:[#allocation20_spill] sm:$0xff] }
 0x43f   : > { %v3495_v2 = vsel %vm13576_vm0, 0.0, %v3480_v45  ;;  %v3543_v12 = vsel %vm13577_vm8, %v3527_v30, %v3528_v18  ;;  %v3494_v28 = vsel %vm13578_vm9, 0.0, %v3481_v37  ;;  %v3544_v4 = vsel %vm13579_vm3, %v3526_v0, %v3527_v30  ;;  %v13594_v30 = vld [vmem:[#allocation63_spill] sm:$0xff] }
 0x440   : > { %v3609_v34 = vmax.f32 %v3593_v8, 0.0  ;;  %v3608_v25 = vmax.f32 %v3592_v46, 0.0  ;;  %v3511_v63 = vadd.f32 %v3495_v2, %v10394_v53  ;;  %vm13580_vm14 = vnez %v13446_v5  ;;  %v13592_v8 = vld [vmem:[#allocation19_spill] sm:$0xff]  ;;  %v13595_v2 = vld [vmem:[#allocation60_spill] sm:$0xff] }
 0x441   : > { %v3559_v59 = vsel %vm13580_vm14, 0.0, %v3543_v12  ;;  %v3510_v48 = vadd.f32 %v3494_v28, %v10388_v32  ;;  %vm13581_vm0 = vnez %v13451_v3  ;;  %v3465_v23 = vrot.slane %v10428_v9, 7  ;;  %v13597_v28 = vld [vmem:[#allocation64_spill] sm:$0xff] }
 0x442   : > { %v3622_v57 = vpack.c.bf16 %v3609_v34, %v3608_v25  ;;  %v3558_v24 = vsel %vm13581_vm0, 0.0, %v3544_v4  ;;  %v3575_v11 = vadd.f32 %v3559_v59, %v3511_v63  ;;  %v3464_v0 = vrot.slane %v10410_v58, 7  ;;  %v13599_v59 = vld [vmem:[#allocation61_spill] sm:$0xff] }
 0x443   : > { %v3574_v40 = vadd.f32 %v3558_v24, %v3510_v48  ;;  %vm13582_vm8 = vcmp.lt.s32.totalorder %v8837_v51, 1  ;;  %v3530_v38 = vrot.slane %v10447_v61, 1  ;;  %v3529_v7 = vrot.slane %v10414_v35, 1 }
 0x444   : > { %v3595_v53 = vadd.f32 %v10585_v10, %v3575_v11  ;;  %v3478_v62 = vsel %vm13582_vm8, %v3464_v0, %v3465_v23  ;;  %vm13583_vm3 = vmmov %vm13582_vm8  ;;  %vm13584_vm0 = vnez %v13347_v55  ;;  %vm13585_vm14 = vcmp.lt.s32.totalorder %v8837_v51, 7  ;;  %v13600_v11 = vld [vmem:[#allocation27_spill] sm:$0xff] }
 0x445   : > { %v3594_v32 = vadd.f32 %v10585_v10, %v3574_v40  ;;  %v3479_v49 = vsel %vm13583_vm3, %v3463_v33, %v3464_v0  ;;  %v3497_v9 = vsel %vm13584_vm0, 0.0, %v3478_v62  ;;  %v3541_v58 = vsel %vm13585_vm14, %v3529_v7, %v3530_v38  ;;  %vm13587_vm8 = vmmov %vm13585_vm14  ;;  %v13591_v33 = vld [vmem:[#allocation57_spill] sm:$0xff]  ;;  %v13603_v62 = vld [vmem:[#allocation32_spill] sm:$0xff] }
 0x446   : > { %v3611_v1 = vmax.f32 %v3595_v53, 0.0  ;;  %vm13586_vm9 = vnez %v13367_v31  ;;  %v3542_v61 = vsel %vm13587_vm8, %v3528_v18, %v3529_v7  ;;  %v3513_v43 = vadd.f32 %v3497_v9, %v13588_v26  ;;  %v13606_v7 = vld [vmem:[#allocation62_spill] sm:$0xff] }
 0x447   : > { %v3496_v15 = vsel %vm13586_vm9, 0.0, %v3479_v49  ;;  %vm13590_vm3 = vnez %v13589_v17  ;;  %vm13593_vm0 = vnez %v13592_v8  ;;  %v3467_v34 = vrot.slane %v13594_v30, 7 }
 0x448   : > { %v3561_v35 = vsel %vm13590_vm3, 0.0, %v3541_v58  ;;  %v3512_v13 = vadd.f32 %v3496_v15, %v13591_v33  ;;  %v3560_v45 = vsel %vm13593_vm0, 0.0, %v3542_v61  ;;  %v3466_v18 = vrot.slane %v13595_v2, 7  ;;  %v13610_v61 = vld [vmem:[#allocation7_spill] sm:$0xff] }
 0x449   : > { %v3577_v46 = vadd.f32 %v3561_v35, %v3513_v43  ;;  %vm13596_vm14 = vcmp.lt.s32.totalorder %v8837_v51, 1  ;;  %v3532_v4 = vrot.slane %v13597_v28, 1  ;;  %v3531_v48 = vrot.slane %v13599_v59, 1  ;;  %v13612_v35 = vld [vmem:[#allocation66_spill] sm:$0xff]  ;;  %v13617_v2 = vld [vmem:[#allocation67_spill] sm:$0xff] }
 0x44a   : > { %3801 = vmatmul.bf16.gmra.mxu3 %v3621_v20  ;;  %3850 = vmatmul.bf16.gmra.mxu2 %v3621_v20  ;;  %v3576_v37 = vadd.f32 %v3560_v45, %v3512_v13  ;;  %v3476_v25 = vsel %vm13596_vm14, %v3466_v18, %v3467_v34  ;;  %vm13598_vm8 = vmmov %vm13596_vm14  ;;  %vm13601_vm0 = vnez %v13600_v11  ;;  %vm13602_vm3 = vcmp.lt.s32.totalorder %v8837_v51, 7  ;;  %v13613_v13 = vld [vmem:[#allocation69_spill] sm:$0xff] }
 0x44b   : > { %3899 = vmatmul.bf16.gmra.mxu0 %v3621_v20  ;;  %v3610_v20 = vmax.f32 %v3594_v32, 0.0  ;;  %v3597_v12 = vadd.f32 %v10585_v10, %v3577_v46  ;;  %v3499_v40 = vsel %vm13601_vm0, 0.0, %v3476_v25  ;;  %v3539_v0 = vsel %vm13602_vm3, %v3531_v48, %v3532_v4  ;;  %vm13605_vm14 = vmmov %vm13602_vm3  ;;  %v13618_v25 = vld [vmem:[#allocation17_spill] sm:$0xff] }
 0x44c   : > { %v3596_v63 = vadd.f32 %v10585_v10, %v3576_v37  ;;  %vm13604_vm9 = vnez %v13603_v62  ;;  %v3540_v49 = vsel %vm13605_vm14, %v3530_v38, %v3531_v48  ;;  %vm13611_vm0 = vnez %v13610_v61  ;;  %v13622_v48 = vld [vmem:[#allocation16_spill] sm:$0xff]  ;;  %v7768_v61 = vld [vmem:[%s12954_s11] sm:$0xff] }
 0x44d   : > { %v3623_v14 = vpack.c.bf16 %v3611_v1, %v3610_v20  ;;  %v3613_v24 = vmax.f32 %v3597_v12, 0.0  ;;  %v3515_v1 = vadd.f32 %v3499_v40, %v13606_v7  ;;  %v13609_v20 = vld [vmem:[#allocation59_spill] sm:$0xff]  ;;  %v3562_v26 = vsel %vm13611_vm0, 0.0, %v3540_v49  ;;  %v13628_v7 = vld [vmem:[#allocation65_spill] sm:$0xff] }
 0x44e   : > { %v3612_v53 = vmax.f32 %v3596_v63, 0.0  ;;  %v3468_v33 = vrot.slane %v13612_v35, 7  ;;  %v13614_v45 = vrot.slane %v13613_v13, 7  ;;  %vm13615_vm3 = vcmp.lt.s32.totalorder %v8837_v51, 1  ;;  %v7775_v35 = vld [vmem:[%s12954_s11 + $0x38] sm:$0xff] }
 0x44f   : > { %vm13616_vm14 = vmmov %vm13615_vm3  ;;  %vm13619_vm0 = vnez %v13618_v25  ;;  %v13620_v63 = vrot.slane %v10550_v60, 1  ;;  %v13629_v60 = vld [vmem:[#allocation18_spill] sm:$0xff]  ;;  %4159 = vmatpush.bf16.msra.mxu1 %v7775_v35 }
 0x450   : > { %v3624_v9 = vpack.c.bf16 %v3613_v24, %v3612_v53  ;;  %v3474_v46 = vsel %vm13615_vm3, %v3468_v33, %v13614_v45  ;;  %v3475_v30 = vsel %vm13616_vm14, %v3467_v34, %v3468_v33 }
 0x451   : > { %v3501_v28 = vsel %vm13619_vm0, 0.0, %v3474_v46  ;;  %vm13630_vm0 = vnez %v13629_v60  ;;  %v7773_v46 = vld [vmem:[%s12954_s11 + $0x28] sm:$0xff] }
 0x45a   : > { %3806 = vmatmul.bf16.gmra.mxu3 %v3622_v57  ;;  %3855 = vmatmul.bf16.gmra.mxu2 %v3622_v57 }
 0x45b   : > { %3904 = vmatmul.bf16.gmra.mxu0 %v3622_v57  ;;  %v3477_v57 = vsel %vm13598_vm8, %v3465_v23, %v3466_v18  ;;  %v13607_v23 = vld [vmem:[#allocation9_spill] sm:$0xff]  ;;  %v3533_v18 = vrot.slane %v13617_v2, 1 }
 0x45c   : > { %v3498_v32 = vsel %vm13604_vm9, 0.0, %v3477_v57  ;;  %vm13608_vm8 = vnez %v13607_v23  ;;  %vm13623_vm9 = vnez %v13622_v48 }
 0x45d   : > { %v3563_v58 = vsel %vm13608_vm8, 0.0, %v3539_v0  ;;  %v3514_v15 = vadd.f32 %v3498_v32, %v13609_v20  ;;  %vm13621_vm8 = vcmp.lt.s32.totalorder %v8837_v51, 7  ;;  %v3500_v24 = vsel %vm13623_vm9, 0.0, %v3475_v30  ;;  %v13625_v0 = vld [vmem:[#allocation68_spill] sm:$0xff]  ;;  %v13626_v32 = vld [vmem:[#allocation3_spill] sm:$0xff] }
 0x45e   : > { %v3579_v43 = vadd.f32 %v3563_v58, %v3515_v1  ;;  %v3537_v57 = vsel %vm13621_vm8, %v3533_v18, %v13620_v63  ;;  %vm13624_vm3 = vmmov %vm13621_vm8  ;;  %v3517_v34 = vadd.f32 %v3501_v28, %v13625_v0  ;;  %vm13627_vm14 = vnez %v13626_v32  ;;  %v7772_v28 = vld [vmem:[%s12954_s11 + $0x20] sm:$0xff] }
 0x45f   : > { %v3538_v40 = vsel %vm13624_vm3, %v3532_v4, %v3533_v18  ;;  %v3565_v49 = vsel %vm13627_vm14, 0.0, %v3537_v57  ;;  %v3516_v1 = vadd.f32 %v3500_v24, %v13628_v7  ;;  %vm13646_vm8 = vcmp.lt.s32.totalorder %v8837_v51, 1 }
 0x460   : > { %v3599_v38 = vadd.f32 %v10585_v10, %v3579_v43  ;;  %v3581_v58 = vadd.f32 %v3565_v49, %v3517_v34  ;;  %v7771_v49 = vld [vmem:[%s12954_s11 + $0x18] sm:$0xff]  ;;  %vm13647_vm3 = vmmov %vm13646_vm8 }
 0x462   : > { %v3615_v12 = vmax.f32 %v3599_v38, 0.0 }
 0x46a   : > { %3811 = vmatmul.bf16.gmra.mxu3 %v3623_v14  ;;  %3860 = vmatmul.bf16.gmra.mxu2 %v3623_v14 }
 0x46b   : > { %3909 = vmatmul.bf16.gmra.mxu0 %v3623_v14  ;;  %v3578_v14 = vadd.f32 %v3562_v26, %v3514_v15  ;;  %v3601_v15 = vadd.f32 %v10585_v10, %v3581_v58 }
 0x46d   : > { %v3598_v37 = vadd.f32 %v10585_v10, %v3578_v14  ;;  %v3617_v26 = vmax.f32 %v3601_v15, 0.0 }
 0x46f   : > { %v3614_v59 = vmax.f32 %v3598_v37, 0.0 }
 0x471   : > { %v3625_v53 = vpack.c.bf16 %v3615_v12, %v3614_v59 }
 0x47a   : > { %3816 = vmatmul.bf16.gmra.mxu3 %v3624_v9  ;;  %3865 = vmatmul.bf16.gmra.mxu2 %v3624_v9 }
 0x47b   : > { %3914 = vmatmul.bf16.gmra.mxu0 %v3624_v9  ;;  %v3564_v9 = vsel %vm13630_vm0, 0.0, %v3538_v40  ;;  %vm13649_vm0 = vcmp.lt.s32.totalorder %v8837_v51, 7 }
 0x47c   : > { %v3580_v20 = vadd.f32 %v3564_v9, %v3516_v1 }
 0x47e   : > { %v3600_v4 = vadd.f32 %v10585_v10, %v3580_v20  ;;  %v7774_v10 = vld [vmem:[%s12954_s11 + $0x30] sm:$0xff] }
 0x47f   : > { %4160 = vmatpush.bf16.msra.mxu1 %v7774_v10 }
 0x480   : > { %v3616_v43 = vmax.f32 %v3600_v4, 0.0  ;;  %v7770_v4 = vld [vmem:[%s12954_s11 + $0x10] sm:$0xff] }
 0x482   : > { %v3626_v14 = vpack.c.bf16 %v3617_v26, %v3616_v43 }
 0x483   : > { %4161 = vmatpush.bf16.msra.mxu1 %v7773_v46 }
 0x487   : > { %4162 = vmatpush.bf16.msra.mxu1 %v7772_v28  ;;  %v7769_v28 = vld [vmem:[%s12954_s11 + $0x8] sm:$0xff] }
 0x48a   : > { %3821 = vmatmul.bf16.gmra.mxu3 %v3625_v53  ;;  %3870 = vmatmul.bf16.gmra.mxu2 %v3625_v53 }
 0x48b   : > { %3919 = vmatmul.bf16.gmra.mxu0 %v3625_v53  ;;  %4163 = vmatpush.bf16.msra.mxu1 %v7771_v49 }
 0x48f   : > { %4164 = vmatpush.bf16.msra.mxu1 %v7770_v4 }
 0x493   : > { %4165 = vmatpush.bf16.msra.mxu1 %v7769_v28 }
 0x497   : > { %4166 = vmatpush.bf16.msra.mxu1 %v7768_v61 }
 0x49a   : > { %3826 = vmatmul.bf16.gmra.mxu3 %v3626_v14  ;;  %3875 = vmatmul.bf16.gmra.mxu2 %v3626_v14 }
 0x49b   : > { %3924 = vmatmul.bf16.gmra.mxu0 %v3626_v14 }
 0x4aa   : > { %3831 = vmatmul.bf16.gmra.mxu3 %v10623_v56  ;;  %3880 = vmatmul.bf16.gmra.mxu2 %v10623_v56 }
 0x4ab   : > { %3929 = vmatmul.bf16.gmra.mxu0 %v10623_v56 }
 0x4b8   : > { %v10763_v33 = vpop.f32.mrf.mxu0 }
 0x4bd   : > { %v10765_v38 = vpop.f32.mrf.mxu3  ;;  %v10767_v13 = vpop.f32.mrf.mxu2 }
 0x4c0   : > { %v10769_v45 = vpop.f32.mrf.mxu0 }
 0x4c5   : > { %v10774_v37 = vpop.f32.mrf.mxu3  ;;  %v10776_v56 = vpop.f32.mrf.mxu2 }
 0x4c8   : > { %v10778_v30 = vpop.f32.mrf.mxu0 }
 0x4cd   : > { %v10780_v2 = vpop.f32.mrf.mxu3  ;;  %v10782_v18 = vpop.f32.mrf.mxu2 }
 0x4d0   : > { %v10784_v12 = vpop.f32.mrf.mxu0 }
 0x4d5   : > { %v10789_v63 = vpop.f32.mrf.mxu3  ;;  %v10791_v57 = vpop.f32.mrf.mxu2 }
 0x4d8   : > { %v10793_v59 = vpop.f32.mrf.mxu0 }
 0x4dd   : > { %v10795_v24 = vpop.f32.mrf.mxu3  ;;  %v10797_v40 = vpop.f32.mrf.mxu2 }
 0x4e0   : > { %v10799_v0 = vpop.f32.mrf.mxu0 }
 0x4e5   : > { %v10801_v34 = vpop.f32.mrf.mxu3  ;;  %v10803_v53 = vpop.f32.mrf.mxu2 }
 0x4e8   : > { %v10808_v7 = vpop.f32.mrf.mxu0 }
 0x4ed   : > { %v10810_v1 = vpop.f32.mrf.mxu3  ;;  %v10812_v9 = vpop.f32.mrf.mxu2 }
 0x4f0   : > { %v10814_v58 = vpop.f32.mrf.mxu0 }
 0x4f5   : > { %v10816_v20 = vpop.f32.mrf.mxu3  ;;  %v10818_v15 = vpop.f32.mrf.mxu2 }
 0x4f8   : > { %v10823_v26 = vpop.f32.mrf.mxu0 }
 0x4fd   : > { %v10825_v43 = vpop.f32.mrf.mxu3  ;;  %v10827_v14 = vpop.f32.mrf.mxu2 }
 0x4fe   : > { %13631 = vst [vmem:[#allocation21_spill] sm:$0xff] %v10827_v14 }
 0x500   : > { %v10829_v35 = vpop.f32.mrf.mxu0 }
 0x501   : > { %13632 = vst [vmem:[#allocation14_spill] sm:$0xff] %v10829_v35 }
 0x505   : > { %v10831_v10 = vpop.f32.mrf.mxu3  ;;  %v10833_v46 = vpop.f32.mrf.mxu2 }
 0x506   : > { %13633 = vst [vmem:[#allocation10_spill] sm:$0xff] %v10833_v46 }
 0x508   : > { %v10838_v49 = vpop.f32.mrf.mxu0 }
 0x509   : > { %13634 = vst [vmem:[#allocation58_spill] sm:$0xff] %v10838_v49 }
 0x50d   : > { %v10840_v4 = vpop.f32.mrf.mxu3  ;;  %v10842_v60 = vpop.f32.mrf.mxu2 }
 0x50e   : > { %13635 = vst [vmem:[#allocation57_spill] sm:$0xff] %v10840_v4 }
 0x50f   : > { %13636 = vst [vmem:[#allocation63_spill] sm:$0xff] %v10842_v60 }
 0x510   : > { %v10844_v32 = vpop.f32.mrf.mxu0 }
 0x511   : > { %13637 = vst [vmem:[#allocation60_spill] sm:$0xff] %v10844_v32 }
 0x515   : > { %v10846_v48 = vpop.f32.mrf.mxu3  ;;  %v10848_v25 = vpop.f32.mrf.mxu2 }
 0x516   : > { %13638 = vst [vmem:[#allocation64_spill] sm:$0xff] %v10846_v48  ;;  %v3935_v48 = vrot.slane %v10765_v38, 7 }
 0x517   : > { %13639 = vst [vmem:[#allocation61_spill] sm:$0xff] %v10848_v25  ;;  %v3936_v25 = vrot.slane %v10774_v37, 7  ;;  %v4000_v37 = vrot.slane %v10769_v45, 1 }
 0x518   : > { %v10853_v23 = vpop.f32.mrf.mxu0 }
 0x519   : > { %13640 = vst [vmem:[#allocation62_spill] sm:$0xff] %v10853_v23 }
 0x51d   : > { %v10855_v28 = vpop.f32.mrf.mxu3  ;;  %v10857_v62 = vpop.f32.mrf.mxu2 }
 0x51e   : > { %13641 = vst [vmem:[#allocation59_spill] sm:$0xff] %v10855_v28  ;;  %v3965_v28 = vsel %vm13646_vm8, %v3935_v48, %v3936_v25  ;;  %vm13651_vm8 = vmmov %vm13649_vm0 }
 0x51f   : > { %13642 = vst [vmem:[#allocation66_spill] sm:$0xff] %v10857_v62  ;;  %v4001_v62 = vrot.slane %v10778_v30, 1  ;;  %v3968_v46 = vsel %vm9327_vm13, 0.0, %v3965_v28 }
 0x520   : > { %v10859_v11 = vpop.f32.mrf.mxu0 }
 0x521   : > { %13643 = vst [vmem:[#allocation69_spill] sm:$0xff] %v10859_v11  ;;  %v4028_v31 = vsel %vm13649_vm0, %v4000_v37, %v4001_v62  ;;  %vm13652_vm0 = vnez %v13522_v19 }
 0x522   : > { %v4032_v28 = vsel %vm9131_vm5, 0.0, %v4028_v31  ;;  %v10906_v31 = vld [vmem:[%s12953_s10] ss:$0 sm:$0xff] }
 0x525   : > { %v10861_v60 = vpop.f32.mrf.mxu3  ;;  %v10863_v32 = vpop.f32.mrf.mxu2 }
 0x526   : > { %13644 = vst [vmem:[#allocation67_spill] sm:$0xff] %v10861_v60  ;;  %v13146_v61 = vrot.slane %v10861_v60, 7  ;;  %v3984_v60 = vadd.f32 %v3968_v46, %v10776_v56 }
 0x527   : > { %13645 = vst [vmem:[#allocation68_spill] sm:$0xff] %v10863_v32 }
 0x528   : > { %v10865_v4 = vpop.f32.mrf.mxu0  ;;  %v4048_v46 = vadd.f32 %v4032_v28, %v3984_v60  ;;  %v3937_v60 = vrot.slane %v10780_v2, 7  ;;  %v4002_v2 = vrot.slane %v10784_v12, 1 }
 0x52a   : > { %v4068_v28 = vadd.f32 %v10906_v31, %v4048_v46 }
 0x52d   : > { %v3832_v8 = vpop.f32.mrf.mxu3  ;;  %v3881_v11 = vpop.f32.mrf.mxu2 }
 0x52e   : > { %v3949_v23 = vrot.slane %v3832_v8, 7  ;;  %v4013_v8 = vrot.slane %v10865_v4, 1 }
 0x530   : > { %v3952_v32 = vsel %vm13647_vm3, %v13146_v61, %v3949_v23  ;;  %v3932_v14 = vpop.f32.mrf.mxu0  ;;  %vm13653_vm3 = vmmov %vm13651_vm8 }
 0x531   : > { %v4014_v17 = vrot.slane %v3932_v14, 1  ;;  %v3981_v30 = vsel %vm13515_vm6, 0.0, %v3952_v32  ;;  %v3999_v14 = vrot.slane %v10763_v33, 1  ;;  %vm13654_vm6 = vmmov %vm13653_vm3 }
 0x532   : > { %v3997_v38 = vadd.f32 %v3981_v30, %v3881_v11  ;;  %v3938_v11 = vrot.slane %v10789_v63, 7 }
 0x533   : > { %v4015_v61 = vsel %vm13651_vm8, %v4013_v8, %v4014_v17  ;;  %v4029_v32 = vsel %vm13653_vm3, %v3999_v14, %v4000_v37  ;;  %v4030_v55 = vsel %vm13654_vm6, %v4014_v17, %v3999_v14  ;;  %vm13655_vm8 = vcmp.lt.s32.totalorder %v8837_v51, 1 }
 0x534   : > { %v4045_v49 = vsel %vm13652_vm0, 0.0, %v4015_v61  ;;  %vm13656_vm13 = vmmov %vm13655_vm8  ;;  %vm13668_vm0 = vnez %v13335_v27 }
 0x535   : > { %v3834_v45 = vpop.f32.mrf.mxu3  ;;  %v3883_v37 = vpop.f32.mrf.mxu2  ;;  %v4061_v30 = vadd.f32 %v4045_v49, %v3997_v38  ;;  %v4003_v49 = vrot.slane %v10793_v59, 1  ;;  %vm13658_vm6 = vmmov %vm13655_vm8 }
 0x536   : > { %v3950_v35 = vrot.slane %v3834_v45, 7 }
 0x538   : > { %v3966_v56 = vsel %vm13655_vm8, %v3950_v35, %v3935_v48  ;;  %v3951_v33 = vsel %vm13656_vm13, %v3949_v23, %v3950_v35  ;;  %v4031_v23 = vsel %vm13563_vm11, 0.0, %v4029_v32  ;;  %v4046_v35 = vsel %vm13533_vm4, 0.0, %v4030_v55  ;;  %vm13657_vm13 = vmmov %vm13655_vm8 }
 0x539   : > { %v3967_v61 = vsel %vm9357_vm15, 0.0, %v3966_v56  ;;  %v3982_v17 = vsel %vm13528_vm12, 0.0, %v3951_v33  ;;  %v3963_v56 = vsel %vm13657_vm13, %v3937_v60, %v3938_v11  ;;  %v10928_v32 = vadd.f32 %v10906_v31, %v4061_v30  ;;  %vm13659_vm8 = vmmov %vm13653_vm3 }
 0x53a   : > { %v3983_v48 = vadd.f32 %v3967_v61, %v10767_v13  ;;  %v3998_v45 = vadd.f32 %v3982_v17, %v3883_v37  ;;  %v3964_v55 = vsel %vm13658_vm6, %v3936_v25, %v3937_v60  ;;  %v3970_v59 = vsel %vm9460_vm2, 0.0, %v3963_v56  ;;  %vm13660_vm13 = vmmov %vm13658_vm6 }
 0x53b   : > { %v4026_v61 = vsel %vm13653_vm3, %v4002_v2, %v4003_v49  ;;  %v3969_v37 = vsel %vm9411_vm1, 0.0, %v3964_v55  ;;  %v4027_v17 = vsel %vm13659_vm8, %v4001_v62, %v4002_v2  ;;  %v3986_v25 = vadd.f32 %v3970_v59, %v10791_v57 }
 0x53c   : > { %v4047_v63 = vadd.f32 %v4031_v23, %v3983_v48  ;;  %v4062_v14 = vadd.f32 %v4046_v35, %v3998_v45  ;;  %v4034_v12 = vsel %vm9244_vm10, 0.0, %v4026_v61  ;;  %v3985_v30 = vadd.f32 %v3969_v37, %v10782_v18 }
 0x53d   : > { %v4033_v48 = vsel %vm9189_vm7, 0.0, %v4027_v17  ;;  %v4050_v45 = vadd.f32 %v4034_v12, %v3986_v25  ;;  %v3940_v23 = vrot.slane %v10801_v34, 7  ;;  %v3939_v35 = vrot.slane %v10795_v24, 7 }
 0x53e   : > { %v4067_v13 = vadd.f32 %v10906_v31, %v4047_v63  ;;  %v10925_v38 = vadd.f32 %v10906_v31, %v4062_v14  ;;  %v4049_v60 = vadd.f32 %v4033_v48, %v3985_v30  ;;  %v4005_v57 = vrot.slane %v10808_v7, 1 }
 0x53f   : > { %v4070_v63 = vadd.f32 %v10906_v31, %v4050_v45  ;;  %v3961_v62 = vsel %vm13660_vm13, %v3939_v35, %v3940_v23  ;;  %v3962_v18 = vsel %vm13658_vm6, %v3938_v11, %v3939_v35  ;;  %vm13661_vm3 = vnez %v13570_v39  ;;  %vm13663_vm13 = vmmov %vm13659_vm8 }
 0x540   : > { %v4083_v33 = vpack.c.bf16 %v4068_v28, %v4067_v13  ;;  %v4090_v46 = vpack.c.bf16 %v10925_v38, %v10928_v32  ;;  %v4069_v14 = vadd.f32 %v10906_v31, %v4049_v60  ;;  %v4004_v28 = vrot.slane %v10799_v0, 1 }
 0x541   : > { %v3972_v34 = vsel %vm13661_vm3, 0.0, %v3961_v62  ;;  %vm13662_vm12 = vnez %v13321_v52  ;;  %vm13664_vm6 = vnez %v13442_v54  ;;  %vm13665_vm4 = vnez %v13438_v36 }
 0x542   : > { %4167 = vmatmul.bf16.vlgmr.msra.gmra.mxu1 %v4083_v33  ;;  %v4084_v56 = vpack.c.bf16 %v4070_v63, %v4069_v14  ;;  %v4024_v24 = vsel %vm13659_vm8, %v4004_v28, %v4005_v57  ;;  %v3971_v13 = vsel %vm13662_vm12, 0.0, %v3962_v18  ;;  %v4025_v7 = vsel %vm13663_vm13, %v4003_v49, %v4004_v28 }
 0x543   : > { %v3988_v55 = vadd.f32 %v3972_v34, %v10803_v53  ;;  %v4036_v11 = vsel %vm13664_vm6, 0.0, %v4024_v24  ;;  %v3987_v0 = vadd.f32 %v3971_v13, %v10797_v40  ;;  %v4035_v2 = vsel %vm13665_vm4, 0.0, %v4025_v7  ;;  %v13677_v34 = vld [vmem:[#allocation14_spill] sm:$0xff]  ;;  %v13678_v7 = vld [vmem:[#allocation23_spill] sm:$0xff] }
 0x544   : > { %v3942_v59 = vrot.slane %v10816_v20, 7  ;;  %v3941_v37 = vrot.slane %v10810_v1, 7  ;;  %vm13666_vm8 = vcmp.lt.s32.totalorder %v8837_v51, 1  ;;  %v4007_v53 = vrot.slane %v10823_v26, 1 }
 0x545   : > { %v4052_v33 = vadd.f32 %v4036_v11, %v3988_v55  ;;  %v4051_v61 = vadd.f32 %v4035_v2, %v3987_v0  ;;  %vm13667_vm13 = vmmov %vm13666_vm8  ;;  %v4006_v12 = vrot.slane %v10814_v58, 1  ;;  %vm13669_vm6 = vcmp.lt.s32.totalorder %v8837_v51, 7  ;;  %v13681_v55 = vld [vmem:[#allocation22_spill] sm:$0xff] }
 0x546   : > { %v3959_v49 = vsel %vm13666_vm8, %v3941_v37, %v3942_v59  ;;  %v3960_v40 = vsel %vm13667_vm13, %v3940_v23, %v3941_v37  ;;  %vm13670_vm3 = vnez %v13339_v16  ;;  %vm13671_vm8 = vmmov %vm13669_vm6  ;;  %vm13672_vm13 = vnez %v13446_v5  ;;  %v13684_v2 = vld [vmem:[#allocation10_spill] sm:$0xff]  ;;  %v13687_v37 = vld [vmem:[#allocation21_spill] sm:$0xff] }
 0x547   : > { %v4072_v17 = vadd.f32 %v10906_v31, %v4052_v33  ;;  %v4071_v25 = vadd.f32 %v10906_v31, %v4051_v61  ;;  %v3974_v20 = vsel %vm13668_vm0, 0.0, %v3959_v49  ;;  %v4022_v1 = vsel %vm13669_vm6, %v4006_v12, %v4007_v53  ;;  %v13685_v61 = vld [vmem:[#allocation20_spill] sm:$0xff]  ;;  %v13688_v49 = vld [vmem:[#allocation19_spill] sm:$0xff] }
 0x548   : > { %v3973_v48 = vsel %vm13670_vm3, 0.0, %v3960_v40  ;;  %v4023_v26 = vsel %vm13671_vm8, %v4005_v57, %v4006_v12  ;;  %v3990_v45 = vadd.f32 %v3974_v20, %v10818_v15  ;;  %v4038_v23 = vsel %vm13672_vm13, 0.0, %v4022_v1  ;;  %v13675_v15 = vld [vmem:[#allocation58_spill] sm:$0xff]  ;;  %v13691_v1 = vld [vmem:[#allocation57_spill] sm:$0xff] }
 0x549   : > { %v4085_v30 = vpack.c.bf16 %v4072_v17, %v4071_v25  ;;  %v3989_v58 = vadd.f32 %v3973_v48, %v10812_v9  ;;  %vm13673_vm4 = vnez %v13451_v3  ;;  %v3944_v63 = vrot.slane %v10831_v10, 7 }
 0x54a   : > { %v4037_v60 = vsel %vm13673_vm4, 0.0, %v4023_v26  ;;  %v4054_v35 = vadd.f32 %v4038_v23, %v3990_v45  ;;  %v3943_v14 = vrot.slane %v10825_v43, 7  ;;  %vm13674_vm6 = vcmp.lt.s32.totalorder %v8837_v51, 1  ;;  %v13693_v45 = vld [vmem:[#allocation62_spill] sm:$0xff] }
 0x54b   : > { %v4053_v62 = vadd.f32 %v4037_v60, %v3989_v58  ;;  %v4009_v28 = vrot.slane %v13675_v15, 1  ;;  %vm13676_vm8 = vmmov %vm13674_vm6  ;;  %v4008_v24 = vrot.slane %v13677_v34, 1  ;;  %vm13679_vm13 = vnez %v13678_v7 }
 0x54c   : > { %v4074_v18 = vadd.f32 %v10906_v31, %v4054_v35  ;;  %v3957_v57 = vsel %vm13674_vm6, %v3943_v14, %v3944_v63  ;;  %v3958_v9 = vsel %vm13676_vm8, %v3942_v59, %v3943_v14  ;;  %vm13680_vm4 = vcmp.lt.s32.totalorder %v8837_v51, 7  ;;  %v13695_v35 = vld [vmem:[#allocation60_spill] sm:$0xff] }
 0x54d   : > { %v3976_v10 = vsel %vm13679_vm13, 0.0, %v3957_v57  ;;  %v4020_v43 = vsel %vm13680_vm4, %v4008_v24, %v4009_v28  ;;  %vm13682_vm3 = vnez %v13681_v55  ;;  %vm13683_vm6 = vmmov %vm13680_vm4  ;;  %vm13686_vm8 = vnez %v13685_v61 }
 0x54e   : > { %v3975_v11 = vsel %vm13682_vm3, 0.0, %v3958_v9  ;;  %v4021_v0 = vsel %vm13683_vm6, %v4007_v53, %v4008_v24  ;;  %v3992_v33 = vadd.f32 %v3976_v10, %v13684_v2  ;;  %v4040_v59 = vsel %vm13686_vm8, 0.0, %v4020_v43  ;;  %v13702_v24 = vld [vmem:[#allocation61_spill] sm:$0xff]  ;;  %v13705_v43 = vld [vmem:[#allocation63_spill] sm:$0xff] }
 0x54f   : > { %v3991_v17 = vadd.f32 %v3975_v11, %v13687_v37  ;;  %vm13689_vm0 = vnez %v13688_v49  ;;  %v3945_v48 = vrot.slane %v13691_v1, 7  ;;  %vm13692_vm4 = vcmp.lt.s32.totalorder %v8837_v51, 1  ;;  %v13703_v10 = vld [vmem:[#allocation9_spill] sm:$0xff]  ;;  %v13708_v37 = vld [vmem:[#allocation59_spill] sm:$0xff] }
 0x550   : > { %v4039_v25 = vsel %vm13689_vm0, 0.0, %v4021_v0  ;;  %v4056_v40 = vadd.f32 %v4040_v59, %v3992_v33  ;;  %v4011_v23 = vrot.slane %v13693_v45, 1  ;;  %vm13694_vm6 = vmmov %vm13692_vm4  ;;  %vm13698_vm3 = vcmp.lt.s32.totalorder %v8837_v51, 7  ;;  %v13706_v0 = vld [vmem:[#allocation7_spill] sm:$0xff]  ;;  %v13714_v45 = vld [vmem:[#allocation17_spill] sm:$0xff] }
 0x551   : > { %v4055_v12 = vadd.f32 %v4039_v25, %v3991_v17  ;;  %v3956_v60 = vsel %vm13694_vm6, %v3944_v63, %v3945_v48  ;;  %vm13704_vm6 = vnez %v13703_v10  ;;  %vm13707_vm0 = vnez %v13706_v0 }
 0x552   : > { %4172 = vmatmul.bf16.gmra.mxu1 %v4084_v56  ;;  %v4073_v56 = vadd.f32 %v10906_v31, %v4053_v62  ;;  %v4076_v26 = vadd.f32 %v10906_v31, %v4056_v40  ;;  %v4010_v62 = vrot.slane %v13695_v35, 1  ;;  %v3947_v17 = vrot.slane %v13708_v37, 7  ;;  %v13709_v40 = vld [vmem:[#allocation67_spill] sm:$0xff]  ;;  %v7598_v37 = vld [vmem:[%s12956_s13 + $0x70] sm:$0xf] }
 0x553   : > { %v4075_v58 = vadd.f32 %v10906_v31, %v4055_v12  ;;  %v13710_v12 = vrot.slane %v13709_v40, 7 }
 0x554   : > { %v4086_v13 = vpack.c.bf16 %v4074_v18, %v4073_v56  ;;  %v13696_v18 = vld [vmem:[#allocation27_spill] sm:$0xff]  ;;  %v4018_v15 = vsel %vm13698_vm3, %v4010_v62, %v4011_v23  ;;  %v13699_v56 = vld [vmem:[#allocation32_spill] sm:$0xff] }
 0x555   : > { %v4087_v14 = vpack.c.bf16 %v4076_v26, %v4075_v58  ;;  %vm13697_vm13 = vnez %v13696_v18  ;;  %vm13700_vm8 = vnez %v13699_v56  ;;  %v4042_v63 = vsel %vm13704_vm6, 0.0, %v4018_v15 }
 0x556   : > { %v3977_v9 = vsel %vm13700_vm8, 0.0, %v3956_v60  ;;  %vm13715_vm6 = vnez %v13714_v45 }
 0x557   : > { %v3993_v11 = vadd.f32 %v3977_v9, %v13705_v43 }
 0x562   : > { %4177 = vmatmul.bf16.gmra.mxu1 %v4085_v30  ;;  %v13690_v30 = vld [vmem:[#allocation64_spill] sm:$0xff] }
 0x563   : > { %v3946_v20 = vrot.slane %v13690_v30, 7 }
 0x565   : > { %v3955_v53 = vsel %vm13692_vm4, %v3945_v48, %v3946_v20  ;;  %vm13701_vm4 = vmmov %vm13698_vm3  ;;  %vm13711_vm3 = vcmp.lt.s32.totalorder %v8837_v51, 1  ;;  %v13713_v48 = vld [vmem:[#allocation69_spill] sm:$0xff] }
 0x566   : > { %v3978_v57 = vsel %vm13697_vm13, 0.0, %v3955_v53  ;;  %v4019_v34 = vsel %vm13701_vm4, %v4009_v28, %v4010_v62  ;;  %v3953_v28 = vsel %vm13711_vm3, %v3947_v17, %v13710_v12  ;;  %vm13712_vm4 = vmmov %vm13711_vm3  ;;  %v4012_v26 = vrot.slane %v13713_v48, 1  ;;  %v7590_v48 = vld [vmem:[%s12956_s13 + $0x60] sm:$0xf] }
 0x567   : > { %v4041_v2 = vsel %vm13707_vm0, 0.0, %v4019_v34  ;;  %v3954_v1 = vsel %vm13712_vm4, %v3946_v20, %v3947_v17  ;;  %v3980_v58 = vsel %vm13715_vm6, 0.0, %v3953_v28  ;;  %vm13716_vm13 = vcmp.lt.s32.totalorder %v8837_v51, 7  ;;  %v13721_v34 = vld [vmem:[#allocation66_spill] sm:$0xff] }
 0x568   : > { %v4057_v59 = vadd.f32 %v4041_v2, %v3993_v11  ;;  %v4016_v60 = vsel %vm13716_vm13, %v4012_v26, %v4013_v8  ;;  %v3979_v62 = vsel %vm13623_vm9, 0.0, %v3954_v1  ;;  %vm13718_vm3 = vmmov %vm13716_vm13  ;;  %vm13763_vm13 = vcmask 523264  }
 0x569   : > { %v4044_v9 = vsel %vm13627_vm14, 0.0, %v4016_v60 }
 0x56a   : > { %v4077_v30 = vadd.f32 %v10906_v31, %v4057_v59 }
 0x572   : > { %4182 = vmatmul.bf16.gmra.mxu1 %v4086_v13  ;;  %v3994_v13 = vadd.f32 %v3978_v57, %v13702_v24  ;;  %v13719_v57 = vld [vmem:[#allocation68_spill] sm:$0xff]  ;;  %v3995_v24 = vadd.f32 %v3979_v62, %v13721_v34 }
 0x573   : > { %v3996_v20 = vadd.f32 %v3980_v58, %v13719_v57  ;;  %v13725_v57 = vld [vmem:[#allocation2_spill] sm:$0xff] }
 0x574   : > { %v4058_v33 = vadd.f32 %v4042_v63, %v3994_v13  ;;  %v13722_v13 = vld [vmem:[#allocation18_spill] sm:$0xff] }
 0x575   : > { %vm13723_vm4 = vnez %v13722_v13  ;;  %v4060_v63 = vadd.f32 %v4044_v9, %v3996_v20 }
 0x576   : > { %v4078_v25 = vadd.f32 %v10906_v31, %v4058_v33  ;;  %v11079_v33 = vld [vmem:[%s12955_s12] ss:$0 sm:$0xff] }
 0x577   : > { %v4080_v8 = vadd.f32 %v10906_v31, %v4060_v63 }
 0x578   : > { %v4088_v53 = vpack.c.bf16 %v4078_v25, %v4077_v30 }
 0x582   : > { %4187 = vmatmul.bf16.gmra.mxu1 %v4087_v14  ;;  %v4017_v14 = vsel %vm13718_vm3, %v4011_v23, %v4012_v26  ;;  %v7789_v26 = vld [vmem:[%s12956_s13 + $0x64] sm:$0xf0]  ;;  %vm13770_vm3 = vmmov %vm13763_vm13 }
 0x583   : > { %v4043_v4 = vsel %vm13723_vm4, 0.0, %v4017_v14  ;;  %v13724_v14 = vld [vmem:[#allocation38_spill] sm:$0xff]  ;;  %vm13772_vm14 = vmmov %vm13770_vm3 }
 0x584   : > { %v4059_v43 = vadd.f32 %v4043_v4, %v3995_v24  ;;  %v13726_v20 = vpack.c.b16 %v13724_v14, %v13725_v57  ;;  %v13731_v14 = vld [vmem:[#allocation43_spill] sm:$0xff]  ;;  %vm13773_vm4 = vmmov %vm13770_vm3 }
 0x586   : > { %v4079_v11 = vadd.f32 %v10906_v31, %v4059_v43  ;;  %v7791_v31 = vld [vmem:[%s12956_s13 + $0x74] sm:$0xf0] }
 0x587   : > { %v7599_v17 = vor.u32 %v7791_v31, %v7598_v37  ;;  %v13727_v31 = vld [vmem:[#allocation42_spill] sm:$0xff] }
 0x588   : > { %v4089_v2 = vpack.c.bf16 %v4080_v8, %v4079_v11  ;;  %v7582_v8 = vld [vmem:[%s12956_s13 + $0x50] sm:$0xf]  ;;  %v7787_v11 = vld [vmem:[%s12956_s13 + $0x54] sm:$0xf0] }
 0x589   : > { %4552 = vmatpush.bf16.msra.mxu3 %v7599_v17  ;;  %4650 = vmatpush.bf16.msrb.mxu0 %v7599_v17  ;;  %v13728_v17 = vld [vmem:[#allocation8_spill] sm:$0xff] }
 0x592   : > { %4192 = vmatmul.bf16.gmra.mxu1 %v4088_v53  ;;  %v7591_v53 = vor.u32 %v7789_v26, %v7590_v48  ;;  %v7785_v48 = vld [vmem:[%s12956_s13 + $0x44] sm:$0xf0] }
 0x594   : > { %4553 = vmatpush.bf16.msra.mxu3 %v7591_v53  ;;  %4651 = vmatpush.bf16.msrb.mxu0 %v7591_v53 }
 0x5a2   : > { %4197 = vmatmul.bf16.gmra.mxu1 %v4089_v2  ;;  %v7583_v2 = vor.u32 %v7787_v11, %v7582_v8  ;;  %v13734_v8 = vld [vmem:[#allocation36_spill] sm:$0xff] }
 0x5a4   : > { %4554 = vmatpush.bf16.msra.mxu3 %v7583_v2  ;;  %4652 = vmatpush.bf16.msrb.mxu0 %v7583_v2  ;;  %v7790_v2 = vld [vmem:[%s12956_s13 + $0x74] sm:$0xf] }
 0x5b2   : > { %4202 = vmatmul.bf16.gmra.mxu1 %v4090_v46 }
 0x5bf   : > { %v4168_v23 = vpop.f32.mrf.mxu1 }
 0x5c0   : > { %v4169_v59 = vadd.f32 %v11079_v33, %v4168_v23 }
 0x5c2   : > { %v4208_v38 = vpack.c.bf16 %v4169_v59, %v4169_v59 }
 0x5c4   : > { %v4240_v40 = vunpack.c.l.b16 %v4208_v38 }
 0x5c7   : > { %v4170_v25 = vpop.f32.mrf.mxu1 }
 0x5c8   : > { %v4171_v32 = vadd.f32 %v11079_v33, %v4170_v25  ;;  %v13729_v25 = vpack.c.b16 %v13727_v31, %v13728_v17  ;;  %v7783_v31 = vld [vmem:[%s12956_s13 + $0x34] sm:$0xf0] }
 0x5ca   : > { %v4209_v46 = vpack.c.bf16 %v4171_v32, %v4171_v32 }
 0x5cc   : > { %v4241_v12 = vunpack.c.l.b16 %v4209_v46 }
 0x5ce   : > { %v11089_v28 = vpack.c.b16 %v4241_v12, %v4240_v40 }
 0x5cf   : > { %v4173_v30 = vpop.f32.mrf.mxu1 }
 0x5d0   : > { %4352 = vrot.lane.b32.xlu1 %v11089_v28, %s7956_s26  ;;  %v4174_v1 = vadd.f32 %v11079_v33, %v4173_v30 }
 0x5d2   : > { %v4210_v60 = vpack.c.bf16 %v4174_v1, %v4174_v1  ;;  %v7574_v1 = vld [vmem:[%s12956_s13 + $0x40] sm:$0xf] }
 0x5d3   : > { %v7575_v26 = vor.u32 %v7785_v48, %v7574_v1  ;;  %v13736_v1 = vld [vmem:[#allocation40_spill] sm:$0xff]  ;;  %v13737_v48 = vld [vmem:[#allocation39_spill] sm:$0xff] }
 0x5d4   : > { %v4242_v34 = vunpack.c.l.b16 %v4210_v60 }
 0x5d5   : > { %4555 = vmatpush.bf16.msra.mxu3 %v7575_v26  ;;  %4653 = vmatpush.bf16.msrb.mxu0 %v7575_v26  ;;  %v13738_v26 = vpack.c.b16 %v13736_v1, %v13737_v48  ;;  %v7781_v1 = vld [vmem:[%s12956_s13 + $0x24] sm:$0xf0] }
 0x5d7   : > { %v4175_v58 = vpop.f32.mrf.mxu1 }
 0x5d8   : > { %v4176_v62 = vadd.f32 %v11079_v33, %v4175_v58  ;;  %4410 = vrot.lane.b32.xlu1 %v13726_v20, %s7956_s26 }
 0x5da   : > { %v4211_v9 = vpack.c.bf16 %v4176_v62, %v4176_v62  ;;  %v13730_v62 = vld [vmem:[#allocation44_spill] sm:$0xff] }
 0x5db   : > { %v13732_v57 = vpack.c.b16 %v13730_v62, %v13731_v14 }
 0x5dc   : > { %v4243_v24 = vunpack.c.l.b16 %v4211_v9 }
 0x5de   : > { %v11105_v4 = vpack.c.b16 %v4243_v24, %v4242_v34 }
 0x5df   : > { %v4178_v63 = vpop.f32.mrf.mxu1 }
 0x5e0   : > { %4354 = vrot.lane.b32.xlu0 %v11105_v4, %s7956_s26  ;;  %v4179_v43 = vadd.f32 %v11079_v33, %v4178_v63 }
 0x5e2   : > { %v4212_v59 = vpack.c.bf16 %v4179_v43, %v4179_v43  ;;  %v13733_v43 = vld [vmem:[#allocation37_spill] sm:$0xff] }
 0x5e3   : > { %v13735_v11 = vpack.c.b16 %v13733_v43, %v13734_v8 }
 0x5e4   : > { %v4244_v32 = vunpack.c.l.b16 %v4212_v59 }
 0x5e7   : > { %v4180_v23 = vpop.f32.mrf.mxu1 }
 0x5e8   : > { %v4181_v37 = vadd.f32 %v11079_v33, %v4180_v23  ;;  %4412 = vrot.lane.b32.xlu0 %v13729_v25, %s7956_s26  ;;  %v7600_v23 = vld [vmem:[%s12956_s13 + $0x78] sm:$0xf0] }
 0x5e9   : > { %v7603_v17 = vor.u32 %v7790_v2, %v7600_v23  ;;  %v7576_v2 = vld [vmem:[%s12956_s13 + $0x48] sm:$0xf0]  ;;  %v13742_v23 = vld [vmem:[#allocation41_spill] sm:$0xff] }
 0x5ea   : > { %v4213_v38 = vpack.c.bf16 %v4181_v37, %v4181_v37  ;;  %v7566_v37 = vld [vmem:[%s12956_s13 + $0x30] sm:$0xf] }
 0x5eb   : > { %v7567_v25 = vor.u32 %v7783_v31, %v7566_v37  ;;  %4699 = vmatpush.bf16.msrb.mxu1 %v7603_v17  ;;  %4601 = vmatpush.bf16.msra.mxu2 %v7603_v17  ;;  %v13745_v17 = vld [vmem:[#allocation4_spill] sm:$0xff] }
 0x5ec   : > { %v4245_v46 = vunpack.c.l.b16 %v4213_v38 }
 0x5ed   : > { %4556 = vmatpush.bf16.msra.mxu3 %v7567_v25  ;;  %4654 = vmatpush.bf16.msrb.mxu0 %v7567_v25  ;;  %v13746_v25 = vld [vmem:[#allocation26_spill] sm:$0xff] }
 0x5ee   : > { %v11121_v40 = vpack.c.b16 %v4245_v46, %v4244_v32  ;;  %v7788_v32 = vld [vmem:[%s12956_s13 + $0x64] sm:$0xf]  ;;  %v7592_v46 = vld [vmem:[%s12956_s13 + $0x68] sm:$0xf0] }
 0x5ef   : > { %v4183_v12 = vpop.f32.mrf.mxu1  ;;  %v7595_v62 = vor.u32 %v7788_v32, %v7592_v46  ;;  %v7782_v32 = vld [vmem:[%s12956_s13 + $0x34] sm:$0xf]  ;;  %v7568_v46 = vld [vmem:[%s12956_s13 + $0x38] sm:$0xf0] }
 0x5f0   : > { %4356 = vrot.lane.b32.xlu2 %v11121_v40, %s7956_s26  ;;  %v4184_v30 = vadd.f32 %v11079_v33, %v4183_v12  ;;  %v7571_v48 = vor.u32 %v7782_v32, %v7568_v46 }
 0x5f1   : > { %4700 = vmatpush.bf16.msrb.mxu1 %v7595_v62  ;;  %4602 = vmatpush.bf16.msra.mxu2 %v7595_v62 }
 0x5f2   : > { %v4214_v58 = vpack.c.bf16 %v4184_v30, %v4184_v30 }
 0x5f4   : > { %v4246_v9 = vunpack.c.l.b16 %v4214_v58  ;;  %v13740_v58 = vld [vmem:[#allocation49_spill] sm:$0xff] }
 0x5f7   : > { %v4185_v53 = vpop.f32.mrf.mxu1 }
 0x5f8   : > { %v4186_v60 = vadd.f32 %v11079_v33, %v4185_v53  ;;  %4414 = vrot.lane.b32.xlu2 %v13732_v57, %s7956_s26  ;;  %v13739_v53 = vld [vmem:[#allocation50_spill] sm:$0xff]  ;;  %v7786_v57 = vld [vmem:[%s12956_s13 + $0x54] sm:$0xf] }
 0x5fa   : > { %v4215_v20 = vpack.c.bf16 %v4186_v60, %v4186_v60  ;;  %v13741_v60 = vpack.c.b16 %v13739_v53, %v13740_v58  ;;  %v7780_v58 = vld [vmem:[%s12956_s13 + $0x24] sm:$0xf] }
 0x5fc   : > { %v4247_v34 = vunpack.c.l.b16 %v4215_v20  ;;  %v7584_v20 = vld [vmem:[%s12956_s13 + $0x58] sm:$0xf0] }
 0x5fe   : > { %v11137_v24 = vpack.c.b16 %v4247_v34, %v4246_v9 }
 0x5ff   : > { %v4188_v63 = vpop.f32.mrf.mxu1 }
 0x600   : > { %4304 = vrot.lane.b32.xlu2 %v13735_v11, %s7956_s26  ;;  %4358 = vrot.lane.b32.xlu1 %v11137_v24, %s7956_s26  ;;  %v4189_v59 = vadd.f32 %v11079_v33, %v4188_v63  ;;  %v7587_v63 = vor.u32 %v7786_v57, %v7584_v20  ;;  %v7784_v11 = vld [vmem:[%s12956_s13 + $0x44] sm:$0xf]  ;;  %v13749_v20 = vld [vmem:[#allocation45_spill] sm:$0xff] }
 0x601   : > { %v7579_v31 = vor.u32 %v7784_v11, %v7576_v2  ;;  %v13748_v57 = vld [vmem:[#allocation46_spill] sm:$0xff] }
 0x602   : > { %v4216_v12 = vpack.c.bf16 %v4189_v59, %v4189_v59  ;;  %4701 = vmatpush.bf16.msrb.mxu1 %v7587_v63  ;;  %4603 = vmatpush.bf16.msra.mxu2 %v7587_v63  ;;  %v13743_v59 = vld [vmem:[#allocation35_spill] sm:$0xff]  ;;  %v13751_v63 = vld [vmem:[#allocation52_spill] sm:$0xff] }
 0x603   : > { %v13744_v37 = vpack.c.b16 %v13742_v23, %v13743_v59  ;;  %v7550_v23 = vld [vmem:[%s12956_s13 + $0x10] sm:$0xf]  ;;  %v7779_v59 = vld [vmem:[%s12956_s13 + $0x14] sm:$0xf0] }
 0x604   : > { %v4248_v9 = vunpack.c.l.b16 %v4216_v12 }
 0x606   : > { %4702 = vmatpush.bf16.msrb.mxu1 %v7579_v31  ;;  %4604 = vmatpush.bf16.msra.mxu2 %v7579_v31 }
 0x607   : > { %v4190_v38 = vpop.f32.mrf.mxu1 }
 0x608   : > { %v4191_v30 = vadd.f32 %v11079_v33, %v4190_v38  ;;  %4306 = vrot.lane.b32.xlu2 %v13738_v26, %s7956_s26  ;;  %4416 = vrot.lane.b32.xlu1 %v13741_v60, %s7956_s26  ;;  %v13747_v38 = vpack.c.b16 %v13745_v17, %v13746_v25  ;;  %v7560_v60 = vld [vmem:[%s12956_s13 + $0x28] sm:$0xf0]  ;;  %v7551_v25 = vor.u32 %v7779_v59, %v7550_v23  ;;  %v13761_v23 = vld [vmem:[#allocation29_spill] sm:$0xff] }
 0x60a   : > { %v4217_v14 = vpack.c.bf16 %v4191_v30, %v4191_v30  ;;  %v7558_v30 = vld [vmem:[%s12956_s13 + $0x20] sm:$0xf]  ;;  %4703 = vmatpush.bf16.msrb.mxu1 %v7571_v48  ;;  %4605 = vmatpush.bf16.msra.mxu2 %v7571_v48  ;;  %v7776_v48 = vld [vmem:[%s12956_s13 + $0x4] sm:$0xf] }
 0x60b   : > { %v7559_v26 = vor.u32 %v7781_v1, %v7558_v30  ;;  %v7542_v30 = vld [vmem:[%s12956_s13] sm:$0xf]  ;;  %v7777_v1 = vld [vmem:[%s12956_s13 + $0x4] sm:$0xf0] }
 0x60c   : > { %v4249_v34 = vunpack.c.l.b16 %v4217_v14 }
 0x60d   : > { %4557 = vmatpush.bf16.msra.mxu3 %v7559_v26  ;;  %4655 = vmatpush.bf16.msrb.mxu0 %v7559_v26  ;;  %v13754_v26 = vld [vmem:[#allocation54_spill] sm:$0xff] }
 0x60e   : > { %v11179_v43 = vpack.c.b16 %v4249_v34, %v4248_v9  ;;  %v13750_v9 = vpack.c.b16 %v13748_v57, %v13749_v20  ;;  %v7563_v34 = vor.u32 %v7780_v58, %v7560_v60  ;;  %v7543_v60 = vor.u32 %v7777_v1, %v7542_v30  ;;  %v13758_v57 = vld [vmem:[#allocation55_spill] sm:$0xff] }
 0x60f   : > { %v4193_v8 = vpop.f32.mrf.mxu1 }
 0x610   : > { %4308 = vrot.lane.b32.xlu2 %v13744_v37, %s7956_s26  ;;  %4360 = vrot.lane.b32.xlu0 %v11179_v43, %s7956_s26  ;;  %v4194_v12 = vadd.f32 %v11079_v33, %v4193_v8  ;;  %v13752_v8 = vld [vmem:[#allocation30_spill] sm:$0xff]  ;;  %v7778_v37 = vld [vmem:[%s12956_s13 + $0x14] sm:$0xf] }
 0x611   : > { %4418 = vrot.lane.b32.xlu1 %v13747_v38, %s7956_s26  ;;  %v13753_v11 = vpack.c.b16 %v13751_v63, %v13752_v8  ;;  %4704 = vmatpush.bf16.msrb.mxu1 %v7563_v34  ;;  %v7552_v38 = vld [vmem:[%s12956_s13 + $0x18] sm:$0xf0] }
 0x612   : > { %v4218_v62 = vpack.c.bf16 %v4194_v12, %v4194_v12  ;;  %4606 = vmatpush.bf16.msra.mxu2 %v7563_v34  ;;  %v7555_v32 = vor.u32 %v7778_v37, %v7552_v38  ;;  %4656 = vmatpush.bf16.msrb.mxu0 %v7551_v25 }
 0x613   : > { %4558 = vmatpush.bf16.msra.mxu3 %v7551_v25 }
 0x614   : > { %v4250_v31 = vunpack.c.l.b16 %v4218_v62  ;;  %v7544_v62 = vld [vmem:[%s12956_s13 + $0x8] sm:$0xf0] }
 0x615   : > { %4705 = vmatpush.bf16.msrb.mxu1 %v7555_v32 }
 0x616   : > { %4607 = vmatpush.bf16.msra.mxu2 %v7555_v32  ;;  %4657 = vmatpush.bf16.msrb.mxu0 %v7543_v60 }
 0x617   : > { %v4195_v53 = vpop.f32.mrf.mxu1  ;;  %4559 = vmatpush.bf16.msra.mxu3 %v7543_v60  ;;  %v4409_v60 = vpop.permute.xlu2 %4408 }
 0x618   : > { %v4196_v14 = vadd.f32 %v11079_v33, %v4195_v53  ;;  %4310 = vrot.lane.b32.xlu2 %v13750_v9, %s7956_s26  ;;  %v13755_v53 = vld [vmem:[#allocation53_spill] sm:$0xff]  ;;  %v7547_v9 = vor.u32 %v7776_v48, %v7544_v62 }
 0x619   : > { %4420 = vrot.lane.b32.xlu1 %v13753_v11, %s7956_s26  ;;  %v13756_v58 = vpack.c.b16 %v13754_v26, %v13755_v53 }
 0x61a   : > { %v4219_v2 = vpack.c.bf16 %v4196_v14, %v4196_v14  ;;  %v13757_v14 = vld [vmem:[#allocation56_spill] sm:$0xff]  ;;  %4706 = vmatpush.bf16.msrb.mxu1 %v7547_v9  ;;  %4608 = vmatpush.bf16.msra.mxu2 %v7547_v9 }
 0x61b   : > { %v13759_v20 = vpack.c.b16 %v13757_v14, %v13758_v57  ;;  %v13764_v57 = vld [vmem:[#allocation48_spill] sm:$0xff] }
 0x61c   : > { %v4251_v17 = vunpack.c.l.b16 %v4219_v2  ;;  %v13760_v2 = vld [vmem:[#allocation51_spill] sm:$0xff] }
 0x61d   : > { %v13762_v59 = vpack.c.b16 %v13760_v2, %v13761_v23 }
 0x61e   : > { %v11237_v46 = vpack.c.b16 %v4251_v17, %v4250_v31 }
 0x61f   : > { %v4198_v12 = vpop.f32.mrf.mxu1 }
 0x620   : > { %4316 = vrot.lane.b32.xlu2 %v13756_v58, %s7956_s26  ;;  %4362 = vrot.lane.b32.xlu0 %v11237_v46, %s7956_s26  ;;  %v4199_v34 = vadd.f32 %v11079_v33, %v4198_v12 }
 0x621   : > { %4422 = vrot.lane.b32.xlu1 %v13759_v20, %s7956_s26  ;;  %v13765_v20 = vld [vmem:[#allocation47_spill] sm:$0xff] }
 0x622   : > { %v4220_v8 = vpack.c.bf16 %v4199_v34, %v4199_v34  ;;  %v13766_v9 = vpack.c.b16 %v13764_v57, %v13765_v20  ;;  %v13767_v34 = vld [vmem:[#allocation28_spill] sm:$0xff] }
 0x624   : > { %v4252_v31 = vunpack.c.l.b16 %v4220_v8 }
 0x627   : > { %v4200_v63 = vpop.f32.mrf.mxu1 }
 0x628   : > { %v4201_v11 = vadd.f32 %v11079_v33, %v4200_v63  ;;  %v13768_v63 = vld [vmem:[#allocation34_spill] sm:$0xff] }
 0x629   : > { %4314 = vrot.lane.b32.xlu1 %v13762_v59, %s7956_s26  ;;  %v13769_v8 = vpack.c.b16 %v13767_v34, %v13768_v63 }
 0x62a   : > { %v4221_v37 = vpack.c.bf16 %v4201_v11, %v4201_v11 }
 0x62c   : > { %v4253_v17 = vunpack.c.l.b16 %v4221_v37 }
 0x62e   : > { %v11267_v25 = vpack.c.b16 %v4253_v17, %v4252_v31 }
 0x62f   : > { %v4203_v38 = vpop.f32.mrf.mxu1 }
 0x630   : > { %4364 = vrot.lane.b32.xlu0 %v11267_v25, %s7956_s26  ;;  %v4204_v32 = vadd.f32 %v11079_v33, %v4203_v38 }
 0x632   : > { %v4222_v30 = vpack.c.bf16 %v4204_v32, %v4204_v32 }
 0x634   : > { %v4254_v26 = vunpack.c.l.b16 %v4222_v30 }
 0x637   : > { %v4205_v12 = vpop.f32.mrf.mxu1 }
 0x638   : > { %v4206_v1 = vadd.f32 %v11079_v33, %v4205_v12 }
 0x63a   : > { %v4223_v48 = vpack.c.bf16 %v4206_v1, %v4206_v1 }
 0x63c   : > { %v4255_v53 = vunpack.c.l.b16 %v4223_v48 }
 0x63e   : > { %v11273_v58 = vpack.c.b16 %v4255_v53, %v4254_v26 }
 0x640   : > { %4366 = vrot.lane.b32.xlu0 %v11273_v58, %s7956_s26 }
 0x642   : > { %v4353_v62 = vpop.permute.xlu1 %4352 }
 0x643   : > { %v4426_v14 = vsel %vm13763_vm13, %v4353_v62, %v4409_v60  ;;  %vm13771_vm13 = vmmov %vm13770_vm3 }
 0x644   : > { %4658 = vmatmul.bf16.vlgmr.msrb.gmra.mxu0 %v4426_v14  ;;  %4707 = vmatmul.bf16.vlgmr.msrb.gmra.mxu1 %v4426_v14 }
 0x648   : > { %4312 = vrot.lane.b32.xlu0 %v13766_v9, %s7956_s26 }
 0x64a   : > { %v4357_v33 = vpop.permute.xlu2 %4356  ;;  %v4411_v11 = vpop.permute.xlu1 %4410 }
 0x650   : > { %4318 = vrot.lane.b32.xlu0 %v13769_v8, %s7956_s26 }
 0x652   : > { %v4415_v2 = vpop.permute.xlu2 %4414  ;;  %v4355_v23 = vpop.permute.xlu0 %4354 }
 0x653   : > { %v4430_v59 = vsel %vm13770_vm3, %v4355_v23, %v4411_v11 }
 0x654   : > { %4663 = vmatmul.bf16.gmra.mxu0 %v4430_v59  ;;  %4712 = vmatmul.bf16.gmra.mxu1 %v4430_v59 }
 0x65a   : > { %v4305_v37 = vpop.permute.xlu2 %4304  ;;  %v4413_v17 = vpop.permute.xlu0 %4412 }
 0x65b   : > { %v4322_v31 = vsel %vm13771_vm13, %v11089_v28, %v4305_v37  ;;  %v4434_v38 = vsel %vm13772_vm14, %v4357_v33, %v4413_v17  ;;  %vm13774_vm13 = vmmov %vm13770_vm3 }
 0x65c   : > { %4560 = vmatmul.bf16.vlgmr.msra.gmra.mxu3 %v4322_v31  ;;  %4609 = vmatmul.bf16.vlgmr.msra.gmra.mxu2 %v4322_v31  ;;  %vm13775_vm14 = vmmov %vm13770_vm3 }
 0x662   : > { %v4307_v32 = vpop.permute.xlu2 %4306 }
 0x663   : > { %v4326_v12 = vsel %vm13773_vm4, %v11105_v4, %v4307_v32  ;;  %vm13776_vm4 = vmmov %vm13770_vm3 }
 0x664   : > { %4668 = vmatmul.bf16.gmra.mxu0 %v4434_v38  ;;  %4717 = vmatmul.bf16.gmra.mxu1 %v4434_v38 }
 0x66a   : > { %v4309_v48 = vpop.permute.xlu2 %4308 }
 0x66b   : > { %v4330_v28 = vsel %vm13774_vm13, %v11121_v40, %v4309_v48  ;;  %vm13777_vm13 = vmmov %vm13770_vm3 }
 0x66c   : > { %4565 = vmatmul.bf16.gmra.mxu3 %v4326_v12  ;;  %4614 = vmatmul.bf16.gmra.mxu2 %v4326_v12 }
 0x672   : > { %v4359_v30 = vpop.permute.xlu1 %4358  ;;  %v4311_v4 = vpop.permute.xlu2 %4310 }
 0x673   : > { %v4438_v1 = vsel %vm13770_vm3, %v4359_v30, %v4415_v2  ;;  %v4334_v62 = vsel %vm13776_vm4, %v11137_v24, %v4311_v4  ;;  %vm13779_vm4 = vmmov %vm13770_vm3 }
 0x674   : > { %4673 = vmatmul.bf16.gmra.mxu0 %v4438_v1  ;;  %4722 = vmatmul.bf16.gmra.mxu1 %v4438_v1 }
 0x67a   : > { %v4417_v26 = vpop.permute.xlu1 %4416 }
 0x67c   : > { %4570 = vmatmul.bf16.gmra.mxu3 %v4330_v28  ;;  %4619 = vmatmul.bf16.gmra.mxu2 %v4330_v28 }
 0x682   : > { %v4361_v53 = vpop.permute.xlu0 %4360 }
 0x683   : > { %v4442_v60 = vsel %vm13775_vm14, %v4361_v53, %v4417_v26  ;;  %v4419_v14 = vpop.permute.xlu1 %4418  ;;  %vm13778_vm14 = vmmov %vm13770_vm3 }
 0x684   : > { %4678 = vmatmul.bf16.gmra.mxu0 %v4442_v60  ;;  %4727 = vmatmul.bf16.gmra.mxu1 %v4442_v60 }
 0x68b   : > { %v4421_v40 = vpop.permute.xlu1 %4420 }
 0x68c   : > { %4575 = vmatmul.bf16.gmra.mxu3 %v4334_v62  ;;  %4624 = vmatmul.bf16.gmra.mxu2 %v4334_v62 }
 0x692   : > { %v4363_v57 = vpop.permute.xlu0 %4362 }
 0x693   : > { %v4446_v20 = vsel %vm13770_vm3, %v4363_v57, %v4419_v14  ;;  %v4423_v34 = vpop.permute.xlu1 %4422 }
 0x694   : > { %4683 = vmatmul.bf16.gmra.mxu0 %v4446_v20  ;;  %4732 = vmatmul.bf16.gmra.mxu1 %v4446_v20 }
 0x69b   : > { %v4315_v23 = vpop.permute.xlu1 %4314 }
 0x69c   : > { %v4342_v17 = vsel %vm13770_vm3, %v11237_v46, %v4315_v23  ;;  %v4317_v46 = vpop.permute.xlu2 %4316 }
 0x6a2   : > { %v4365_v9 = vpop.permute.xlu0 %4364 }
 0x6a3   : > { %v4450_v33 = vsel %vm13777_vm13, %v4365_v9, %v4421_v40  ;;  %vm13780_vm13 = vcmp.lt.s32.totalorder %v8837_v51, 1  ;;  %v7794_v40 = vld [vmem:[%s12958_s15 + $0x10] sm:$0xff] }
 0x6a4   : > { %4688 = vmatmul.bf16.gmra.mxu0 %v4450_v33  ;;  %4737 = vmatmul.bf16.gmra.mxu1 %v4450_v33 }
 0x6b2   : > { %v4367_v63 = vpop.permute.xlu0 %4366 }
 0x6b3   : > { %v4454_v8 = vsel %vm13778_vm14, %v4367_v63, %v4423_v34  ;;  %vm13781_vm14 = vmmov %vm13780_vm13 }
 0x6b4   : > { %4693 = vmatmul.bf16.gmra.mxu0 %v4454_v8  ;;  %4742 = vmatmul.bf16.gmra.mxu1 %v4454_v8 }
 0x6ba   : > { %v4313_v24 = vpop.permute.xlu0 %4312 }
 0x6bb   : > { %v4338_v11 = vsel %vm13779_vm4, %v11179_v43, %v4313_v24  ;;  %v7795_v43 = vld [vmem:[%s12958_s15 + $0x18] sm:$0xff]  ;;  %vm13782_vm4 = vmmov %vm13770_vm3 }
 0x6bc   : > { %4580 = vmatmul.bf16.gmra.mxu3 %v4338_v11  ;;  %4629 = vmatmul.bf16.gmra.mxu2 %v4338_v11  ;;  %v4346_v28 = vsel %vm13782_vm4, %v11267_v25, %v4317_v46  ;;  %vm13783_vm3 = vmmov %vm13780_vm13 }
 0x6bd   : > { %5180 = vmatpush.bf16.msrb.mxu3 %v7795_v43  ;;  %5253 = vmatpush.bf16.msrb.mxu2 %v7795_v43 }
 0x6c1   : > { %v11303_v2 = vpop.f32.mrf.mxu0  ;;  %5181 = vmatpush.bf16.msrb.mxu3 %v7794_v40  ;;  %5254 = vmatpush.bf16.msrb.mxu2 %v7794_v40  ;;  %v4708_v47 = vpop.f32.mrf.mxu1 }
 0x6c2   : > { %4928 = vrot.lane.b32.xlu0 %v11303_v2, %s7956_s26  ;;  %v13154_v37 = vrot.slane %v11303_v2, 7  ;;  %v4319_v25 = vpop.permute.xlu0 %4318  ;;  %v13803_v18 = vrot.slane %v11303_v2, 7  ;;  %v11471_v2 = vld [vmem:[%s12957_s14] ss:$0 sm:$0xff] }
 0x6c9   : > { %v4661_v59 = vpop.f32.mrf.mxu0 }
 0x6ca   : > { %v4749_v31 = vrot.slane %v4661_v59, 7 }
 0x6cc   : > { %4585 = vmatmul.bf16.gmra.mxu3 %v4342_v17  ;;  %4634 = vmatmul.bf16.gmra.mxu2 %v4342_v17  ;;  %v11317_v38 = vsel %vm13780_vm13, %v13154_v37, %v4749_v31  ;;  %vm13784_vm13 = vmmov %vm13783_vm3 }
 0x6d1   : > { %v4664_v32 = vpop.f32.mrf.mxu0 }
 0x6d2   : > { %v4750_v12 = vrot.slane %v4664_v32, 7 }
 0x6d4   : > { %v11321_v30 = vsel %vm13781_vm14, %v4749_v31, %v4750_v12  ;;  %vm13785_vm14 = vmmov %vm13782_vm4 }
 0x6d5   : > { %v4350_v9 = vsel %vm13785_vm14, %v11273_v58, %v4319_v25  ;;  %vm13786_vm4 = vmmov %vm13783_vm3 }
 0x6d6   : > { %vm13788_vm14 = vmmov %vm13783_vm3 }
 0x6d9   : > { %v4666_v1 = vpop.f32.mrf.mxu0 }
 0x6da   : > { %v4751_v48 = vrot.slane %v4666_v1, 7 }
 0x6dc   : > { %4590 = vmatmul.bf16.gmra.mxu3 %v4346_v28  ;;  %4639 = vmatmul.bf16.gmra.mxu2 %v4346_v28  ;;  %v11327_v26 = vsel %vm13783_vm3, %v4750_v12, %v4751_v48 }
 0x6df   : > { %v11329_v53 = vpop.f32.mrf.mxu3  ;;  %v11429_v6 = vpop.f32.mrf.mxu2 }
 0x6e0   : > { %4812 = vrot.lane.b32.xlu1 %v11329_v53, %s7956_s26 }
 0x6e1   : > { %v4669_v60 = vpop.f32.mrf.mxu0 }
 0x6e2   : > { %v4752_v4 = vrot.slane %v4669_v60, 7 }
 0x6e4   : > { %v11335_v62 = vsel %vm13784_vm13, %v4751_v48, %v4752_v4  ;;  %vm13787_vm13 = vmmov %vm13783_vm3  ;;  %v7793_v48 = vld [vmem:[%s12958_s15 + $0x8] sm:$0xff] }
 0x6e5   : > { %5182 = vmatpush.bf16.msrb.mxu3 %v7793_v48  ;;  %5255 = vmatpush.bf16.msrb.mxu2 %v7793_v48 }
 0x6e7   : > { %v11337_v14 = vpop.f32.mrf.mxu3  ;;  %v4612_v13 = vpop.f32.mrf.mxu2 }
 0x6e8   : > { %4930 = vrot.lane.b32.xlu1 %v4661_v59, %s7956_s26  ;;  %4814 = vrot.lane.b32.xlu2 %v11337_v14, %s7956_s26  ;;  %v4993_v0 = vrot.slane %v4612_v13, 1 }
 0x6e9   : > { %v4671_v57 = vpop.f32.mrf.mxu0 }
 0x6ea   : > { %v4753_v20 = vrot.slane %v4671_v57, 7 }
 0x6ec   : > { %4595 = vmatmul.bf16.gmra.mxu3 %v4350_v9  ;;  %4644 = vmatmul.bf16.gmra.mxu2 %v4350_v9  ;;  %v11349_v33 = vsel %vm13786_vm4, %v4752_v4, %v4753_v20  ;;  %vm13789_vm4 = vmmov %vm13783_vm3 }
 0x6ef   : > { %v11351_v34 = vpop.f32.mrf.mxu3 }
 0x6f0   : > { %4932 = vrot.lane.b32.xlu1 %v4664_v32, %s7956_s26  ;;  %4816 = vrot.lane.b32.xlu2 %v11351_v34, %s7956_s26 }
 0x6f1   : > { %v4674_v63 = vpop.f32.mrf.mxu0 }
 0x6f2   : > { %v4754_v8 = vrot.slane %v4674_v63, 7 }
 0x6f4   : > { %v11358_v58 = vsel %vm13783_vm3, %v4753_v20, %v4754_v8 }
 0x6f7   : > { %v11360_v24 = vpop.f32.mrf.mxu3 }
 0x6f8   : > { %4934 = vrot.lane.b32.xlu2 %v4666_v1, %s7956_s26  ;;  %4818 = vrot.lane.b32.xlu0 %v11360_v24, %s7956_s26 }
 0x6f9   : > { %v4676_v11 = vpop.f32.mrf.mxu0 }
 0x6fa   : > { %v4755_v23 = vrot.slane %v4676_v11, 7 }
 0x6fc   : > { %v11367_v59 = vsel %vm13787_vm13, %v4754_v8, %v4755_v23  ;;  %vm13791_vm13 = vmmov %vm13783_vm3 }
 0x6ff   : > { %v11369_v31 = vpop.f32.mrf.mxu3 }
 0x700   : > { %4936 = vrot.lane.b32.xlu2 %v4669_v60, %s7956_s26  ;;  %4820 = vrot.lane.b32.xlu0 %v11369_v31, %s7956_s26 }
 0x701   : > { %v4679_v17 = vpop.f32.mrf.mxu0 }
 0x702   : > { %v4756_v43 = vrot.slane %v4679_v17, 7 }
 0x704   : > { %v11376_v32 = vsel %vm13788_vm14, %v4755_v23, %v4756_v43  ;;  %vm13793_vm14 = vmmov %vm13783_vm3 }
 0x707   : > { %v11378_v12 = vpop.f32.mrf.mxu3 }
 0x708   : > { %4822 = vrot.lane.b32.xlu1 %v11378_v12, %s7956_s26  ;;  %4938 = vrot.lane.b32.xlu0 %v4671_v57, %s7956_s26 }
 0x709   : > { %v4681_v46 = vpop.f32.mrf.mxu0 }
 0x70a   : > { %v4757_v1 = vrot.slane %v4681_v46, 7 }
 0x70c   : > { %v11388_v28 = vsel %vm13789_vm4, %v4756_v43, %v4757_v1  ;;  %vm13795_vm4 = vmmov %vm13783_vm3 }
 0x70f   : > { %v11390_v60 = vpop.f32.mrf.mxu3 }
 0x710   : > { %4824 = vrot.lane.b32.xlu1 %v11390_v60, %s7956_s26  ;;  %4940 = vrot.lane.b32.xlu0 %v4674_v63, %s7956_s26 }
 0x711   : > { %v4684_v4 = vpop.f32.mrf.mxu0 }
 0x712   : > { %v4758_v25 = vrot.slane %v4684_v4, 7 }
 0x714   : > { %v11397_v57 = vsel %vm13783_vm3, %v4757_v1, %v4758_v25 }
 0x715   : > { %13790 = vst [vmem:[#allocation65_spill] sm:$0xff] %v11397_v57 }
 0x717   : > { %v11399_v20 = vpop.f32.mrf.mxu3 }
 0x718   : > { %4942 = vrot.lane.b32.xlu1 %v4676_v11, %s7956_s26  ;;  %4826 = vrot.lane.b32.xlu2 %v11399_v20, %s7956_s26 }
 0x719   : > { %v4686_v40 = vpop.f32.mrf.mxu0 }
 0x71a   : > { %v4759_v9 = vrot.slane %v4686_v40, 7 }
 0x71c   : > { %v11406_v8 = vsel %vm13791_vm13, %v4758_v25, %v4759_v9  ;;  %vm13798_vm13 = vmmov %vm13783_vm3 }
 0x71d   : > { %13792 = vst [vmem:[#allocation58_spill] sm:$0xff] %v11406_v8 }
 0x720   : > { %4944 = vrot.lane.b32.xlu1 %v4679_v17, %s7956_s26  ;;  %v7792_v17 = vld [vmem:[%s12958_s15] sm:$0xff] }
 0x721   : > { %v11409_v63 = vpop.f32.mrf.mxu0  ;;  %5183 = vmatpush.bf16.msrb.mxu3 %v7792_v17  ;;  %5256 = vmatpush.bf16.msrb.mxu2 %v7792_v17  ;;  %v4710_v17 = vpop.f32.mrf.mxu1 }
 0x722   : > { %v4760_v23 = vrot.slane %v11409_v63, 7 }
 0x724   : > { %v11414_v43 = vsel %vm13793_vm14, %v4759_v9, %v4760_v23 }
 0x725   : > { %13794 = vst [vmem:[#allocation14_spill] sm:$0xff] %v11414_v43  ;;  %v4615_v43 = vpop.f32.mrf.mxu2 }
 0x729   : > { %v11416_v11 = vpop.f32.mrf.mxu0 }
 0x72a   : > { %v4761_v1 = vrot.slane %v11416_v11, 7 }
 0x72c   : > { %v11421_v48 = vsel %vm13795_vm4, %v4760_v23, %v4761_v1  ;;  %vm13804_vm4 = vmmov %vm13783_vm3 }
 0x72d   : > { %13796 = vst [vmem:[#allocation10_spill] sm:$0xff] %v11421_v48 }
 0x731   : > { %v11423_v25 = vpop.f32.mrf.mxu0 }
 0x732   : > { %v4762_v37 = vrot.slane %v11423_v25, 7 }
 0x734   : > { %v11433_v9 = vsel %vm13783_vm3, %v4761_v1, %v4762_v37  ;;  %vm13805_vm3 = vcmp.lt.s32.totalorder %v8837_v51, 7 }
 0x735   : > { %13797 = vst [vmem:[#allocation21_spill] sm:$0xff] %v11433_v9  ;;  %v13800_v9 = vld [vmem:[#allocation15_spill] sm:$0xff] }
 0x736   : > { %vm13801_vm14 = vnez %v13800_v9  ;;  %v4929_v9 = vpop.permute.xlu0 %4928 }
 0x739   : > { %v11435_v19 = vpop.f32.mrf.mxu0 }
 0x73a   : > { %v4763_v23 = vrot.slane %v11435_v19, 7 }
 0x73c   : > { %v11440_v15 = vsel %vm13798_vm13, %v4762_v37, %v4763_v23  ;;  %v4781_v37 = vsel %vm13801_vm14, 0.0, %v11317_v38  ;;  %v4779_v8 = vsel %vm13804_vm4, %v4763_v23, %v13803_v18  ;;  %v13160_v38 = vrot.slane %v11429_v6, 1  ;;  %vm13806_vm13 = vmmov %vm13805_vm3 }
 0x73d   : > { %13799 = vst [vmem:[#allocation64_spill] sm:$0xff] %v11440_v15  ;;  %v11454_v15 = vpop.f32.mrf.mxu1  ;;  %vm13807_vm4 = vcmask 523264  }
 0x73e   : > { %v5022_v13 = vsel %vm13805_vm3, %v13160_v38, %v4993_v0 }
 0x73f   : > { %v11442_v35 = vpop.f32.mrf.mxu3 }
 0x740   : > { %4828 = vrot.lane.b32.xlu2 %v11442_v35, %s7956_s26 }
 0x742   : > { %v4815_v1 = vpop.permute.xlu2 %4814 }
 0x743   : > { %v4861_v45 = vadd.f32 %v4815_v1, %v4781_v37  ;;  %v4780_v1 = vsel %vm9357_vm15, 0.0, %v4779_v8 }
 0x745   : > { %v4877_v56 = vadd.f32 %v4861_v45, %v4710_v17  ;;  %v4976_v45 = vadd.f32 %v4929_v9, %v11329_v53  ;;  %v4715_v37 = vpop.f32.mrf.mxu1 }
 0x747   : > { %v11446_v10 = vpop.f32.mrf.mxu3  ;;  %v4897_v23 = vadd.f32 %v11471_v2, %v4877_v56 }
 0x748   : > { %4946 = vrot.lane.b32.xlu2 %v4681_v46, %s7956_s26  ;;  %4830 = vrot.lane.b32.xlu0 %v11446_v10, %s7956_s26  ;;  %v4617_v46 = vpop.f32.mrf.mxu2 }
 0x749   : > { %v4995_v50 = vrot.slane %v4617_v46, 1 }
 0x74f   : > { %v11456_v48 = vpop.f32.mrf.mxu3 }
 0x750   : > { %13802 = vst [vmem:[#allocation57_spill] sm:$0xff] %v11456_v48  ;;  %4948 = vrot.lane.b32.xlu2 %v4684_v4, %s7956_s26  ;;  %4832 = vrot.lane.b32.xlu0 %v11456_v48, %s7956_s26  ;;  %v4994_v4 = vrot.slane %v4615_v43, 1  ;;  %v5024_v48 = vsel %vm13563_vm11, 0.0, %v5022_v13  ;;  %v4620_v9 = vpop.f32.mrf.mxu2 }
 0x751   : > { %v5040_v43 = vadd.f32 %v5024_v48, %v4976_v45 }
 0x752   : > { %v4813_v57 = vpop.permute.xlu1 %4812  ;;  %v5020_v46 = vsel %vm13805_vm3, %v4994_v4, %v4995_v50 }
 0x753   : > { %v4860_v18 = vadd.f32 %v4813_v57, %v4780_v1  ;;  %v4817_v57 = vpop.permute.xlu2 %4816  ;;  %v5073_v1 = vmax.f32 %v4897_v23, 0.0  ;;  %v5056_v38 = vadd.f32 %v11471_v2, %v5040_v43 }
 0x755   : > { %v4876_v17 = vadd.f32 %v4860_v18, %v4708_v47  ;;  %v5021_v47 = vsel %vm13806_vm13, %v4993_v0, %v4994_v4  ;;  %v4718_v0 = vpop.f32.mrf.mxu1  ;;  %v5096_v23 = vmax.f32 %v5056_v38, 0.0  ;;  %vm13808_vm13 = vmmov %vm13805_vm3 }
 0x756   : > { %v5025_v13 = vsel %vm9131_vm5, 0.0, %v5021_v47 }
 0x757   : > { %v4896_v8 = vadd.f32 %v11471_v2, %v4876_v17  ;;  %v11480_v29 = vpop.f32.mrf.mxu3 }
 0x758   : > { %4950 = vrot.lane.b32.xlu0 %v4686_v40, %s7956_s26  ;;  %4834 = vrot.lane.b32.xlu1 %v11480_v29, %s7956_s26 }
 0x759   : > { %v5072_v53 = vmax.f32 %v4896_v8, 0.0 }
 0x75a   : > { %v4931_v56 = vpop.permute.xlu1 %4930 }
 0x75b   : > { %v5088_v18 = vpack.c.bf16 %v5073_v1, %v5072_v53  ;;  %v4977_v17 = vadd.f32 %v4931_v56, %v11337_v14  ;;  %v4996_v14 = vrot.slane %v4620_v9, 1  ;;  %v4935_v1 = vpop.permute.xlu2 %4934  ;;  %v4782_v56 = vsel %vm9411_vm1, 0.0, %v11321_v30 }
 0x75c   : > { %v4979_v38 = vadd.f32 %v4935_v1, %v11360_v24  ;;  %v5026_v9 = vsel %vm9189_vm7, 0.0, %v5020_v46  ;;  %v4783_v24 = vsel %vm9460_vm2, 0.0, %v11327_v26  ;;  %vm13810_vm7 = vnez %v13438_v36 }
 0x75d   : > { %v5041_v40 = vadd.f32 %v5025_v13, %v4977_v17  ;;  %7620 = vmatmul.msk.bf16.vlgmr.msrb.gmra.mxu3 %vm13807_vm4, %v5088_v18  ;;  %v4862_v18 = vadd.f32 %v4817_v57, %v4782_v56  ;;  %v5019_v17 = vsel %vm13808_vm13, %v4995_v50, %v4996_v14  ;;  %vm13809_vm13 = vmmov %vm13807_vm4 }
 0x75f   : > { %v5057_v48 = vadd.f32 %v11471_v2, %v5041_v40  ;;  %v11495_v45 = vpop.f32.mrf.mxu3  ;;  %v4878_v50 = vadd.f32 %v4862_v18, %v11454_v15 }
 0x760   : > { %4952 = vrot.lane.b32.xlu0 %v11409_v63, %s7956_s26  ;;  %4836 = vrot.lane.b32.xlu1 %v11495_v45, %s7956_s26  ;;  %v4622_v63 = vpop.f32.mrf.mxu2 }
 0x761   : > { %v5097_v8 = vmax.f32 %v5057_v48, 0.0 }
 0x762   : > { %v4933_v43 = vpop.permute.xlu1 %4932 }
 0x763   : > { %v5112_v53 = vpack.c.bf16 %v5097_v8, %v5096_v23  ;;  %v4978_v47 = vadd.f32 %v4933_v43, %v11351_v34  ;;  %v5027_v34 = vsel %vm9244_vm10, 0.0, %v5019_v17  ;;  %v4720_v23 = vpop.f32.mrf.mxu1  ;;  %v4898_v8 = vadd.f32 %v11471_v2, %v4878_v50  ;;  %v4937_v18 = vpop.permute.xlu2 %4936 }
 0x764   : > { %v5043_v30 = vadd.f32 %v5027_v34, %v4979_v38  ;;  %v4980_v34 = vadd.f32 %v4937_v18, %v11369_v31  ;;  %vm13816_vm10 = vcmask 523264  }
 0x765   : > { %7628 = vmatmul.msk.bf16.vlgmr.msrb.gmra.mxu2 %vm13807_vm4, %v5112_v53  ;;  %v5042_v13 = vadd.f32 %v5026_v9, %v4978_v47  ;;  %v4997_v47 = vrot.slane %v4622_v63, 1  ;;  %v5074_v26 = vmax.f32 %v4898_v8, 0.0  ;;  %v4784_v63 = vsel %vm13662_vm12, 0.0, %v11335_v62  ;;  %vm13817_vm15 = vmmov %vm13816_vm10 }
 0x766   : > { %v5059_v1 = vadd.f32 %v11471_v2, %v5043_v30 }
 0x767   : > { %v11513_v4 = vpop.f32.mrf.mxu3  ;;  %v5058_v40 = vadd.f32 %v11471_v2, %v5042_v13  ;;  %v5018_v13 = vsel %vm13805_vm3, %v4996_v14, %v4997_v47 }
 0x768   : > { %4954 = vrot.lane.b32.xlu1 %v11416_v11, %s7956_s26  ;;  %4838 = vrot.lane.b32.xlu2 %v11513_v4, %s7956_s26  ;;  %v4625_v43 = vpop.f32.mrf.mxu2  ;;  %v5099_v56 = vmax.f32 %v5059_v1, 0.0 }
 0x769   : > { %v5098_v53 = vmax.f32 %v5058_v40, 0.0 }
 0x76a   : > { %v4819_v57 = vpop.permute.xlu0 %4818 }
 0x76b   : > { %v4863_v48 = vadd.f32 %v4819_v57, %v4783_v24  ;;  %v5113_v9 = vpack.c.bf16 %v5099_v56, %v5098_v53  ;;  %v4723_v30 = vpop.f32.mrf.mxu1  ;;  %v5028_v24 = vsel %vm13810_vm7, 0.0, %v5018_v13  ;;  %vm13813_vm7 = vnez %v13442_v54 }
 0x76c   : > { %v5044_v40 = vadd.f32 %v5028_v24, %v4980_v34 }
 0x76d   : > { %v4879_v11 = vadd.f32 %v4863_v48, %v4715_v37 }
 0x76f   : > { %v4899_v46 = vadd.f32 %v11471_v2, %v4879_v11  ;;  %v11529_v15 = vpop.f32.mrf.mxu3 }
 0x770   : > { %4956 = vrot.lane.b32.xlu1 %v11423_v25, %s7956_s26  ;;  %4840 = vrot.lane.b32.xlu2 %v11529_v15, %s7956_s26  ;;  %v4998_v25 = vrot.slane %v4625_v43, 1  ;;  %v4627_v62 = vpop.f32.mrf.mxu2 }
 0x771   : > { %v5075_v17 = vmax.f32 %v4899_v46, 0.0 }
 0x772   : > { %v4821_v38 = vpop.permute.xlu0 %4820  ;;  %v4827_v31 = vpop.permute.xlu2 %4826  ;;  %v5017_v48 = vsel %vm13805_vm3, %v4997_v47, %v4998_v25  ;;  %vm13814_vm3 = vnez %v13339_v16 }
 0x773   : > { %v5089_v37 = vpack.c.bf16 %v5075_v17, %v5074_v26  ;;  %v4864_v50 = vadd.f32 %v4821_v38, %v4784_v63  ;;  %v4725_v38 = vpop.f32.mrf.mxu1 }
 0x775   : > { %7621 = vmatmul.msk.bf16.gmra.mxu3 %vm13809_vm13, %v5089_v37  ;;  %7629 = vmatmul.msk.bf16.gmra.mxu2 %vm13807_vm4, %v5113_v9  ;;  %v4880_v14 = vadd.f32 %v4864_v50, %v4718_v0  ;;  %vm13811_vm13 = vnez %v13570_v39  ;;  %vm13812_vm4 = vnez %v13335_v27  ;;  %v5029_v0 = vsel %vm13813_vm7, 0.0, %v5017_v48 }
 0x776   : > { %v4785_v8 = vsel %vm13811_vm13, 0.0, %v11349_v33  ;;  %v4787_v46 = vsel %vm13812_vm4, 0.0, %v11367_v59  ;;  %v4786_v50 = vsel %vm13814_vm3, 0.0, %v11358_v58  ;;  %vm13815_vm7 = vcmp.lt.s32.totalorder %v8837_v51, 7 }
 0x777   : > { %v11545_v57 = vpop.f32.mrf.mxu3  ;;  %v4867_v26 = vadd.f32 %v4827_v31, %v4787_v46  ;;  %v4900_v47 = vadd.f32 %v11471_v2, %v4880_v14  ;;  %vm13818_vm4 = vnez %v13451_v3  ;;  %vm13819_vm3 = vnez %v13446_v5 }
 0x778   : > { %4958 = vrot.lane.b32.xlu2 %v11435_v19, %s7956_s26  ;;  %4842 = vrot.lane.b32.xlu0 %v11545_v57, %s7956_s26  ;;  %v5060_v19 = vadd.f32 %v11471_v2, %v5044_v40  ;;  %v4630_v37 = vpop.f32.mrf.mxu2  ;;  %s7957_s26 = smov 122  }
 0x779   : > { %v4883_v13 = vadd.f32 %v4867_v26, %v4725_v38  ;;  %v5076_v34 = vmax.f32 %v4900_v47, 0.0 }
 0x77a   : > { %v4823_v1 = vpop.permute.xlu1 %4822  ;;  %v4939_v11 = vpop.permute.xlu0 %4938  ;;  %v5100_v9 = vmax.f32 %v5060_v19, 0.0 }
 0x77b   : > { %v4865_v43 = vadd.f32 %v4823_v1, %v4785_v8  ;;  %v4981_v53 = vadd.f32 %v4939_v11, %v11378_v12  ;;  %v4999_v12 = vrot.slane %v4627_v62, 1  ;;  %v5000_v8 = vrot.slane %v4630_v37, 1 }
 0x77c   : > { %v4903_v62 = vadd.f32 %v11471_v2, %v4883_v13 }
 0x77d   : > { %v4881_v56 = vadd.f32 %v4865_v43, %v4720_v23  ;;  %v5045_v18 = vadd.f32 %v5029_v0, %v4981_v53  ;;  %v5016_v48 = vsel %vm13815_vm7, %v4998_v25, %v4999_v12  ;;  %v5015_v25 = vsel %vm13815_vm7, %v4999_v12, %v5000_v8 }
 0x77e   : > { %v5030_v43 = vsel %vm13818_vm4, 0.0, %v5016_v48  ;;  %v5079_v53 = vmax.f32 %v4903_v62, 0.0  ;;  %vm13822_vm4 = vmmov %vm13815_vm7 }
 0x77f   : > { %v4901_v33 = vadd.f32 %v11471_v2, %v4881_v56  ;;  %v5061_v17 = vadd.f32 %v11471_v2, %v5045_v18 }
 0x780   : > { %v4632_v18 = vpop.f32.mrf.mxu2 }
 0x781   : > { %v5077_v63 = vmax.f32 %v4901_v33, 0.0  ;;  %v5101_v59 = vmax.f32 %v5061_v17, 0.0  ;;  %v5001_v12 = vrot.slane %v4632_v18, 1 }
 0x782   : > { %v4825_v24 = vpop.permute.xlu1 %4824  ;;  %v4941_v40 = vpop.permute.xlu0 %4940 }
 0x783   : > { %v5090_v23 = vpack.c.bf16 %v5077_v63, %v5076_v34  ;;  %v5114_v31 = vpack.c.bf16 %v5101_v59, %v5100_v9  ;;  %v4866_v14 = vadd.f32 %v4825_v24, %v4786_v50  ;;  %v4982_v11 = vadd.f32 %v4941_v40, %v11390_v60  ;;  %v4728_v50 = vpop.f32.mrf.mxu1 }
 0x784   : > { %v5031_v60 = vsel %vm13819_vm3, 0.0, %v5015_v25  ;;  %v5014_v59 = vsel %vm13815_vm7, %v5000_v8, %v5001_v12  ;;  %vm13821_vm3 = vnez %v13688_v49  ;;  %vm13825_vm7 = vnez %v13678_v7 }
 0x785   : > { %v4882_v1 = vadd.f32 %v4866_v14, %v4723_v30  ;;  %7622 = vmatmul.msk.bf16.gmra.mxu3 %vm13816_vm10, %v5090_v23  ;;  %7630 = vmatmul.msk.bf16.gmra.mxu2 %vm13817_vm15, %v5114_v31  ;;  %v5046_v46 = vadd.f32 %v5030_v43, %v4982_v11  ;;  %vm13820_vm15 = vmmov %vm13816_vm10  ;;  %v5032_v24 = vsel %vm13821_vm3, 0.0, %v5014_v59 }
 0x787   : > { %v4902_v58 = vadd.f32 %v11471_v2, %v4882_v1  ;;  %v5062_v47 = vadd.f32 %v11471_v2, %v5046_v46 }
 0x788   : > { %v4635_v37 = vpop.f32.mrf.mxu2 }
 0x789   : > { %v5078_v19 = vmax.f32 %v4902_v58, 0.0  ;;  %v5102_v17 = vmax.f32 %v5062_v47, 0.0  ;;  %v5002_v34 = vrot.slane %v4635_v37, 1 }
 0x78a   : > { %v4943_v0 = vpop.permute.xlu1 %4942 }
 0x78b   : > { %v5091_v26 = vpack.c.bf16 %v5079_v53, %v5078_v19  ;;  %v4983_v30 = vadd.f32 %v4943_v0, %v11399_v20  ;;  %v5013_v23 = vsel %vm13822_vm4, %v5001_v12, %v5002_v34  ;;  %v4730_v8 = vpop.f32.mrf.mxu1  ;;  %vm13824_vm4 = vnez %v13681_v55 }
 0x78c   : > { %v4789_v0 = vsel %vm13825_vm7, 0.0, %v11388_v28 }
 0x78d   : > { %v5047_v56 = vadd.f32 %v5031_v60, %v4983_v30 }
 0x78f   : > { %v5063_v33 = vadd.f32 %v11471_v2, %v5047_v56 }
 0x790   : > { %v4637_v53 = vpop.f32.mrf.mxu2 }
 0x791   : > { %v5103_v38 = vmax.f32 %v5063_v33, 0.0 }
 0x792   : > { %v4945_v13 = vpop.permute.xlu1 %4944 }
 0x793   : > { %v5115_v9 = vpack.c.bf16 %v5103_v38, %v5102_v17  ;;  %v4984_v63 = vadd.f32 %v4945_v13, %v11442_v35  ;;  %v4733_v19 = vpop.f32.mrf.mxu1  ;;  %v13826_v13 = vld [vmem:[#allocation65_spill] sm:$0xff] }
 0x795   : > { %7623 = vmatmul.msk.bf16.gmra.mxu3 %vm13816_vm10, %v5091_v26  ;;  %7631 = vmatmul.msk.bf16.gmra.mxu2 %vm13820_vm15, %v5115_v9  ;;  %v5048_v40 = vadd.f32 %v5032_v24, %v4984_v63  ;;  %vm13823_vm10 = vnez %v13685_v61  ;;  %v5003_v9 = vrot.slane %v4637_v53, 1  ;;  %v4790_v63 = vsel %vm13700_vm8, 0.0, %v13826_v13 }
 0x796   : > { %v5033_v48 = vsel %vm13823_vm10, 0.0, %v5013_v23  ;;  %vm13828_vm10 = vcmp.lt.s32.totalorder %v8837_v51, 7  ;;  %v13829_v23 = vld [vmem:[#allocation57_spill] sm:$0xff] }
 0x797   : > { %v5064_v62 = vadd.f32 %v11471_v2, %v5048_v40  ;;  %v5012_v40 = vsel %vm13828_vm10, %v5002_v34, %v5003_v9 }
 0x798   : > { %v4640_v30 = vpop.f32.mrf.mxu2 }
 0x799   : > { %v5104_v11 = vmax.f32 %v5064_v62, 0.0  ;;  %v5004_v24 = vrot.slane %v4640_v30, 1 }
 0x79a   : > { %v4829_v20 = vpop.permute.xlu2 %4828 }
 0x79b   : > { %v4735_v47 = vpop.f32.mrf.mxu1 }
 0x7a0   : > { %v4642_v28 = vpop.f32.mrf.mxu2 }
 0x7a2   : > { %v4947_v31 = vpop.permute.xlu2 %4946 }
 0x7a3   : > { %v4985_v14 = vadd.f32 %v4947_v31, %v11446_v10  ;;  %v4788_v10 = vsel %vm13824_vm4, 0.0, %v11376_v32 }
 0x7a4   : > { %v4868_v46 = vadd.f32 %v4829_v20, %v4788_v10 }
 0x7a5   : > { %v5049_v35 = vadd.f32 %v5033_v48, %v4985_v14  ;;  %v5034_v48 = vsel %vm13707_vm0, 0.0, %v5012_v40 }
 0x7a6   : > { %v4884_v25 = vadd.f32 %v4868_v46, %v4728_v50  ;;  %v4738_v50 = vpop.f32.mrf.mxu1 }
 0x7a7   : > { %v5065_v1 = vadd.f32 %v11471_v2, %v5049_v35 }
 0x7a8   : > { %v4904_v56 = vadd.f32 %v11471_v2, %v4884_v25  ;;  %v13835_v25 = vld [vmem:[#allocation10_spill] sm:$0xff] }
 0x7a9   : > { %v5105_v58 = vmax.f32 %v5065_v1, 0.0 }
 0x7aa   : > { %v5080_v17 = vmax.f32 %v4904_v56, 0.0  ;;  %v4949_v12 = vpop.permute.xlu2 %4948  ;;  %v13837_v56 = vld [vmem:[#allocation9_spill] sm:$0xff] }
 0x7ab   : > { %v5116_v43 = vpack.c.bf16 %v5105_v58, %v5104_v11  ;;  %v4986_v31 = vadd.f32 %v4949_v12, %v13829_v23  ;;  %v13832_v11 = vld [vmem:[#allocation27_spill] sm:$0xff]  ;;  %v13839_v23 = vld [vmem:[#allocation14_spill] sm:$0xff] }
 0x7ac   : > { %vm13833_vm8 = vnez %v13832_v11 }
 0x7ad   : > { %7632 = vmatmul.msk.bf16.gmra.mxu2 %vm13820_vm15, %v5116_v43  ;;  %v5050_v35 = vadd.f32 %v5034_v48, %v4986_v31  ;;  %v4792_v31 = vsel %vm13623_vm9, 0.0, %v13839_v23  ;;  %v13848_v23 = vld [vmem:[#allocation21_spill] sm:$0xff] }
 0x7ae   : > { %v4740_v12 = vpop.f32.mrf.mxu1 }
 0x7ba   : > { %v4831_v26 = vpop.permute.xlu0 %4830 }
 0x7bb   : > { %v4869_v60 = vadd.f32 %v4831_v26, %v4789_v0  ;;  %v4793_v0 = vsel %vm13715_vm6, 0.0, %v13835_v25  ;;  %vm13841_vm6 = vcmask 523264   ;;  %v13843_v25 = vld [vmem:[#allocation18_spill] sm:$0xff] }
 0x7bc   : > { %vm13844_vm9 = vnez %v13843_v25  ;;  %v11862_v25 = vld [vmem:[%s11666_s27] ss:$0 sm:$0xff] }
 0x7bd   : > { %v4885_v18 = vadd.f32 %v4869_v60, %v4730_v8  ;;  %v13831_v8 = vld [vmem:[#allocation58_spill] sm:$0xff] }
 0x7be   : > { %v4791_v58 = vsel %vm13833_vm8, 0.0, %v13831_v8 }
 0x7bf   : > { %v4905_v33 = vadd.f32 %v11471_v2, %v4885_v18 }
 0x7c1   : > { %v5081_v38 = vmax.f32 %v4905_v33, 0.0  ;;  %v5066_v33 = vadd.f32 %v11471_v2, %v5050_v35 }
 0x7c2   : > { %v4833_v32 = vpop.permute.xlu0 %4832  ;;  %v4839_v1 = vpop.permute.xlu2 %4838 }
 0x7c3   : > { %v5092_v37 = vpack.c.bf16 %v5081_v38, %v5080_v17  ;;  %v4870_v59 = vadd.f32 %v4833_v32, %v4790_v63  ;;  %v4873_v30 = vadd.f32 %v4839_v1, %v4793_v0  ;;  %v4645_v38 = vpop.f32.mrf.mxu2  ;;  %v5005_v32 = vrot.slane %v4642_v28, 1 }
 0x7c4   : > { %v5006_v28 = vrot.slane %v4645_v38, 1  ;;  %v13845_v38 = vld [vmem:[#allocation3_spill] sm:$0xff] }
 0x7c5   : > { %7624 = vmatmul.msk.bf16.gmra.mxu3 %vm13820_vm15, %v5092_v37  ;;  %v4886_v62 = vadd.f32 %v4870_v59, %v4733_v19  ;;  %vm13834_vm15 = vmmov %vm13828_vm10  ;;  %vm13838_vm10 = vnez %v13837_v56  ;;  %v4889_v13 = vadd.f32 %v4873_v30, %v4740_v12  ;;  %v5106_v59 = vmax.f32 %v5066_v33, 0.0 }
 0x7c6   : > { %v5011_v53 = vsel %vm13834_vm15, %v5003_v9, %v5004_v24 }
 0x7c7   : > { %v4906_v19 = vadd.f32 %v11471_v2, %v4886_v62  ;;  %v5035_v18 = vsel %vm13838_vm10, 0.0, %v5011_v53  ;;  %vm13842_vm10 = vmmov %vm13841_vm6 }
 0x7c9   : > { %v5082_v63 = vmax.f32 %v4906_v19, 0.0 }
 0x7ca   : > { %v4835_v43 = vpop.permute.xlu1 %4834  ;;  %v4951_v46 = vpop.permute.xlu0 %4950 }
 0x7cb   : > { %v4871_v10 = vadd.f32 %v4835_v43, %v4791_v58  ;;  %v4987_v26 = vadd.f32 %v4951_v46, %v11480_v29  ;;  %v5010_v58 = vsel %vm13834_vm15, %v5004_v24, %v5005_v32  ;;  %v4909_v43 = vadd.f32 %v11471_v2, %v4889_v13  ;;  %v4841_v19 = vpop.permute.xlu2 %4840 }
 0x7cc   : > { %v5036_v0 = vsel %vm13844_vm9, 0.0, %v5010_v58  ;;  %vm13856_vm9 = vcmp.lt.s32.totalorder %v8837_v51, 7 }
 0x7cd   : > { %v4887_v60 = vadd.f32 %v4871_v10, %v4735_v47  ;;  %v5051_v17 = vadd.f32 %v5035_v18, %v4987_v26  ;;  %v4647_v26 = vpop.f32.mrf.mxu2  ;;  %v5085_v30 = vmax.f32 %v4909_v43, 0.0  ;;  %v5009_v18 = vsel %vm13834_vm15, %v5005_v32, %v5006_v28 }
 0x7ce   : > { %v13855_v43 = vrot.slane %v11429_v6, 1 }
 0x7cf   : > { %v4907_v9 = vadd.f32 %v11471_v2, %v4887_v60  ;;  %v5067_v37 = vadd.f32 %v11471_v2, %v5051_v17  ;;  %v5007_v17 = vrot.slane %v4647_v26, 1 }
 0x7d1   : > { %v5083_v29 = vmax.f32 %v4907_v9, 0.0  ;;  %v5107_v40 = vmax.f32 %v5067_v37, 0.0 }
 0x7d2   : > { %v4837_v48 = vpop.permute.xlu1 %4836  ;;  %v4953_v1 = vpop.permute.xlu0 %4952 }
 0x7d3   : > { %v5093_v62 = vpack.c.bf16 %v5083_v29, %v5082_v63  ;;  %v4872_v35 = vadd.f32 %v4837_v48, %v4792_v31  ;;  %v5117_v8 = vpack.c.bf16 %v5107_v40, %v5106_v59  ;;  %v4988_v10 = vadd.f32 %v4953_v1, %v11495_v45  ;;  %v13849_v31 = vld [vmem:[#allocation5_spill] sm:$0xff] }
 0x7d4   : > { %v13851_v1 = vld [vmem:[#allocation13_spill] sm:$0xff] }
 0x7d5   : > { %v4888_v53 = vadd.f32 %v4872_v35, %v4738_v50  ;;  %7625 = vmatmul.msk.bf16.gmra.mxu3 %vm13841_vm6, %v5093_v62  ;;  %7633 = vmatmul.msk.bf16.gmra.mxu2 %vm13842_vm10, %v5117_v8  ;;  %v5052_v24 = vadd.f32 %v5036_v0, %v4988_v10  ;;  %vm13846_vm6 = vnez %v13845_v38  ;;  %vm13847_vm10 = vmmov %vm13834_vm15  ;;  %vm13850_vm15 = vnez %v13849_v31  ;;  %v4959_v62 = vpop.permute.xlu2 %4958 }
 0x7d6   : > { %v5037_v9 = vsel %vm13846_vm6, 0.0, %v5009_v18  ;;  %v5008_v29 = vsel %vm13847_vm10, %v5006_v28, %v5007_v17  ;;  %v4794_v48 = vsel %vm13850_vm15, 0.0, %v13848_v23  ;;  %vm13852_vm6 = vnez %v13851_v1 }
 0x7d7   : > { %v4908_v46 = vadd.f32 %v11471_v2, %v4888_v53  ;;  %v5068_v12 = vadd.f32 %v11471_v2, %v5052_v24  ;;  %v5038_v8 = vsel %vm13852_vm6, 0.0, %v5008_v29  ;;  %v4874_v28 = vadd.f32 %v4841_v19, %v4794_v48  ;;  %v13861_v19 = vld [vmem:[#allocation31_spill] sm:$0xff] }
 0x7d8   : > { %vm13854_vm10 = vcmask 523264   ;;  %v5023_v53 = vsel %vm13856_vm9, %v5007_v17, %v13855_v43  ;;  %v4991_v10 = vadd.f32 %v4959_v62, %v11545_v57  ;;  %vm13862_vm9 = vnez %v13861_v19 }
 0x7d9   : > { %v5084_v60 = vmax.f32 %v4908_v46, 0.0  ;;  %v5108_v32 = vmax.f32 %v5068_v12, 0.0  ;;  %vm13857_vm15 = vmmov %vm13854_vm10  ;;  %v11843_v19 = vmul.u32 2, %v8837_v51 }
 0x7da   : > { %v4955_v50 = vpop.permute.xlu1 %4954 }
 0x7db   : > { %v5094_v33 = vpack.c.bf16 %v5085_v30, %v5084_v60  ;;  %v4989_v45 = vadd.f32 %v4955_v50, %v11513_v4  ;;  %v4743_v4 = vpop.f32.mrf.mxu1  ;;  %v13858_v30 = vld [vmem:[#allocation25_spill] sm:$0xff] }
 0x7dc   : > { %v4890_v26 = vadd.f32 %v4874_v28, %v4743_v4  ;;  %vm13859_vm6 = vnez %v13858_v30  ;;  %v11851_v30 = vld [vmem:[%s12959_s16] ss:$0 sm:$0xff] }
 0x7dd   : > { %v5053_v37 = vadd.f32 %v5037_v9, %v4989_v45  ;;  %v5039_v60 = vsel %vm13859_vm6, 0.0, %v5023_v53 }
 0x7de   : > { %v5055_v6 = vadd.f32 %v5039_v60, %v4991_v10  ;;  %v4910_v45 = vadd.f32 %v11471_v2, %v4890_v26 }
 0x7df   : > { %v5069_v13 = vadd.f32 %v11471_v2, %v5053_v37 }
 0x7e0   : > { %v11651_v63 = vpop.f32.mrf.mxu3  ;;  %v5071_v9 = vadd.f32 %v11471_v2, %v5055_v6  ;;  %v5086_v29 = vmax.f32 %v4910_v45, 0.0 }
 0x7e1   : > { %v5109_v59 = vmax.f32 %v5069_v13, 0.0  ;;  %5362 = vrot.lane.b32.xlu0 %v11651_v63, %s7957_s26 }
 0x7e2   : > { %v4957_v40 = vpop.permute.xlu1 %4956 }
 0x7e3   : > { %v5118_v35 = vpack.c.bf16 %v5109_v59, %v5108_v32  ;;  %v4990_v58 = vadd.f32 %v4957_v40, %v11529_v15  ;;  %v13860_v15 = vld [vmem:[#allocation64_spill] sm:$0xff]  ;;  %v4745_v50 = vpop.f32.mrf.mxu1  ;;  %v5111_v40 = vmax.f32 %v5071_v9, 0.0 }
 0x7e4   : > { %v4795_v57 = vsel %vm13862_vm9, 0.0, %v13860_v15  ;;  %vm13864_vm9 = vmmov %vm13854_vm10 }
 0x7e5   : > { %7626 = vmatmul.msk.bf16.gmra.mxu3 %vm13854_vm10, %v5094_v33  ;;  %7634 = vmatmul.msk.bf16.gmra.mxu2 %vm13857_vm15, %v5118_v35  ;;  %v5054_v46 = vadd.f32 %v5038_v8, %v4990_v58  ;;  %vm13863_vm15 = vcmp.lt.s32.totalorder %v8837_v51, 1 }
 0x7e7   : > { %v5070_v33 = vadd.f32 %v11471_v2, %v5054_v46 }
 0x7e8   : > { %v11676_v0 = vpop.f32.mrf.mxu2  ;;  %v11703_v62 = vpop.f32.mrf.mxu3 }
 0x7e9   : > { %5526 = vrot.lane.b32.xlu2 %v11676_v0, %s7957_s26  ;;  %5442 = vrot.lane.b32.xlu1 %v11676_v0, %s7958_s29  ;;  %v5110_v37 = vmax.f32 %v5070_v33, 0.0  ;;  %v13168_v32 = vrot.slane %v11676_v0, 7 }
 0x7ea   : > { %v4843_v24 = vpop.permute.xlu0 %4842 }
 0x7eb   : > { %v4875_v18 = vadd.f32 %v4843_v24, %v4795_v57  ;;  %v5119_v48 = vpack.c.bf16 %v5111_v40, %v5110_v37 }
 0x7ed   : > { %v4891_v17 = vadd.f32 %v4875_v18, %v4745_v50 }
 0x7ef   : > { %v4911_v12 = vadd.f32 %v11471_v2, %v4891_v17 }
 0x7f0   : > { %v5260_v13 = vpop.f32.mrf.mxu2 }
 0x7f1   : > { %v5087_v59 = vmax.f32 %v4911_v12, 0.0  ;;  %v5299_v4 = vrot.slane %v5260_v13, 7  ;;  %5590 = vrot.lane.b32.xlu1 %v11651_v63, %s7958_s29  ;;  %5528 = vrot.lane.b32.xlu0 %v5260_v13, %s7957_s26 }
 0x7f2   : > { %5444 = vrot.lane.b32.xlu2 %v5260_v13, %s7958_s29 }
 0x7f3   : > { %v5095_v23 = vpack.c.bf16 %v5087_v59, %v5086_v29  ;;  %v11700_v2 = vsel %vm13863_vm15, %v13168_v32, %v5299_v4 }
 0x7f5   : > { %7627 = vmatmul.msk.bf16.gmra.mxu3 %vm13854_vm10, %v5095_v23  ;;  %7635 = vmatmul.msk.bf16.gmra.mxu2 %vm13864_vm9, %v5119_v48  ;;  %vm13865_vm9 = vmmov %vm13863_vm15 }
 0x7f6   : > { %vm13866_vm10 = vmmov %vm13865_vm9 }
 0x7f8   : > { %v5263_v35 = vpop.f32.mrf.mxu2  ;;  %v11715_v28 = vpop.f32.mrf.mxu3 }
 0x7f9   : > { %v5300_v8 = vrot.slane %v5263_v35, 7  ;;  %5364 = vrot.lane.b32.xlu1 %v11703_v62, %s7957_s26  ;;  %5446 = vrot.lane.b32.xlu0 %v5263_v35, %s7958_s29 }
 0x7fa   : > { %5592 = vrot.lane.b32.xlu2 %v11703_v62, %s7958_s29 }
 0x7fb   : > { %v11713_v58 = vsel %vm13863_vm15, %v5299_v4, %v5300_v8  ;;  %vm13867_vm15 = vmmov %vm13865_vm9 }
 0x7fc   : > { %v5332_v14 = vsel %vm9411_vm1, 0.0, %v11713_v58 }
 0x800   : > { %v5265_v43 = vpop.f32.mrf.mxu2  ;;  %v11726_v46 = vpop.f32.mrf.mxu3 }
 0x801   : > { %v5301_v53 = vrot.slane %v5265_v43, 7  ;;  %5530 = vrot.lane.b32.xlu1 %v5263_v35, %s7957_s26  ;;  %5594 = vrot.lane.b32.xlu0 %v11715_v28, %s7958_s29 }
 0x802   : > { %5366 = vrot.lane.b32.xlu2 %v11715_v28, %s7957_s26 }
 0x803   : > { %v11724_v10 = vsel %vm13865_vm9, %v5300_v8, %v5301_v53 }
 0x808   : > { %v5268_v26 = vpop.f32.mrf.mxu2  ;;  %v11744_v18 = vpop.f32.mrf.mxu3 }
 0x809   : > { %v5302_v60 = vrot.slane %v5268_v26, 7  ;;  %5448 = vrot.lane.b32.xlu1 %v5265_v43, %s7958_s29  ;;  %5368 = vrot.lane.b32.xlu0 %v11726_v46, %s7957_s26 }
 0x80a   : > { %5532 = vrot.lane.b32.xlu2 %v5265_v43, %s7957_s26 }
 0x80b   : > { %v11734_v6 = vsel %vm13866_vm10, %v5301_v53, %v5302_v60  ;;  %vm13868_vm10 = vmmov %vm13865_vm9 }
 0x810   : > { %v5270_v15 = vpop.f32.mrf.mxu2  ;;  %v11751_v45 = vpop.f32.mrf.mxu3 }
 0x811   : > { %v5303_v57 = vrot.slane %v5270_v15, 7  ;;  %5596 = vrot.lane.b32.xlu1 %v11726_v46, %s7958_s29  ;;  %5534 = vrot.lane.b32.xlu0 %v5268_v26, %s7957_s26 }
 0x812   : > { %5450 = vrot.lane.b32.xlu2 %v5268_v26, %s7958_s29 }
 0x813   : > { %v11742_v24 = vsel %vm13867_vm15, %v5302_v60, %v5303_v57  ;;  %vm13870_vm15 = vmmov %vm13865_vm9 }
 0x818   : > { %v5273_v50 = vpop.f32.mrf.mxu2  ;;  %v11766_v13 = vpop.f32.mrf.mxu3 }
 0x819   : > { %5370 = vrot.lane.b32.xlu1 %v11744_v18, %s7957_s26  ;;  %5452 = vrot.lane.b32.xlu0 %v5270_v15, %s7958_s29  ;;  %v5304_v33 = vrot.slane %v5273_v50, 7 }
 0x81a   : > { %5598 = vrot.lane.b32.xlu2 %v11744_v18, %s7958_s29 }
 0x81b   : > { %v11755_v17 = vsel %vm13865_vm9, %v5303_v57, %v5304_v33 }
 0x820   : > { %v5275_v9 = vpop.f32.mrf.mxu2  ;;  %v11780_v40 = vpop.f32.mrf.mxu3 }
 0x821   : > { %5536 = vrot.lane.b32.xlu1 %v5270_v15, %s7957_s26  ;;  %5600 = vrot.lane.b32.xlu0 %v11751_v45, %s7958_s29  ;;  %v5305_v12 = vrot.slane %v5275_v9, 7  ;;  %13872 = vst [vmem:[#allocation61_spill] sm:$0xff] %v11780_v40 }
 0x822   : > { %5372 = vrot.lane.b32.xlu2 %v11751_v45, %s7957_s26 }
 0x823   : > { %v11764_v37 = vsel %vm13868_vm10, %v5304_v33, %v5305_v12  ;;  %vm13880_vm10 = vcmp.lt.s32.totalorder %v8837_v51, 7 }
 0x824   : > { %13869 = vst [vmem:[#allocation62_spill] sm:$0xff] %v11764_v37 }
 0x829   : > { %5374 = vrot.lane.b32.xlu0 %v11766_v13, %s7957_s26  ;;  %5454 = vrot.lane.b32.xlu1 %v5273_v50, %s7958_s29 }
 0x82a   : > { %5538 = vrot.lane.b32.xlu2 %v5273_v50, %s7957_s26 }
 0x830   : > { %v5278_v29 = vpop.f32.mrf.mxu2 }
 0x831   : > { %5602 = vrot.lane.b32.xlu1 %v11766_v13, %s7958_s29  ;;  %5540 = vrot.lane.b32.xlu0 %v5275_v9, %s7957_s26  ;;  %v5306_v59 = vrot.slane %v5278_v29, 7 }
 0x832   : > { %5456 = vrot.lane.b32.xlu2 %v5275_v9, %s7958_s29 }
 0x833   : > { %v11778_v4 = vsel %vm13870_vm15, %v5305_v12, %v5306_v59  ;;  %vm5718_vm15 = vcmask 48128  }
 0x834   : > { %13871 = vst [vmem:[#allocation60_spill] sm:$0xff] %v11778_v4 }
 0x838   : > { %v11788_v48 = vpop.f32.mrf.mxu2 }
 0x839   : > { %5376 = vrot.lane.b32.xlu1 %v11780_v40, %s7957_s26  ;;  %5458 = vrot.lane.b32.xlu0 %v5278_v29, %s7958_s29  ;;  %v13169_v35 = vrot.slane %v11788_v48, 7 }
 0x83a   : > { %5604 = vrot.lane.b32.xlu2 %v11780_v40, %s7958_s29 }
 0x83b   : > { %v11803_v43 = vsel %vm13865_vm9, %v5306_v59, %v13169_v35 }
 0x83c   : > { %13874 = vst [vmem:[#allocation59_spill] sm:$0xff] %v11803_v43 }
 0x841   : > { %5542 = vrot.lane.b32.xlu1 %v5278_v29, %s7957_s26 }
 0x843   : > { %v5527_v23 = vpop.permute.xlu2 %5526 }
 0x844   : > { %v5574_v38 = vadd.f32 %v5527_v23, %v11651_v63  ;;  %v11865_v63 = vadd.s32 1, %v11843_v19 }
 0x846   : > { %vm5929_vm1 = vcmp.eq.s32.totalorder %v11865_v63, %v11862_v25 }
 0x848   : > { %v11791_v8 = vpop.f32.mrf.mxu3 }
 0x849   : > { %13873 = vst [vmem:[#allocation63_spill] sm:$0xff] %v11791_v8  ;;  %5460 = vrot.lane.b32.xlu1 %v11788_v48, %s7958_s29  ;;  %5606 = vrot.lane.b32.xlu0 %v11791_v8, %s7958_s29 }
 0x84a   : > { %5378 = vrot.lane.b32.xlu2 %v11791_v8, %s7957_s26 }
 0x84c   : > { %v5445_v53 = vpop.permute.xlu2 %5444 }
 0x850   : > { %v11805_v26 = vpop.f32.mrf.mxu3 }
 0x851   : > { %13875 = vst [vmem:[#allocation67_spill] sm:$0xff] %v11805_v26  ;;  %5608 = vrot.lane.b32.xlu1 %v11805_v26, %s7958_s29  ;;  %5380 = vrot.lane.b32.xlu0 %v11805_v26, %s7957_s26 }
 0x852   : > { %5544 = vrot.lane.b32.xlu2 %v11788_v48, %s7957_s26 }
 0x853   : > { %v11825_v50 = vpop.permute.xlu0 %5362 }
 0x854   : > { %v11813_v60 = vpop.permute.xlu2 %5592 }
 0x855   : > { %v13171_v35 = vrot.slane %v11813_v60, 1 }
 0x858   : > { %v11815_v15 = vpop.f32.mrf.mxu3  ;;  %v11817_v57 = vpop.f32.mrf.mxu2 }
 0x859   : > { %13876 = vst [vmem:[#allocation69_spill] sm:$0xff] %v11815_v15  ;;  %5382 = vrot.lane.b32.xlu1 %v11815_v15, %s7957_s26  ;;  %5546 = vrot.lane.b32.xlu0 %v11817_v57, %s7957_s26  ;;  %v5308_v61 = vrot.slane %v11817_v57, 7 }
 0x85a   : > { %5462 = vrot.lane.b32.xlu2 %v11817_v57, %s7958_s29 }
 0x85b   : > { %v11827_v33 = vpop.permute.xlu1 %5442 }
 0x85c   : > { %v5367_v29 = vpop.permute.xlu2 %5366 }
 0x860   : > { %v11829_v9 = vpop.f32.mrf.mxu3  ;;  %v11831_v12 = vpop.f32.mrf.mxu2 }
 0x861   : > { %13877 = vst [vmem:[#allocation68_spill] sm:$0xff] %v11829_v9  ;;  %5548 = vrot.lane.b32.xlu1 %v11831_v12, %s7957_s26  ;;  %5464 = vrot.lane.b32.xlu0 %v11831_v12, %s7958_s29  ;;  %v13887_v57 = vrot.slane %v11831_v12, 7 }
 0x862   : > { %13878 = vst [vmem:[#allocation66_spill] sm:$0xff] %v11831_v12  ;;  %5610 = vrot.lane.b32.xlu2 %v11815_v15, %s7958_s29  ;;  %v11940_v15 = vld [vmem:[%s11666_s27 + $0x1] ss:$0 sm:$0xff] }
 0x863   : > { %v11839_v59 = vpop.permute.xlu1 %5590  ;;  %v5529_v32 = vpop.permute.xlu0 %5528 }
 0x864   : > { %13879 = vst [vmem:[#allocation38_spill] sm:$0xff] %v11839_v59  ;;  %v13170_v1 = vrot.slane %v11839_v59, 1  ;;  %v11926_v59 = vld [vmem:[%s11666_s27 + $0x2] ss:$0 sm:$0xff]  ;;  %v5575_v8 = vadd.f32 %v5529_v32, %v11703_v62  ;;  %v13890_v62 = vrot.slane %v11813_v60, 1 }
 0x866   : > { %v5668_v31 = vsel %vm13880_vm10, %v13170_v1, %v13171_v35 }
 0x867   : > { %v5670_v47 = vsel %vm13563_vm11, 0.0, %v5668_v31  ;;  %v5412_v31 = vadd.f32 %v5367_v29, %v5332_v14  ;;  %vm5786_vm11 = vcmp.eq.s32.totalorder %v11843_v19, %v11926_v59 }
 0x868   : > { %v5686_v23 = vadd.f32 %v5670_v47, %v5574_v38  ;;  %v11867_v56 = vpop.f32.mrf.mxu3  ;;  %v11877_v34 = vpop.f32.mrf.mxu2  ;;  %v5331_v38 = vsel %vm13801_vm14, 0.0, %v11700_v2  ;;  %vm5785_vm14 = vcmp.eq.s32.totalorder %v11843_v19, %v11940_v15 }
 0x869   : > { %13882 = vst [vmem:[#allocation2_spill] sm:$0xff] %v11867_v56  ;;  %5466 = vrot.lane.b32.xlu1 %v11877_v34, %s7958_s29  ;;  %5612 = vrot.lane.b32.xlu0 %v11829_v9, %s7958_s29 }
 0x86a   : > { %13883 = vst [vmem:[#allocation42_spill] sm:$0xff] %v11877_v34  ;;  %v11880_v1 = vadd.f32 %v11851_v30, %v5686_v23  ;;  %5384 = vrot.lane.b32.xlu2 %v11829_v9, %s7957_s26  ;;  %v11896_v23 = vpop.permute.xlu2 %5532 }
 0x86b   : > { %v5365_v42 = vpop.permute.xlu1 %5364  ;;  %v5447_v58 = vpop.permute.xlu0 %5446 }
 0x86c   : > { %5735 = vst.msk [vmem:[%s11875_s30] sm:$0xff] %vm5718_vm15, %v11880_v1  ;;  %v5411_v14 = vadd.f32 %v5365_v42, %v5331_v38  ;;  %v5492_v29 = vadd.f32 %v5447_v58, %v5412_v31  ;;  %v5945_v35 = vsel %vm5929_vm1, %v11880_v1, 0.0  ;;  %v6201_v42 = vsel %vm5718_vm15, %v11880_v1, -inf }
 0x86d   : > { %vm13894_vm1 = vnez %v13339_v16 }
 0x86e   : > { %v5491_v2 = vadd.f32 %v5445_v53, %v5411_v14  ;;  %v11904_v47 = vadd.f32 %v11851_v30, %v5492_v29  ;;  %v5961_v53 = vsel %vm5718_vm15, %v5945_v35, 0.0  ;;  %v6202_v14 = vrot.slane %v6201_v42, 4 }
 0x86f   : > { %v5962_v11 = vrot.slane %v5961_v53, 4 }
 0x870   : > { %v11910_v31 = vadd.f32 %v11851_v30, %v5491_v2  ;;  %5721 = vst.msk [vmem:[%s11901_s3 + $0x10] sm:$0xff] %vm5718_vm15, %v11904_v47  ;;  %v11915_v38 = vpop.f32.mrf.mxu3  ;;  %v11917_v58 = vpop.f32.mrf.mxu2  ;;  %v6203_v49 = vmax.f32 %v6201_v42, %v6202_v14  ;;  %v6103_v9 = vsel %vm5718_vm15, %v11904_v47, -inf  ;;  %v11959_v42 = vsel %vm13865_vm9, %v5308_v61, %v13887_v57 }
 0x871   : > { %13885 = vst [vmem:[#allocation8_spill] sm:$0xff] %v11915_v38  ;;  %5614 = vrot.lane.b32.xlu1 %v11867_v56, %s7958_s29  ;;  %5386 = vrot.lane.b32.xlu0 %v11867_v56, %s7957_s26  ;;  %v5963_v14 = vadd.f32 %v5962_v11, %v5961_v53  ;;  %v5802_v56 = vsel %vm5786_vm11, %v11904_v47, 0.0  ;;  %v6104_v60 = vrot.slane %v6103_v9, 4  ;;  %vm13905_vm11 = vnez %v13568_v44 }
 0x872   : > { %13886 = vst [vmem:[#allocation44_spill] sm:$0xff] %v11917_v58  ;;  %v6096_v29 = vsel %vm5718_vm15, %v11910_v31, -inf  ;;  %5550 = vrot.lane.b32.xlu2 %v11877_v34, %s7957_s26  ;;  %v11945_v34 = vpop.permute.xlu2 %5450  ;;  %v6204_v43 = vrot.slane %v6203_v49, 2  ;;  %v5801_v11 = vsel %vm5785_vm14, %v11910_v31, 0.0  ;;  %v5830_v22 = vsel %vm5718_vm15, %v5802_v56, 0.0 }
 0x873   : > { %5720 = vst.msk [vmem:[%s11901_s3 + $0x8] sm:$0xff] %vm5718_vm15, %v11910_v31  ;;  %v11934_v2 = vpop.permute.xlu1 %5530  ;;  %v11936_v35 = vpop.permute.xlu0 %5594  ;;  %v6097_v20 = vrot.slane %v6096_v29, 4  ;;  %v6105_v56 = vmax.f32 %v6103_v9, %v6104_v60  ;;  %v5577_v9 = vadd.f32 %v11896_v23, %v11726_v46  ;;  %vm13895_vm14 = vnez %v13335_v27 }
 0x874   : > { %13888 = vst [vmem:[#allocation43_spill] sm:$0xff] %v11959_v42  ;;  %v13889_v32 = vrot.slane %v11936_v35, 1  ;;  %v5831_v42 = vrot.slane %v5830_v22, 4 }
 0x875   : > { %v6098_v5 = vmax.f32 %v6096_v29, %v6097_v20  ;;  %v5333_v20 = vsel %vm9460_vm2, 0.0, %v11724_v10  ;;  %v13891_v29 = vrot.slane %v11788_v48, 7  ;;  %vm5930_vm2 = vcmp.eq.s32.totalorder %v11865_v63, %v11940_v15 }
 0x876   : > { %v5667_v40 = vsel %vm13880_vm10, %v13890_v62, %v13889_v32  ;;  %v5964_v32 = vrot.slane %v5963_v14, 2  ;;  %v5832_v23 = vadd.f32 %v5831_v42, %v5830_v22 }
 0x877   : > { %v5671_v12 = vsel %vm9131_vm5, 0.0, %v5667_v40  ;;  %vm13892_vm5 = vmmov %vm13865_vm9  ;;  %v6099_v62 = vrot.slane %v6098_v5, 2  ;;  %vm13901_vm9 = vcmp.lt.s32.totalorder %v8837_v51, 7 }
 0x878   : > { %v11953_v26 = vpop.f32.mrf.mxu3  ;;  %v11968_v7 = vpop.f32.mrf.mxu2  ;;  %v5687_v53 = vadd.f32 %v5671_v12, %v5575_v8  ;;  %v11986_v57 = vsel %vm13892_vm5, %v13891_v29, %v5308_v61  ;;  %v5823_v12 = vsel %vm5718_vm15, %v5801_v11, 0.0  ;;  %v6205_v29 = vmax.f32 %v6203_v49, %v6204_v43  ;;  %v12005_v11 = vld [vmem:[%s11666_s27 + $0x3] ss:$0 sm:$0xff]  ;;  %vm13897_vm10 = vmmov %vm13892_vm5 }
 0x879   : > { %5388 = vrot.lane.b32.xlu1 %v11915_v38, %s7957_s26  ;;  %5552 = vrot.lane.b32.xlu0 %v11917_v58, %s7957_s26  ;;  %13893 = vst [vmem:[#allocation37_spill] sm:$0xff] %v11986_v57  ;;  %v5965_v43 = vadd.f32 %v5964_v32, %v5963_v14  ;;  %v5824_v60 = vrot.slane %v5823_v12, 4  ;;  %v6106_v14 = vrot.slane %v6105_v56, 2  ;;  %v5576_v32 = vadd.f32 %v11934_v2, %v11715_v28 }
 0x87a   : > { %5468 = vrot.lane.b32.xlu2 %v11917_v58, %s7958_s29  ;;  %v11990_v8 = vadd.f32 %v11851_v30, %v5687_v53  ;;  %v12019_v61 = vpop.permute.xlu2 %5598  ;;  %v6206_v46 = vrot.slane %v6205_v29, 1  ;;  %v13896_v49 = vrot.slane %v11676_v0, 7 }
 0x87b   : > { %v5449_v21 = vpop.permute.xlu1 %5448  ;;  %v5369_v40 = vpop.permute.xlu0 %5368  ;;  %v5825_v28 = vadd.f32 %v5824_v60, %v5823_v12  ;;  %v13900_v0 = vrot.slane %v12019_v61, 1  ;;  %v13902_v12 = vrot.slane %v11936_v35, 1  ;;  %v6107_v60 = vmax.f32 %v6105_v56, %v6106_v14 }
 0x87c   : > { %v5413_v10 = vadd.f32 %v5369_v40, %v5333_v20  ;;  %5736 = vst.msk [vmem:[%s11875_s30 + $0x8] sm:$0xff] %vm5718_vm15, %v11990_v8  ;;  %v6208_v20 = vsel %vm5718_vm15, %v11990_v8, -inf  ;;  %v12058_v3 = vmax.f32 %v6205_v29, %v6206_v46  ;;  %v5946_v29 = vsel %vm5930_vm2, %v11990_v8, 0.0 }
 0x87d   : > { %v6209_v53 = vrot.slane %v6208_v20, 4  ;;  %v5826_v44 = vrot.slane %v5825_v28, 2  ;;  %vm13906_vm2 = vcmp.eq.s32.totalorder %v11843_v19, %v11862_v25 }
 0x87e   : > { %v5493_v48 = vadd.f32 %v5449_v21, %v5413_v10  ;;  %v6100_v10 = vmax.f32 %v6098_v5, %v6099_v62  ;;  %v5966_v5 = vrot.slane %v5965_v43, 1 }
 0x87f   : > { %v6210_v57 = vmax.f32 %v6208_v20, %v6209_v53 }
 0x880   : > { %v12010_v21 = vadd.f32 %v11851_v30, %v5493_v48  ;;  %v12012_v40 = vpop.f32.mrf.mxu3  ;;  %v12021_v58 = vpop.f32.mrf.mxu2  ;;  %v6101_v2 = vrot.slane %v6100_v10, 1 }
 0x881   : > { %v13194_v48 = vrot.slane %v12021_v58, 7  ;;  %5620 = vrot.lane.b32.xlu1 %v12012_v40, %s7958_s29  ;;  %5470 = vrot.lane.b32.xlu0 %v11968_v7, %s7958_s29  ;;  %v6211_v53 = vrot.slane %v6210_v57, 2 }
 0x882   : > { %5722 = vst.msk [vmem:[%s11901_s3 + $0x18] sm:$0xff] %vm5718_vm15, %v12010_v21  ;;  %5616 = vrot.lane.b32.xlu2 %v11915_v38, %s7958_s29  ;;  %v13898_v38 = vld [vmem:[#allocation12_spill] sm:$0xff]  ;;  %v6110_v55 = vsel %vm5718_vm15, %v12010_v21, -inf }
 0x883   : > { %v5597_v62 = vpop.permute.xlu1 %5596  ;;  %v5329_v42 = vsel %vm13897_vm10, %v13194_v48, %v13896_v49  ;;  %vm13899_vm5 = vnez %v13898_v38  ;;  %v6212_v27 = vmax.f32 %v6210_v57, %v6211_v53  ;;  %v5833_v49 = vrot.slane %v5832_v23, 2  ;;  %vm13903_vm10 = vmmov %vm13901_vm9 }
 0x884   : > { %v5641_v22 = vrot.slane %v5597_v62, 1  ;;  %v5330_v37 = vsel %vm13899_vm5, 0.0, %v5329_v42  ;;  %vm13904_vm5 = vnez %v13428_v41  ;;  %v6111_v46 = vrot.slane %v6110_v55, 4  ;;  %v12073_v42 = vpop.permute.xlu0 %5534 }
 0x885   : > { %v5410_v20 = vadd.f32 %v11825_v50, %v5330_v37  ;;  %v6213_v62 = vrot.slane %v6212_v27, 1  ;;  %v12075_v41 = vadd.f32 %v5966_v5, %v5965_v43  ;;  %v5834_v15 = vadd.f32 %v5833_v49, %v5832_v23 }
 0x886   : > { %v5665_v4 = vsel %vm13901_vm9, %v5641_v22, %v13900_v0  ;;  %v5666_v38 = vsel %vm13903_vm10, %v13902_v12, %v5641_v22  ;;  %v6108_v23 = vrot.slane %v6107_v60, 1  ;;  %vm5931_vm9 = vcmp.eq.s32.totalorder %v11865_v63, %v11926_v59 }
 0x887   : > { %v5673_v57 = vsel %vm13904_vm5, 0.0, %v5665_v4  ;;  %v5490_v37 = vadd.f32 %v11827_v33, %v5410_v20  ;;  %v5672_v50 = vsel %vm13905_vm11, 0.0, %v5666_v38  ;;  %v6102_v4 = vmax.f32 %v6100_v10, %v6101_v2 }
 0x888   : > { %v5688_v35 = vadd.f32 %v5672_v50, %v5576_v32  ;;  %v5689_v53 = vadd.f32 %v5673_v57, %v5577_v9  ;;  %v6214_v56 = vmax.f32 %v6212_v27, %v6213_v62  ;;  %v5968_v27 = vsel %vm5718_vm15, %v5946_v29, 0.0  ;;  %v5373_v50 = vpop.permute.xlu2 %5372 }
 0x889   : > { %v12078_v33 = vadd.f32 %v11851_v30, %v5490_v37  ;;  %5618 = vrot.lane.b32.xlu0 %v11953_v26, %s7958_s29  ;;  %5554 = vrot.lane.b32.xlu1 %v11968_v7, %s7957_s26  ;;  %v6112_v32 = vmax.f32 %v6110_v55, %v6111_v46  ;;  %vm13907_vm11 = vcmp.eq.s32.totalorder %v11843_v19, %v12005_v11  ;;  %v5969_v12 = vrot.slane %v5968_v27, 4 }
 0x88a   : > { %5390 = vrot.lane.b32.xlu2 %v11953_v26, %s7957_s26  ;;  %v12083_v14 = vadd.f32 %v11851_v30, %v5688_v35  ;;  %v12086_v9 = vadd.f32 %v11851_v30, %v5689_v53  ;;  %v12093_v43 = vmax.f32 %v6102_v4, %v6214_v56  ;;  %v5803_v25 = vsel %vm13907_vm11, %v12010_v21, 0.0 }
 0x88b   : > { %5719 = vst.msk [vmem:[%s11901_s3] sm:$0xff] %vm5718_vm15, %v12078_v33  ;;  %v5800_v10 = vsel %vm13906_vm2, %v12078_v33, 0.0  ;;  %v6089_v5 = vsel %vm5718_vm15, %v12078_v33, -inf  ;;  %v12119_v55 = vadd.f32 %v5826_v44, %v5825_v28  ;;  %v5837_v29 = vsel %vm5718_vm15, %v5803_v25, 0.0  ;;  %v5371_v25 = vpop.permute.xlu1 %5370 }
 0x88c   : > { %v5816_v20 = vsel %vm5718_vm15, %v5800_v10, 0.0  ;;  %v6090_v22 = vrot.slane %v6089_v5, 4  ;;  %5737 = vst.msk [vmem:[%s11875_s30 + $0x10] sm:$0xff] %vm5718_vm15, %v12083_v14  ;;  %v6330_v2 = vsub.f32 %v11910_v31, %v12093_v43  ;;  %v6490_v0 = vsub.f32 %v11990_v8, %v12093_v43 }
 0x88d   : > { %v5817_v49 = vrot.slane %v5816_v20, 4  ;;  %5738 = vst.msk [vmem:[%s11875_s30 + $0x18] sm:$0xff] %vm5718_vm15, %v12086_v9  ;;  %v6215_v31 = vsel %vm5718_vm15, %v12083_v14, -inf  ;;  %v5835_v8 = vrot.slane %v5834_v15, 1  ;;  %v6113_v46 = vrot.slane %v6112_v32, 2 }
 0x88e   : > { %v6091_v38 = vmax.f32 %v6089_v5, %v6090_v22  ;;  %v6347_v57 = vmul.f32 1.442695, %v6330_v2  ;;  %v6507_v62 = vmul.f32 1.442695, %v6490_v0  ;;  %v6216_v53 = vrot.slane %v6215_v31, 4 }
 0x88f   : > { %v5818_v37 = vadd.f32 %v5817_v49, %v5816_v20  ;;  %v6109_v28 = vmax.f32 %v6107_v60, %v6108_v23  ;;  %v6222_v56 = vsel %vm5718_vm15, %v12086_v9, -inf  ;;  %v5970_v44 = vadd.f32 %v5969_v12, %v5968_v27  ;;  %v5453_v20 = vpop.permute.xlu0 %5452 }
 0x890   : > { %v6092_v35 = vrot.slane %v6091_v38, 2  ;;  %7850 = vpow2.f32 %v6347_v57  ;;  %v6217_v5 = vmax.f32 %v6215_v31, %v6216_v53  ;;  %v13908_v60 = vsel %vm13811_vm13, 0.0, %v11742_v24 }
 0x891   : > { %v5819_v4 = vrot.slane %v5818_v37, 2  ;;  %7852 = vpow2.f32 %v6507_v62  ;;  %5392 = vrot.lane.b32.xlu0 %v12012_v40, %s7957_s26  ;;  %v5415_v23 = vadd.f32 %v5373_v50, %v13908_v60  ;;  %vm5932_vm10 = vcmp.eq.s32.totalorder %v11865_v63, %v12005_v11 }
 0x892   : > { %5556 = vrot.lane.b32.xlu2 %v12021_v58, %s7957_s26  ;;  %v6093_v10 = vmax.f32 %v6091_v38, %v6092_v35  ;;  %v5838_v22 = vrot.slane %v5837_v29, 4  ;;  %v6223_v0 = vrot.slane %v6222_v56, 4  ;;  %v5828_v27 = vrot.slane %v12119_v55, 1 }
 0x893   : > { %v5820_v2 = vadd.f32 %v5819_v4, %v5818_v37  ;;  %v6114_v49 = vmax.f32 %v6112_v32, %v6113_v46  ;;  %v6218_v38 = vrot.slane %v6217_v5, 2  ;;  %v12139_v31 = vadd.f32 %v5835_v8, %v5834_v15 }
 0x894   : > { %v6094_v12 = vrot.slane %v6093_v10, 1  ;;  %v6224_v62 = vmax.f32 %v6222_v56, %v6223_v0  ;;  %v5495_v39 = vadd.f32 %v5453_v20, %v5415_v23  ;;  %v5971_v35 = vrot.slane %v5970_v44, 2 }
 0x895   : > { %v5821_v57 = vrot.slane %v5820_v2, 1  ;;  %v6219_v50 = vmax.f32 %v6217_v5, %v6218_v38  ;;  %v13909_v53 = vsel %vm13662_vm12, 0.0, %v11734_v6  ;;  %v5839_v60 = vadd.f32 %v5838_v22, %v5837_v29 }
 0x896   : > { %v6095_v24 = vmax.f32 %v6093_v10, %v6094_v12  ;;  %v5414_v37 = vadd.f32 %v5371_v25, %v13909_v53  ;;  %v7851_v4 = vpop.eup %7850  ;;  %v6225_v32 = vrot.slane %v6224_v62, 2  ;;  %v12146_v46 = vadd.f32 %v11851_v30, %v5495_v39 }
 0x897   : > { %v5822_v48 = vadd.f32 %v5821_v57, %v5820_v2  ;;  %v7853_v15 = vpop.eup %7852  ;;  %v6384_v8 = vsel %vm5718_vm15, %v7851_v4, 0.0  ;;  %v6115_v56 = vrot.slane %v6114_v49, 1  ;;  %v6220_v5 = vrot.slane %v6219_v50, 1 }
 0x898   : > { %v12150_v10 = vmax.f32 %v6095_v24, %v12058_v3  ;;  %v6385_v52 = vrot.slane %v6384_v8, 4  ;;  %v6544_v6 = vsel %vm5718_vm15, %v7853_v15, 0.0  ;;  %v5947_v29 = vsel %vm5931_vm9, %v12083_v14, 0.0  ;;  %5724 = vst.msk [vmem:[%s11901_s3 + $0x28] sm:$0xff] %vm5718_vm15, %v12146_v46 }
 0x899   : > { %v12154_v20 = vadd.f32 %v12075_v41, %v5822_v48  ;;  %v6545_v23 = vrot.slane %v6544_v6, 4  ;;  %v5494_v2 = vadd.f32 %v11945_v34, %v5414_v37  ;;  %5472 = vrot.lane.b32.xlu0 %v12021_v58, %s7958_s29  ;;  %v5972_v48 = vadd.f32 %v5971_v35, %v5970_v44  ;;  %v12178_v35 = vld [vmem:[%s11666_s27 + $0x4] ss:$0 sm:$0xff] }
 0x89a   : > { %v6329_v3 = vsub.f32 %v12078_v33, %v12150_v10  ;;  %v6489_v22 = vsub.f32 %v11880_v1, %v12150_v10  ;;  %v6386_v41 = vadd.f32 %v6385_v52, %v6384_v8  ;;  %v6221_v59 = vmax.f32 %v6219_v50, %v6220_v5 }
 0x89b   : > { %v6226_v0 = vmax.f32 %v6224_v62, %v6225_v32  ;;  %v6546_v25 = vadd.f32 %v6545_v23, %v6544_v6  ;;  %v6116_v12 = vmax.f32 %v6114_v49, %v6115_v56  ;;  %v5975_v33 = vsel %vm5718_vm15, %v5947_v29, 0.0  ;;  %v12195_v29 = vpop.permute.xlu1 %5536 }
 0x89c   : > { %v6345_v38 = vmul.f32 1.442695, %v6329_v3  ;;  %v6505_v57 = vmul.f32 1.442695, %v6489_v22  ;;  %v6387_v39 = vrot.slane %v6386_v41, 2  ;;  %v12171_v1 = vmax.f32 %v6109_v28, %v6221_v59 }
 0x89d   : > { %v6227_v24 = vrot.slane %v6226_v0, 1  ;;  %v6547_v34 = vrot.slane %v6546_v25, 2  ;;  %v5948_v44 = vsel %vm5932_vm10, %v12086_v9, 0.0  ;;  %v12181_v49 = vadd.f32 %v11851_v30, %v5494_v2 }
 0x89e   : > { %7854 = vpow2.f32 %v6345_v38  ;;  %v6388_v62 = vadd.f32 %v6387_v39, %v6386_v41  ;;  %v6331_v53 = vsub.f32 %v11904_v47, %v12171_v1  ;;  %v5840_v37 = vrot.slane %v5839_v60, 2  ;;  %v5539_v47 = vpop.permute.xlu2 %5538 }
 0x89f   : > { %7856 = vpow2.f32 %v6505_v57  ;;  %v6228_v50 = vmax.f32 %v6226_v0, %v6227_v24  ;;  %v6548_v28 = vadd.f32 %v6547_v34, %v6546_v25  ;;  %v5976_v4 = vrot.slane %v5975_v33, 4  ;;  %5723 = vst.msk [vmem:[%s11901_s3 + $0x20] sm:$0xff] %vm5718_vm15, %v12181_v49  ;;  %v12202_v0 = vld [vmem:[%s11666_s27 + $0x5] ss:$0 sm:$0xff] }
 0x8a0   : > { %v6491_v32 = vsub.f32 %v12083_v14, %v12171_v1  ;;  %v6389_v11 = vrot.slane %v6388_v62, 1  ;;  %v5982_v15 = vsel %vm5718_vm15, %v5948_v44, 0.0  ;;  %v6349_v56 = vmul.f32 1.442695, %v6331_v53 }
 0x8a1   : > { %v12191_v8 = vmax.f32 %v6116_v12, %v6228_v50  ;;  %v5973_v5 = vrot.slane %v5972_v48, 1  ;;  %v6549_v52 = vrot.slane %v6548_v28, 1  ;;  %vm5788_vm12 = vcmp.eq.s32.totalorder %v11843_v19, %v12178_v35 }
 0x8a2   : > { %v6509_v6 = vmul.f32 1.442695, %v6491_v32  ;;  %v6390_v14 = vadd.f32 %v6389_v11, %v6388_v62  ;;  %7858 = vpow2.f32 %v6349_v56  ;;  %v5841_v41 = vadd.f32 %v5840_v37, %v5839_v60 }
 0x8a3   : > { %v6332_v23 = vsub.f32 %v12010_v21, %v12191_v8  ;;  %v6492_v3 = vsub.f32 %v12086_v9, %v12191_v8  ;;  %v6550_v2 = vadd.f32 %v6549_v52, %v6548_v28  ;;  %v5983_v59 = vrot.slane %v5982_v15, 4 }
 0x8a4   : > { %v7855_v22 = vpop.eup %7854  ;;  %7860 = vpow2.f32 %v6509_v6  ;;  %v5977_v38 = vadd.f32 %v5976_v4, %v5975_v33  ;;  %v5974_v24 = vadd.f32 %v5973_v5, %v5972_v48  ;;  %v5829_v9 = vadd.f32 %v5828_v27, %v12119_v55 }
 0x8a5   : > { %v7857_v25 = vpop.eup %7856  ;;  %v6377_v12 = vsel %vm5718_vm15, %v7855_v22, 0.0  ;;  %v6351_v57 = vmul.f32 1.442695, %v6332_v23  ;;  %v6511_v39 = vmul.f32 1.442695, %v6492_v3  ;;  %v6650_v34 = vadd.f32 %v6550_v2, %v6390_v14  ;;  %v5455_v3 = vpop.permute.xlu1 %5454 }
 0x8a6   : > { %v6378_v21 = vrot.slane %v6377_v12, 4  ;;  %v6537_v44 = vsel %vm5718_vm15, %v7857_v25, 0.0  ;;  %v12210_v62 = vadd.f32 %v5539_v47, %v11766_v13  ;;  %v5842_v50 = vrot.slane %v5841_v41, 1  ;;  %v12230_v23 = vpop.permute.xlu2 %5456 }
 0x8a7   : > { %v6538_v60 = vrot.slane %v6537_v44, 4  ;;  %7862 = vpow2.f32 %v6351_v57  ;;  %v5984_v33 = vadd.f32 %v5983_v59, %v5982_v15  ;;  %v5978_v48 = vrot.slane %v5977_v38, 2  ;;  %v12223_v15 = vpop.permute.xlu0 %5600 }
 0x8a8   : > { %7864 = vlog2.f32 %v6650_v34  ;;  %v6379_v53 = vadd.f32 %v6378_v21, %v6377_v12  ;;  %v7859_v28 = vpop.eup %7858  ;;  %v12214_v4 = vadd.f32 %v12073_v42, %v11744_v18  ;;  %vm5789_vm13 = vcmp.eq.s32.totalorder %v11843_v19, %v12202_v0 }
 0x8a9   : > { %v6539_v37 = vadd.f32 %v6538_v60, %v6537_v44  ;;  %7866 = vpow2.f32 %v6511_v39  ;;  %vm6729_vm5 = vcmask 40960   ;;  %v6074_v27 = vadd.f32 %v5974_v24, %v5829_v9 }
 0x8aa   : > { %v7861_v55 = vpop.eup %7860  ;;  %v6380_v13 = vrot.slane %v6379_v53, 2  ;;  %v6391_v32 = vsel %vm5718_vm15, %v7859_v28, 0.0  ;;  %v5804_v11 = vsel %vm5788_vm12, %v12181_v49, 0.0  ;;  %v6117_v42 = vsel %vm5718_vm15, %v12181_v49, -inf }
 0x8ab   : > { %v6540_v56 = vrot.slane %v6539_v37, 2  ;;  %v6392_v5 = vrot.slane %v6391_v32, 4  ;;  %v6551_v18 = vsel %vm5718_vm15, %v7861_v55, 0.0  ;;  %v12228_v52 = vadd.f32 %v5842_v50, %v5841_v41 }
 0x8ac   : > { %v6381_v6 = vadd.f32 %v6380_v13, %v6379_v53  ;;  %v5985_v47 = vrot.slane %v5984_v33, 2  ;;  %v6552_v14 = vrot.slane %v6551_v18, 4  ;;  %v12232_v59 = vadd.f32 %v5978_v48, %v5977_v38 }
 0x8ad   : > { %v7863_v22 = vpop.eup %7862  ;;  %v6541_v2 = vadd.f32 %v6540_v56, %v6539_v37  ;;  %v6393_v25 = vadd.f32 %v6392_v5, %v6391_v32  ;;  %v5844_v12 = vsel %vm5718_vm15, %v5804_v11, 0.0  ;;  %v6118_v34 = vrot.slane %v6117_v42, 4 }
 0x8ae   : > { %v7865_v57 = vpop.eup %7864  ;;  %v6382_v39 = vrot.slane %v6381_v6, 1  ;;  %v6398_v24 = vsel %vm5718_vm15, %v7863_v22, 0.0  ;;  %v6553_v41 = vadd.f32 %v6552_v14, %v6551_v18  ;;  %v12236_v28 = vadd.f32 %v5985_v47, %v5984_v33 }
 0x8af   : > { %v7867_v21 = vpop.eup %7866  ;;  %v6668_v44 = vmul.f32 0.6931472, %v7865_v57  ;;  %v6542_v9 = vrot.slane %v6541_v2, 1  ;;  %v6394_v60 = vrot.slane %v6393_v25, 2  ;;  %v6399_v50 = vrot.slane %v6398_v24, 4  ;;  %v5375_v57 = vpop.permute.xlu0 %5374 }
 0x8b0   : > { %v6383_v53 = vadd.f32 %v6382_v39, %v6381_v6  ;;  %v6554_v38 = vrot.slane %v6553_v41, 2  ;;  %v6558_v37 = vsel %vm5718_vm15, %v7867_v21, 0.0  ;;  %v5845_v5 = vrot.slane %v5844_v12, 4  ;;  %v12257_v21 = vpop.permute.xlu2 %5604 }
 0x8b1   : > { %v6698_v48 = vadd.f32 %v6668_v44, %v12093_v43  ;;  %v6543_v55 = vadd.f32 %v6542_v9, %v6541_v2  ;;  %v6395_v13 = vadd.f32 %v6394_v60, %v6393_v25  ;;  %v6400_v32 = vadd.f32 %v6399_v50, %v6398_v24  ;;  %v5603_v9 = vpop.permute.xlu1 %5602 }
 0x8b2   : > { %v6555_v11 = vadd.f32 %v6554_v38, %v6553_v41  ;;  %v6559_v56 = vrot.slane %v6558_v37, 4  ;;  %v6119_v18 = vmax.f32 %v6117_v42, %v6118_v34  ;;  %v5980_v22 = vrot.slane %v12232_v59, 1 }
 0x8b3   : > { %v6714_v33 = vsub.f32 %v6698_v48, %v6074_v27  ;;  %v6649_v6 = vadd.f32 %v6543_v55, %v6383_v53  ;;  %v6396_v47 = vrot.slane %v6395_v13, 1  ;;  %v6401_v14 = vrot.slane %v6400_v32, 2 }
 0x8b4   : > { %v6556_v43 = vrot.slane %v6555_v11, 1  ;;  %v6560_v2 = vadd.f32 %v6559_v56, %v6558_v37  ;;  %v5805_v25 = vsel %vm5789_vm13, %v12146_v46, 0.0  ;;  %vm5933_vm2 = vcmp.eq.s32.totalorder %v11865_v63, %v12178_v35 }
 0x8b5   : > { %6731 = vst.msk [vmem:[%s12244_s20 + $0x1] sm:$0x1] %vm6729_vm5, %v6714_v33  ;;  %7868 = vlog2.f32 %v6649_v6  ;;  %v6397_v39 = vadd.f32 %v6396_v47, %v6395_v13  ;;  %v6402_v24 = vadd.f32 %v6401_v14, %v6400_v32  ;;  %v6124_v27 = vsel %vm5718_vm15, %v12146_v46, -inf }
 0x8b6   : > { %v6557_v42 = vadd.f32 %v6556_v43, %v6555_v11  ;;  %v6561_v41 = vrot.slane %v6560_v2, 2  ;;  %v5846_v34 = vadd.f32 %v5845_v5, %v5844_v12  ;;  %v5643_v44 = vrot.slane %v12223_v15, 1 }
 0x8b7   : > { %v6403_v60 = vrot.slane %v6402_v24, 1  ;;  %v6120_v50 = vrot.slane %v6119_v18, 2  ;;  %v5851_v53 = vsel %vm5718_vm15, %v5805_v25, 0.0  ;;  %v13910_v38 = vsel %vm13894_vm1, 0.0, %v11755_v17 }
 0x8b8   : > { %v5416_v37 = vadd.f32 %v5375_v57, %v13910_v38  ;;  %v6562_v48 = vadd.f32 %v6561_v41, %v6560_v2  ;;  %v6651_v55 = vadd.f32 %v6557_v42, %v6397_v39  ;;  %v6125_v13 = vrot.slane %v6124_v27, 4  ;;  %v13917_v57 = vld [vmem:[#allocation6_spill] sm:$0xff] }
 0x8b9   : > { %v13911_v32 = vrot.slane %v12019_v61, 1  ;;  %vm13912_vm11 = vcmp.lt.s32.totalorder %v8837_v51, 7  ;;  %v5645_v15 = vrot.slane %v12257_v21, 1  ;;  %vm13913_vm9 = vnez %v13438_v36 }
 0x8ba   : > { %v5496_v56 = vadd.f32 %v5455_v3, %v5416_v37  ;;  %v5644_v5 = vrot.slane %v5603_v9, 1  ;;  %v6404_v33 = vadd.f32 %v6403_v60, %v6402_v24  ;;  %v6563_v16 = vrot.slane %v6562_v48, 1  ;;  %vm13914_vm1 = vmmov %vm13912_vm11 }
 0x8bb   : > { %v5664_v12 = vsel %vm13912_vm11, %v13911_v32, %v5643_v44  ;;  %7870 = vlog2.f32 %v6651_v55  ;;  %v7869_v6 = vpop.eup %7868  ;;  %v5579_v61 = vadd.f32 %v12195_v29, %v11751_v45  ;;  %vm13915_vm10 = vmmov %vm13914_vm1  ;;  %vm13916_vm12 = vnez %v13442_v54 }
 0x8bc   : > { %v5674_v11 = vsel %vm13913_vm9, 0.0, %v5664_v12  ;;  %v12276_v47 = vadd.f32 %v11851_v30, %v5496_v56  ;;  %v5662_v36 = vsel %vm13914_vm1, %v5644_v5, %v5645_v15  ;;  %v5663_v3 = vsel %vm13915_vm10, %v5643_v44, %v5644_v5 }
 0x8bd   : > { %v5690_v17 = vadd.f32 %v5674_v11, %v12214_v4  ;;  %v6666_v14 = vmul.f32 0.6931472, %v7869_v6  ;;  %v6564_v43 = vadd.f32 %v6563_v16, %v6562_v48  ;;  %v5675_v2 = vsel %vm13916_vm12, 0.0, %v5663_v3  ;;  %v7840_v48 = vld [vmem:[%s11666_s27 + $0x6] ss:$0 sm:$0xff] }
 0x8be   : > { %v5981_v45 = vadd.f32 %v5980_v22, %v12232_v59  ;;  %v5987_v29 = vrot.slane %v12236_v28, 1  ;;  %v5847_v25 = vrot.slane %v5846_v34, 2  ;;  %5725 = vst.msk [vmem:[%s11901_s3 + $0x30] sm:$0xff] %vm5718_vm15, %v12276_v47  ;;  %vm13918_vm13 = vnez %v13917_v57 }
 0x8bf   : > { %v12285_v4 = vadd.f32 %v11851_v30, %v5690_v17  ;;  %v5676_v39 = vsel %vm13918_vm13, 0.0, %v5662_v36  ;;  %v6697_v24 = vadd.f32 %v6666_v14, %v12150_v10  ;;  %v6652_v42 = vadd.f32 %v6564_v43, %v6404_v33 }
 0x8c0   : > { %v5691_v59 = vadd.f32 %v5675_v2, %v5579_v61  ;;  %v6121_v22 = vmax.f32 %v6119_v18, %v6120_v50  ;;  %v5852_v41 = vrot.slane %v5851_v53, 4  ;;  %v6131_v9 = vsel %vm5718_vm15, %v12276_v47, -inf  ;;  %v12336_v61 = vpop.permute.xlu0 %5540 }
 0x8c1   : > { %5739 = vst.msk [vmem:[%s11875_s30 + $0x20] sm:$0xff] %vm5718_vm15, %v12285_v4  ;;  %v6229_v54 = vsel %vm5718_vm15, %v12285_v4, -inf  ;;  %v7871_v60 = vpop.eup %7870  ;;  %v6713_v38 = vsub.f32 %v6697_v24, %v12154_v20  ;;  %7872 = vlog2.f32 %v6652_v42  ;;  %v6126_v10 = vmax.f32 %v6124_v27, %v6125_v13  ;;  %v5379_v24 = vpop.permute.xlu2 %5378 }
 0x8c2   : > { %v6230_v44 = vrot.slane %v6229_v54, 4  ;;  %v5949_v37 = vsel %vm5933_vm2, %v12285_v4, 0.0  ;;  %v5988_v55 = vadd.f32 %v5987_v29, %v12236_v28  ;;  %v6670_v32 = vmul.f32 0.6931472, %v7871_v60 }
 0x8c3   : > { %v5692_v50 = vadd.f32 %v5676_v39, %v12210_v62  ;;  %6730 = vst.msk [vmem:[%s12244_s20] sm:$0x1] %vm6729_vm5, %v6713_v38  ;;  %v6075_v12 = vadd.f32 %v5981_v45, %v12139_v31  ;;  %v12315_v20 = vadd.f32 %v5847_v25, %v5846_v34  ;;  %v6132_v27 = vrot.slane %v6131_v9, 4  ;;  %v5377_v45 = vpop.permute.xlu1 %5376 }
 0x8c4   : > { %v6231_v18 = vmax.f32 %v6229_v54, %v6230_v44  ;;  %v12318_v13 = vadd.f32 %v11851_v30, %v5691_v59  ;;  %v6699_v35 = vadd.f32 %v6670_v32, %v12171_v1  ;;  %v5989_v28 = vsel %vm5718_vm15, %v5949_v37, 0.0  ;;  %v13919_v1 = vld [vmem:[#allocation60_spill] sm:$0xff] }
 0x8c5   : > { %v12323_v56 = vadd.f32 %v11851_v30, %v5692_v50  ;;  %v6122_v62 = vrot.slane %v6121_v22, 1  ;;  %v5853_v5 = vadd.f32 %v5852_v41, %v5851_v53  ;;  %v6127_v33 = vrot.slane %v6126_v10, 2 }
 0x8c6   : > { %v6232_v11 = vrot.slane %v6231_v18, 2  ;;  %vm5790_vm2 = vcmp.eq.s32.totalorder %v11843_v19, %v7840_v48  ;;  %5740 = vst.msk [vmem:[%s11875_s30 + $0x28] sm:$0xff] %vm5718_vm15, %v12318_v13  ;;  %v6076_v31 = vadd.f32 %v5988_v55, %v12228_v52  ;;  %v6715_v34 = vsub.f32 %v6699_v35, %v6075_v12 }
 0x8c7   : > { %5741 = vst.msk [vmem:[%s11875_s30 + $0x30] sm:$0xff] %vm5718_vm15, %v12323_v56  ;;  %v5338_v6 = vsel %vm13824_vm4, 0.0, %v13919_v1  ;;  %v7873_v53 = vpop.eup %7872  ;;  %vm5934_vm11 = vcmp.eq.s32.totalorder %v11865_v63, %v12202_v0  ;;  %v5990_v36 = vrot.slane %v5989_v28, 4  ;;  %v6133_v3 = vmax.f32 %v6131_v9, %v6132_v27  ;;  %vm13926_vm4 = vmmov %vm13914_vm1 }
 0x8c8   : > { %v6233_v16 = vmax.f32 %v6231_v18, %v6232_v11  ;;  %v6236_v52 = vsel %vm5718_vm15, %v12318_v13, -inf  ;;  %v6672_v14 = vmul.f32 0.6931472, %v7873_v53  ;;  %6732 = vst.msk [vmem:[%s12244_s20 + $0x2] sm:$0x1] %vm6729_vm5, %v6715_v34  ;;  %vm5935_vm9 = vcmp.eq.s32.totalorder %v11865_v63, %v7840_v48  ;;  %v5459_v53 = vpop.permute.xlu0 %5458  ;;  %vm13932_vm13 = vmmov %vm13926_vm4 }
 0x8c9   : > { %v5806_v2 = vsel %vm5790_vm2, %v12276_v47, 0.0  ;;  %v5849_v29 = vrot.slane %v12315_v20, 1  ;;  %v6123_v25 = vmax.f32 %v6121_v22, %v6122_v62  ;;  %v5854_v57 = vrot.slane %v5853_v5, 2  ;;  %vm13933_vm2 = vmmov %vm13926_vm4 }
 0x8ca   : > { %v6234_v43 = vrot.slane %v6233_v16, 1  ;;  %v6128_v39 = vmax.f32 %v6126_v10, %v6127_v33  ;;  %v6700_v42 = vadd.f32 %v6672_v14, %v12191_v8  ;;  %v5950_v59 = vsel %vm5934_vm11, %v12318_v13, 0.0 }
 0x8cb   : > { %v6237_v41 = vrot.slane %v6236_v52, 4  ;;  %v5991_v44 = vadd.f32 %v5990_v36, %v5989_v28  ;;  %v5858_v9 = vsel %vm5718_vm15, %v5806_v2, 0.0  ;;  %v6134_v60 = vrot.slane %v6133_v3, 2  ;;  %v12375_v2 = vpop.permute.xlu1 %5542 }
 0x8cc   : > { %v6235_v54 = vmax.f32 %v6233_v16, %v6234_v43  ;;  %v5951_v38 = vsel %vm5935_vm9, %v12323_v56, 0.0  ;;  %v6716_v22 = vsub.f32 %v6700_v42, %v6076_v31  ;;  %v6243_v8 = vsel %vm5718_vm15, %v12323_v56, -inf  ;;  %v12377_v42 = vpop.permute.xlu2 %5544 }
 0x8cd   : > { %v6238_v10 = vmax.f32 %v6236_v52, %v6237_v41  ;;  %v12360_v48 = vadd.f32 %v5854_v57, %v5853_v5  ;;  %v6129_v55 = vrot.slane %v6128_v39, 1  ;;  %v5996_v0 = vsel %vm5718_vm15, %v5950_v59, 0.0  ;;  %v13922_v5 = vld [vmem:[#allocation62_spill] sm:$0xff] }
 0x8ce   : > { %v12356_v37 = vmax.f32 %v6123_v25, %v6235_v54  ;;  %v6244_v32 = vrot.slane %v6243_v8, 4  ;;  %6733 = vst.msk [vmem:[%s12244_s20 + $0x3] sm:$0x1] %vm6729_vm5, %v6716_v22  ;;  %v6003_v12 = vsel %vm5718_vm15, %v5951_v38, 0.0  ;;  %v5859_v35 = vrot.slane %v5858_v9, 4 }
 0x8cf   : > { %v6239_v27 = vrot.slane %v6238_v10, 2  ;;  %v6135_v28 = vmax.f32 %v6133_v3, %v6134_v60  ;;  %v13923_v33 = vsel %vm13895_vm14, 0.0, %v13922_v5  ;;  %v5992_v34 = vrot.slane %v5991_v44, 2 }
 0x8d0   : > { %v6333_v18 = vsub.f32 %v12181_v49, %v12356_v37  ;;  %v6493_v50 = vsub.f32 %v12285_v4, %v12356_v37  ;;  %v6245_v11 = vmax.f32 %v6243_v8, %v6244_v32  ;;  %v5417_v31 = vadd.f32 %v5377_v45, %v13923_v33 }
 0x8d1   : > { %v6240_v17 = vmax.f32 %v6238_v10, %v6239_v27  ;;  %v5997_v49 = vrot.slane %v5996_v0, 4  ;;  %v6004_v36 = vrot.slane %v6003_v12, 4  ;;  %v6130_v14 = vmax.f32 %v6128_v39, %v6129_v55  ;;  %v12402_v27 = vpop.permute.xlu0 %5606 }
 0x8d2   : > { %v6353_v16 = vmul.f32 1.442695, %v6333_v18  ;;  %v6513_v1 = vmul.f32 1.442695, %v6493_v50  ;;  %v6246_v52 = vrot.slane %v6245_v11, 2  ;;  %v5497_v4 = vadd.f32 %v12230_v23, %v5417_v31 }
 0x8d3   : > { %v6241_v43 = vrot.slane %v6240_v17, 1  ;;  %v5418_v3 = vadd.f32 %v5379_v24, %v5338_v6  ;;  %v5860_v25 = vadd.f32 %v5859_v35, %v5858_v9  ;;  %v6136_v45 = vrot.slane %v6135_v28, 1  ;;  %v13924_v24 = vld [vmem:[#allocation59_spill] sm:$0xff] }
 0x8d4   : > { %7874 = vpow2.f32 %v6353_v16  ;;  %v6247_v57 = vmax.f32 %v6245_v11, %v6246_v52  ;;  %v5993_v54 = vadd.f32 %v5992_v34, %v5991_v44  ;;  %v12380_v41 = vadd.f32 %v11851_v30, %v5497_v4  ;;  %v13935_v44 = vld [vmem:[#allocation20_spill] sm:$0xff] }
 0x8d5   : > { %7876 = vpow2.f32 %v6513_v1  ;;  %v6242_v59 = vmax.f32 %v6240_v17, %v6241_v43  ;;  %v5498_v60 = vadd.f32 %v5459_v53, %v5418_v3  ;;  %v5998_v23 = vadd.f32 %v5997_v49, %v5996_v0  ;;  %v12417_v49 = vpop.permute.xlu1 %5460 }
 0x8d6   : > { %v6005_v39 = vadd.f32 %v6004_v36, %v6003_v12  ;;  %v6248_v38 = vrot.slane %v6247_v57, 1  ;;  %5726 = vst.msk [vmem:[%s11901_s3 + $0x38] sm:$0xff] %vm5718_vm15, %v12380_v41  ;;  %v5850_v10 = vadd.f32 %v5849_v29, %v12315_v20  ;;  %v5856_v8 = vrot.slane %v12360_v48, 1 }
 0x8d7   : > { %v12382_v22 = vmax.f32 %v6130_v14, %v6242_v59  ;;  %v12388_v6 = vadd.f32 %v11851_v30, %v5498_v60  ;;  %v6137_v55 = vmax.f32 %v6135_v28, %v6136_v45  ;;  %v5994_v18 = vrot.slane %v5993_v54, 1  ;;  %v12420_v14 = vld [vmem:[%s11666_s27 + $0x7] ss:$0 sm:$0xff] }
 0x8d8   : > { %v6249_v0 = vmax.f32 %v6247_v57, %v6248_v38  ;;  %v5861_v50 = vrot.slane %v5860_v25, 2  ;;  %v5999_v29 = vrot.slane %v5998_v23, 2  ;;  %v6006_v28 = vrot.slane %v6005_v39, 2  ;;  %v13927_v38 = vld [vmem:[#allocation61_spill] sm:$0xff] }
 0x8d9   : > { %v6334_v12 = vsub.f32 %v12146_v46, %v12382_v22  ;;  %v6494_v30 = vsub.f32 %v12318_v13, %v12382_v22  ;;  %5727 = vst.msk [vmem:[%s11901_s3 + $0x40] sm:$0xff] %vm5718_vm15, %v12388_v6  ;;  %v5646_v16 = vrot.slane %v12402_v27, 1  ;;  %v6138_v53 = vsel %vm5718_vm15, %v12380_v41, -inf }
 0x8da   : > { %v7875_v32 = vpop.eup %7874  ;;  %v12405_v11 = vmax.f32 %v6137_v55, %v6249_v0  ;;  %v12413_v17 = vadd.f32 %v5861_v50, %v5860_v25  ;;  %v5995_v43 = vadd.f32 %v5994_v18, %v5993_v54  ;;  %v12427_v25 = vadd.f32 %v5999_v29, %v5998_v23  ;;  %v13928_v55 = vld [vmem:[#allocation11_spill] sm:$0xff] }
 0x8db   : > { %v7877_v35 = vpop.eup %7876  ;;  %v6405_v20 = vsel %vm5718_vm15, %v7875_v32, 0.0  ;;  %v6355_v46 = vmul.f32 1.442695, %v6334_v12  ;;  %v6515_v33 = vmul.f32 1.442695, %v6494_v30  ;;  %v12429_v57 = vadd.f32 %v6006_v28, %v6005_v39  ;;  %v13930_v18 = vld [vmem:[#allocation67_spill] sm:$0xff] }
 0x8dc   : > { %v6406_v62 = vrot.slane %v6405_v20, 4  ;;  %v6565_v5 = vsel %vm5718_vm15, %v7877_v35, 0.0  ;;  %v6335_v13 = vsub.f32 %v12276_v47, %v12405_v11  ;;  %v6495_v34 = vsub.f32 %v12323_v56, %v12405_v11  ;;  %v12422_v47 = vpop.permute.xlu2 %5462  ;;  %v12443_v39 = vld [vmem:[%s11666_s27 + $0x8] ss:$0 sm:$0xff] }
 0x8dd   : > { %v6566_v31 = vrot.slane %v6565_v5, 4  ;;  %7878 = vpow2.f32 %v6355_v46  ;;  %v12425_v56 = vadd.f32 %v5856_v8, %v12360_v48  ;;  %v5661_v59 = vsel %vm13926_vm4, %v5645_v15, %v5646_v16  ;;  %vm13946_vm4 = vmmov %vm13933_vm2 }
 0x8de   : > { %v6407_v1 = vadd.f32 %v6406_v62, %v6405_v20  ;;  %v6357_v52 = vmul.f32 1.442695, %v6335_v13  ;;  %7880 = vpow2.f32 %v6515_v33  ;;  %v6517_v4 = vmul.f32 1.442695, %v6495_v34 }
 0x8df   : > { %v6567_v36 = vadd.f32 %v6566_v31, %v6565_v5  ;;  %v5581_v48 = vadd.f32 %v12336_v61, %v13927_v38  ;;  %v6139_v54 = vrot.slane %v6138_v53, 4  ;;  %v5863_v23 = vrot.slane %v12413_v17, 1 }
 0x8e0   : > { %v6408_v3 = vrot.slane %v6407_v1, 2  ;;  %7882 = vpow2.f32 %v6357_v52  ;;  %vm5791_vm14 = vcmp.eq.s32.totalorder %v11843_v19, %v12420_v14  ;;  %vm13929_vm1 = vnez %v13928_v55 }
 0x8e1   : > { %v6568_v45 = vrot.slane %v6567_v36, 2  ;;  %7884 = vpow2.f32 %v6517_v4  ;;  %v5677_v21 = vsel %vm13929_vm1, 0.0, %v5661_v59  ;;  %v12447_v32 = vadd.f32 %v5995_v43, %v5850_v10  ;;  %v5609_v43 = vpop.permute.xlu1 %5608 }
 0x8e2   : > { %v6409_v60 = vadd.f32 %v6408_v3, %v6407_v1  ;;  %v12451_v50 = vadd.f32 %v12377_v42, %v13930_v18  ;;  %v5693_v61 = vadd.f32 %v5677_v21, %v5581_v48  ;;  %v6001_v35 = vrot.slane %v12427_v25, 1  ;;  %v13931_v42 = vld [vmem:[#allocation63_spill] sm:$0xff] }
 0x8e3   : > { %v6569_v8 = vadd.f32 %v6568_v45, %v6567_v36  ;;  %v7879_v0 = vpop.eup %7878  ;;  %v6008_v20 = vrot.slane %v12429_v57, 1  ;;  %v6140_v10 = vmax.f32 %v6138_v53, %v6139_v54  ;;  %vm5792_vm10 = vcmp.eq.s32.totalorder %v11843_v19, %v12443_v39  ;;  %v12469_v53 = vld [vmem:[%s12959_s16] ss:$0 sm:$0xff] }
 0x8e4   : > { %v6410_v15 = vrot.slane %v6409_v60, 1  ;;  %v7881_v12 = vpop.eup %7880  ;;  %v6412_v29 = vsel %vm5718_vm15, %v7879_v0, 0.0  ;;  %v5582_v13 = vadd.f32 %v12375_v2, %v13931_v42  ;;  %v5807_v52 = vsel %vm5791_vm14, %v12380_v41, 0.0 }
 0x8e5   : > { %v6570_v30 = vrot.slane %v6569_v8, 1  ;;  %v6413_v62 = vrot.slane %v6412_v29, 4  ;;  %v6572_v5 = vsel %vm5718_vm15, %v7881_v12, 0.0  ;;  %v12472_v4 = vadd.f32 %v12469_v53, %v5693_v61 }
 0x8e6   : > { %v6411_v28 = vadd.f32 %v6410_v15, %v6409_v60  ;;  %v7883_v46 = vpop.eup %7882  ;;  %v6573_v31 = vrot.slane %v6572_v5, 4  ;;  %v12475_v60 = vpop.permute.xlu2 %5610  ;;  %v6141_v54 = vrot.slane %v6140_v10, 2  ;;  %v5647_v0 = vrot.slane %v5609_v43, 1 }
 0x8e7   : > { %v6571_v33 = vadd.f32 %v6570_v30, %v6569_v8  ;;  %v7885_v34 = vpop.eup %7884  ;;  %v6414_v1 = vadd.f32 %v6413_v62, %v6412_v29  ;;  %v6419_v36 = vsel %vm5718_vm15, %v7883_v46, 0.0  ;;  %v6145_v8 = vsel %vm5718_vm15, %v12388_v6, -inf  ;;  %5742 = vst.msk [vmem:[%s11875_s30 + $0x38] sm:$0xff] %vm5718_vm15, %v12472_v4 }
 0x8e8   : > { %v6420_v3 = vrot.slane %v6419_v36, 4  ;;  %v6574_v45 = vadd.f32 %v6573_v31, %v6572_v5  ;;  %v6579_v59 = vsel %vm5718_vm15, %v7885_v34, 0.0  ;;  %vm5936_vm12 = vcmp.eq.s32.totalorder %v11865_v63, %v12420_v14 }
 0x8e9   : > { %v6653_v2 = vadd.f32 %v6571_v33, %v6411_v28  ;;  %v6415_v38 = vrot.slane %v6414_v1, 2  ;;  %v6580_v48 = vrot.slane %v6579_v59, 4  ;;  %v12485_v61 = vsel %vm5718_vm15, %v5807_v52, 0.0 }
 0x8ea   : > { %v6421_v55 = vadd.f32 %v6420_v3, %v6419_v36  ;;  %v6575_v21 = vrot.slane %v6574_v45, 2  ;;  %v5648_v12 = vrot.slane %v12475_v60, 1  ;;  %v6146_v28 = vrot.slane %v6145_v8, 4 }
 0x8eb   : > { %7886 = vlog2.f32 %v6653_v2  ;;  %v6416_v15 = vadd.f32 %v6415_v38, %v6414_v1  ;;  %v6581_v18 = vadd.f32 %v6580_v48, %v6579_v59  ;;  %v6250_v62 = vsel %vm5718_vm15, %v12472_v4, -inf }
 0x8ec   : > { %v6422_v30 = vrot.slane %v6421_v55, 2  ;;  %v6576_v29 = vadd.f32 %v6575_v21, %v6574_v45  ;;  %v5808_v33 = vsel %vm5792_vm10, %v12388_v6, 0.0  ;;  %v6251_v31 = vrot.slane %v6250_v62, 4 }
 0x8ed   : > { %v6417_v5 = vrot.slane %v6416_v15, 1  ;;  %v6582_v46 = vrot.slane %v6581_v18, 2  ;;  %v6142_v1 = vmax.f32 %v6140_v10, %v6141_v54  ;;  %v5659_v36 = vsel %vm13932_vm13, %v5647_v0, %v5648_v12 }
 0x8ee   : > { %v6423_v42 = vadd.f32 %v6422_v30, %v6421_v55  ;;  %v6577_v34 = vrot.slane %v6576_v29, 1  ;;  %v6252_v2 = vmax.f32 %v6250_v62, %v6251_v31  ;;  %v5660_v3 = vsel %vm13933_vm2, %v5646_v16, %v5647_v0 }
 0x8ef   : > { %v6418_v52 = vadd.f32 %v6417_v5, %v6416_v15  ;;  %v6583_v43 = vadd.f32 %v6582_v46, %v6581_v18  ;;  %v6147_v48 = vmax.f32 %v6145_v8, %v6146_v28  ;;  %v5678_v10 = vsel %vm13821_vm3, 0.0, %v5660_v3 }
 0x8f0   : > { %v6424_v59 = vrot.slane %v6423_v42, 1  ;;  %v6578_v38 = vadd.f32 %v6577_v34, %v6576_v29  ;;  %v6253_v30 = vrot.slane %v6252_v2, 2  ;;  %vm13936_vm11 = vnez %v13935_v44 }
 0x8f1   : > { %v7887_v45 = vpop.eup %7886  ;;  %v6584_v21 = vrot.slane %v6583_v43, 1  ;;  %v5679_v15 = vsel %vm13936_vm11, 0.0, %v5659_v36  ;;  %v6143_v5 = vrot.slane %v6142_v1, 1  ;;  %v5694_v27 = vadd.f32 %v5678_v10, %v5582_v13 }
 0x8f2   : > { %v6674_v54 = vmul.f32 0.6931472, %v7887_v45  ;;  %v6425_v18 = vadd.f32 %v6424_v59, %v6423_v42  ;;  %v6654_v62 = vadd.f32 %v6578_v38, %v6418_v52  ;;  %v6254_v29 = vmax.f32 %v6252_v2, %v6253_v30 }
 0x8f3   : > { %v6585_v0 = vadd.f32 %v6584_v21, %v6583_v43  ;;  %v5695_v8 = vadd.f32 %v5679_v15, %v12451_v50  ;;  %v6002_v28 = vadd.f32 %v6001_v35, %v12427_v25  ;;  %v6148_v46 = vrot.slane %v6147_v48, 2  ;;  %v5381_v43 = vpop.permute.xlu0 %5380  ;;  %v5383_v15 = vpop.permute.xlu1 %5382 }
 0x8f4   : > { %v6701_v16 = vadd.f32 %v6674_v54, %v12356_v37  ;;  %7888 = vlog2.f32 %v6654_v62  ;;  %v12512_v44 = vadd.f32 %v12469_v53, %v5694_v27  ;;  %v6255_v42 = vrot.slane %v6254_v29, 1 }
 0x8f5   : > { %v6655_v13 = vadd.f32 %v6585_v0, %v6425_v18  ;;  %v12516_v37 = vadd.f32 %v12469_v53, %v5695_v8  ;;  %v5866_v34 = vrot.slane %v12485_v61, 4  ;;  %v5872_v50 = vsel %vm5718_vm15, %v5808_v33, 0.0  ;;  %v12557_v0 = vpop.permute.xlu2 %5384 }
 0x8f6   : > { %v6717_v31 = vsub.f32 %v6701_v16, %v12447_v32  ;;  %v5952_v25 = vsel %vm5936_vm12, %v12472_v4, 0.0  ;;  %5743 = vst.msk [vmem:[%s11875_s30 + $0x40] sm:$0xff] %vm5718_vm15, %v12512_v44  ;;  %v6257_v32 = vsel %vm5718_vm15, %v12512_v44, -inf  ;;  %v6144_v35 = vmax.f32 %v6142_v1, %v6143_v5 }
 0x8f7   : > { %7890 = vlog2.f32 %v6655_v13  ;;  %v6256_v36 = vmax.f32 %v6254_v29, %v6255_v42  ;;  %v6258_v52 = vrot.slane %v6257_v32, 4  ;;  %v5864_v33 = vadd.f32 %v5863_v23, %v12413_v17  ;;  %5744 = vst.msk [vmem:[%s11875_s30 + $0x48] sm:$0xff] %vm5718_vm15, %v12516_v37 }
 0x8f8   : > { %6734 = vst.msk [vmem:[%s12244_s20 + $0x4] sm:$0x1] %vm6729_vm5, %v6717_v31  ;;  %v6009_v14 = vadd.f32 %v6008_v20, %v12429_v57  ;;  %v6149_v2 = vmax.f32 %v6147_v48, %v6148_v46  ;;  %v6264_v3 = vsel %vm5718_vm15, %v12516_v37, -inf  ;;  %v6010_v1 = vsel %vm5718_vm15, %v5952_v25, 0.0 }
 0x8f9   : > { %v12543_v45 = vmax.f32 %v6144_v35, %v6256_v36  ;;  %v6259_v59 = vmax.f32 %v6257_v32, %v6258_v52  ;;  %v6265_v38 = vrot.slane %v6264_v3, 4  ;;  %v6078_v17 = vadd.f32 %v6002_v28, %v12425_v56  ;;  %v13938_v52 = vld [vmem:[#allocation37_spill] sm:$0xff] }
 0x8fa   : > { %v7889_v55 = vpop.eup %7888  ;;  %v5867_v23 = vadd.f32 %v5866_v34, %v12485_v61  ;;  %v5873_v10 = vrot.slane %v5872_v50, 4  ;;  %v13937_v57 = vsel %vm13825_vm7, 0.0, %v13924_v24  ;;  %v6150_v18 = vrot.slane %v6149_v2, 1 }
 0x8fb   : > { %v5419_v20 = vadd.f32 %v5381_v43, %v13937_v57  ;;  %v6676_v48 = vmul.f32 0.6931472, %v7889_v55  ;;  %v6336_v54 = vsub.f32 %v12380_v41, %v12543_v45  ;;  %v6496_v21 = vsub.f32 %v12472_v4, %v12543_v45  ;;  %v12572_v35 = vpop.permute.xlu0 %5546  ;;  %v13939_v43 = vld [vmem:[#allocation32_spill] sm:$0xff] }
 0x8fc   : > { %v6260_v30 = vrot.slane %v6259_v59, 2  ;;  %v6011_v62 = vrot.slane %v6010_v1, 4  ;;  %v6266_v56 = vmax.f32 %v6264_v3, %v6265_v38  ;;  %v6079_v41 = vadd.f32 %v6009_v14, %v5864_v33 }
 0x8fd   : > { %v5499_v61 = vadd.f32 %v12417_v49, %v5419_v20  ;;  %v7891_v5 = vpop.eup %7890  ;;  %v6702_v9 = vadd.f32 %v6676_v48, %v12382_v22  ;;  %v6359_v27 = vmul.f32 1.442695, %v6336_v54  ;;  %v6519_v24 = vmul.f32 1.442695, %v6496_v21 }
 0x8fe   : > { %v6261_v16 = vmax.f32 %v6259_v59, %v6260_v30  ;;  %v6678_v29 = vmul.f32 0.6931472, %v7891_v5  ;;  %v5868_v8 = vrot.slane %v5867_v23, 2  ;;  %vm5937_vm3 = vcmp.eq.s32.totalorder %v11865_v63, %v12443_v39 }
 0x8ff   : > { %v6718_v4 = vsub.f32 %v6702_v9, %v6078_v17  ;;  %7892 = vpow2.f32 %v6359_v27  ;;  %v12562_v49 = vadd.f32 %v12469_v53, %v5499_v61  ;;  %v5874_v46 = vadd.f32 %v5873_v10, %v5872_v50  ;;  %v12591_v17 = vpop.permute.xlu1 %5548 }
 0x900   : > { %v6262_v28 = vrot.slane %v6261_v16, 1  ;;  %v6703_v22 = vadd.f32 %v6678_v29, %v12405_v11  ;;  %7894 = vpow2.f32 %v6519_v24  ;;  %v6267_v31 = vrot.slane %v6266_v56, 2 }
 0x901   : > { %6735 = vst.msk [vmem:[%s12244_s20 + $0x5] sm:$0x1] %vm6729_vm5, %v6718_v4  ;;  %v6151_v13 = vmax.f32 %v6149_v2, %v6150_v18  ;;  %v6012_v42 = vadd.f32 %v6011_v62, %v6010_v1  ;;  %v6152_v25 = vsel %vm5718_vm15, %v12562_v49, -inf  ;;  %v5953_v11 = vsel %vm5937_vm3, %v12512_v44, 0.0  ;;  %v12597_v18 = vpop.permute.xlu2 %5550  ;;  %v12602_v62 = vld [vmem:[%s11666_s27 + $0x9] ss:$0 sm:$0xff] }
 0x902   : > { %v6263_v34 = vmax.f32 %v6261_v16, %v6262_v28  ;;  %v6719_v32 = vsub.f32 %v6703_v22, %v6079_v41  ;;  %5728 = vst.msk [vmem:[%s11901_s3 + $0x48] sm:$0xff] %vm5718_vm15, %v12562_v49  ;;  %v6153_v36 = vrot.slane %v6152_v25, 4  ;;  %vm13940_vm7 = vnez %v13939_v43  ;;  %v13941_v16 = vld [vmem:[#allocation42_spill] sm:$0xff]  ;;  %v13942_v28 = vld [vmem:[#allocation43_spill] sm:$0xff]  ;;  %v13944_v22 = vld [vmem:[#allocation44_spill] sm:$0xff] }
 0x903   : > { %v5340_v33 = vsel %vm13940_vm7, 0.0, %v13938_v52  ;;  %v5875_v14 = vrot.slane %v5874_v46, 2  ;;  %v6268_v2 = vmax.f32 %v6266_v56, %v6267_v31  ;;  %v12585_v59 = vadd.f32 %v5868_v8, %v5867_v23 }
 0x904   : > { %v12578_v50 = vmax.f32 %v6151_v13, %v6263_v34  ;;  %6736 = vst.msk [vmem:[%s12244_s20 + $0x6] sm:$0x1] %vm6729_vm5, %v6719_v32  ;;  %v5420_v3 = vadd.f32 %v5383_v15, %v5340_v33  ;;  %v6013_v38 = vrot.slane %v6012_v42, 2  ;;  %v6017_v20 = vsel %vm5718_vm15, %v5953_v11, 0.0  ;;  %v5465_v34 = vpop.permute.xlu0 %5464 }
 0x905   : > { %v7893_v1 = vpop.eup %7892  ;;  %v6154_v48 = vmax.f32 %v6152_v25, %v6153_v36  ;;  %v6269_v56 = vrot.slane %v6268_v2, 1  ;;  %v6018_v9 = vrot.slane %v6017_v20, 4  ;;  %vm5938_vm9 = vcmp.eq.s32.totalorder %v11865_v63, %v12602_v62 }
 0x906   : > { %v6337_v39 = vsub.f32 %v12388_v6, %v12578_v50  ;;  %v6497_v55 = vsub.f32 %v12512_v44, %v12578_v50  ;;  %v7895_v10 = vpop.eup %7894  ;;  %v6426_v57 = vsel %vm5718_vm15, %v7893_v1, 0.0  ;;  %v5500_v54 = vadd.f32 %v12422_v47, %v5420_v3 }
 0x907   : > { %v6427_v23 = vrot.slane %v6426_v57, 4  ;;  %v6586_v21 = vsel %vm5718_vm15, %v7895_v10, 0.0  ;;  %v12599_v6 = vadd.f32 %v5875_v14, %v5874_v46  ;;  %v6155_v61 = vrot.slane %v6154_v48, 2 }
 0x908   : > { %v6361_v30 = vmul.f32 1.442695, %v6337_v39  ;;  %v6521_v15 = vmul.f32 1.442695, %v6497_v55  ;;  %v6587_v44 = vrot.slane %v6586_v21, 4  ;;  %v12605_v47 = vadd.f32 %v12469_v53, %v5500_v54 }
 0x909   : > { %v6428_v5 = vadd.f32 %v6427_v23, %v6426_v57  ;;  %v6156_v24 = vmax.f32 %v6154_v48, %v6155_v61  ;;  %v5310_v41 = vrot.slane %v13941_v16, 7  ;;  %v6014_v29 = vadd.f32 %v6013_v38, %v6012_v42  ;;  %v12622_v38 = vpop.permute.xlu1 %5466 }
 0x90a   : > { %7896 = vpow2.f32 %v6361_v30  ;;  %v6588_v27 = vadd.f32 %v6587_v44, %v6586_v21  ;;  %5729 = vst.msk [vmem:[%s11901_s3 + $0x50] sm:$0xff] %vm5718_vm15, %v12605_v47  ;;  %v5341_v46 = vsel %vm13833_vm8, 0.0, %v13942_v28  ;;  %v6270_v31 = vmax.f32 %v6268_v2, %v6269_v56  ;;  %v12629_v21 = vpop.permute.xlu2 %5468 }
 0x90b   : > { %7898 = vpow2.f32 %v6521_v15  ;;  %v6429_v8 = vrot.slane %v6428_v5, 2  ;;  %v6157_v13 = vrot.slane %v6156_v24, 1  ;;  %v6019_v32 = vadd.f32 %v6018_v9, %v6017_v20 }
 0x90c   : > { %v6589_v4 = vrot.slane %v6588_v27, 2  ;;  %v5421_v11 = vadd.f32 %v12557_v0, %v5341_v46  ;;  %v5954_v36 = vsel %vm5938_vm9, %v12516_v37, 0.0  ;;  %v5870_v42 = vrot.slane %v12585_v59, 1 }
 0x90d   : > { %v6430_v25 = vadd.f32 %v6429_v8, %v6428_v5  ;;  %v5877_v52 = vrot.slane %v12599_v6, 1  ;;  %v6158_v33 = vmax.f32 %v6156_v24, %v6157_v13  ;;  %v6015_v3 = vrot.slane %v6014_v29, 1 }
 0x90e   : > { %v6590_v43 = vadd.f32 %v6589_v4, %v6588_v27  ;;  %vm5793_vm8 = vcmp.eq.s32.totalorder %v11843_v19, %v12602_v62  ;;  %v5501_v2 = vadd.f32 %v5465_v34, %v5421_v11  ;;  %v6024_v10 = vsel %vm5718_vm15, %v5954_v36, 0.0  ;;  %v5613_v36 = vpop.permute.xlu0 %5612 }
 0x90f   : > { %v6431_v1 = vrot.slane %v6430_v25, 1  ;;  %v12626_v57 = vmax.f32 %v6158_v33, %v6270_v31  ;;  %v6020_v48 = vrot.slane %v6019_v32, 2  ;;  %v6025_v5 = vrot.slane %v6024_v10, 4 }
 0x910   : > { %v7897_v14 = vpop.eup %7896  ;;  %v6591_v55 = vrot.slane %v6590_v43, 1  ;;  %v6159_v9 = vsel %vm5718_vm15, %v12605_v47, -inf  ;;  %v12638_v27 = vadd.f32 %v12469_v53, %v5501_v2  ;;  %v5311_v46 = vrot.slane %v13944_v22, 7 }
 0x911   : > { %v7899_v39 = vpop.eup %7898  ;;  %v6433_v0 = vsel %vm5718_vm15, %v7897_v14, 0.0  ;;  %v6432_v20 = vadd.f32 %v6431_v1, %v6430_v25  ;;  %v6338_v44 = vsub.f32 %v12562_v49, %v12626_v57  ;;  %v6498_v56 = vsub.f32 %v12516_v37, %v12626_v57 }
 0x912   : > { %v6434_v54 = vrot.slane %v6433_v0, 4  ;;  %v6593_v23 = vsel %vm5718_vm15, %v7899_v39, 0.0  ;;  %v6592_v30 = vadd.f32 %v6591_v55, %v6590_v43  ;;  %v6016_v31 = vadd.f32 %v6015_v3, %v6014_v29  ;;  %5730 = vst.msk [vmem:[%s11901_s3 + $0x58] sm:$0xff] %vm5718_vm15, %v12638_v27 }
 0x913   : > { %v6594_v15 = vrot.slane %v6593_v23, 4  ;;  %v6363_v4 = vmul.f32 1.442695, %v6338_v44  ;;  %v6523_v28 = vmul.f32 1.442695, %v6498_v56  ;;  %v6021_v13 = vadd.f32 %v6020_v48, %v6019_v32  ;;  %v13945_v48 = vld [vmem:[#allocation69_spill] sm:$0xff] }
 0x914   : > { %v6435_v61 = vadd.f32 %v6434_v54, %v6433_v0  ;;  %v6656_v24 = vadd.f32 %v6592_v30, %v6432_v20  ;;  %v5312_v37 = vrot.slane %v11968_v7, 7  ;;  %v6160_v11 = vrot.slane %v6159_v9, 4  ;;  %v5615_v0 = vpop.permute.xlu1 %5614  ;;  %v12658_v54 = vpop.permute.xlu2 %5616 }
 0x915   : > { %v6595_v8 = vadd.f32 %v6594_v15, %v6593_v23  ;;  %v5871_v43 = vadd.f32 %v5870_v42, %v12585_v59  ;;  %v5809_v14 = vsel %vm5793_vm8, %v12562_v49, 0.0  ;;  %v12651_v29 = vadd.f32 %v5877_v52, %v12599_v6  ;;  %v13956_v15 = vld [vmem:[#allocation9_spill] sm:$0xff] }
 0x916   : > { %v6436_v34 = vrot.slane %v6435_v61, 2  ;;  %7900 = vlog2.f32 %v6656_v24  ;;  %v12653_v3 = vadd.f32 %v6025_v5, %v6024_v10  ;;  %v6022_v2 = vrot.slane %v6021_v13, 1  ;;  %v13948_v10 = vld [vmem:[#allocation66_spill] sm:$0xff] }
 0x917   : > { %v6596_v25 = vrot.slane %v6595_v8, 2  ;;  %7902 = vpow2.f32 %v6363_v4  ;;  %v6080_v1 = vadd.f32 %v6016_v31, %v5871_v43  ;;  %v5649_v55 = vrot.slane %v5613_v36, 1 }
 0x918   : > { %v6437_v33 = vadd.f32 %v6436_v34, %v6435_v61  ;;  %7904 = vpow2.f32 %v6523_v28  ;;  %v5879_v42 = vsel %vm5718_vm15, %v5809_v14, 0.0  ;;  %v6161_v20 = vmax.f32 %v6159_v9, %v6160_v11 }
 0x919   : > { %v6597_v32 = vadd.f32 %v6596_v25, %v6595_v8  ;;  %v5584_v49 = vadd.f32 %v12572_v35, %v13945_v48  ;;  %v5658_v6 = vsel %vm13946_vm4, %v5648_v12, %v5649_v55  ;;  %vm13947_vm14 = vcmp.lt.s32.totalorder %v8837_v51, 1 }
 0x91a   : > { %v6438_v39 = vrot.slane %v6437_v33, 1  ;;  %v12670_v52 = vsel %vm13947_vm14, %v5311_v46, %v5312_v37  ;;  %v13949_v35 = vrot.slane %v13948_v10, 7  ;;  %vm13950_vm1 = vmmov %vm13947_vm14  ;;  %v6027_v12 = vrot.slane %v12653_v3, 2  ;;  %v13954_v10 = vld [vmem:[#allocation68_spill] sm:$0xff] }
 0x91b   : > { %v6598_v59 = vrot.slane %v6597_v32, 1  ;;  %v5680_v44 = vsel %vm13707_vm0, 0.0, %v5658_v6  ;;  %v5650_v56 = vrot.slane %v5615_v0, 1  ;;  %v5880_v9 = vrot.slane %v5879_v42, 4  ;;  %vm13952_vm0 = vmmov %vm13933_vm2 }
 0x91c   : > { %v6439_v62 = vadd.f32 %v6438_v39, %v6437_v33  ;;  %v12678_v23 = vsel %vm13950_vm1, %v13949_v35, %v5310_v41  ;;  %v7901_v60 = vpop.eup %7900  ;;  %v6166_v24 = vsel %vm5718_vm15, %v12638_v27, -inf  ;;  %v5696_v8 = vadd.f32 %v5680_v44, %v5584_v49  ;;  %vm13953_vm10 = vmmov %vm13952_vm0 }
 0x91d   : > { %v6599_v30 = vadd.f32 %v6598_v59, %v6597_v32  ;;  %v7903_v61 = vpop.eup %7902  ;;  %v6680_v5 = vmul.f32 0.6931472, %v7901_v60  ;;  %v6162_v34 = vrot.slane %v6161_v20, 2  ;;  %v5651_v25 = vrot.slane %v12658_v54, 1  ;;  %vm13960_vm2 = vmmov %vm13950_vm1 }
 0x91e   : > { %v7905_v4 = vpop.eup %7904  ;;  %v6440_v31 = vsel %vm5718_vm15, %v7903_v61, 0.0  ;;  %v12690_v33 = vadd.f32 %v12469_v53, %v5696_v8  ;;  %v6167_v32 = vrot.slane %v6166_v24, 4  ;;  %v5657_v39 = vsel %vm13952_vm0, %v5649_v55, %v5650_v56  ;;  %v13955_v55 = vld [vmem:[#allocation2_spill] sm:$0xff] }
 0x91f   : > { %v6657_v28 = vadd.f32 %v6599_v30, %v6439_v62  ;;  %v6704_v11 = vadd.f32 %v6680_v5, %v12543_v45  ;;  %v6441_v36 = vrot.slane %v6440_v31, 4  ;;  %v6600_v43 = vsel %vm5718_vm15, %v7905_v4, 0.0 }
 0x920   : > { %v6601_v14 = vrot.slane %v6600_v43, 4  ;;  %5745 = vst.msk [vmem:[%s11875_s30 + $0x50] sm:$0xff] %vm5718_vm15, %v12690_v33  ;;  %v6271_v45 = vsel %vm5718_vm15, %v12690_v33, -inf  ;;  %v5656_v48 = vsel %vm13953_vm10, %v5650_v56, %v5651_v25  ;;  %v6023_v49 = vadd.f32 %v6022_v2, %v6021_v13  ;;  %v13958_v56 = vld [vmem:[#allocation18_spill] sm:$0xff] }
 0x921   : > { %7906 = vlog2.f32 %v6657_v28  ;;  %v6720_v0 = vsub.f32 %v6704_v11, %v6080_v1  ;;  %v6442_v59 = vadd.f32 %v6441_v36, %v6440_v31  ;;  %v5881_v62 = vadd.f32 %v5880_v9, %v5879_v42 }
 0x922   : > { %v6602_v6 = vadd.f32 %v6601_v14, %v6600_v43  ;;  %v5585_v35 = vadd.f32 %v12591_v17, %v13954_v10  ;;  %v5586_v60 = vadd.f32 %v12597_v18, %v13955_v55  ;;  %v6272_v30 = vrot.slane %v6271_v45, 4  ;;  %v7844_v18 = vld [vmem:[%s11666_s27 + $0xa] ss:$0 sm:$0xff] }
 0x923   : > { %6737 = vst.msk [vmem:[%s12244_s20 + $0x7] sm:$0x1] %vm6729_vm5, %v6720_v0  ;;  %v6443_v1 = vrot.slane %v6442_v59, 2  ;;  %vm13957_vm12 = vnez %v13956_v15  ;;  %v6168_v5 = vmax.f32 %v6166_v24, %v6167_v32  ;;  %vm13959_vm13 = vnez %v13958_v56 }
 0x924   : > { %v5681_v44 = vsel %vm13957_vm12, 0.0, %v5657_v39  ;;  %v6603_v61 = vrot.slane %v6602_v6, 2  ;;  %v5682_v13 = vsel %vm13959_vm13, 0.0, %v5656_v48  ;;  %v6163_v9 = vmax.f32 %v6161_v20, %v6162_v34 }
 0x925   : > { %v5697_v2 = vadd.f32 %v5681_v44, %v5585_v35  ;;  %v6444_v42 = vadd.f32 %v6443_v1, %v6442_v59  ;;  %v6273_v17 = vmax.f32 %v6271_v45, %v6272_v30  ;;  %v5698_v8 = vadd.f32 %v5682_v13, %v5586_v60 }
 0x926   : > { %v6081_v28 = vadd.f32 %v6023_v49, %v12651_v29  ;;  %v6604_v31 = vadd.f32 %v6603_v61, %v6602_v6  ;;  %v12724_v24 = vsel %vm13960_vm2, %v5310_v41, %v5311_v46  ;;  %v5882_v34 = vrot.slane %v5881_v62, 2 }
 0x927   : > { %v7907_v4 = vpop.eup %7906  ;;  %v12716_v11 = vadd.f32 %v12469_v53, %v5697_v2  ;;  %v6445_v36 = vrot.slane %v6444_v42, 1  ;;  %v6274_v43 = vrot.slane %v6273_v17, 2  ;;  %v6169_v29 = vrot.slane %v6168_v5, 2  ;;  %v7845_v2 = vld [vmem:[%s11666_s27 + $0xb] ss:$0 sm:$0xff] }
 0x928   : > { %v6682_v20 = vmul.f32 0.6931472, %v7907_v4  ;;  %v6605_v14 = vrot.slane %v6604_v31, 1  ;;  %v12727_v32 = vadd.f32 %v12469_v53, %v5698_v8  ;;  %v6164_v46 = vrot.slane %v6163_v9, 1 }
 0x929   : > { %5746 = vst.msk [vmem:[%s11875_s30 + $0x58] sm:$0xff] %vm5718_vm15, %v12716_v11  ;;  %v6278_v16 = vsel %vm5718_vm15, %v12716_v11, -inf  ;;  %v6446_v41 = vadd.f32 %v6445_v36, %v6444_v42  ;;  %v6275_v39 = vmax.f32 %v6273_v17, %v6274_v43  ;;  %v6028_v48 = vadd.f32 %v6027_v12, %v12653_v3 }
 0x92a   : > { %v6705_v22 = vadd.f32 %v6682_v20, %v12578_v50  ;;  %v6606_v0 = vadd.f32 %v6605_v14, %v6604_v31  ;;  %5747 = vst.msk [vmem:[%s11875_s30 + $0x60] sm:$0xff] %vm5718_vm15, %v12727_v32  ;;  %v6279_v59 = vrot.slane %v6278_v16, 4  ;;  %vm5794_vm11 = vcmp.eq.s32.totalorder %v11843_v19, %v7844_v18 }
 0x92b   : > { %v6276_v49 = vrot.slane %v6275_v39, 1  ;;  %vm5939_vm3 = vcmp.eq.s32.totalorder %v11865_v63, %v7844_v18  ;;  %v6170_v50 = vmax.f32 %v6168_v5, %v6169_v29  ;;  %v5883_v35 = vadd.f32 %v5882_v34, %v5881_v62 }
 0x92c   : > { %v6721_v45 = vsub.f32 %v6705_v22, %v6081_v28  ;;  %v6658_v6 = vadd.f32 %v6606_v0, %v6446_v41  ;;  %v6280_v10 = vmax.f32 %v6278_v16, %v6279_v59  ;;  %v6165_v1 = vmax.f32 %v6163_v9, %v6164_v46 }
 0x92d   : > { %v6277_v55 = vmax.f32 %v6275_v39, %v6276_v49  ;;  %v5810_v60 = vsel %vm5794_vm11, %v12605_v47, 0.0  ;;  %v6029_v15 = vrot.slane %v6028_v48, 1  ;;  %v5955_v3 = vsel %vm5939_vm3, %v12690_v33, 0.0 }
 0x92e   : > { %6738 = vst.msk [vmem:[%s12244_s20 + $0x8] sm:$0x1] %vm6729_vm5, %v6721_v45  ;;  %7908 = vlog2.f32 %v6658_v6  ;;  %v6281_v30 = vrot.slane %v6280_v10, 2  ;;  %v6171_v44 = vrot.slane %v6170_v50, 1  ;;  %v5884_v56 = vrot.slane %v5883_v35, 1 }
 0x92f   : > { %v12747_v12 = vmax.f32 %v6165_v1, %v6277_v55  ;;  %v5886_v5 = vsel %vm5718_vm15, %v5810_v60, 0.0  ;;  %v6031_v42 = vsel %vm5718_vm15, %v5955_v3, 0.0  ;;  %v6030_v17 = vadd.f32 %v6029_v15, %v6028_v48 }
 0x930   : > { %v6282_v61 = vmax.f32 %v6280_v10, %v6281_v30  ;;  %v5887_v31 = vrot.slane %v5886_v5, 4  ;;  %v6172_v18 = vmax.f32 %v6170_v50, %v6171_v44  ;;  %v5885_v34 = vadd.f32 %v5884_v56, %v5883_v35  ;;  %v13961_v56 = vld [vmem:[#allocation16_spill] sm:$0xff] }
 0x931   : > { %v6339_v13 = vsub.f32 %v12605_v47, %v12747_v12  ;;  %v6499_v62 = vsub.f32 %v12690_v33, %v12747_v12  ;;  %v6032_v43 = vrot.slane %v6031_v42, 4  ;;  %vm5795_vm7 = vcmp.eq.s32.totalorder %v11843_v19, %v7845_v2 }
 0x932   : > { %v6283_v9 = vrot.slane %v6282_v61, 1  ;;  %v6082_v33 = vadd.f32 %v6030_v17, %v5885_v34  ;;  %v6285_v29 = vsel %vm5718_vm15, %v12727_v32, -inf  ;;  %v5888_v16 = vadd.f32 %v5887_v31, %v5886_v5 }
 0x933   : > { %v6365_v8 = vmul.f32 1.442695, %v6339_v13  ;;  %v6525_v4 = vmul.f32 1.442695, %v6499_v62  ;;  %vm5940_vm9 = vcmp.eq.s32.totalorder %v11865_v63, %v7845_v2  ;;  %v5811_v39 = vsel %vm5795_vm7, %v12638_v27, 0.0  ;;  %v5387_v62 = vpop.permute.xlu0 %5386 }
 0x934   : > { %v7909_v28 = vpop.eup %7908  ;;  %v6284_v20 = vmax.f32 %v6282_v61, %v6283_v9  ;;  %v6033_v0 = vadd.f32 %v6032_v43, %v6031_v42  ;;  %v6286_v59 = vrot.slane %v6285_v29, 4  ;;  %v5956_v49 = vsel %vm5940_vm9, %v12716_v11, 0.0  ;;  %v7846_v13 = vld [vmem:[%s11666_s27 + $0xc] ss:$0 sm:$0xff] }
 0x935   : > { %v6684_v36 = vmul.f32 0.6931472, %v7909_v28  ;;  %7910 = vpow2.f32 %v6365_v8  ;;  %v5889_v50 = vrot.slane %v5888_v16, 2  ;;  %v5893_v10 = vsel %vm5718_vm15, %v5811_v39, 0.0 }
 0x936   : > { %7912 = vpow2.f32 %v6525_v4  ;;  %v12757_v47 = vmax.f32 %v6172_v18, %v6284_v20  ;;  %v6034_v1 = vrot.slane %v6033_v0, 2  ;;  %v6038_v30 = vsel %vm5718_vm15, %v5956_v49, 0.0 }
 0x937   : > { %v6706_v14 = vadd.f32 %v6684_v36, %v12626_v57  ;;  %v6287_v15 = vmax.f32 %v6285_v29, %v6286_v59  ;;  %v12775_v44 = vadd.f32 %v5889_v50, %v5888_v16  ;;  %vm13962_vm8 = vnez %v13961_v56 }
 0x938   : > { %v6340_v22 = vsub.f32 %v12638_v27, %v12757_v47  ;;  %v6500_v41 = vsub.f32 %v12716_v11, %v12757_v47  ;;  %v5894_v11 = vrot.slane %v5893_v10, 4  ;;  %v5342_v5 = vsel %vm13962_vm8, 0.0, %v12678_v23 }
 0x939   : > { %v6722_v46 = vsub.f32 %v6706_v14, %v6082_v33  ;;  %v6035_v2 = vadd.f32 %v6034_v1, %v6033_v0  ;;  %v6039_v9 = vrot.slane %v6038_v30, 4  ;;  %v5422_v17 = vadd.f32 %v5387_v62, %v5342_v5 }
 0x93a   : > { %v6367_v45 = vmul.f32 1.442695, %v6340_v22  ;;  %v6527_v48 = vmul.f32 1.442695, %v6500_v41  ;;  %v6288_v28 = vrot.slane %v6287_v15, 2  ;;  %vm5796_vm4 = vcmp.eq.s32.totalorder %v11843_v19, %v7846_v13 }
 0x93b   : > { %v7911_v57 = vpop.eup %7910  ;;  %6739 = vst.msk [vmem:[%s12244_s20 + $0x9] sm:$0x1] %vm6729_vm5, %v6722_v46  ;;  %vm5941_vm14 = vcmp.eq.s32.totalorder %v11865_v63, %v7846_v13  ;;  %v5502_v23 = vadd.f32 %v12622_v38, %v5422_v17  ;;  %v6040_v39 = vadd.f32 %v6039_v9, %v6038_v30  ;;  %v5895_v30 = vadd.f32 %v5894_v11, %v5893_v10 }
 0x93c   : > { %v7913_v6 = vpop.eup %7912  ;;  %v6447_v35 = vsel %vm5718_vm15, %v7911_v57, 0.0  ;;  %7914 = vpow2.f32 %v6367_v45  ;;  %v5957_v34 = vsel %vm5941_vm14, %v12727_v32, 0.0  ;;  %v6289_v0 = vmax.f32 %v6287_v15, %v6288_v28 }
 0x93d   : > { %v6448_v55 = vrot.slane %v6447_v35, 4  ;;  %v6607_v27 = vsel %vm5718_vm15, %v7913_v6, 0.0  ;;  %7916 = vpow2.f32 %v6527_v48  ;;  %v6045_v14 = vsel %vm5718_vm15, %v5957_v34, 0.0 }
 0x93e   : > { %v6608_v60 = vrot.slane %v6607_v27, 4  ;;  %v6046_v22 = vrot.slane %v6045_v14, 4  ;;  %v12789_v41 = vadd.f32 %v12469_v53, %v5502_v23  ;;  %v6036_v15 = vrot.slane %v6035_v2, 1 }
 0x93f   : > { %v6449_v3 = vadd.f32 %v6448_v55, %v6447_v35  ;;  %v6290_v17 = vrot.slane %v6289_v0, 1  ;;  %vm13978_vm8 = vcmp.lt.s32.totalorder %v8837_v51, 1 }
 0x940   : > { %v6609_v61 = vadd.f32 %v6608_v60, %v6607_v27  ;;  %v6047_v38 = vadd.f32 %v6046_v22, %v6045_v14  ;;  %5731 = vst.msk [vmem:[%s11901_s3 + $0x60] sm:$0xff] %vm5718_vm15, %v12789_v41  ;;  %v5812_v57 = vsel %vm5796_vm4, %v12789_v41, 0.0  ;;  %v6173_v35 = vsel %vm5718_vm15, %v12789_v41, -inf }
 0x941   : > { %v6450_v42 = vrot.slane %v6449_v3, 2  ;;  %v5900_v50 = vsel %vm5718_vm15, %v5812_v57, 0.0  ;;  %v6174_v60 = vrot.slane %v6173_v35, 4 }
 0x942   : > { %v7915_v8 = vpop.eup %7914  ;;  %v6610_v4 = vrot.slane %v6609_v61, 2  ;;  %v6048_v55 = vrot.slane %v6047_v38, 2  ;;  %v5901_v27 = vrot.slane %v5900_v50, 4 }
 0x943   : > { %v7917_v31 = vpop.eup %7916  ;;  %v6451_v18 = vadd.f32 %v6450_v42, %v6449_v3  ;;  %v6454_v20 = vsel %vm5718_vm15, %v7915_v8, 0.0  ;;  %v6175_v13 = vmax.f32 %v6173_v35, %v6174_v60  ;;  %v6041_v42 = vrot.slane %v6040_v39, 2 }
 0x944   : > { %v6611_v36 = vadd.f32 %v6610_v4, %v6609_v61  ;;  %v6455_v43 = vrot.slane %v6454_v20, 4  ;;  %v6614_v33 = vsel %vm5718_vm15, %v7917_v31, 0.0  ;;  %v6049_v5 = vadd.f32 %v6048_v55, %v6047_v38 }
 0x945   : > { %v6452_v29 = vrot.slane %v6451_v18, 1  ;;  %v6615_v16 = vrot.slane %v6614_v33, 4  ;;  %v5902_v62 = vadd.f32 %v5901_v27, %v5900_v50  ;;  %v6176_v31 = vrot.slane %v6175_v13, 2 }
 0x946   : > { %v6612_v46 = vrot.slane %v6611_v36, 1  ;;  %v6456_v59 = vadd.f32 %v6455_v43, %v6454_v20  ;;  %v6050_v4 = vrot.slane %v6049_v5, 1  ;;  %v5896_v20 = vrot.slane %v5895_v30, 2 }
 0x947   : > { %v6453_v45 = vadd.f32 %v6452_v29, %v6451_v18  ;;  %v6616_v48 = vadd.f32 %v6615_v16, %v6614_v33  ;;  %v5903_v28 = vrot.slane %v5902_v62, 2  ;;  %v5891_v18 = vrot.slane %v12775_v44, 1 }
 0x948   : > { %v6613_v49 = vadd.f32 %v6612_v46, %v6611_v36  ;;  %v6457_v6 = vrot.slane %v6456_v59, 2  ;;  %v6177_v23 = vmax.f32 %v6175_v13, %v6176_v31  ;;  %v6037_v36 = vadd.f32 %v6036_v15, %v6035_v2 }
 0x949   : > { %v6617_v1 = vrot.slane %v6616_v48, 2  ;;  %v5904_v11 = vadd.f32 %v5903_v28, %v5902_v62  ;;  %v6042_v43 = vadd.f32 %v6041_v42, %v6040_v39  ;;  %v6291_v33 = vmax.f32 %v6289_v0, %v6290_v17  ;;  %v13963_v62 = vld [vmem:[#allocation17_spill] sm:$0xff]  ;;  %v5553_v42 = vpop.permute.xlu0 %5552 }
 0x94a   : > { %v6659_v3 = vadd.f32 %v6613_v49, %v6453_v45  ;;  %v6458_v61 = vadd.f32 %v6457_v6, %v6456_v59  ;;  %v6051_v29 = vadd.f32 %v6050_v4, %v6049_v5  ;;  %v6178_v22 = vrot.slane %v6177_v23, 1 }
 0x94b   : > { %v6618_v56 = vadd.f32 %v6617_v1, %v6616_v48  ;;  %v5905_v16 = vrot.slane %v5904_v11, 1  ;;  %v5892_v59 = vadd.f32 %v5891_v18, %v12775_v44  ;;  %v5897_v45 = vadd.f32 %v5896_v20, %v5895_v30 }
 0x94c   : > { %7918 = vlog2.f32 %v6659_v3  ;;  %v6459_v9 = vrot.slane %v6458_v61, 1  ;;  %v6179_v57 = vmax.f32 %v6177_v23, %v6178_v22  ;;  %v6043_v49 = vrot.slane %v6042_v43, 1 }
 0x94d   : > { %v6619_v8 = vrot.slane %v6618_v56, 1  ;;  %v5906_v38 = vadd.f32 %v5905_v16, %v5904_v11  ;;  %v6083_v6 = vadd.f32 %v6037_v36, %v5892_v59  ;;  %v5898_v0 = vrot.slane %v5897_v45, 1  ;;  %v13967_v59 = vld [vmem:[#allocation38_spill] sm:$0xff] }
 0x94e   : > { %v6460_v34 = vadd.f32 %v6459_v9, %v6458_v61  ;;  %v12805_v39 = vmax.f32 %v6179_v57, %v6291_v33  ;;  %v6044_v55 = vadd.f32 %v6043_v49, %v6042_v43  ;;  %vm13964_vm1 = vnez %v13963_v62 }
 0x94f   : > { %v6620_v10 = vadd.f32 %v6619_v8, %v6618_v56  ;;  %v12803_v2 = vadd.f32 %v6051_v29, %v5906_v38  ;;  %v5391_v56 = vpop.permute.xlu2 %5390 }
 0x950   : > { %v6341_v1 = vsub.f32 %v12789_v41, %v12805_v39  ;;  %v6501_v44 = vsub.f32 %v12727_v32, %v12805_v39  ;;  %v5389_v41 = vpop.permute.xlu1 %5388  ;;  %v5343_v32 = vsel %vm13964_vm1, 0.0, %v12724_v24  ;;  %v13965_v24 = vld [vmem:[#allocation5_spill] sm:$0xff] }
 0x951   : > { %v6660_v14 = vadd.f32 %v6620_v10, %v6460_v34  ;;  %v5423_v13 = vadd.f32 %v5389_v41, %v5343_v32  ;;  %vm13966_vm0 = vnez %v13965_v24  ;;  %v13973_v32 = vld [vmem:[#allocation3_spill] sm:$0xff] }
 0x952   : > { %v7919_v46 = vpop.eup %7918  ;;  %v6369_v60 = vmul.f32 1.442695, %v6341_v1  ;;  %v6529_v30 = vmul.f32 1.442695, %v6501_v44  ;;  %v5344_v34 = vsel %vm13966_vm0, 0.0, %v12670_v52  ;;  %v13968_v52 = vrot.slane %v13967_v59, 1 }
 0x953   : > { %v6686_v48 = vmul.f32 0.6931472, %v7919_v46  ;;  %7920 = vlog2.f32 %v6660_v14  ;;  %v5503_v4 = vadd.f32 %v12629_v21, %v5423_v13  ;;  %v5424_v11 = vadd.f32 %v5391_v56, %v5344_v34  ;;  %v5471_v14 = vpop.permute.xlu0 %5470  ;;  %v12849_v1 = vld [vmem:[%s12959_s16] ss:$0 sm:$0xff] }
 0x954   : > { %7922 = vpow2.f32 %v6369_v60  ;;  %vm13974_vm13 = vnez %v13973_v32 }
 0x955   : > { %v6707_v50 = vadd.f32 %v6686_v48, %v12747_v12  ;;  %v5899_v12 = vadd.f32 %v5898_v0, %v5897_v45  ;;  %7924 = vpow2.f32 %v6529_v30  ;;  %v12823_v18 = vadd.f32 %v12469_v53, %v5503_v4 }
 0x956   : > { %v5504_v16 = vadd.f32 %v5471_v14, %v5424_v11 }
 0x957   : > { %v6723_v35 = vsub.f32 %v6707_v50, %v6083_v6  ;;  %v6084_v3 = vadd.f32 %v6044_v55, %v5899_v12  ;;  %5732 = vst.msk [vmem:[%s11901_s3 + $0x68] sm:$0xff] %vm5718_vm15, %v12823_v18  ;;  %v5557_v36 = vpop.permute.xlu2 %5556 }
 0x958   : > { %v5621_v21 = vpop.permute.xlu1 %5620  ;;  %v5589_v46 = vadd.f32 %v5557_v36, %v12012_v40  ;;  %v12839_v49 = vadd.f32 %v12469_v53, %v5504_v16  ;;  %v6180_v40 = vsel %vm5718_vm15, %v12823_v18, -inf }
 0x959   : > { %v7921_v27 = vpop.eup %7920  ;;  %6740 = vst.msk [vmem:[%s12244_s20 + $0xa] sm:$0x1] %vm6729_vm5, %v6723_v35  ;;  %v5653_v33 = vrot.slane %v5621_v21, 1  ;;  %v6181_v60 = vrot.slane %v6180_v40, 4 }
 0x95a   : > { %v6688_v15 = vmul.f32 0.6931472, %v7921_v27  ;;  %v7923_v9 = vpop.eup %7922  ;;  %5733 = vst.msk [vmem:[%s11901_s3 + $0x70] sm:$0xff] %vm5718_vm15, %v12839_v49  ;;  %v6187_v55 = vsel %vm5718_vm15, %v12839_v49, -inf }
 0x95b   : > { %v7925_v17 = vpop.eup %7924  ;;  %v6461_v8 = vsel %vm5718_vm15, %v7923_v9, 0.0  ;;  %v5669_v45 = vsel %vm13953_vm10, %v5653_v33, %v13968_v52  ;;  %v5619_v27 = vpop.permute.xlu0 %5618  ;;  %v6182_v41 = vmax.f32 %v6180_v40, %v6181_v60  ;;  %v13975_v9 = vld [vmem:[#allocation13_spill] sm:$0xff] }
 0x95c   : > { %v6708_v61 = vadd.f32 %v6688_v15, %v12757_v47  ;;  %v6462_v47 = vrot.slane %v6461_v8, 4  ;;  %v6621_v28 = vsel %vm5718_vm15, %v7925_v17, 0.0  ;;  %v5685_v57 = vsel %vm13859_vm6, 0.0, %v5669_v45  ;;  %vm13971_vm6 = vmmov %vm13953_vm10 }
 0x95d   : > { %v6622_v31 = vrot.slane %v6621_v28, 4  ;;  %v5701_v50 = vadd.f32 %v5685_v57, %v5589_v46  ;;  %v5652_v12 = vrot.slane %v5619_v27, 1  ;;  %v6188_v15 = vrot.slane %v6187_v55, 4  ;;  %vm13972_vm12 = vmmov %vm13971_vm6 }
 0x95e   : > { %v6724_v5 = vsub.f32 %v6708_v61, %v6084_v3  ;;  %v6463_v20 = vadd.f32 %v6462_v47, %v6461_v8  ;;  %v13970_v3 = vld [vmem:[#allocation8_spill] sm:$0xff]  ;;  %vm13976_vm2 = vnez %v13975_v9 }
 0x95f   : > { %v6623_v10 = vadd.f32 %v6622_v31, %v6621_v28  ;;  %v12852_v44 = vadd.f32 %v12849_v1, %v5701_v50  ;;  %v5587_v61 = vadd.f32 %v5553_v42, %v13970_v3  ;;  %v5654_v56 = vsel %vm13971_vm6, %v5652_v12, %v5653_v33  ;;  %v7848_v50 = vld [vmem:[%s11666_s27 + $0xe] ss:$0 sm:$0xff] }
 0x960   : > { %6741 = vst.msk [vmem:[%s12244_s20 + $0xb] sm:$0x1] %vm6729_vm5, %v6724_v5  ;;  %v6464_v23 = vrot.slane %v6463_v20, 2  ;;  %v5555_v30 = vpop.permute.xlu1 %5554  ;;  %v5655_v5 = vsel %vm13972_vm12, %v5651_v25, %v5652_v12  ;;  %v5684_v17 = vsel %vm13976_vm2, 0.0, %v5654_v56  ;;  %v6189_v42 = vmax.f32 %v6187_v55, %v6188_v15 }
 0x961   : > { %v6624_v43 = vrot.slane %v6623_v10, 2  ;;  %5750 = vst.msk [vmem:[%s11875_s30 + $0x78] sm:$0xff] %vm5718_vm15, %v12852_v44  ;;  %v5588_v62 = vadd.f32 %v5555_v30, %v11953_v26  ;;  %v5683_v13 = vsel %vm13974_vm13, 0.0, %v5655_v5  ;;  %v6183_v31 = vrot.slane %v6182_v41, 2 }
 0x962   : > { %v6465_v29 = vadd.f32 %v6464_v23, %v6463_v20  ;;  %v5699_v8 = vadd.f32 %v5683_v13, %v5587_v61  ;;  %v6190_v24 = vrot.slane %v6189_v42, 2  ;;  %vm5798_vm7 = vcmp.eq.s32.totalorder %v11843_v19, %v7848_v50 }
 0x963   : > { %v6625_v22 = vadd.f32 %v6624_v43, %v6623_v10  ;;  %v5700_v4 = vadd.f32 %v5684_v17, %v5588_v62  ;;  %v6184_v23 = vmax.f32 %v6182_v41, %v6183_v31  ;;  %vm5943_vm9 = vcmp.eq.s32.totalorder %v11865_v63, %v7848_v50  ;;  %v5393_v13 = vpop.permute.xlu0 %5392 }
 0x964   : > { %v6466_v48 = vrot.slane %v6465_v29, 1  ;;  %v5715_v54 = vadd.f32 %v12849_v1, %v5699_v8  ;;  %v6191_v43 = vmax.f32 %v6189_v42, %v6190_v24  ;;  %v5814_v61 = vsel %vm5798_vm7, %v12839_v49, 0.0 }
 0x965   : > { %v6626_v6 = vrot.slane %v6625_v22, 1  ;;  %v5716_v25 = vadd.f32 %v12849_v1, %v5700_v4  ;;  %v5914_v32 = vsel %vm5718_vm15, %v5814_v61, 0.0 }
 0x966   : > { %v6467_v0 = vadd.f32 %v6466_v48, %v6465_v29  ;;  %5748 = vst.msk [vmem:[%s11875_s30 + $0x68] sm:$0xff] %vm5718_vm15, %v5715_v54  ;;  %v6292_v26 = vsel %vm5718_vm15, %v5715_v54, -inf  ;;  %v6185_v29 = vrot.slane %v6184_v23, 1 }
 0x967   : > { %v6627_v35 = vadd.f32 %v6626_v6, %v6625_v22  ;;  %5749 = vst.msk [vmem:[%s11875_s30 + $0x70] sm:$0xff] %vm5718_vm15, %v5716_v25  ;;  %v6293_v34 = vrot.slane %v6292_v26, 4  ;;  %v6299_v10 = vsel %vm5718_vm15, %v5716_v25, -inf  ;;  %v6192_v22 = vrot.slane %v6191_v43, 1  ;;  %v7847_v6 = vld [vmem:[%s11666_s27 + $0xd] ss:$0 sm:$0xff] }
 0x968   : > { %v6300_v21 = vrot.slane %v6299_v10, 4  ;;  %v6186_v52 = vmax.f32 %v6184_v23, %v6185_v29  ;;  %vm5942_vm11 = vcmp.eq.s32.totalorder %v11865_v63, %v7847_v6  ;;  %vm5797_vm3 = vcmp.eq.s32.totalorder %v11843_v19, %v7847_v6 }
 0x969   : > { %v6661_v53 = vadd.f32 %v6627_v35, %v6467_v0  ;;  %v6294_v36 = vmax.f32 %v6292_v26, %v6293_v34  ;;  %v5958_v15 = vsel %vm5942_vm11, %v5715_v54, 0.0  ;;  %v5813_v3 = vsel %vm5797_vm3, %v12823_v18, 0.0 }
 0x96a   : > { %v6301_v14 = vmax.f32 %v6299_v10, %v6300_v21  ;;  %v5959_v56 = vsel %vm5943_vm9, %v5716_v25, 0.0  ;;  %v6052_v5 = vsel %vm5718_vm15, %v5958_v15, 0.0  ;;  %v5907_v41 = vsel %vm5718_vm15, %v5813_v3, 0.0 }
 0x96b   : > { %7926 = vlog2.f32 %v6661_v53  ;;  %v6295_v33 = vrot.slane %v6294_v36, 2  ;;  %v6053_v17 = vrot.slane %v6052_v5, 4  ;;  %v6059_v8 = vsel %vm5718_vm15, %v5959_v56, 0.0 }
 0x96c   : > { %v6302_v16 = vrot.slane %v6301_v14, 2  ;;  %v5908_v4 = vrot.slane %v5907_v41, 4  ;;  %v5915_v26 = vrot.slane %v5914_v32, 4  ;;  %v6060_v34 = vrot.slane %v6059_v8, 4 }
 0x96e   : > { %v6303_v59 = vmax.f32 %v6301_v14, %v6302_v16  ;;  %v5909_v14 = vadd.f32 %v5908_v4, %v5907_v41 }
 0x970   : > { %v6304_v48 = vrot.slane %v6303_v59, 1 }
 0x971   : > { %v7927_v47 = vpop.eup %7926 }
 0x972   : > { %v6690_v28 = vmul.f32 0.6931472, %v7927_v47  ;;  %v6305_v38 = vmax.f32 %v6303_v59, %v6304_v48 }
 0x974   : > { %v6709_v20 = vadd.f32 %v6690_v28, %v12805_v39  ;;  %v6296_v39 = vmax.f32 %v6294_v36, %v6295_v33  ;;  %v6054_v36 = vadd.f32 %v6053_v17, %v6052_v5 }
 0x976   : > { %v6725_v11 = vsub.f32 %v6709_v20, %v12803_v2  ;;  %v6297_v46 = vrot.slane %v6296_v39, 1  ;;  %v6193_v2 = vmax.f32 %v6191_v43, %v6192_v22  ;;  %v5916_v22 = vadd.f32 %v5915_v26, %v5914_v32 }
 0x977   : > { %v6055_v48 = vrot.slane %v6054_v36, 2 }
 0x978   : > { %6742 = vst.msk [vmem:[%s12244_s20 + $0xc] sm:$0x1] %vm6729_vm5, %v6725_v11  ;;  %v6298_v45 = vmax.f32 %v6296_v39, %v6297_v46  ;;  %v12887_v0 = vmax.f32 %v6193_v2, %v6305_v38  ;;  %v6061_v46 = vadd.f32 %v6060_v34, %v6059_v8  ;;  %v5917_v3 = vrot.slane %v5916_v22, 2 }
 0x979   : > { %v6056_v61 = vadd.f32 %v6055_v48, %v6054_v36 }
 0x97a   : > { %v12883_v57 = vmax.f32 %v6186_v52, %v6298_v45  ;;  %v6343_v53 = vsub.f32 %v12839_v49, %v12887_v0  ;;  %v6503_v27 = vsub.f32 %v5716_v25, %v12887_v0  ;;  %v6306_v25 = vsel %vm5718_vm15, %v12852_v44, -inf  ;;  %v5473_v45 = vpop.permute.xlu0 %5472 }
 0x97b   : > { %v6307_v7 = vrot.slane %v6306_v25, 4 }
 0x97c   : > { %v6342_v35 = vsub.f32 %v12823_v18, %v12883_v57  ;;  %v6502_v40 = vsub.f32 %v5715_v54, %v12883_v57  ;;  %v6373_v30 = vmul.f32 1.442695, %v6343_v53  ;;  %v6533_v12 = vmul.f32 1.442695, %v6503_v27 }
 0x97d   : > { %v13977_v54 = vrot.slane %v12021_v58, 7  ;;  %v6308_v50 = vmax.f32 %v6306_v25, %v6307_v7  ;;  %v5910_v53 = vrot.slane %v5909_v14, 2 }
 0x97e   : > { %v6371_v55 = vmul.f32 1.442695, %v6342_v35  ;;  %v6531_v60 = vmul.f32 1.442695, %v6502_v40 }
 0x97f   : > { %v5314_v28 = vsel %vm13978_vm8, %v5312_v37, %v13977_v54  ;;  %v13979_v37 = vld [vmem:[#allocation31_spill] sm:$0xff]  ;;  %v6309_v41 = vrot.slane %v6308_v50, 2 }
 0x980   : > { %7928 = vpow2.f32 %v6371_v55  ;;  %vm13980_vm4 = vnez %v13979_v37 }
 0x981   : > { %7930 = vpow2.f32 %v6531_v60  ;;  %v5345_v33 = vsel %vm13980_vm4, 0.0, %v5314_v28 }
 0x982   : > { %7932 = vpow2.f32 %v6373_v30  ;;  %v5425_v16 = vadd.f32 %v5393_v13, %v5345_v33  ;;  %v6062_v30 = vrot.slane %v6061_v46, 2  ;;  %v5911_v13 = vadd.f32 %v5910_v53, %v5909_v14 }
 0x983   : > { %7934 = vpow2.f32 %v6533_v12 }
 0x984   : > { %v5505_v6 = vadd.f32 %v5473_v45, %v5425_v16  ;;  %v6063_v8 = vadd.f32 %v6062_v30, %v6061_v46  ;;  %v5912_v54 = vrot.slane %v5911_v13, 1 }
 0x986   : > { %v7929_v62 = vpop.eup %7928  ;;  %v5525_v60 = vadd.f32 %v12849_v1, %v5505_v6  ;;  %v6057_v1 = vrot.slane %v6056_v61, 1  ;;  %v6064_v28 = vrot.slane %v6063_v8, 1 }
 0x987   : > { %v7931_v9 = vpop.eup %7930  ;;  %v6468_v42 = vsel %vm5718_vm15, %v7929_v62, 0.0 }
 0x988   : > { %v7933_v18 = vpop.eup %7932  ;;  %v6469_v47 = vrot.slane %v6468_v42, 4  ;;  %v6628_v49 = vsel %vm5718_vm15, %v7931_v9, 0.0  ;;  %5734 = vst.msk [vmem:[%s11901_s3 + $0x78] sm:$0xff] %vm5718_vm15, %v5525_v60  ;;  %v6194_v32 = vsel %vm5718_vm15, %v5525_v60, -inf  ;;  %v6058_v26 = vadd.f32 %v6057_v1, %v6056_v61 }
 0x989   : > { %v7935_v31 = vpop.eup %7934  ;;  %v6475_v20 = vsel %vm5718_vm15, %v7933_v18, 0.0  ;;  %v6629_v24 = vrot.slane %v6628_v49, 4  ;;  %v5918_v18 = vadd.f32 %v5917_v3, %v5916_v22 }
 0x98a   : > { %v6470_v10 = vadd.f32 %v6469_v47, %v6468_v42  ;;  %v6476_v11 = vrot.slane %v6475_v20, 4  ;;  %v6635_v23 = vsel %vm5718_vm15, %v7935_v31, 0.0  ;;  %v6195_v42 = vrot.slane %v6194_v32, 4 }
 0x98b   : > { %v6630_v58 = vadd.f32 %v6629_v24, %v6628_v49  ;;  %v6636_v21 = vrot.slane %v6635_v23, 4  ;;  %v6310_v47 = vmax.f32 %v6308_v50, %v6309_v41  ;;  %v5919_v25 = vrot.slane %v5918_v18, 1 }
 0x98c   : > { %v6471_v43 = vrot.slane %v6470_v10, 2  ;;  %v6477_v51 = vadd.f32 %v6476_v11, %v6475_v20  ;;  %v6196_v49 = vmax.f32 %v6194_v32, %v6195_v42  ;;  %v6065_v11 = vadd.f32 %v6064_v28, %v6063_v8 }
 0x98d   : > { %v6631_v29 = vrot.slane %v6630_v58, 2  ;;  %v6637_v39 = vadd.f32 %v6636_v21, %v6635_v23  ;;  %v6311_v20 = vrot.slane %v6310_v47, 1  ;;  %v5920_v21 = vadd.f32 %v5919_v25, %v5918_v18 }
 0x98e   : > { %v6472_v59 = vadd.f32 %v6471_v43, %v6470_v10  ;;  %v6478_v52 = vrot.slane %v6477_v51, 2  ;;  %v6197_v31 = vrot.slane %v6196_v49, 2  ;;  %v5913_v10 = vadd.f32 %v5912_v54, %v5911_v13 }
 0x98f   : > { %v6632_v2 = vadd.f32 %v6631_v29, %v6630_v58  ;;  %v6638_v38 = vrot.slane %v6637_v39, 2  ;;  %v6312_v37 = vmax.f32 %v6310_v47, %v6311_v20  ;;  %v6087_v14 = vadd.f32 %v6065_v11, %v5920_v21 }
 0x990   : > { %v6473_v35 = vrot.slane %v6472_v59, 1  ;;  %v6479_v40 = vadd.f32 %v6478_v52, %v6477_v51  ;;  %v6198_v24 = vmax.f32 %v6196_v49, %v6197_v31  ;;  %v6086_v7 = vadd.f32 %v6058_v26, %v5913_v10  ;;  %v7849_v52 = vld [vmem:[%s11666_s27 + $0xf] ss:$0 sm:$0xff] }
 0x991   : > { %v6633_v55 = vrot.slane %v6632_v2, 1  ;;  %v6639_v27 = vadd.f32 %v6638_v38, %v6637_v39  ;;  %vm5799_vm14 = vcmp.eq.s32.totalorder %v11843_v19, %v7849_v52  ;;  %vm5944_vm1 = vcmp.eq.s32.totalorder %v11865_v63, %v7849_v52 }
 0x992   : > { %v6474_v12 = vadd.f32 %v6473_v35, %v6472_v59  ;;  %v6480_v15 = vrot.slane %v6479_v40, 1  ;;  %v6199_v36 = vrot.slane %v6198_v24, 1 }
 0x993   : > { %v6634_v56 = vadd.f32 %v6633_v55, %v6632_v2  ;;  %v6640_v5 = vrot.slane %v6639_v27, 1 }
 0x994   : > { %v6481_v62 = vadd.f32 %v6480_v15, %v6479_v40  ;;  %v6200_v33 = vmax.f32 %v6198_v24, %v6199_v36 }
 0x995   : > { %v6641_v9 = vadd.f32 %v6640_v5, %v6639_v27  ;;  %v6662_v17 = vadd.f32 %v6634_v56, %v6474_v12 }
 0x996   : > { %v6328_v16 = vmax.f32 %v6200_v33, %v6312_v37 }
 0x997   : > { %v6663_v4 = vadd.f32 %v6641_v9, %v6481_v62  ;;  %7936 = vlog2.f32 %v6662_v17 }
 0x998   : > { %v6344_v46 = vsub.f32 %v5525_v60, %v6328_v16  ;;  %v6504_v59 = vsub.f32 %v12852_v44, %v6328_v16 }
 0x999   : > { %7938 = vlog2.f32 %v6663_v4 }
 0x99a   : > { %v6375_v45 = vmul.f32 1.442695, %v6344_v46  ;;  %v6535_v48 = vmul.f32 1.442695, %v6504_v59 }
 0x99c   : > { %7940 = vpow2.f32 %v6375_v45 }
 0x99d   : > { %v7937_v34 = vpop.eup %7936  ;;  %7942 = vpow2.f32 %v6535_v48 }
 0x99e   : > { %v6692_v23 = vmul.f32 0.6931472, %v7937_v34 }
 0x99f   : > { %v7939_v58 = vpop.eup %7938 }
 0x9a0   : > { %v6694_v43 = vmul.f32 0.6931472, %v7939_v58  ;;  %v6710_v51 = vadd.f32 %v6692_v23, %v12883_v57  ;;  %v5815_v57 = vsel %vm5799_vm14, %v5525_v60, 0.0 }
 0x9a1   : > { %v5921_v2 = vsel %vm5718_vm15, %v5815_v57, 0.0 }
 0x9a2   : > { %v6711_v29 = vadd.f32 %v6694_v43, %v12887_v0  ;;  %v6726_v39 = vsub.f32 %v6710_v51, %v6086_v7  ;;  %v5960_v0 = vsel %vm5944_vm1, %v12852_v44, 0.0  ;;  %v7941_v38 = vpop.eup %7940  ;;  %v5922_v40 = vrot.slane %v5921_v2, 4 }
 0x9a3   : > { %v7943_v6 = vpop.eup %7942  ;;  %v6066_v50 = vsel %vm5718_vm15, %v5960_v0, 0.0  ;;  %v6482_v35 = vsel %vm5718_vm15, %v7941_v38, 0.0 }
 0x9a4   : > { %v6727_v22 = vsub.f32 %v6711_v29, %v6087_v14  ;;  %6743 = vst.msk [vmem:[%s12244_s20 + $0xd] sm:$0x1] %vm6729_vm5, %v6726_v39  ;;  %v6483_v53 = vrot.slane %v6482_v35, 4  ;;  %v6642_v55 = vsel %vm5718_vm15, %v7943_v6, 0.0  ;;  %v6067_v27 = vrot.slane %v6066_v50, 4 }
 0x9a5   : > { %v6643_v19 = vrot.slane %v6642_v55, 4  ;;  %v5923_v12 = vadd.f32 %v5922_v40, %v5921_v2 }
 0x9a6   : > { %6744 = vst.msk [vmem:[%s12244_s20 + $0xe] sm:$0x1] %vm6729_vm5, %v6727_v22  ;;  %v6484_v30 = vadd.f32 %v6483_v53, %v6482_v35  ;;  %v6068_v44 = vadd.f32 %v6067_v27, %v6066_v50 }
 0x9a7   : > { %v6644_v63 = vadd.f32 %v6643_v19, %v6642_v55  ;;  %v5924_v56 = vrot.slane %v5923_v12, 2 }
 0x9a8   : > { %v6485_v60 = vrot.slane %v6484_v30, 2  ;;  %v6069_v62 = vrot.slane %v6068_v44, 2 }
 0x9a9   : > { %v6645_v15 = vrot.slane %v6644_v63, 2  ;;  %v5925_v9 = vadd.f32 %v5924_v56, %v5923_v12 }
 0x9aa   : > { %v6486_v3 = vadd.f32 %v6485_v60, %v6484_v30  ;;  %v6070_v8 = vadd.f32 %v6069_v62, %v6068_v44 }
 0x9ab   : > { %v6646_v61 = vadd.f32 %v6645_v15, %v6644_v63  ;;  %v5926_v42 = vrot.slane %v5925_v9, 1 }
 0x9ac   : > { %v6487_v5 = vrot.slane %v6486_v3, 1  ;;  %v6071_v18 = vrot.slane %v6070_v8, 1 }
 0x9ad   : > { %v6647_v41 = vrot.slane %v6646_v61, 1  ;;  %v5927_v1 = vadd.f32 %v5926_v42, %v5925_v9 }
 0x9ae   : > { %v6488_v32 = vadd.f32 %v6487_v5, %v6486_v3  ;;  %v6072_v47 = vadd.f32 %v6071_v18, %v6070_v8 }
 0x9af   : > { %v6648_v13 = vadd.f32 %v6647_v41, %v6646_v61 }
 0x9b0   : > { %v6088_v54 = vadd.f32 %v6072_v47, %v5927_v1 }
 0x9b1   : > { %v6664_v17 = vadd.f32 %v6648_v13, %v6488_v32 }
 0x9b3   : > { %7944 = vlog2.f32 %v6664_v17 }
 0x9b9   : > { %v7945_v4 = vpop.eup %7944 }
 0x9ba   : > { %v6696_v49 = vmul.f32 0.6931472, %v7945_v4 }
 0x9bc   : > { %v6712_v28 = vadd.f32 %v6696_v49, %v6328_v16 }
 0x9be   : > { %v6728_v31 = vsub.f32 %v6712_v28, %v6088_v54 }
 0x9c0   : > { %6745 = vst.msk [vmem:[%s12244_s20 + $0xf] sm:$0x1] %vm6729_vm5, %v6728_v31 }
 0x9c1 PF: > { %s30_s0 = sadd.s32 1, %s7954_s0  }
 0x9c2   : > { %p27_p4 = scmp.ge.s32.totalorder %s30_s0, 4  }
 0x9c4   :  { %29 = sbr.rel (!%p27_p4) target bundleno = 5 (0x5), region = 148 }

</bundles_post_ra>
